<compile_context>
chip_gen: v6e
topology: v6e:2x2x1
jax: 0.10.0
libtpu: 0.0.40
codegen_flags: <defaults>
</compile_context>

<pallas_src>
import functools

import jax
import jax.numpy as jnp
from jax.experimental import pallas as pl
from jax.experimental.pallas import tpu as pltpu


def _round_up(x, m):
    return (x + m - 1) // m * m


# ----------------------------------------------------------------------------
# Pallas kernel 1: tiled conv-as-matmul (+ bias), bf16 operands, f32 accumulate
# ----------------------------------------------------------------------------
def _matmul_bias_kernel(p_ref, w_ref, b_ref, o_ref, acc_ref):
    @pl.when(pl.program_id(2) == 0)
    def _init():
        acc_ref[...] = jnp.zeros_like(acc_ref)

    acc_ref[...] += jnp.dot(p_ref[...], w_ref[...],
                            preferred_element_type=jnp.float32)

    @pl.when(pl.program_id(2) == pl.num_programs(2) - 1)
    def _finalize():
        o_ref[...] = acc_ref[...] + b_ref[...]


def conv_matmul(patches, w_mat, bias):
    """patches (M, K) bf16 @ w_mat (K, Cp) bf16 + bias (Cp,) f32 -> (Mpad, Cp) f32."""
    M, K = patches.shape
    Cp = w_mat.shape[1]

    # Tile sizes: MXU-friendly, VMEM-bounded (fits easily in v7x 64 MiB).
    tm = 256 if M >= 256 else _round_up(M, 8)
    Mpad = _round_up(M, tm)
    if Mpad != M:
        patches = jnp.pad(patches, ((0, Mpad - M), (0, 0)))
    tn = min(256, Cp)                       # Cp is a multiple of 128
    tk = 512 if K % 512 == 0 else K         # all EncoderMG K's hit one branch

    grid = (Mpad // tm, Cp // tn, K // tk)
    cost = pl.CostEstimate(
        flops=2 * Mpad * K * Cp,
        transcendentals=0,
        bytes_accessed=Mpad * K * 2 + K * Cp * 2 + Mpad * Cp * 4 + Cp * 4,
    )

    return pl.pallas_call(
        _matmul_bias_kernel,
        out_shape=jax.ShapeDtypeStruct((Mpad, Cp), jnp.float32),
        grid_spec=pltpu.PrefetchScalarGridSpec(
            num_scalar_prefetch=0,
            grid=grid,
            in_specs=[
                pl.BlockSpec((tm, tk), lambda i, j, k: (i, k)),
                pl.BlockSpec((tk, tn), lambda i, j, k: (k, j)),
                pl.BlockSpec((1, tn), lambda i, j, k: (0, j)),
            ],
            out_specs=pl.BlockSpec((tm, tn), lambda i, j, k: (i, j)),
            scratch_shapes=[pltpu.VMEM((tm, tn), jnp.float32)],
        ),
        compiler_params=pltpu.CompilerParams(
            dimension_semantics=("parallel", "parallel", "arbitrary")),
        cost_estimate=cost,
    )(patches, w_mat, bias.reshape(1, Cp))


# ----------------------------------------------------------------------------
# Pallas kernel 2: fused GroupNorm + ReLU (gridded over batch, MXU reductions)
# ----------------------------------------------------------------------------
def _gn_relu_kernel(x_ref, gmap_ref, gmapT_ref, gamma_ref, beta_ref, o_ref, *, eps):
    x = x_ref[...]                                      # (HW, C)
    hw = x.shape[0]

    # Spatial sums on the MXU (frees VALU/XLU slots); tiny-HW tail on the VPU.
    if hw >= 8:
        ones = jnp.ones((1, hw), jnp.float32)
        s1 = jnp.dot(ones, x, preferred_element_type=jnp.float32)        # (1, C)
        s2 = jnp.dot(ones, x * x, preferred_element_type=jnp.float32)    # (1, C)
    else:
        s1 = jnp.sum(x, axis=0, keepdims=True)
        s2 = jnp.sum(x * x, axis=0, keepdims=True)

    # gmap is the one-hot channel->group map already scaled by 1/(HW*cg).
    mean_g = jnp.dot(s1, gmap_ref[...], preferred_element_type=jnp.float32)  # (1, G)
    ex2_g = jnp.dot(s2, gmap_ref[...], preferred_element_type=jnp.float32)   # (1, G)
    var_g = jnp.maximum(ex2_g - mean_g * mean_g, 0.0)   # biased var, clamp cancellation

    mean_c = jnp.dot(mean_g, gmapT_ref[...], preferred_element_type=jnp.float32)  # (1, C)
    var_c = jnp.dot(var_g, gmapT_ref[...], preferred_element_type=jnp.float32)    # (1, C)
    inv_c = jax.lax.rsqrt(var_c + eps)

    scale = inv_c * gamma_ref[...]                      # (1, C)
    shift = beta_ref[...] - mean_c * scale
    o_ref[...] = jnp.maximum(x * scale + shift, 0.0)


def group_norm_relu(x_nlc, gamma, beta, *, group_size, eps=1e-5):
    # x_nlc: (N, HW, Cp) f32, Cp multiple of 128; group_size divides Cp.
    N, HW, Cp = x_nlc.shape
    cg = group_size
    Gp = Cp // cg
    ch = jnp.arange(Cp)
    gmap = jnp.zeros((Cp, Gp), jnp.float32).at[ch, ch // cg].set(1.0 / (HW * cg))
    gmapT = jnp.zeros((Gp, Cp), jnp.float32).at[ch // cg, ch].set(1.0)

    # TODO(synk): for very large HW (high-res inputs) tile the spatial axis with
    # a two-pass stats epilogue instead of keeping the whole (HW, Cp) slab resident.
    kern = functools.partial(_gn_relu_kernel, eps=eps)
    cost = pl.CostEstimate(
        flops=N * HW * Cp * 8,
        transcendentals=N * Cp,
        bytes_accessed=2 * N * HW * Cp * 4,
    )
    return pl.pallas_call(
        kern,
        out_shape=jax.ShapeDtypeStruct((N, HW, Cp), jnp.float32),
        grid_spec=pltpu.PrefetchScalarGridSpec(
            num_scalar_prefetch=0,
            grid=(N,),
            in_specs=[
                pl.BlockSpec((None, HW, Cp), lambda n: (n, 0, 0)),
                pl.BlockSpec((Cp, Gp), lambda n: (0, 0)),
                pl.BlockSpec((Gp, Cp), lambda n: (0, 0)),
                pl.BlockSpec((1, Cp), lambda n: (0, 0)),
                pl.BlockSpec((1, Cp), lambda n: (0, 0)),
            ],
            out_specs=pl.BlockSpec((None, HW, Cp), lambda n: (n, 0, 0)),
        ),
        compiler_params=pltpu.CompilerParams(dimension_semantics=("parallel",)),
        cost_estimate=cost,
    )(x_nlc, gmap, gmapT, gamma.reshape(1, Cp), beta.reshape(1, Cp))


# ----------------------------------------------------------------------------
# Plain-JAX glue: channels-last padding, im2col, layer composition
# ----------------------------------------------------------------------------
def _im2col_nhwc(xp, kh, kw, stride):
    # xp: (N, Hp, Wp, C) already padded, bf16.
    # TODO(synk): replace host-side im2col with in-kernel halo DMA + per-(kh,kw)
    # shifted matmuls to remove the KH*KW x duplicated HBM round trip.
    N, Hp, Wp, C = xp.shape
    OH = (Hp - kh) // stride + 1
    OW = (Wp - kw) // stride + 1
    cols = []
    for i in range(kh):
        for j in range(kw):
            cols.append(xp[:, i:i + stride * OH:stride, j:j + stride * OW:stride, :])
    p = jnp.stack(cols, axis=3)                     # (N, OH, OW, KH*KW, C)
    return p.reshape(N * OH * OW, kh * kw * C), OH, OW


def conv_gn_relu(x_nhwc, w, b, gamma, beta, *, stride, pad_mode, num_groups):
    # x_nhwc: (N, H, W, Cin); w: (Cout, Cin, KH, KW) PyTorch layout.
    N = x_nhwc.shape[0]
    Cout, Cin, KH, KW = w.shape
    cg = Cout // num_groups
    Cp = _round_up(max(Cout, 128), 128)             # lane-dense padded Cout

    xp = jnp.pad(x_nhwc.astype(jnp.bfloat16),
                 ((0, 0), (1, 1), (1, 1), (0, 0)), mode=pad_mode)
    patches, OH, OW = _im2col_nhwc(xp, KH, KW, stride)        # (M, K) bf16

    # Weight matching patch layout: index = (ki*KW + kj)*Cin + cin.
    w_mat = w.transpose(2, 3, 1, 0).reshape(KH * KW * Cin, Cout)
    if Cp != Cout:
        w_mat = jnp.pad(w_mat, ((0, 0), (0, Cp - Cout)))
        b = jnp.pad(b, (0, Cp - Cout))
        gamma = jnp.pad(gamma, (0, Cp - Cout))
        beta = jnp.pad(beta, (0, Cp - Cout))

    y = conv_matmul(patches, w_mat.astype(jnp.bfloat16), b)   # (Mpad, Cp) f32
    M = N * OH * OW
    y = y[:M].reshape(N, OH * OW, Cp)
    y = group_norm_relu(y, gamma, beta, group_size=cg)        # fused GN + ReLU
    return y[:, :, :Cout].reshape(N, OH, OW, Cout)            # stay NHWC


# ----------------------------------------------------------------------------
# Module definition / parameters
# ----------------------------------------------------------------------------
GROUP_COUNTS = (4, 8, 16, 16, 32, 64)
STRIDES = (2, 2, 2, 2, 2, 1)
# pad1 = ReplicationPad2d(1) -> 'edge'; pad2..pad6 = ZeroPad2d(1) -> 'constant'
PAD_MODES = ("edge", "constant", "constant", "constant", "constant", "constant")


def init_params(key, cascade_level=0):
    cin0 = 3 if cascade_level == 0 else 12
    conv_specs = [
        (cin0, 64, 4),
        (64, 128, 4),
        (128, 256, 4),
        (256, 256, 4),
        (256, 512, 4),
        (512, 1024, 3),
    ]
    params = []
    for ci, co, k in conv_specs:
        key, k1, k2 = jax.random.split(key, 3)
        fan_in = ci * k * k
        w = jax.random.normal(k1, (co, ci, k, k), jnp.float32) / jnp.sqrt(fan_in)
        b = 0.01 * jax.random.normal(k2, (co,), jnp.float32)
        gamma = jnp.ones((co,), jnp.float32)      # GroupNorm affine defaults
        beta = jnp.zeros((co,), jnp.float32)
        params.append(dict(w=w, b=b, gamma=gamma, beta=beta))
    return params


def encoder_mg_forward(x_nchw, params):
    x = jnp.transpose(x_nchw, (0, 2, 3, 1))       # NCHW -> NHWC once
    outs = []
    for p, g, st, pm in zip(params, GROUP_COUNTS, STRIDES, PAD_MODES):
        x = conv_gn_relu(x, p["w"], p["b"], p["gamma"], p["beta"],
                         stride=st, pad_mode=pm, num_groups=g)
        outs.append(x)
    # Convert back to NCHW only at the module boundary (PyTorch interface).
    return tuple(jnp.transpose(o, (0, 3, 1, 2)) for o in outs)


if __name__ == "__main__":
    key = jax.random.PRNGKey(0)
    kx, kp = jax.random.split(key)
    # Small but valid shape: 32x32 input -> spatial 16, 8, 4, 2, 1, 1.
    x = jax.random.normal(kx, (2, 3, 32, 32), jnp.float32)
    params = init_params(kp, cascade_level=0)

    fwd = jax.jit(encoder_mg_forward)
    outs = fwd(x, params)
    outs = jax.block_until_ready(outs)

    expected = [(2, 64, 16, 16), (2, 128, 8, 8), (2, 256, 4, 4),
                (2, 256, 2, 2), (2, 512, 1, 1), (2, 1024, 1, 1)]
    assert [tuple(o.shape) for o in outs] == expected, \
        [tuple(o.shape) for o in outs]
    assert all(bool(jnp.all(jnp.isfinite(o))) for o in outs)
    print("KERNEL_OK")
</pallas_src>

<mosaic_0001>
module attributes {stable_mosaic.version = 11 : i64} {
  func.func @_matmul_bias_kernel(%arg0: i32, %arg1: i32, %arg2: i32, %arg3: memref<256x48xbf16, #tpu.memory_space<vmem>>, %arg4: memref<48x128xbf16, #tpu.memory_space<vmem>>, %arg5: memref<1x128xf32, #tpu.memory_space<vmem>>, %arg6: memref<256x128xf32, #tpu.memory_space<vmem>>, %arg7: memref<256x128xf32, #tpu.memory_space<vmem>>) attributes {dimension_semantics = [#tpu.dimension_semantics<parallel>, #tpu.dimension_semantics<parallel>, #tpu.dimension_semantics<arbitrary>], iteration_bounds = array<i64: 2, 1, 1>, scalar_prefetch = 0 : i64, scratch_operands = 1 : i64, tpu.core_type = #tpu.core_type<tc>, window_params = [{transform_indices = @transform_0, window_bounds = array<i64: 256, 48>}, {transform_indices = @transform_1, window_bounds = array<i64: 48, 128>}, {transform_indices = @transform_2, window_bounds = array<i64: 1, 128>}, {transform_indices = @transform_3, window_bounds = array<i64: 256, 128>}]} {
    %c0_i32 = arith.constant 0 : i32
    %0 = arith.cmpi eq, %arg2, %c0_i32 : i32
    %1 = arith.extui %0 : i1 to i32
    %c0_i32_0 = arith.constant 0 : i32
    %2 = arith.cmpi ne, %1, %c0_i32_0 : i32
    scf.if %2 {
      %cst_10 = arith.constant 0.000000e+00 : f32
      %12 = vector.broadcast %cst_10 : f32 to vector<256x128xf32>
      %c0_11 = arith.constant 0 : index
      %c0_12 = arith.constant 0 : index
      %13 = vector.load %arg7[%c0_11, %c0_12] : memref<256x128xf32, #tpu.memory_space<vmem>>, vector<256x128xf32>
      tpu.vector_store %arg7[%c0_11, %c0_12], %12 {strides = array<i32>} : memref<256x128xf32, #tpu.memory_space<vmem>>, vector<256x128xf32>,
    } else {
    }
    %c0 = arith.constant 0 : index
    %c0_1 = arith.constant 0 : index
    %3 = vector.load %arg7[%c0, %c0_1] : memref<256x128xf32, #tpu.memory_space<vmem>>, vector<256x128xf32>
    %c0_2 = arith.constant 0 : index
    %c0_3 = arith.constant 0 : index
    %4 = vector.load %arg3[%c0_2, %c0_3] : memref<256x48xbf16, #tpu.memory_space<vmem>>, vector<256x48xbf16>
    %c0_4 = arith.constant 0 : index
    %c0_5 = arith.constant 0 : index
    %5 = vector.load %arg4[%c0_4, %c0_5] : memref<48x128xbf16, #tpu.memory_space<vmem>>, vector<48x128xbf16>
    %cst = arith.constant dense<0.000000e+00> : vector<256x128xf32>
    %6 = tpu.matmul %4, %5, %cst {dimension_numbers = #tpu.dot_dimension_numbers<[1], [0], [0], [1], [0, 0, 1, 1], [], []>} : vector<256x48xbf16>, vector<48x128xbf16>, vector<256x128xf32> -> vector<256x128xf32>
    %7 = arith.addf %3, %6 : vector<256x128xf32>
    %c0_6 = arith.constant 0 : index
    %c0_7 = arith.constant 0 : index
    %8 = vector.load %arg7[%c0_6, %c0_7] : memref<256x128xf32, #tpu.memory_space<vmem>>, vector<256x128xf32>
    tpu.vector_store %arg7[%c0_6, %c0_7], %7 {strides = array<i32>} : memref<256x128xf32, #tpu.memory_space<vmem>>, vector<256x128xf32>,
    %c0_i32_8 = arith.constant 0 : i32
    %9 = arith.cmpi eq, %arg2, %c0_i32_8 : i32
    %10 = arith.extui %9 : i1 to i32
    %c0_i32_9 = arith.constant 0 : i32
    %11 = arith.cmpi ne, %10, %c0_i32_9 : i32
    scf.if %11 {
      %c0_10 = arith.constant 0 : index
      %c0_11 = arith.constant 0 : index
      %12 = vector.load %arg7[%c0_10, %c0_11] : memref<256x128xf32, #tpu.memory_space<vmem>>, vector<256x128xf32>
      %c0_12 = arith.constant 0 : index
      %c0_13 = arith.constant 0 : index
      %13 = vector.load %arg5[%c0_12, %c0_13] : memref<1x128xf32, #tpu.memory_space<vmem>>, vector<1x128xf32>
      %14 = vector.broadcast %13 : vector<1x128xf32> to vector<256x128xf32>
      %15 = arith.addf %12, %14 : vector<256x128xf32>
      %c0_14 = arith.constant 0 : index
      %c0_15 = arith.constant 0 : index
      %16 = vector.load %arg6[%c0_14, %c0_15] : memref<256x128xf32, #tpu.memory_space<vmem>>, vector<256x128xf32>
      tpu.vector_store %arg6[%c0_14, %c0_15], %15 {strides = array<i32>} : memref<256x128xf32, #tpu.memory_space<vmem>>, vector<256x128xf32>,
    } else {
    }
    return
  }
  func.func @transform_0(%arg0: i32, %arg1: i32, %arg2: i32) -> (i32, i32) {
    %c0_i32 = arith.constant 0 : i32
    return %arg0, %arg2 : i32, i32
  }
  func.func @transform_1(%arg0: i32, %arg1: i32, %arg2: i32) -> (i32, i32) {
    %c0_i32 = arith.constant 0 : i32
    return %arg2, %arg1 : i32, i32
  }
  func.func @transform_2(%arg0: i32, %arg1: i32, %arg2: i32) -> (i32, i32) {
    %c0_i32 = arith.constant 0 : i32
    %c0_i32_0 = arith.constant 0 : i32
    return %c0_i32, %arg1 : i32, i32
  }
  func.func @transform_3(%arg0: i32, %arg1: i32, %arg2: i32) -> (i32, i32) {
    %c0_i32 = arith.constant 0 : i32
    return %arg0, %arg1 : i32, i32
  }
}

module attributes {stable_mosaic.version = 11 : i64} {
  func.func @_gn_relu_kernel(%arg0: i32, %arg1: memref<1x256x128xf32, #tpu.memory_space<vmem>>, %arg2: memref<128x8xf32, #tpu.memory_space<vmem>>, %arg3: memref<8x128xf32, #tpu.memory_space<vmem>>, %arg4: memref<1x128xf32, #tpu.memory_space<vmem>>, %arg5: memref<1x128xf32, #tpu.memory_space<vmem>>, %arg6: memref<1x256x128xf32, #tpu.memory_space<vmem>>) attributes {dimension_semantics = [#tpu.dimension_semantics<parallel>], iteration_bounds = array<i64: 2>, scalar_prefetch = 0 : i64, scratch_operands = 0 : i64, tpu.core_type = #tpu.core_type<tc>, window_params = [{transform_indices = @transform_0, window_bounds = array<i64: 1, 256, 128>}, {pipeline_mode = #tpu.pipeline_mode<synchronous>, transform_indices = @transform_1, window_bounds = array<i64: 128, 8>}, {pipeline_mode = #tpu.pipeline_mode<synchronous>, transform_indices = @transform_2, window_bounds = array<i64: 8, 128>}, {pipeline_mode = #tpu.pipeline_mode<synchronous>, transform_indices = @transform_3, window_bounds = array<i64: 1, 128>}, {pipeline_mode = #tpu.pipeline_mode<synchronous>, transform_indices = @transform_4, window_bounds = array<i64: 1, 128>}, {transform_indices = @transform_5, window_bounds = array<i64: 1, 256, 128>}]} {
    %c0 = arith.constant 0 : index
    %c0_0 = arith.constant 0 : index
    %c0_1 = arith.constant 0 : index
    %0 = vector.load %arg1[%c0, %c0_0, %c0_1] : memref<1x256x128xf32, #tpu.memory_space<vmem>>, vector<1x256x128xf32>
    %1 = vector.shape_cast %0 : vector<1x256x128xf32> to vector<256x128xf32>
    %cst = arith.constant 1.000000e+00 : f32
    %2 = vector.broadcast %cst : f32 to vector<1x256xf32>
    %cst_2 = arith.constant dense<0.000000e+00> : vector<1x128xf32>
    %3 = tpu.matmul %2, %1, %cst_2 {dimension_numbers = #tpu.dot_dimension_numbers<[1], [0], [0], [1], [0, 0, 1, 1], [], []>} : vector<1x256xf32>, vector<256x128xf32>, vector<1x128xf32> -> vector<1x128xf32>
    %4 = arith.mulf %1, %1 : vector<256x128xf32>
    %cst_3 = arith.constant dense<0.000000e+00> : vector<1x128xf32>
    %5 = tpu.matmul %2, %4, %cst_3 {dimension_numbers = #tpu.dot_dimension_numbers<[1], [0], [0], [1], [0, 0, 1, 1], [], []>} : vector<1x256xf32>, vector<256x128xf32>, vector<1x128xf32> -> vector<1x128xf32>
    %c0_4 = arith.constant 0 : index
    %c0_5 = arith.constant 0 : index
    %6 = vector.load %arg2[%c0_4, %c0_5] : memref<128x8xf32, #tpu.memory_space<vmem>>, vector<128x8xf32>
    %cst_6 = arith.constant dense<0.000000e+00> : vector<1x8xf32>
    %7 = tpu.matmul %3, %6, %cst_6 {dimension_numbers = #tpu.dot_dimension_numbers<[1], [0], [0], [1], [0, 0, 1, 1], [], []>} : vector<1x128xf32>, vector<128x8xf32>, vector<1x8xf32> -> vector<1x8xf32>
    %c0_7 = arith.constant 0 : index
    %c0_8 = arith.constant 0 : index
    %8 = vector.load %arg2[%c0_7, %c0_8] : memref<128x8xf32, #tpu.memory_space<vmem>>, vector<128x8xf32>
    %cst_9 = arith.constant dense<0.000000e+00> : vector<1x8xf32>
    %9 = tpu.matmul %5, %8, %cst_9 {dimension_numbers = #tpu.dot_dimension_numbers<[1], [0], [0], [1], [0, 0, 1, 1], [], []>} : vector<1x128xf32>, vector<128x8xf32>, vector<1x8xf32> -> vector<1x8xf32>
    %10 = arith.mulf %7, %7 : vector<1x8xf32>
    %11 = arith.subf %9, %10 : vector<1x8xf32>
    %cst_10 = arith.constant 0.000000e+00 : f32
    %12 = vector.broadcast %cst_10 : f32 to vector<1x8xf32>
    %13 = arith.maximumf %11, %12 : vector<1x8xf32>
    %c0_11 = arith.constant 0 : index
    %c0_12 = arith.constant 0 : index
    %14 = vector.load %arg3[%c0_11, %c0_12] : memref<8x128xf32, #tpu.memory_space<vmem>>, vector<8x128xf32>
    %cst_13 = arith.constant dense<0.000000e+00> : vector<1x128xf32>
    %15 = tpu.matmul %7, %14, %cst_13 {dimension_numbers = #tpu.dot_dimension_numbers<[1], [0], [0], [1], [0, 0, 1, 1], [], []>} : vector<1x8xf32>, vector<8x128xf32>, vector<1x128xf32> -> vector<1x128xf32>
    %c0_14 = arith.constant 0 : index
    %c0_15 = arith.constant 0 : index
    %16 = vector.load %arg3[%c0_14, %c0_15] : memref<8x128xf32, #tpu.memory_space<vmem>>, vector<8x128xf32>
    %cst_16 = arith.constant dense<0.000000e+00> : vector<1x128xf32>
    %17 = tpu.matmul %13, %16, %cst_16 {dimension_numbers = #tpu.dot_dimension_numbers<[1], [0], [0], [1], [0, 0, 1, 1], [], []>} : vector<1x8xf32>, vector<8x128xf32>, vector<1x128xf32> -> vector<1x128xf32>
    %cst_17 = arith.constant 9.99999974E-6 : f32
    %18 = vector.broadcast %cst_17 : f32 to vector<1x128xf32>
    %19 = arith.addf %17, %18 : vector<1x128xf32>
    %20 = math.rsqrt %19 : vector<1x128xf32>
    %c0_18 = arith.constant 0 : index
    %c0_19 = arith.constant 0 : index
    %21 = vector.load %arg4[%c0_18, %c0_19] : memref<1x128xf32, #tpu.memory_space<vmem>>, vector<1x128xf32>
    %22 = arith.mulf %20, %21 : vector<1x128xf32>
    %c0_20 = arith.constant 0 : index
    %c0_21 = arith.constant 0 : index
    %23 = vector.load %arg5[%c0_20, %c0_21] : memref<1x128xf32, #tpu.memory_space<vmem>>, vector<1x128xf32>
    %24 = arith.mulf %15, %22 : vector<1x128xf32>
    %25 = arith.subf %23, %24 : vector<1x128xf32>
    %26 = vector.broadcast %22 : vector<1x128xf32> to vector<256x128xf32>
    %27 = arith.mulf %1, %26 : vector<256x128xf32>
    %28 = vector.broadcast %25 : vector<1x128xf32> to vector<256x128xf32>
    %29 = arith.addf %27, %28 : vector<256x128xf32>
    %cst_22 = arith.constant 0.000000e+00 : f32
    %30 = vector.broadcast %cst_22 : f32 to vector<256x128xf32>
    %31 = arith.maximumf %29, %30 : vector<256x128xf32>
    %c0_23 = arith.constant 0 : index
    %c0_24 = arith.constant 0 : index
    %c0_25 = arith.constant 0 : index
    %32 = vector.load %arg6[%c0_23, %c0_24, %c0_25] : memref<1x256x128xf32, #tpu.memory_space<vmem>>, vector<1x256x128xf32>
    %33 = vector.shape_cast %32 : vector<1x256x128xf32> to vector<256x128xf32>
    %34 = vector.shape_cast %31 : vector<256x128xf32> to vector<1x256x128xf32>
    tpu.vector_store %arg6[%c0_23, %c0_24, %c0_25], %34 {strides = array<i32>} : memref<1x256x128xf32, #tpu.memory_space<vmem>>, vector<1x256x128xf32>,
    return
  }
  func.func @transform_0(%arg0: i32) -> (i32, i32, i32) {
    %c0_i32 = arith.constant 0 : i32
    %c0_i32_0 = arith.constant 0 : i32
    %c0_i32_1 = arith.constant 0 : i32
    return %arg0, %c0_i32, %c0_i32_0 : i32, i32, i32
  }
  func.func @transform_1(%arg0: i32) -> (i32, i32) {
    %c0_i32 = arith.constant 0 : i32
    %c0_i32_0 = arith.constant 0 : i32
    %c0_i32_1 = arith.constant 0 : i32
    return %c0_i32, %c0_i32_0 : i32, i32
  }
  func.func @transform_2(%arg0: i32) -> (i32, i32) {
    %c0_i32 = arith.constant 0 : i32
    %c0_i32_0 = arith.constant 0 : i32
    %c0_i32_1 = arith.constant 0 : i32
    return %c0_i32, %c0_i32_0 : i32, i32
  }
  func.func @transform_3(%arg0: i32) -> (i32, i32) {
    %c0_i32 = arith.constant 0 : i32
    %c0_i32_0 = arith.constant 0 : i32
    %c0_i32_1 = arith.constant 0 : i32
    return %c0_i32, %c0_i32_0 : i32, i32
  }
  func.func @transform_4(%arg0: i32) -> (i32, i32) {
    %c0_i32 = arith.constant 0 : i32
    %c0_i32_0 = arith.constant 0 : i32
    %c0_i32_1 = arith.constant 0 : i32
    return %c0_i32, %c0_i32_0 : i32, i32
  }
  func.func @transform_5(%arg0: i32) -> (i32, i32, i32) {
    %c0_i32 = arith.constant 0 : i32
    %c0_i32_0 = arith.constant 0 : i32
    %c0_i32_1 = arith.constant 0 : i32
    return %arg0, %c0_i32, %c0_i32_0 : i32, i32, i32
  }
}

module attributes {stable_mosaic.version = 11 : i64} {
  func.func @_matmul_bias_kernel(%arg0: i32, %arg1: i32, %arg2: i32, %arg3: memref<128x512xbf16, #tpu.memory_space<vmem>>, %arg4: memref<512x128xbf16, #tpu.memory_space<vmem>>, %arg5: memref<1x128xf32, #tpu.memory_space<vmem>>, %arg6: memref<128x128xf32, #tpu.memory_space<vmem>>, %arg7: memref<128x128xf32, #tpu.memory_space<vmem>>) attributes {dimension_semantics = [#tpu.dimension_semantics<parallel>, #tpu.dimension_semantics<parallel>, #tpu.dimension_semantics<arbitrary>], iteration_bounds = array<i64: 1, 1, 2>, scalar_prefetch = 0 : i64, scratch_operands = 1 : i64, tpu.core_type = #tpu.core_type<tc>, window_params = [{transform_indices = @transform_0, window_bounds = array<i64: 128, 512>}, {transform_indices = @transform_1, window_bounds = array<i64: 512, 128>}, {transform_indices = @transform_2, window_bounds = array<i64: 1, 128>}, {transform_indices = @transform_3, window_bounds = array<i64: 128, 128>}]} {
    %c0_i32 = arith.constant 0 : i32
    %0 = arith.cmpi eq, %arg2, %c0_i32 : i32
    %1 = arith.extui %0 : i1 to i32
    %c0_i32_0 = arith.constant 0 : i32
    %2 = arith.cmpi ne, %1, %c0_i32_0 : i32
    scf.if %2 {
      %cst_9 = arith.constant 0.000000e+00 : f32
      %12 = vector.broadcast %cst_9 : f32 to vector<128x128xf32>
      %c0_10 = arith.constant 0 : index
      %c0_11 = arith.constant 0 : index
      %13 = vector.load %arg7[%c0_10, %c0_11] : memref<128x128xf32, #tpu.memory_space<vmem>>, vector<128x128xf32>
      tpu.vector_store %arg7[%c0_10, %c0_11], %12 {strides = array<i32>} : memref<128x128xf32, #tpu.memory_space<vmem>>, vector<128x128xf32>,
    } else {
    }
    %c0 = arith.constant 0 : index
    %c0_1 = arith.constant 0 : index
    %3 = vector.load %arg7[%c0, %c0_1] : memref<128x128xf32, #tpu.memory_space<vmem>>, vector<128x128xf32>
    %c0_2 = arith.constant 0 : index
    %c0_3 = arith.constant 0 : index
    %4 = vector.load %arg3[%c0_2, %c0_3] : memref<128x512xbf16, #tpu.memory_space<vmem>>, vector<128x512xbf16>
    %c0_4 = arith.constant 0 : index
    %c0_5 = arith.constant 0 : index
    %5 = vector.load %arg4[%c0_4, %c0_5] : memref<512x128xbf16, #tpu.memory_space<vmem>>, vector<512x128xbf16>
    %cst = arith.constant dense<0.000000e+00> : vector<128x128xf32>
    %6 = tpu.matmul %4, %5, %cst {dimension_numbers = #tpu.dot_dimension_numbers<[1], [0], [0], [1], [0, 0, 1, 1], [], []>} : vector<128x512xbf16>, vector<512x128xbf16>, vector<128x128xf32> -> vector<128x128xf32>
    %7 = arith.addf %3, %6 : vector<128x128xf32>
    %c0_6 = arith.constant 0 : index
    %c0_7 = arith.constant 0 : index
    %8 = vector.load %arg7[%c0_6, %c0_7] : memref<128x128xf32, #tpu.memory_space<vmem>>, vector<128x128xf32>
    tpu.vector_store %arg7[%c0_6, %c0_7], %7 {strides = array<i32>} : memref<128x128xf32, #tpu.memory_space<vmem>>, vector<128x128xf32>,
    %c1_i32 = arith.constant 1 : i32
    %9 = arith.cmpi eq, %arg2, %c1_i32 : i32
    %10 = arith.extui %9 : i1 to i32
    %c0_i32_8 = arith.constant 0 : i32
    %11 = arith.cmpi ne, %10, %c0_i32_8 : i32
    scf.if %11 {
      %c0_9 = arith.constant 0 : index
      %c0_10 = arith.constant 0 : index
      %12 = vector.load %arg7[%c0_9, %c0_10] : memref<128x128xf32, #tpu.memory_space<vmem>>, vector<128x128xf32>
      %c0_11 = arith.constant 0 : index
      %c0_12 = arith.constant 0 : index
      %13 = vector.load %arg5[%c0_11, %c0_12] : memref<1x128xf32, #tpu.memory_space<vmem>>, vector<1x128xf32>
      %14 = vector.broadcast %13 : vector<1x128xf32> to vector<128x128xf32>
      %15 = arith.addf %12, %14 : vector<128x128xf32>
      %c0_13 = arith.constant 0 : index
      %c0_14 = arith.constant 0 : index
      %16 = vector.load %arg6[%c0_13, %c0_14] : memref<128x128xf32, #tpu.memory_space<vmem>>, vector<128x128xf32>
      tpu.vector_store %arg6[%c0_13, %c0_14], %15 {strides = array<i32>} : memref<128x128xf32, #tpu.memory_space<vmem>>, vector<128x128xf32>,
    } else {
    }
    return
  }
  func.func @transform_0(%arg0: i32, %arg1: i32, %arg2: i32) -> (i32, i32) {
    %c0_i32 = arith.constant 0 : i32
    return %arg0, %arg2 : i32, i32
  }
  func.func @transform_1(%arg0: i32, %arg1: i32, %arg2: i32) -> (i32, i32) {
    %c0_i32 = arith.constant 0 : i32
    return %arg2, %arg1 : i32, i32
  }
  func.func @transform_2(%arg0: i32, %arg1: i32, %arg2: i32) -> (i32, i32) {
    %c0_i32 = arith.constant 0 : i32
    %c0_i32_0 = arith.constant 0 : i32
    return %c0_i32, %arg1 : i32, i32
  }
  func.func @transform_3(%arg0: i32, %arg1: i32, %arg2: i32) -> (i32, i32) {
    %c0_i32 = arith.constant 0 : i32
    return %arg0, %arg1 : i32, i32
  }
}

module attributes {stable_mosaic.version = 11 : i64} {
  func.func @_gn_relu_kernel(%arg0: i32, %arg1: memref<1x64x128xf32, #tpu.memory_space<vmem>>, %arg2: memref<128x8xf32, #tpu.memory_space<vmem>>, %arg3: memref<8x128xf32, #tpu.memory_space<vmem>>, %arg4: memref<1x128xf32, #tpu.memory_space<vmem>>, %arg5: memref<1x128xf32, #tpu.memory_space<vmem>>, %arg6: memref<1x64x128xf32, #tpu.memory_space<vmem>>) attributes {dimension_semantics = [#tpu.dimension_semantics<parallel>], iteration_bounds = array<i64: 2>, scalar_prefetch = 0 : i64, scratch_operands = 0 : i64, tpu.core_type = #tpu.core_type<tc>, window_params = [{transform_indices = @transform_0, window_bounds = array<i64: 1, 64, 128>}, {pipeline_mode = #tpu.pipeline_mode<synchronous>, transform_indices = @transform_1, window_bounds = array<i64: 128, 8>}, {pipeline_mode = #tpu.pipeline_mode<synchronous>, transform_indices = @transform_2, window_bounds = array<i64: 8, 128>}, {pipeline_mode = #tpu.pipeline_mode<synchronous>, transform_indices = @transform_3, window_bounds = array<i64: 1, 128>}, {pipeline_mode = #tpu.pipeline_mode<synchronous>, transform_indices = @transform_4, window_bounds = array<i64: 1, 128>}, {transform_indices = @transform_5, window_bounds = array<i64: 1, 64, 128>}]} {
    %c0 = arith.constant 0 : index
    %c0_0 = arith.constant 0 : index
    %c0_1 = arith.constant 0 : index
    %0 = vector.load %arg1[%c0, %c0_0, %c0_1] : memref<1x64x128xf32, #tpu.memory_space<vmem>>, vector<1x64x128xf32>
    %1 = vector.shape_cast %0 : vector<1x64x128xf32> to vector<64x128xf32>
    %cst = arith.constant 1.000000e+00 : f32
    %2 = vector.broadcast %cst : f32 to vector<1x64xf32>
    %cst_2 = arith.constant dense<0.000000e+00> : vector<1x128xf32>
    %3 = tpu.matmul %2, %1, %cst_2 {dimension_numbers = #tpu.dot_dimension_numbers<[1], [0], [0], [1], [0, 0, 1, 1], [], []>} : vector<1x64xf32>, vector<64x128xf32>, vector<1x128xf32> -> vector<1x128xf32>
    %4 = arith.mulf %1, %1 : vector<64x128xf32>
    %cst_3 = arith.constant dense<0.000000e+00> : vector<1x128xf32>
    %5 = tpu.matmul %2, %4, %cst_3 {dimension_numbers = #tpu.dot_dimension_numbers<[1], [0], [0], [1], [0, 0, 1, 1], [], []>} : vector<1x64xf32>, vector<64x128xf32>, vector<1x128xf32> -> vector<1x128xf32>
    %c0_4 = arith.constant 0 : index
    %c0_5 = arith.constant 0 : index
    %6 = vector.load %arg2[%c0_4, %c0_5] : memref<128x8xf32, #tpu.memory_space<vmem>>, vector<128x8xf32>
    %cst_6 = arith.constant dense<0.000000e+00> : vector<1x8xf32>
    %7 = tpu.matmul %3, %6, %cst_6 {dimension_numbers = #tpu.dot_dimension_numbers<[1], [0], [0], [1], [0, 0, 1, 1], [], []>} : vector<1x128xf32>, vector<128x8xf32>, vector<1x8xf32> -> vector<1x8xf32>
    %c0_7 = arith.constant 0 : index
    %c0_8 = arith.constant 0 : index
    %8 = vector.load %arg2[%c0_7, %c0_8] : memref<128x8xf32, #tpu.memory_space<vmem>>, vector<128x8xf32>
    %cst_9 = arith.constant dense<0.000000e+00> : vector<1x8xf32>
    %9 = tpu.matmul %5, %8, %cst_9 {dimension_numbers = #tpu.dot_dimension_numbers<[1], [0], [0], [1], [0, 0, 1, 1], [], []>} : vector<1x128xf32>, vector<128x8xf32>, vector<1x8xf32> -> vector<1x8xf32>
    %10 = arith.mulf %7, %7 : vector<1x8xf32>
    %11 = arith.subf %9, %10 : vector<1x8xf32>
    %cst_10 = arith.constant 0.000000e+00 : f32
    %12 = vector.broadcast %cst_10 : f32 to vector<1x8xf32>
    %13 = arith.maximumf %11, %12 : vector<1x8xf32>
    %c0_11 = arith.constant 0 : index
    %c0_12 = arith.constant 0 : index
    %14 = vector.load %arg3[%c0_11, %c0_12] : memref<8x128xf32, #tpu.memory_space<vmem>>, vector<8x128xf32>
    %cst_13 = arith.constant dense<0.000000e+00> : vector<1x128xf32>
    %15 = tpu.matmul %7, %14, %cst_13 {dimension_numbers = #tpu.dot_dimension_numbers<[1], [0], [0], [1], [0, 0, 1, 1], [], []>} : vector<1x8xf32>, vector<8x128xf32>, vector<1x128xf32> -> vector<1x128xf32>
    %c0_14 = arith.constant 0 : index
    %c0_15 = arith.constant 0 : index
    %16 = vector.load %arg3[%c0_14, %c0_15] : memref<8x128xf32, #tpu.memory_space<vmem>>, vector<8x128xf32>
    %cst_16 = arith.constant dense<0.000000e+00> : vector<1x128xf32>
    %17 = tpu.matmul %13, %16, %cst_16 {dimension_numbers = #tpu.dot_dimension_numbers<[1], [0], [0], [1], [0, 0, 1, 1], [], []>} : vector<1x8xf32>, vector<8x128xf32>, vector<1x128xf32> -> vector<1x128xf32>
    %cst_17 = arith.constant 9.99999974E-6 : f32
    %18 = vector.broadcast %cst_17 : f32 to vector<1x128xf32>
    %19 = arith.addf %17, %18 : vector<1x128xf32>
    %20 = math.rsqrt %19 : vector<1x128xf32>
    %c0_18 = arith.constant 0 : index
    %c0_19 = arith.constant 0 : index
    %21 = vector.load %arg4[%c0_18, %c0_19] : memref<1x128xf32, #tpu.memory_space<vmem>>, vector<1x128xf32>
    %22 = arith.mulf %20, %21 : vector<1x128xf32>
    %c0_20 = arith.constant 0 : index
    %c0_21 = arith.constant 0 : index
    %23 = vector.load %arg5[%c0_20, %c0_21] : memref<1x128xf32, #tpu.memory_space<vmem>>, vector<1x128xf32>
    %24 = arith.mulf %15, %22 : vector<1x128xf32>
    %25 = arith.subf %23, %24 : vector<1x128xf32>
    %26 = vector.broadcast %22 : vector<1x128xf32> to vector<64x128xf32>
    %27 = arith.mulf %1, %26 : vector<64x128xf32>
    %28 = vector.broadcast %25 : vector<1x128xf32> to vector<64x128xf32>
    %29 = arith.addf %27, %28 : vector<64x128xf32>
    %cst_22 = arith.constant 0.000000e+00 : f32
    %30 = vector.broadcast %cst_22 : f32 to vector<64x128xf32>
    %31 = arith.maximumf %29, %30 : vector<64x128xf32>
    %c0_23 = arith.constant 0 : index
    %c0_24 = arith.constant 0 : index
    %c0_25 = arith.constant 0 : index
    %32 = vector.load %arg6[%c0_23, %c0_24, %c0_25] : memref<1x64x128xf32, #tpu.memory_space<vmem>>, vector<1x64x128xf32>
    %33 = vector.shape_cast %32 : vector<1x64x128xf32> to vector<64x128xf32>
    %34 = vector.shape_cast %31 : vector<64x128xf32> to vector<1x64x128xf32>
    tpu.vector_store %arg6[%c0_23, %c0_24, %c0_25], %34 {strides = array<i32>} : memref<1x64x128xf32, #tpu.memory_space<vmem>>, vector<1x64x128xf32>,
    return
  }
  func.func @transform_0(%arg0: i32) -> (i32, i32, i32) {
    %c0_i32 = arith.constant 0 : i32
    %c0_i32_0 = arith.constant 0 : i32
    %c0_i32_1 = arith.constant 0 : i32
    return %arg0, %c0_i32, %c0_i32_0 : i32, i32, i32
  }
  func.func @transform_1(%arg0: i32) -> (i32, i32) {
    %c0_i32 = arith.constant 0 : i32
    %c0_i32_0 = arith.constant 0 : i32
    %c0_i32_1 = arith.constant 0 : i32
    return %c0_i32, %c0_i32_0 : i32, i32
  }
  func.func @transform_2(%arg0: i32) -> (i32, i32) {
    %c0_i32 = arith.constant 0 : i32
    %c0_i32_0 = arith.constant 0 : i32
    %c0_i32_1 = arith.constant 0 : i32
    return %c0_i32, %c0_i32_0 : i32, i32
  }
  func.func @transform_3(%arg0: i32) -> (i32, i32) {
    %c0_i32 = arith.constant 0 : i32
    %c0_i32_0 = arith.constant 0 : i32
    %c0_i32_1 = arith.constant 0 : i32
    return %c0_i32, %c0_i32_0 : i32, i32
  }
  func.func @transform_4(%arg0: i32) -> (i32, i32) {
    %c0_i32 = arith.constant 0 : i32
    %c0_i32_0 = arith.constant 0 : i32
    %c0_i32_1 = arith.constant 0 : i32
    return %c0_i32, %c0_i32_0 : i32, i32
  }
  func.func @transform_5(%arg0: i32) -> (i32, i32, i32) {
    %c0_i32 = arith.constant 0 : i32
    %c0_i32_0 = arith.constant 0 : i32
    %c0_i32_1 = arith.constant 0 : i32
    return %arg0, %c0_i32, %c0_i32_0 : i32, i32, i32
  }
}

module attributes {stable_mosaic.version = 11 : i64} {
  func.func @_matmul_bias_kernel(%arg0: i32, %arg1: i32, %arg2: i32, %arg3: memref<32x512xbf16, #tpu.memory_space<vmem>>, %arg4: memref<512x256xbf16, #tpu.memory_space<vmem>>, %arg5: memref<1x256xf32, #tpu.memory_space<vmem>>, %arg6: memref<32x256xf32, #tpu.memory_space<vmem>>, %arg7: memref<32x256xf32, #tpu.memory_space<vmem>>) attributes {dimension_semantics = [#tpu.dimension_semantics<parallel>, #tpu.dimension_semantics<parallel>, #tpu.dimension_semantics<arbitrary>], iteration_bounds = array<i64: 1, 1, 4>, scalar_prefetch = 0 : i64, scratch_operands = 1 : i64, tpu.core_type = #tpu.core_type<tc>, window_params = [{transform_indices = @transform_0, window_bounds = array<i64: 32, 512>}, {transform_indices = @transform_1, window_bounds = array<i64: 512, 256>}, {transform_indices = @transform_2, window_bounds = array<i64: 1, 256>}, {transform_indices = @transform_3, window_bounds = array<i64: 32, 256>}]} {
    %c0_i32 = arith.constant 0 : i32
    %0 = arith.cmpi eq, %arg2, %c0_i32 : i32
    %1 = arith.extui %0 : i1 to i32
    %c0_i32_0 = arith.constant 0 : i32
    %2 = arith.cmpi ne, %1, %c0_i32_0 : i32
    scf.if %2 {
      %cst_9 = arith.constant 0.000000e+00 : f32
      %12 = vector.broadcast %cst_9 : f32 to vector<32x256xf32>
      %c0_10 = arith.constant 0 : index
      %c0_11 = arith.constant 0 : index
      %13 = vector.load %arg7[%c0_10, %c0_11] : memref<32x256xf32, #tpu.memory_space<vmem>>, vector<32x256xf32>
      tpu.vector_store %arg7[%c0_10, %c0_11], %12 {strides = array<i32>} : memref<32x256xf32, #tpu.memory_space<vmem>>, vector<32x256xf32>,
    } else {
    }
    %c0 = arith.constant 0 : index
    %c0_1 = arith.constant 0 : index
    %3 = vector.load %arg7[%c0, %c0_1] : memref<32x256xf32, #tpu.memory_space<vmem>>, vector<32x256xf32>
    %c0_2 = arith.constant 0 : index
    %c0_3 = arith.constant 0 : index
    %4 = vector.load %arg3[%c0_2, %c0_3] : memref<32x512xbf16, #tpu.memory_space<vmem>>, vector<32x512xbf16>
    %c0_4 = arith.constant 0 : index
    %c0_5 = arith.constant 0 : index
    %5 = vector.load %arg4[%c0_4, %c0_5] : memref<512x256xbf16, #tpu.memory_space<vmem>>, vector<512x256xbf16>
    %cst = arith.constant dense<0.000000e+00> : vector<32x256xf32>
    %6 = tpu.matmul %4, %5, %cst {dimension_numbers = #tpu.dot_dimension_numbers<[1], [0], [0], [1], [0, 0, 1, 1], [], []>} : vector<32x512xbf16>, vector<512x256xbf16>, vector<32x256xf32> -> vector<32x256xf32>
    %7 = arith.addf %3, %6 : vector<32x256xf32>
    %c0_6 = arith.constant 0 : index
    %c0_7 = arith.constant 0 : index
    %8 = vector.load %arg7[%c0_6, %c0_7] : memref<32x256xf32, #tpu.memory_space<vmem>>, vector<32x256xf32>
    tpu.vector_store %arg7[%c0_6, %c0_7], %7 {strides = array<i32>} : memref<32x256xf32, #tpu.memory_space<vmem>>, vector<32x256xf32>,
    %c3_i32 = arith.constant 3 : i32
    %9 = arith.cmpi eq, %arg2, %c3_i32 : i32
    %10 = arith.extui %9 : i1 to i32
    %c0_i32_8 = arith.constant 0 : i32
    %11 = arith.cmpi ne, %10, %c0_i32_8 : i32
    scf.if %11 {
      %c0_9 = arith.constant 0 : index
      %c0_10 = arith.constant 0 : index
      %12 = vector.load %arg7[%c0_9, %c0_10] : memref<32x256xf32, #tpu.memory_space<vmem>>, vector<32x256xf32>
      %c0_11 = arith.constant 0 : index
      %c0_12 = arith.constant 0 : index
      %13 = vector.load %arg5[%c0_11, %c0_12] : memref<1x256xf32, #tpu.memory_space<vmem>>, vector<1x256xf32>
      %14 = vector.broadcast %13 : vector<1x256xf32> to vector<32x256xf32>
      %15 = arith.addf %12, %14 : vector<32x256xf32>
      %c0_13 = arith.constant 0 : index
      %c0_14 = arith.constant 0 : index
      %16 = vector.load %arg6[%c0_13, %c0_14] : memref<32x256xf32, #tpu.memory_space<vmem>>, vector<32x256xf32>
      tpu.vector_store %arg6[%c0_13, %c0_14], %15 {strides = array<i32>} : memref<32x256xf32, #tpu.memory_space<vmem>>, vector<32x256xf32>,
    } else {
    }
    return
  }
  func.func @transform_0(%arg0: i32, %arg1: i32, %arg2: i32) -> (i32, i32) {
    %c0_i32 = arith.constant 0 : i32
    return %arg0, %arg2 : i32, i32
  }
  func.func @transform_1(%arg0: i32, %arg1: i32, %arg2: i32) -> (i32, i32) {
    %c0_i32 = arith.constant 0 : i32
    return %arg2, %arg1 : i32, i32
  }
  func.func @transform_2(%arg0: i32, %arg1: i32, %arg2: i32) -> (i32, i32) {
    %c0_i32 = arith.constant 0 : i32
    %c0_i32_0 = arith.constant 0 : i32
    return %c0_i32, %arg1 : i32, i32
  }
  func.func @transform_3(%arg0: i32, %arg1: i32, %arg2: i32) -> (i32, i32) {
    %c0_i32 = arith.constant 0 : i32
    return %arg0, %arg1 : i32, i32
  }
}

module attributes {stable_mosaic.version = 11 : i64} {
  func.func @_gn_relu_kernel(%arg0: i32, %arg1: memref<1x16x256xf32, #tpu.memory_space<vmem>>, %arg2: memref<256x16xf32, #tpu.memory_space<vmem>>, %arg3: memref<16x256xf32, #tpu.memory_space<vmem>>, %arg4: memref<1x256xf32, #tpu.memory_space<vmem>>, %arg5: memref<1x256xf32, #tpu.memory_space<vmem>>, %arg6: memref<1x16x256xf32, #tpu.memory_space<vmem>>) attributes {dimension_semantics = [#tpu.dimension_semantics<parallel>], iteration_bounds = array<i64: 2>, scalar_prefetch = 0 : i64, scratch_operands = 0 : i64, tpu.core_type = #tpu.core_type<tc>, window_params = [{transform_indices = @transform_0, window_bounds = array<i64: 1, 16, 256>}, {pipeline_mode = #tpu.pipeline_mode<synchronous>, transform_indices = @transform_1, window_bounds = array<i64: 256, 16>}, {pipeline_mode = #tpu.pipeline_mode<synchronous>, transform_indices = @transform_2, window_bounds = array<i64: 16, 256>}, {pipeline_mode = #tpu.pipeline_mode<synchronous>, transform_indices = @transform_3, window_bounds = array<i64: 1, 256>}, {pipeline_mode = #tpu.pipeline_mode<synchronous>, transform_indices = @transform_4, window_bounds = array<i64: 1, 256>}, {transform_indices = @transform_5, window_bounds = array<i64: 1, 16, 256>}]} {
    %c0 = arith.constant 0 : index
    %c0_0 = arith.constant 0 : index
    %c0_1 = arith.constant 0 : index
    %0 = vector.load %arg1[%c0, %c0_0, %c0_1] : memref<1x16x256xf32, #tpu.memory_space<vmem>>, vector<1x16x256xf32>
    %1 = vector.shape_cast %0 : vector<1x16x256xf32> to vector<16x256xf32>
    %cst = arith.constant 1.000000e+00 : f32
    %2 = vector.broadcast %cst : f32 to vector<1x16xf32>
    %cst_2 = arith.constant dense<0.000000e+00> : vector<1x256xf32>
    %3 = tpu.matmul %2, %1, %cst_2 {dimension_numbers = #tpu.dot_dimension_numbers<[1], [0], [0], [1], [0, 0, 1, 1], [], []>} : vector<1x16xf32>, vector<16x256xf32>, vector<1x256xf32> -> vector<1x256xf32>
    %4 = arith.mulf %1, %1 : vector<16x256xf32>
    %cst_3 = arith.constant dense<0.000000e+00> : vector<1x256xf32>
    %5 = tpu.matmul %2, %4, %cst_3 {dimension_numbers = #tpu.dot_dimension_numbers<[1], [0], [0], [1], [0, 0, 1, 1], [], []>} : vector<1x16xf32>, vector<16x256xf32>, vector<1x256xf32> -> vector<1x256xf32>
    %c0_4 = arith.constant 0 : index
    %c0_5 = arith.constant 0 : index
    %6 = vector.load %arg2[%c0_4, %c0_5] : memref<256x16xf32, #tpu.memory_space<vmem>>, vector<256x16xf32>
    %cst_6 = arith.constant dense<0.000000e+00> : vector<1x16xf32>
    %7 = tpu.matmul %3, %6, %cst_6 {dimension_numbers = #tpu.dot_dimension_numbers<[1], [0], [0], [1], [0, 0, 1, 1], [], []>} : vector<1x256xf32>, vector<256x16xf32>, vector<1x16xf32> -> vector<1x16xf32>
    %c0_7 = arith.constant 0 : index
    %c0_8 = arith.constant 0 : index
    %8 = vector.load %arg2[%c0_7, %c0_8] : memref<256x16xf32, #tpu.memory_space<vmem>>, vector<256x16xf32>
    %cst_9 = arith.constant dense<0.000000e+00> : vector<1x16xf32>
    %9 = tpu.matmul %5, %8, %cst_9 {dimension_numbers = #tpu.dot_dimension_numbers<[1], [0], [0], [1], [0, 0, 1, 1], [], []>} : vector<1x256xf32>, vector<256x16xf32>, vector<1x16xf32> -> vector<1x16xf32>
    %10 = arith.mulf %7, %7 : vector<1x16xf32>
    %11 = arith.subf %9, %10 : vector<1x16xf32>
    %cst_10 = arith.constant 0.000000e+00 : f32
    %12 = vector.broadcast %cst_10 : f32 to vector<1x16xf32>
    %13 = arith.maximumf %11, %12 : vector<1x16xf32>
    %c0_11 = arith.constant 0 : index
    %c0_12 = arith.constant 0 : index
    %14 = vector.load %arg3[%c0_11, %c0_12] : memref<16x256xf32, #tpu.memory_space<vmem>>, vector<16x256xf32>
    %cst_13 = arith.constant dense<0.000000e+00> : vector<1x256xf32>
    %15 = tpu.matmul %7, %14, %cst_13 {dimension_numbers = #tpu.dot_dimension_numbers<[1], [0], [0], [1], [0, 0, 1, 1], [], []>} : vector<1x16xf32>, vector<16x256xf32>, vector<1x256xf32> -> vector<1x256xf32>
    %c0_14 = arith.constant 0 : index
    %c0_15 = arith.constant 0 : index
    %16 = vector.load %arg3[%c0_14, %c0_15] : memref<16x256xf32, #tpu.memory_space<vmem>>, vector<16x256xf32>
    %cst_16 = arith.constant dense<0.000000e+00> : vector<1x256xf32>
    %17 = tpu.matmul %13, %16, %cst_16 {dimension_numbers = #tpu.dot_dimension_numbers<[1], [0], [0], [1], [0, 0, 1, 1], [], []>} : vector<1x16xf32>, vector<16x256xf32>, vector<1x256xf32> -> vector<1x256xf32>
    %cst_17 = arith.constant 9.99999974E-6 : f32
    %18 = vector.broadcast %cst_17 : f32 to vector<1x256xf32>
    %19 = arith.addf %17, %18 : vector<1x256xf32>
    %20 = math.rsqrt %19 : vector<1x256xf32>
    %c0_18 = arith.constant 0 : index
    %c0_19 = arith.constant 0 : index
    %21 = vector.load %arg4[%c0_18, %c0_19] : memref<1x256xf32, #tpu.memory_space<vmem>>, vector<1x256xf32>
    %22 = arith.mulf %20, %21 : vector<1x256xf32>
    %c0_20 = arith.constant 0 : index
    %c0_21 = arith.constant 0 : index
    %23 = vector.load %arg5[%c0_20, %c0_21] : memref<1x256xf32, #tpu.memory_space<vmem>>, vector<1x256xf32>
    %24 = arith.mulf %15, %22 : vector<1x256xf32>
    %25 = arith.subf %23, %24 : vector<1x256xf32>
    %26 = vector.broadcast %22 : vector<1x256xf32> to vector<16x256xf32>
    %27 = arith.mulf %1, %26 : vector<16x256xf32>
    %28 = vector.broadcast %25 : vector<1x256xf32> to vector<16x256xf32>
    %29 = arith.addf %27, %28 : vector<16x256xf32>
    %cst_22 = arith.constant 0.000000e+00 : f32
    %30 = vector.broadcast %cst_22 : f32 to vector<16x256xf32>
    %31 = arith.maximumf %29, %30 : vector<16x256xf32>
    %c0_23 = arith.constant 0 : index
    %c0_24 = arith.constant 0 : index
    %c0_25 = arith.constant 0 : index
    %32 = vector.load %arg6[%c0_23, %c0_24, %c0_25] : memref<1x16x256xf32, #tpu.memory_space<vmem>>, vector<1x16x256xf32>
    %33 = vector.shape_cast %32 : vector<1x16x256xf32> to vector<16x256xf32>
    %34 = vector.shape_cast %31 : vector<16x256xf32> to vector<1x16x256xf32>
    tpu.vector_store %arg6[%c0_23, %c0_24, %c0_25], %34 {strides = array<i32>} : memref<1x16x256xf32, #tpu.memory_space<vmem>>, vector<1x16x256xf32>,
    return
  }
  func.func @transform_0(%arg0: i32) -> (i32, i32, i32) {
    %c0_i32 = arith.constant 0 : i32
    %c0_i32_0 = arith.constant 0 : i32
    %c0_i32_1 = arith.constant 0 : i32
    return %arg0, %c0_i32, %c0_i32_0 : i32, i32, i32
  }
  func.func @transform_1(%arg0: i32) -> (i32, i32) {
    %c0_i32 = arith.constant 0 : i32
    %c0_i32_0 = arith.constant 0 : i32
    %c0_i32_1 = arith.constant 0 : i32
    return %c0_i32, %c0_i32_0 : i32, i32
  }
  func.func @transform_2(%arg0: i32) -> (i32, i32) {
    %c0_i32 = arith.constant 0 : i32
    %c0_i32_0 = arith.constant 0 : i32
    %c0_i32_1 = arith.constant 0 : i32
    return %c0_i32, %c0_i32_0 : i32, i32
  }
  func.func @transform_3(%arg0: i32) -> (i32, i32) {
    %c0_i32 = arith.constant 0 : i32
    %c0_i32_0 = arith.constant 0 : i32
    %c0_i32_1 = arith.constant 0 : i32
    return %c0_i32, %c0_i32_0 : i32, i32
  }
  func.func @transform_4(%arg0: i32) -> (i32, i32) {
    %c0_i32 = arith.constant 0 : i32
    %c0_i32_0 = arith.constant 0 : i32
    %c0_i32_1 = arith.constant 0 : i32
    return %c0_i32, %c0_i32_0 : i32, i32
  }
  func.func @transform_5(%arg0: i32) -> (i32, i32, i32) {
    %c0_i32 = arith.constant 0 : i32
    %c0_i32_0 = arith.constant 0 : i32
    %c0_i32_1 = arith.constant 0 : i32
    return %arg0, %c0_i32, %c0_i32_0 : i32, i32, i32
  }
}

module attributes {stable_mosaic.version = 11 : i64} {
  func.func @_gn_relu_kernel(%arg0: i32, %arg1: memref<1x4x256xf32, #tpu.memory_space<vmem>>, %arg2: memref<256x16xf32, #tpu.memory_space<vmem>>, %arg3: memref<16x256xf32, #tpu.memory_space<vmem>>, %arg4: memref<1x256xf32, #tpu.memory_space<vmem>>, %arg5: memref<1x256xf32, #tpu.memory_space<vmem>>, %arg6: memref<1x4x256xf32, #tpu.memory_space<vmem>>) attributes {dimension_semantics = [#tpu.dimension_semantics<parallel>], iteration_bounds = array<i64: 2>, scalar_prefetch = 0 : i64, scratch_operands = 0 : i64, tpu.core_type = #tpu.core_type<tc>, window_params = [{transform_indices = @transform_0, window_bounds = array<i64: 1, 4, 256>}, {pipeline_mode = #tpu.pipeline_mode<synchronous>, transform_indices = @transform_1, window_bounds = array<i64: 256, 16>}, {pipeline_mode = #tpu.pipeline_mode<synchronous>, transform_indices = @transform_2, window_bounds = array<i64: 16, 256>}, {pipeline_mode = #tpu.pipeline_mode<synchronous>, transform_indices = @transform_3, window_bounds = array<i64: 1, 256>}, {pipeline_mode = #tpu.pipeline_mode<synchronous>, transform_indices = @transform_4, window_bounds = array<i64: 1, 256>}, {transform_indices = @transform_5, window_bounds = array<i64: 1, 4, 256>}]} {
    %c0 = arith.constant 0 : index
    %c0_0 = arith.constant 0 : index
    %c0_1 = arith.constant 0 : index
    %0 = vector.load %arg1[%c0, %c0_0, %c0_1] : memref<1x4x256xf32, #tpu.memory_space<vmem>>, vector<1x4x256xf32>
    %1 = vector.shape_cast %0 : vector<1x4x256xf32> to vector<4x256xf32>
    %cst = arith.constant dense<0.000000e+00> : vector<256xf32>
    %2 = vector.multi_reduction <add>, %1, %cst [0] : vector<4x256xf32> to vector<256xf32>
    %3 = vector.shape_cast %2 : vector<256xf32> to vector<1x256xf32>
    %4 = arith.mulf %1, %1 : vector<4x256xf32>
    %cst_2 = arith.constant dense<0.000000e+00> : vector<256xf32>
    %5 = vector.multi_reduction <add>, %4, %cst_2 [0] : vector<4x256xf32> to vector<256xf32>
    %6 = vector.shape_cast %5 : vector<256xf32> to vector<1x256xf32>
    %c0_3 = arith.constant 0 : index
    %c0_4 = arith.constant 0 : index
    %7 = vector.load %arg2[%c0_3, %c0_4] : memref<256x16xf32, #tpu.memory_space<vmem>>, vector<256x16xf32>
    %cst_5 = arith.constant dense<0.000000e+00> : vector<1x16xf32>
    %8 = tpu.matmul %3, %7, %cst_5 {dimension_numbers = #tpu.dot_dimension_numbers<[1], [0], [0], [1], [0, 0, 1, 1], [], []>} : vector<1x256xf32>, vector<256x16xf32>, vector<1x16xf32> -> vector<1x16xf32>
    %c0_6 = arith.constant 0 : index
    %c0_7 = arith.constant 0 : index
    %9 = vector.load %arg2[%c0_6, %c0_7] : memref<256x16xf32, #tpu.memory_space<vmem>>, vector<256x16xf32>
    %cst_8 = arith.constant dense<0.000000e+00> : vector<1x16xf32>
    %10 = tpu.matmul %6, %9, %cst_8 {dimension_numbers = #tpu.dot_dimension_numbers<[1], [0], [0], [1], [0, 0, 1, 1], [], []>} : vector<1x256xf32>, vector<256x16xf32>, vector<1x16xf32> -> vector<1x16xf32>
    %11 = arith.mulf %8, %8 : vector<1x16xf32>
    %12 = arith.subf %10, %11 : vector<1x16xf32>
    %cst_9 = arith.constant 0.000000e+00 : f32
    %13 = vector.broadcast %cst_9 : f32 to vector<1x16xf32>
    %14 = arith.maximumf %12, %13 : vector<1x16xf32>
    %c0_10 = arith.constant 0 : index
    %c0_11 = arith.constant 0 : index
    %15 = vector.load %arg3[%c0_10, %c0_11] : memref<16x256xf32, #tpu.memory_space<vmem>>, vector<16x256xf32>
    %cst_12 = arith.constant dense<0.000000e+00> : vector<1x256xf32>
    %16 = tpu.matmul %8, %15, %cst_12 {dimension_numbers = #tpu.dot_dimension_numbers<[1], [0], [0], [1], [0, 0, 1, 1], [], []>} : vector<1x16xf32>, vector<16x256xf32>, vector<1x256xf32> -> vector<1x256xf32>
    %c0_13 = arith.constant 0 : index
    %c0_14 = arith.constant 0 : index
    %17 = vector.load %arg3[%c0_13, %c0_14] : memref<16x256xf32, #tpu.memory_space<vmem>>, vector<16x256xf32>
    %cst_15 = arith.constant dense<0.000000e+00> : vector<1x256xf32>
    %18 = tpu.matmul %14, %17, %cst_15 {dimension_numbers = #tpu.dot_dimension_numbers<[1], [0], [0], [1], [0, 0, 1, 1], [], []>} : vector<1x16xf32>, vector<16x256xf32>, vector<1x256xf32> -> vector<1x256xf32>
    %cst_16 = arith.constant 9.99999974E-6 : f32
    %19 = vector.broadcast %cst_16 : f32 to vector<1x256xf32>
    %20 = arith.addf %18, %19 : vector<1x256xf32>
    %21 = math.rsqrt %20 : vector<1x256xf32>
    %c0_17 = arith.constant 0 : index
    %c0_18 = arith.constant 0 : index
    %22 = vector.load %arg4[%c0_17, %c0_18] : memref<1x256xf32, #tpu.memory_space<vmem>>, vector<1x256xf32>
    %23 = arith.mulf %21, %22 : vector<1x256xf32>
    %c0_19 = arith.constant 0 : index
    %c0_20 = arith.constant 0 : index
    %24 = vector.load %arg5[%c0_19, %c0_20] : memref<1x256xf32, #tpu.memory_space<vmem>>, vector<1x256xf32>
    %25 = arith.mulf %16, %23 : vector<1x256xf32>
    %26 = arith.subf %24, %25 : vector<1x256xf32>
    %27 = vector.broadcast %23 : vector<1x256xf32> to vector<4x256xf32>
    %28 = arith.mulf %1, %27 : vector<4x256xf32>
    %29 = vector.broadcast %26 : vector<1x256xf32> to vector<4x256xf32>
    %30 = arith.addf %28, %29 : vector<4x256xf32>
    %cst_21 = arith.constant 0.000000e+00 : f32
    %31 = vector.broadcast %cst_21 : f32 to vector<4x256xf32>
    %32 = arith.maximumf %30, %31 : vector<4x256xf32>
    %c0_22 = arith.constant 0 : index
    %c0_23 = arith.constant 0 : index
    %c0_24 = arith.constant 0 : index
    %33 = vector.load %arg6[%c0_22, %c0_23, %c0_24] : memref<1x4x256xf32, #tpu.memory_space<vmem>>, vector<1x4x256xf32>
    %34 = vector.shape_cast %33 : vector<1x4x256xf32> to vector<4x256xf32>
    %35 = vector.shape_cast %32 : vector<4x256xf32> to vector<1x4x256xf32>
    tpu.vector_store %arg6[%c0_22, %c0_23, %c0_24], %35 {strides = array<i32>} : memref<1x4x256xf32, #tpu.memory_space<vmem>>, vector<1x4x256xf32>,
    return
  }
  func.func @transform_0(%arg0: i32) -> (i32, i32, i32) {
    %c0_i32 = arith.constant 0 : i32
    %c0_i32_0 = arith.constant 0 : i32
    %c0_i32_1 = arith.constant 0 : i32
    return %arg0, %c0_i32, %c0_i32_0 : i32, i32, i32
  }
  func.func @transform_1(%arg0: i32) -> (i32, i32) {
    %c0_i32 = arith.constant 0 : i32
    %c0_i32_0 = arith.constant 0 : i32
    %c0_i32_1 = arith.constant 0 : i32
    return %c0_i32, %c0_i32_0 : i32, i32
  }
  func.func @transform_2(%arg0: i32) -> (i32, i32) {
    %c0_i32 = arith.constant 0 : i32
    %c0_i32_0 = arith.constant 0 : i32
    %c0_i32_1 = arith.constant 0 : i32
    return %c0_i32, %c0_i32_0 : i32, i32
  }
  func.func @transform_3(%arg0: i32) -> (i32, i32) {
    %c0_i32 = arith.constant 0 : i32
    %c0_i32_0 = arith.constant 0 : i32
    %c0_i32_1 = arith.constant 0 : i32
    return %c0_i32, %c0_i32_0 : i32, i32
  }
  func.func @transform_4(%arg0: i32) -> (i32, i32) {
    %c0_i32 = arith.constant 0 : i32
    %c0_i32_0 = arith.constant 0 : i32
    %c0_i32_1 = arith.constant 0 : i32
    return %c0_i32, %c0_i32_0 : i32, i32
  }
  func.func @transform_5(%arg0: i32) -> (i32, i32, i32) {
    %c0_i32 = arith.constant 0 : i32
    %c0_i32_0 = arith.constant 0 : i32
    %c0_i32_1 = arith.constant 0 : i32
    return %arg0, %c0_i32, %c0_i32_0 : i32, i32, i32
  }
}

module attributes {stable_mosaic.version = 11 : i64} {
  func.func @_matmul_bias_kernel(%arg0: i32, %arg1: i32, %arg2: i32, %arg3: memref<8x512xbf16, #tpu.memory_space<vmem>>, %arg4: memref<512x256xbf16, #tpu.memory_space<vmem>>, %arg5: memref<1x256xf32, #tpu.memory_space<vmem>>, %arg6: memref<8x256xf32, #tpu.memory_space<vmem>>, %arg7: memref<8x256xf32, #tpu.memory_space<vmem>>) attributes {dimension_semantics = [#tpu.dimension_semantics<parallel>, #tpu.dimension_semantics<parallel>, #tpu.dimension_semantics<arbitrary>], iteration_bounds = array<i64: 1, 1, 8>, scalar_prefetch = 0 : i64, scratch_operands = 1 : i64, tpu.core_type = #tpu.core_type<tc>, window_params = [{transform_indices = @transform_0, window_bounds = array<i64: 8, 512>}, {transform_indices = @transform_1, window_bounds = array<i64: 512, 256>}, {transform_indices = @transform_2, window_bounds = array<i64: 1, 256>}, {transform_indices = @transform_3, window_bounds = array<i64: 8, 256>}]} {
    %c0_i32 = arith.constant 0 : i32
    %0 = arith.cmpi eq, %arg2, %c0_i32 : i32
    %1 = arith.extui %0 : i1 to i32
    %c0_i32_0 = arith.constant 0 : i32
    %2 = arith.cmpi ne, %1, %c0_i32_0 : i32
    scf.if %2 {
      %cst_9 = arith.constant 0.000000e+00 : f32
      %12 = vector.broadcast %cst_9 : f32 to vector<8x256xf32>
      %c0_10 = arith.constant 0 : index
      %c0_11 = arith.constant 0 : index
      %13 = vector.load %arg7[%c0_10, %c0_11] : memref<8x256xf32, #tpu.memory_space<vmem>>, vector<8x256xf32>
      tpu.vector_store %arg7[%c0_10, %c0_11], %12 {strides = array<i32>} : memref<8x256xf32, #tpu.memory_space<vmem>>, vector<8x256xf32>,
    } else {
    }
    %c0 = arith.constant 0 : index
    %c0_1 = arith.constant 0 : index
    %3 = vector.load %arg7[%c0, %c0_1] : memref<8x256xf32, #tpu.memory_space<vmem>>, vector<8x256xf32>
    %c0_2 = arith.constant 0 : index
    %c0_3 = arith.constant 0 : index
    %4 = vector.load %arg3[%c0_2, %c0_3] : memref<8x512xbf16, #tpu.memory_space<vmem>>, vector<8x512xbf16>
    %c0_4 = arith.constant 0 : index
    %c0_5 = arith.constant 0 : index
    %5 = vector.load %arg4[%c0_4, %c0_5] : memref<512x256xbf16, #tpu.memory_space<vmem>>, vector<512x256xbf16>
    %cst = arith.constant dense<0.000000e+00> : vector<8x256xf32>
    %6 = tpu.matmul %4, %5, %cst {dimension_numbers = #tpu.dot_dimension_numbers<[1], [0], [0], [1], [0, 0, 1, 1], [], []>} : vector<8x512xbf16>, vector<512x256xbf16>, vector<8x256xf32> -> vector<8x256xf32>
    %7 = arith.addf %3, %6 : vector<8x256xf32>
    %c0_6 = arith.constant 0 : index
    %c0_7 = arith.constant 0 : index
    %8 = vector.load %arg7[%c0_6, %c0_7] : memref<8x256xf32, #tpu.memory_space<vmem>>, vector<8x256xf32>
    tpu.vector_store %arg7[%c0_6, %c0_7], %7 {strides = array<i32>} : memref<8x256xf32, #tpu.memory_space<vmem>>, vector<8x256xf32>,
    %c7_i32 = arith.constant 7 : i32
    %9 = arith.cmpi eq, %arg2, %c7_i32 : i32
    %10 = arith.extui %9 : i1 to i32
    %c0_i32_8 = arith.constant 0 : i32
    %11 = arith.cmpi ne, %10, %c0_i32_8 : i32
    scf.if %11 {
      %c0_9 = arith.constant 0 : index
      %c0_10 = arith.constant 0 : index
      %12 = vector.load %arg7[%c0_9, %c0_10] : memref<8x256xf32, #tpu.memory_space<vmem>>, vector<8x256xf32>
      %c0_11 = arith.constant 0 : index
      %c0_12 = arith.constant 0 : index
      %13 = vector.load %arg5[%c0_11, %c0_12] : memref<1x256xf32, #tpu.memory_space<vmem>>, vector<1x256xf32>
      %14 = vector.broadcast %13 : vector<1x256xf32> to vector<8x256xf32>
      %15 = arith.addf %12, %14 : vector<8x256xf32>
      %c0_13 = arith.constant 0 : index
      %c0_14 = arith.constant 0 : index
      %16 = vector.load %arg6[%c0_13, %c0_14] : memref<8x256xf32, #tpu.memory_space<vmem>>, vector<8x256xf32>
      tpu.vector_store %arg6[%c0_13, %c0_14], %15 {strides = array<i32>} : memref<8x256xf32, #tpu.memory_space<vmem>>, vector<8x256xf32>,
    } else {
    }
    return
  }
  func.func @transform_0(%arg0: i32, %arg1: i32, %arg2: i32) -> (i32, i32) {
    %c0_i32 = arith.constant 0 : i32
    return %arg0, %arg2 : i32, i32
  }
  func.func @transform_1(%arg0: i32, %arg1: i32, %arg2: i32) -> (i32, i32) {
    %c0_i32 = arith.constant 0 : i32
    return %arg2, %arg1 : i32, i32
  }
  func.func @transform_2(%arg0: i32, %arg1: i32, %arg2: i32) -> (i32, i32) {
    %c0_i32 = arith.constant 0 : i32
    %c0_i32_0 = arith.constant 0 : i32
    return %c0_i32, %arg1 : i32, i32
  }
  func.func @transform_3(%arg0: i32, %arg1: i32, %arg2: i32) -> (i32, i32) {
    %c0_i32 = arith.constant 0 : i32
    return %arg0, %arg1 : i32, i32
  }
}

module attributes {stable_mosaic.version = 11 : i64} {
  func.func @_matmul_bias_kernel(%arg0: i32, %arg1: i32, %arg2: i32, %arg3: memref<8x512xbf16, #tpu.memory_space<vmem>>, %arg4: memref<512x256xbf16, #tpu.memory_space<vmem>>, %arg5: memref<1x256xf32, #tpu.memory_space<vmem>>, %arg6: memref<8x256xf32, #tpu.memory_space<vmem>>, %arg7: memref<8x256xf32, #tpu.memory_space<vmem>>) attributes {dimension_semantics = [#tpu.dimension_semantics<parallel>, #tpu.dimension_semantics<parallel>, #tpu.dimension_semantics<arbitrary>], iteration_bounds = array<i64: 1, 2, 8>, scalar_prefetch = 0 : i64, scratch_operands = 1 : i64, tpu.core_type = #tpu.core_type<tc>, window_params = [{transform_indices = @transform_0, window_bounds = array<i64: 8, 512>}, {transform_indices = @transform_1, window_bounds = array<i64: 512, 256>}, {transform_indices = @transform_2, window_bounds = array<i64: 1, 256>}, {transform_indices = @transform_3, window_bounds = array<i64: 8, 256>}]} {
    %c0_i32 = arith.constant 0 : i32
    %0 = arith.cmpi eq, %arg2, %c0_i32 : i32
    %1 = arith.extui %0 : i1 to i32
    %c0_i32_0 = arith.constant 0 : i32
    %2 = arith.cmpi ne, %1, %c0_i32_0 : i32
    scf.if %2 {
      %cst_9 = arith.constant 0.000000e+00 : f32
      %12 = vector.broadcast %cst_9 : f32 to vector<8x256xf32>
      %c0_10 = arith.constant 0 : index
      %c0_11 = arith.constant 0 : index
      %13 = vector.load %arg7[%c0_10, %c0_11] : memref<8x256xf32, #tpu.memory_space<vmem>>, vector<8x256xf32>
      tpu.vector_store %arg7[%c0_10, %c0_11], %12 {strides = array<i32>} : memref<8x256xf32, #tpu.memory_space<vmem>>, vector<8x256xf32>,
    } else {
    }
    %c0 = arith.constant 0 : index
    %c0_1 = arith.constant 0 : index
    %3 = vector.load %arg7[%c0, %c0_1] : memref<8x256xf32, #tpu.memory_space<vmem>>, vector<8x256xf32>
    %c0_2 = arith.constant 0 : index
    %c0_3 = arith.constant 0 : index
    %4 = vector.load %arg3[%c0_2, %c0_3] : memref<8x512xbf16, #tpu.memory_space<vmem>>, vector<8x512xbf16>
    %c0_4 = arith.constant 0 : index
    %c0_5 = arith.constant 0 : index
    %5 = vector.load %arg4[%c0_4, %c0_5] : memref<512x256xbf16, #tpu.memory_space<vmem>>, vector<512x256xbf16>
    %cst = arith.constant dense<0.000000e+00> : vector<8x256xf32>
    %6 = tpu.matmul %4, %5, %cst {dimension_numbers = #tpu.dot_dimension_numbers<[1], [0], [0], [1], [0, 0, 1, 1], [], []>} : vector<8x512xbf16>, vector<512x256xbf16>, vector<8x256xf32> -> vector<8x256xf32>
    %7 = arith.addf %3, %6 : vector<8x256xf32>
    %c0_6 = arith.constant 0 : index
    %c0_7 = arith.constant 0 : index
    %8 = vector.load %arg7[%c0_6, %c0_7] : memref<8x256xf32, #tpu.memory_space<vmem>>, vector<8x256xf32>
    tpu.vector_store %arg7[%c0_6, %c0_7], %7 {strides = array<i32>} : memref<8x256xf32, #tpu.memory_space<vmem>>, vector<8x256xf32>,
    %c7_i32 = arith.constant 7 : i32
    %9 = arith.cmpi eq, %arg2, %c7_i32 : i32
    %10 = arith.extui %9 : i1 to i32
    %c0_i32_8 = arith.constant 0 : i32
    %11 = arith.cmpi ne, %10, %c0_i32_8 : i32
    scf.if %11 {
      %c0_9 = arith.constant 0 : index
      %c0_10 = arith.constant 0 : index
      %12 = vector.load %arg7[%c0_9, %c0_10] : memref<8x256xf32, #tpu.memory_space<vmem>>, vector<8x256xf32>
      %c0_11 = arith.constant 0 : index
      %c0_12 = arith.constant 0 : index
      %13 = vector.load %arg5[%c0_11, %c0_12] : memref<1x256xf32, #tpu.memory_space<vmem>>, vector<1x256xf32>
      %14 = vector.broadcast %13 : vector<1x256xf32> to vector<8x256xf32>
      %15 = arith.addf %12, %14 : vector<8x256xf32>
      %c0_13 = arith.constant 0 : index
      %c0_14 = arith.constant 0 : index
      %16 = vector.load %arg6[%c0_13, %c0_14] : memref<8x256xf32, #tpu.memory_space<vmem>>, vector<8x256xf32>
      tpu.vector_store %arg6[%c0_13, %c0_14], %15 {strides = array<i32>} : memref<8x256xf32, #tpu.memory_space<vmem>>, vector<8x256xf32>,
    } else {
    }
    return
  }
  func.func @transform_0(%arg0: i32, %arg1: i32, %arg2: i32) -> (i32, i32) {
    %c0_i32 = arith.constant 0 : i32
    return %arg0, %arg2 : i32, i32
  }
  func.func @transform_1(%arg0: i32, %arg1: i32, %arg2: i32) -> (i32, i32) {
    %c0_i32 = arith.constant 0 : i32
    return %arg2, %arg1 : i32, i32
  }
  func.func @transform_2(%arg0: i32, %arg1: i32, %arg2: i32) -> (i32, i32) {
    %c0_i32 = arith.constant 0 : i32
    %c0_i32_0 = arith.constant 0 : i32
    return %c0_i32, %arg1 : i32, i32
  }
  func.func @transform_3(%arg0: i32, %arg1: i32, %arg2: i32) -> (i32, i32) {
    %c0_i32 = arith.constant 0 : i32
    return %arg0, %arg1 : i32, i32
  }
}

module attributes {stable_mosaic.version = 11 : i64} {
  func.func @_gn_relu_kernel(%arg0: i32, %arg1: memref<1x1x512xf32, #tpu.memory_space<vmem>>, %arg2: memref<512x32xf32, #tpu.memory_space<vmem>>, %arg3: memref<32x512xf32, #tpu.memory_space<vmem>>, %arg4: memref<1x512xf32, #tpu.memory_space<vmem>>, %arg5: memref<1x512xf32, #tpu.memory_space<vmem>>, %arg6: memref<1x1x512xf32, #tpu.memory_space<vmem>>) attributes {dimension_semantics = [#tpu.dimension_semantics<parallel>], iteration_bounds = array<i64: 2>, scalar_prefetch = 0 : i64, scratch_operands = 0 : i64, tpu.core_type = #tpu.core_type<tc>, window_params = [{transform_indices = @transform_0, window_bounds = array<i64: 1, 1, 512>}, {pipeline_mode = #tpu.pipeline_mode<synchronous>, transform_indices = @transform_1, window_bounds = array<i64: 512, 32>}, {pipeline_mode = #tpu.pipeline_mode<synchronous>, transform_indices = @transform_2, window_bounds = array<i64: 32, 512>}, {pipeline_mode = #tpu.pipeline_mode<synchronous>, transform_indices = @transform_3, window_bounds = array<i64: 1, 512>}, {pipeline_mode = #tpu.pipeline_mode<synchronous>, transform_indices = @transform_4, window_bounds = array<i64: 1, 512>}, {transform_indices = @transform_5, window_bounds = array<i64: 1, 1, 512>}]} {
    %c0 = arith.constant 0 : index
    %c0_0 = arith.constant 0 : index
    %c0_1 = arith.constant 0 : index
    %0 = vector.load %arg1[%c0, %c0_0, %c0_1] : memref<1x1x512xf32, #tpu.memory_space<vmem>>, vector<1x1x512xf32>
    %1 = vector.shape_cast %0 : vector<1x1x512xf32> to vector<1x512xf32>
    %cst = arith.constant dense<0.000000e+00> : vector<512xf32>
    %2 = vector.multi_reduction <add>, %1, %cst [0] : vector<1x512xf32> to vector<512xf32>
    %3 = vector.shape_cast %2 : vector<512xf32> to vector<1x512xf32>
    %4 = arith.mulf %1, %1 : vector<1x512xf32>
    %cst_2 = arith.constant dense<0.000000e+00> : vector<512xf32>
    %5 = vector.multi_reduction <add>, %4, %cst_2 [0] : vector<1x512xf32> to vector<512xf32>
    %6 = vector.shape_cast %5 : vector<512xf32> to vector<1x512xf32>
    %c0_3 = arith.constant 0 : index
    %c0_4 = arith.constant 0 : index
    %7 = vector.load %arg2[%c0_3, %c0_4] : memref<512x32xf32, #tpu.memory_space<vmem>>, vector<512x32xf32>
    %cst_5 = arith.constant dense<0.000000e+00> : vector<1x32xf32>
    %8 = tpu.matmul %3, %7, %cst_5 {dimension_numbers = #tpu.dot_dimension_numbers<[1], [0], [0], [1], [0, 0, 1, 1], [], []>} : vector<1x512xf32>, vector<512x32xf32>, vector<1x32xf32> -> vector<1x32xf32>
    %c0_6 = arith.constant 0 : index
    %c0_7 = arith.constant 0 : index
    %9 = vector.load %arg2[%c0_6, %c0_7] : memref<512x32xf32, #tpu.memory_space<vmem>>, vector<512x32xf32>
    %cst_8 = arith.constant dense<0.000000e+00> : vector<1x32xf32>
    %10 = tpu.matmul %6, %9, %cst_8 {dimension_numbers = #tpu.dot_dimension_numbers<[1], [0], [0], [1], [0, 0, 1, 1], [], []>} : vector<1x512xf32>, vector<512x32xf32>, vector<1x32xf32> -> vector<1x32xf32>
    %11 = arith.mulf %8, %8 : vector<1x32xf32>
    %12 = arith.subf %10, %11 : vector<1x32xf32>
    %cst_9 = arith.constant 0.000000e+00 : f32
    %13 = vector.broadcast %cst_9 : f32 to vector<1x32xf32>
    %14 = arith.maximumf %12, %13 : vector<1x32xf32>
    %c0_10 = arith.constant 0 : index
    %c0_11 = arith.constant 0 : index
    %15 = vector.load %arg3[%c0_10, %c0_11] : memref<32x512xf32, #tpu.memory_space<vmem>>, vector<32x512xf32>
    %cst_12 = arith.constant dense<0.000000e+00> : vector<1x512xf32>
    %16 = tpu.matmul %8, %15, %cst_12 {dimension_numbers = #tpu.dot_dimension_numbers<[1], [0], [0], [1], [0, 0, 1, 1], [], []>} : vector<1x32xf32>, vector<32x512xf32>, vector<1x512xf32> -> vector<1x512xf32>
    %c0_13 = arith.constant 0 : index
    %c0_14 = arith.constant 0 : index
    %17 = vector.load %arg3[%c0_13, %c0_14] : memref<32x512xf32, #tpu.memory_space<vmem>>, vector<32x512xf32>
    %cst_15 = arith.constant dense<0.000000e+00> : vector<1x512xf32>
    %18 = tpu.matmul %14, %17, %cst_15 {dimension_numbers = #tpu.dot_dimension_numbers<[1], [0], [0], [1], [0, 0, 1, 1], [], []>} : vector<1x32xf32>, vector<32x512xf32>, vector<1x512xf32> -> vector<1x512xf32>
    %cst_16 = arith.constant 9.99999974E-6 : f32
    %19 = vector.broadcast %cst_16 : f32 to vector<1x512xf32>
    %20 = arith.addf %18, %19 : vector<1x512xf32>
    %21 = math.rsqrt %20 : vector<1x512xf32>
    %c0_17 = arith.constant 0 : index
    %c0_18 = arith.constant 0 : index
    %22 = vector.load %arg4[%c0_17, %c0_18] : memref<1x512xf32, #tpu.memory_space<vmem>>, vector<1x512xf32>
    %23 = arith.mulf %21, %22 : vector<1x512xf32>
    %c0_19 = arith.constant 0 : index
    %c0_20 = arith.constant 0 : index
    %24 = vector.load %arg5[%c0_19, %c0_20] : memref<1x512xf32, #tpu.memory_space<vmem>>, vector<1x512xf32>
    %25 = arith.mulf %16, %23 : vector<1x512xf32>
    %26 = arith.subf %24, %25 : vector<1x512xf32>
    %27 = arith.mulf %1, %23 : vector<1x512xf32>
    %28 = arith.addf %27, %26 : vector<1x512xf32>
    %cst_21 = arith.constant 0.000000e+00 : f32
    %29 = vector.broadcast %cst_21 : f32 to vector<1x512xf32>
    %30 = arith.maximumf %28, %29 : vector<1x512xf32>
    %c0_22 = arith.constant 0 : index
    %c0_23 = arith.constant 0 : index
    %c0_24 = arith.constant 0 : index
    %31 = vector.load %arg6[%c0_22, %c0_23, %c0_24] : memref<1x1x512xf32, #tpu.memory_space<vmem>>, vector<1x1x512xf32>
    %32 = vector.shape_cast %31 : vector<1x1x512xf32> to vector<1x512xf32>
    %33 = vector.shape_cast %30 : vector<1x512xf32> to vector<1x1x512xf32>
    tpu.vector_store %arg6[%c0_22, %c0_23, %c0_24], %33 {strides = array<i32>} : memref<1x1x512xf32, #tpu.memory_space<vmem>>, vector<1x1x512xf32>,
    return
  }
  func.func @transform_0(%arg0: i32) -> (i32, i32, i32) {
    %c0_i32 = arith.constant 0 : i32
    %c0_i32_0 = arith.constant 0 : i32
    %c0_i32_1 = arith.constant 0 : i32
    return %arg0, %c0_i32, %c0_i32_0 : i32, i32, i32
  }
  func.func @transform_1(%arg0: i32) -> (i32, i32) {
    %c0_i32 = arith.constant 0 : i32
    %c0_i32_0 = arith.constant 0 : i32
    %c0_i32_1 = arith.constant 0 : i32
    return %c0_i32, %c0_i32_0 : i32, i32
  }
  func.func @transform_2(%arg0: i32) -> (i32, i32) {
    %c0_i32 = arith.constant 0 : i32
    %c0_i32_0 = arith.constant 0 : i32
    %c0_i32_1 = arith.constant 0 : i32
    return %c0_i32, %c0_i32_0 : i32, i32
  }
  func.func @transform_3(%arg0: i32) -> (i32, i32) {
    %c0_i32 = arith.constant 0 : i32
    %c0_i32_0 = arith.constant 0 : i32
    %c0_i32_1 = arith.constant 0 : i32
    return %c0_i32, %c0_i32_0 : i32, i32
  }
  func.func @transform_4(%arg0: i32) -> (i32, i32) {
    %c0_i32 = arith.constant 0 : i32
    %c0_i32_0 = arith.constant 0 : i32
    %c0_i32_1 = arith.constant 0 : i32
    return %c0_i32, %c0_i32_0 : i32, i32
  }
  func.func @transform_5(%arg0: i32) -> (i32, i32, i32) {
    %c0_i32 = arith.constant 0 : i32
    %c0_i32_0 = arith.constant 0 : i32
    %c0_i32_1 = arith.constant 0 : i32
    return %arg0, %c0_i32, %c0_i32_0 : i32, i32, i32
  }
}

module attributes {stable_mosaic.version = 11 : i64} {
  func.func @_matmul_bias_kernel(%arg0: i32, %arg1: i32, %arg2: i32, %arg3: memref<8x512xbf16, #tpu.memory_space<vmem>>, %arg4: memref<512x256xbf16, #tpu.memory_space<vmem>>, %arg5: memref<1x256xf32, #tpu.memory_space<vmem>>, %arg6: memref<8x256xf32, #tpu.memory_space<vmem>>, %arg7: memref<8x256xf32, #tpu.memory_space<vmem>>) attributes {dimension_semantics = [#tpu.dimension_semantics<parallel>, #tpu.dimension_semantics<parallel>, #tpu.dimension_semantics<arbitrary>], iteration_bounds = array<i64: 1, 4, 9>, scalar_prefetch = 0 : i64, scratch_operands = 1 : i64, tpu.core_type = #tpu.core_type<tc>, window_params = [{transform_indices = @transform_0, window_bounds = array<i64: 8, 512>}, {transform_indices = @transform_1, window_bounds = array<i64: 512, 256>}, {transform_indices = @transform_2, window_bounds = array<i64: 1, 256>}, {transform_indices = @transform_3, window_bounds = array<i64: 8, 256>}]} {
    %c0_i32 = arith.constant 0 : i32
    %0 = arith.cmpi eq, %arg2, %c0_i32 : i32
    %1 = arith.extui %0 : i1 to i32
    %c0_i32_0 = arith.constant 0 : i32
    %2 = arith.cmpi ne, %1, %c0_i32_0 : i32
    scf.if %2 {
      %cst_9 = arith.constant 0.000000e+00 : f32
      %12 = vector.broadcast %cst_9 : f32 to vector<8x256xf32>
      %c0_10 = arith.constant 0 : index
      %c0_11 = arith.constant 0 : index
      %13 = vector.load %arg7[%c0_10, %c0_11] : memref<8x256xf32, #tpu.memory_space<vmem>>, vector<8x256xf32>
      tpu.vector_store %arg7[%c0_10, %c0_11], %12 {strides = array<i32>} : memref<8x256xf32, #tpu.memory_space<vmem>>, vector<8x256xf32>,
    } else {
    }
    %c0 = arith.constant 0 : index
    %c0_1 = arith.constant 0 : index
    %3 = vector.load %arg7[%c0, %c0_1] : memref<8x256xf32, #tpu.memory_space<vmem>>, vector<8x256xf32>
    %c0_2 = arith.constant 0 : index
    %c0_3 = arith.constant 0 : index
    %4 = vector.load %arg3[%c0_2, %c0_3] : memref<8x512xbf16, #tpu.memory_space<vmem>>, vector<8x512xbf16>
    %c0_4 = arith.constant 0 : index
    %c0_5 = arith.constant 0 : index
    %5 = vector.load %arg4[%c0_4, %c0_5] : memref<512x256xbf16, #tpu.memory_space<vmem>>, vector<512x256xbf16>
    %cst = arith.constant dense<0.000000e+00> : vector<8x256xf32>
    %6 = tpu.matmul %4, %5, %cst {dimension_numbers = #tpu.dot_dimension_numbers<[1], [0], [0], [1], [0, 0, 1, 1], [], []>} : vector<8x512xbf16>, vector<512x256xbf16>, vector<8x256xf32> -> vector<8x256xf32>
    %7 = arith.addf %3, %6 : vector<8x256xf32>
    %c0_6 = arith.constant 0 : index
    %c0_7 = arith.constant 0 : index
    %8 = vector.load %arg7[%c0_6, %c0_7] : memref<8x256xf32, #tpu.memory_space<vmem>>, vector<8x256xf32>
    tpu.vector_store %arg7[%c0_6, %c0_7], %7 {strides = array<i32>} : memref<8x256xf32, #tpu.memory_space<vmem>>, vector<8x256xf32>,
    %c8_i32 = arith.constant 8 : i32
    %9 = arith.cmpi eq, %arg2, %c8_i32 : i32
    %10 = arith.extui %9 : i1 to i32
    %c0_i32_8 = arith.constant 0 : i32
    %11 = arith.cmpi ne, %10, %c0_i32_8 : i32
    scf.if %11 {
      %c0_9 = arith.constant 0 : index
      %c0_10 = arith.constant 0 : index
      %12 = vector.load %arg7[%c0_9, %c0_10] : memref<8x256xf32, #tpu.memory_space<vmem>>, vector<8x256xf32>
      %c0_11 = arith.constant 0 : index
      %c0_12 = arith.constant 0 : index
      %13 = vector.load %arg5[%c0_11, %c0_12] : memref<1x256xf32, #tpu.memory_space<vmem>>, vector<1x256xf32>
      %14 = vector.broadcast %13 : vector<1x256xf32> to vector<8x256xf32>
      %15 = arith.addf %12, %14 : vector<8x256xf32>
      %c0_13 = arith.constant 0 : index
      %c0_14 = arith.constant 0 : index
      %16 = vector.load %arg6[%c0_13, %c0_14] : memref<8x256xf32, #tpu.memory_space<vmem>>, vector<8x256xf32>
      tpu.vector_store %arg6[%c0_13, %c0_14], %15 {strides = array<i32>} : memref<8x256xf32, #tpu.memory_space<vmem>>, vector<8x256xf32>,
    } else {
    }
    return
  }
  func.func @transform_0(%arg0: i32, %arg1: i32, %arg2: i32) -> (i32, i32) {
    %c0_i32 = arith.constant 0 : i32
    return %arg0, %arg2 : i32, i32
  }
  func.func @transform_1(%arg0: i32, %arg1: i32, %arg2: i32) -> (i32, i32) {
    %c0_i32 = arith.constant 0 : i32
    return %arg2, %arg1 : i32, i32
  }
  func.func @transform_2(%arg0: i32, %arg1: i32, %arg2: i32) -> (i32, i32) {
    %c0_i32 = arith.constant 0 : i32
    %c0_i32_0 = arith.constant 0 : i32
    return %c0_i32, %arg1 : i32, i32
  }
  func.func @transform_3(%arg0: i32, %arg1: i32, %arg2: i32) -> (i32, i32) {
    %c0_i32 = arith.constant 0 : i32
    return %arg0, %arg1 : i32, i32
  }
}

module attributes {stable_mosaic.version = 11 : i64} {
  func.func @_gn_relu_kernel(%arg0: i32, %arg1: memref<1x1x1024xf32, #tpu.memory_space<vmem>>, %arg2: memref<1024x64xf32, #tpu.memory_space<vmem>>, %arg3: memref<64x1024xf32, #tpu.memory_space<vmem>>, %arg4: memref<1x1024xf32, #tpu.memory_space<vmem>>, %arg5: memref<1x1024xf32, #tpu.memory_space<vmem>>, %arg6: memref<1x1x1024xf32, #tpu.memory_space<vmem>>) attributes {dimension_semantics = [#tpu.dimension_semantics<parallel>], iteration_bounds = array<i64: 2>, scalar_prefetch = 0 : i64, scratch_operands = 0 : i64, tpu.core_type = #tpu.core_type<tc>, window_params = [{transform_indices = @transform_0, window_bounds = array<i64: 1, 1, 1024>}, {pipeline_mode = #tpu.pipeline_mode<synchronous>, transform_indices = @transform_1, window_bounds = array<i64: 1024, 64>}, {pipeline_mode = #tpu.pipeline_mode<synchronous>, transform_indices = @transform_2, window_bounds = array<i64: 64, 1024>}, {pipeline_mode = #tpu.pipeline_mode<synchronous>, transform_indices = @transform_3, window_bounds = array<i64: 1, 1024>}, {pipeline_mode = #tpu.pipeline_mode<synchronous>, transform_indices = @transform_4, window_bounds = array<i64: 1, 1024>}, {transform_indices = @transform_5, window_bounds = array<i64: 1, 1, 1024>}]} {
    %c0 = arith.constant 0 : index
    %c0_0 = arith.constant 0 : index
    %c0_1 = arith.constant 0 : index
    %0 = vector.load %arg1[%c0, %c0_0, %c0_1] : memref<1x1x1024xf32, #tpu.memory_space<vmem>>, vector<1x1x1024xf32>
    %1 = vector.shape_cast %0 : vector<1x1x1024xf32> to vector<1x1024xf32>
    %cst = arith.constant dense<0.000000e+00> : vector<1024xf32>
    %2 = vector.multi_reduction <add>, %1, %cst [0] : vector<1x1024xf32> to vector<1024xf32>
    %3 = vector.shape_cast %2 : vector<1024xf32> to vector<1x1024xf32>
    %4 = arith.mulf %1, %1 : vector<1x1024xf32>
    %cst_2 = arith.constant dense<0.000000e+00> : vector<1024xf32>
    %5 = vector.multi_reduction <add>, %4, %cst_2 [0] : vector<1x1024xf32> to vector<1024xf32>
    %6 = vector.shape_cast %5 : vector<1024xf32> to vector<1x1024xf32>
    %c0_3 = arith.constant 0 : index
    %c0_4 = arith.constant 0 : index
    %7 = vector.load %arg2[%c0_3, %c0_4] : memref<1024x64xf32, #tpu.memory_space<vmem>>, vector<1024x64xf32>
    %cst_5 = arith.constant dense<0.000000e+00> : vector<1x64xf32>
    %8 = tpu.matmul %3, %7, %cst_5 {dimension_numbers = #tpu.dot_dimension_numbers<[1], [0], [0], [1], [0, 0, 1, 1], [], []>} : vector<1x1024xf32>, vector<1024x64xf32>, vector<1x64xf32> -> vector<1x64xf32>
    %c0_6 = arith.constant 0 : index
    %c0_7 = arith.constant 0 : index
    %9 = vector.load %arg2[%c0_6, %c0_7] : memref<1024x64xf32, #tpu.memory_space<vmem>>, vector<1024x64xf32>
    %cst_8 = arith.constant dense<0.000000e+00> : vector<1x64xf32>
    %10 = tpu.matmul %6, %9, %cst_8 {dimension_numbers = #tpu.dot_dimension_numbers<[1], [0], [0], [1], [0, 0, 1, 1], [], []>} : vector<1x1024xf32>, vector<1024x64xf32>, vector<1x64xf32> -> vector<1x64xf32>
    %11 = arith.mulf %8, %8 : vector<1x64xf32>
    %12 = arith.subf %10, %11 : vector<1x64xf32>
    %cst_9 = arith.constant 0.000000e+00 : f32
    %13 = vector.broadcast %cst_9 : f32 to vector<1x64xf32>
    %14 = arith.maximumf %12, %13 : vector<1x64xf32>
    %c0_10 = arith.constant 0 : index
    %c0_11 = arith.constant 0 : index
    %15 = vector.load %arg3[%c0_10, %c0_11] : memref<64x1024xf32, #tpu.memory_space<vmem>>, vector<64x1024xf32>
    %cst_12 = arith.constant dense<0.000000e+00> : vector<1x1024xf32>
    %16 = tpu.matmul %8, %15, %cst_12 {dimension_numbers = #tpu.dot_dimension_numbers<[1], [0], [0], [1], [0, 0, 1, 1], [], []>} : vector<1x64xf32>, vector<64x1024xf32>, vector<1x1024xf32> -> vector<1x1024xf32>
    %c0_13 = arith.constant 0 : index
    %c0_14 = arith.constant 0 : index
    %17 = vector.load %arg3[%c0_13, %c0_14] : memref<64x1024xf32, #tpu.memory_space<vmem>>, vector<64x1024xf32>
    %cst_15 = arith.constant dense<0.000000e+00> : vector<1x1024xf32>
    %18 = tpu.matmul %14, %17, %cst_15 {dimension_numbers = #tpu.dot_dimension_numbers<[1], [0], [0], [1], [0, 0, 1, 1], [], []>} : vector<1x64xf32>, vector<64x1024xf32>, vector<1x1024xf32> -> vector<1x1024xf32>
    %cst_16 = arith.constant 9.99999974E-6 : f32
    %19 = vector.broadcast %cst_16 : f32 to vector<1x1024xf32>
    %20 = arith.addf %18, %19 : vector<1x1024xf32>
    %21 = math.rsqrt %20 : vector<1x1024xf32>
    %c0_17 = arith.constant 0 : index
    %c0_18 = arith.constant 0 : index
    %22 = vector.load %arg4[%c0_17, %c0_18] : memref<1x1024xf32, #tpu.memory_space<vmem>>, vector<1x1024xf32>
    %23 = arith.mulf %21, %22 : vector<1x1024xf32>
    %c0_19 = arith.constant 0 : index
    %c0_20 = arith.constant 0 : index
    %24 = vector.load %arg5[%c0_19, %c0_20] : memref<1x1024xf32, #tpu.memory_space<vmem>>, vector<1x1024xf32>
    %25 = arith.mulf %16, %23 : vector<1x1024xf32>
    %26 = arith.subf %24, %25 : vector<1x1024xf32>
    %27 = arith.mulf %1, %23 : vector<1x1024xf32>
    %28 = arith.addf %27, %26 : vector<1x1024xf32>
    %cst_21 = arith.constant 0.000000e+00 : f32
    %29 = vector.broadcast %cst_21 : f32 to vector<1x1024xf32>
    %30 = arith.maximumf %28, %29 : vector<1x1024xf32>
    %c0_22 = arith.constant 0 : index
    %c0_23 = arith.constant 0 : index
    %c0_24 = arith.constant 0 : index
    %31 = vector.load %arg6[%c0_22, %c0_23, %c0_24] : memref<1x1x1024xf32, #tpu.memory_space<vmem>>, vector<1x1x1024xf32>
    %32 = vector.shape_cast %31 : vector<1x1x1024xf32> to vector<1x1024xf32>
    %33 = vector.shape_cast %30 : vector<1x1024xf32> to vector<1x1x1024xf32>
    tpu.vector_store %arg6[%c0_22, %c0_23, %c0_24], %33 {strides = array<i32>} : memref<1x1x1024xf32, #tpu.memory_space<vmem>>, vector<1x1x1024xf32>,
    return
  }
  func.func @transform_0(%arg0: i32) -> (i32, i32, i32) {
    %c0_i32 = arith.constant 0 : i32
    %c0_i32_0 = arith.constant 0 : i32
    %c0_i32_1 = arith.constant 0 : i32
    return %arg0, %c0_i32, %c0_i32_0 : i32, i32, i32
  }
  func.func @transform_1(%arg0: i32) -> (i32, i32) {
    %c0_i32 = arith.constant 0 : i32
    %c0_i32_0 = arith.constant 0 : i32
    %c0_i32_1 = arith.constant 0 : i32
    return %c0_i32, %c0_i32_0 : i32, i32
  }
  func.func @transform_2(%arg0: i32) -> (i32, i32) {
    %c0_i32 = arith.constant 0 : i32
    %c0_i32_0 = arith.constant 0 : i32
    %c0_i32_1 = arith.constant 0 : i32
    return %c0_i32, %c0_i32_0 : i32, i32
  }
  func.func @transform_3(%arg0: i32) -> (i32, i32) {
    %c0_i32 = arith.constant 0 : i32
    %c0_i32_0 = arith.constant 0 : i32
    %c0_i32_1 = arith.constant 0 : i32
    return %c0_i32, %c0_i32_0 : i32, i32
  }
  func.func @transform_4(%arg0: i32) -> (i32, i32) {
    %c0_i32 = arith.constant 0 : i32
    %c0_i32_0 = arith.constant 0 : i32
    %c0_i32_1 = arith.constant 0 : i32
    return %c0_i32, %c0_i32_0 : i32, i32
  }
  func.func @transform_5(%arg0: i32) -> (i32, i32, i32) {
    %c0_i32 = arith.constant 0 : i32
    %c0_i32_0 = arith.constant 0 : i32
    %c0_i32_1 = arith.constant 0 : i32
    return %arg0, %c0_i32, %c0_i32_0 : i32, i32, i32
  }
}

</mosaic_0001>

<bundles_post_ra>
// kernel: encoder_mg_forward.12
= control target key start
LH: loop header
LB: loop body
LE: loop exit
PB: predicated region body
PF: predicated region fallthrough
CT: control target
= control target key end

     0   :  { %s1154_s12 = smov 0   ;;  %s1156_s13 = smov 0   ;;  %s1305_s0 = inlined_call_operand.vmem [shape: bf16[512,48], index: 0, kind: input, shape index: {}]   ;;  %s1306_s1 = inlined_call_operand.vmem [shape: bf16[48,128], index: 1, kind: input, shape index: {}]   ;;  %s1307_s2 = inlined_call_operand.vmem [shape: f32[1,128], index: 2, kind: input, shape index: {}]   ;;  %s1308_s3 = inlined_call_operand.vmem [shape: f32[512,128], index: 3, kind: output, shape index: {}]  }
   0x1   :  { %s1158_s14 = smov 0  }
   0x2 LB: > { %s32_s15 = sadd.s32 1, %s1128_s13  ;;  %p961_p0 = scmp.ge.s32.totalorder %s1132_s14, 1  ;;  %s1132_s14 = sphi %s1158_s14, %s13_s14   ;;  %s1128_s13 = sphi %s1156_s13, %s1310_s13   ;;  %s1124_s12 = sphi %s1154_s12, %s1309_s12  }
   0x3   : > { %p34_p1 = scmp.ge.s32.totalorder %s32_s15, 2  ;;  %p188_p2 = scmp.lt.s32.totalorder %s1132_s14, 3 }
   0x5   : > { %s1312_s15 = smov (%p34_p1, %s32_s15), 0  ;;  %p189_p3 = pnand %p961_p0, %p188_p2 }
   0x6   : > { %s962_s18 = sshll.u32 (!%p189_p3), %s1124_s12, 5 }
   0x7   : > { %192 = sbr.rel (%p189_p3) target bundleno = 251 (0xfb), region = 32  ;;  %p230_p4 = scmp.lt.s32.totalorder (!%p189_p3), %s962_s18, 63 }
   0xc   : > { %v1091_v0 = vld [vmem:[%s1306_s1 + $0x10] sm:$0xff]   ;;  %v1092_v1 = vld [vmem:[%s1306_s1 + $0x8] sm:$0xff]   ;;  %s1314_s18 = smov (!%p230_p4, %s962_s18), 63  ;;  %v1093_v2 = vld [vmem:[%s1306_s1] sm:$0xff]   ;;  %vm464_vm0 = vcmask 392192  }
   0xd   : > { %1023 = vmatprep.subr.bf16.mxu0 %v1091_v0  ;;  %1061 = vmatprep.subr.bf16.mxu1 %v1091_v0  ;;  %s963_s23 = sshll.u32 %s1314_s18, 2  ;;  %s965_s27 = sshll.u32 %s1314_s18, 3  ;;  %v1225_v19 = vld [vmem:[%s1307_s2] ss:$0 sm:$0xff] }
   0xe   : > { %1024 = vmatpush3.bf16.msra.mxu0 %v1091_v0  ;;  %1064 = vmatpush3.bf16.msra.mxu1 %v1091_v0  ;;  %s1187_s26 = scalar_lea.vmem %s1305_s0, %s963_s23  ;;  %s1230_s5 = scalar_lea.vmem %s1308_s3, %s965_s27 }
   0xf   : > { %1025 = vmatprep.subr.bf16.mxu0 %v1092_v1  ;;  %1062 = vmatprep.subr.bf16.mxu1 %v1092_v1  ;;  %v1094_v3 = vld [vmem:[%s1187_s26] sm:$0xff]   ;;  %v1096_v5 = vld [vmem:[%s1187_s26 + $0x8] sm:$0xff]   ;;  %v1098_v7 = vld [vmem:[%s1187_s26 + $0x10] sm:$0xff]  }
  0x10   : > { %v1095_v4 = vld [vmem:[%s1187_s26 + $0x40] sm:$0xff]   ;;  %1029 = vmatprep.mubr.msk.bf16.mxu0 %vm464_vm0, %v1094_v3  ;;  %v1097_v6 = vld [vmem:[%s1187_s26 + $0x48] sm:$0xff]   ;;  %v1099_v8 = vld [vmem:[%s1187_s26 + $0x50] sm:$0xff]  }
  0x11   : > { %1045 = vmatprep.mubr.msk.bf16.mxu1 %vm464_vm0, %v1095_v4  ;;  %v1100_v9 = vld [vmem:[%s1187_s26 + $0x18] sm:$0xff]   ;;  %v1102_v11 = vld [vmem:[%s1187_s26 + $0x20] sm:$0xff]   ;;  %v1104_v13 = vld [vmem:[%s1187_s26 + $0x28] sm:$0xff]  }
  0x12   : > { %1026 = vmatpush3.bf16.msra.mxu0 %v1092_v1  ;;  %1065 = vmatpush3.bf16.msra.mxu1 %v1092_v1  ;;  %v1101_v10 = vld [vmem:[%s1187_s26 + $0x58] sm:$0xff]   ;;  %v1103_v12 = vld [vmem:[%s1187_s26 + $0x60] sm:$0xff]   ;;  %v1105_v14 = vld [vmem:[%s1187_s26 + $0x68] sm:$0xff]  }
  0x13   : > { %1027 = vmatprep.subr.bf16.mxu0 %v1093_v2  ;;  %1063 = vmatprep.subr.bf16.mxu1 %v1093_v2  ;;  %v1106_v15 = vld [vmem:[%s1187_s26 + $0x30] sm:$0xff]   ;;  %v1108_v17 = vld [vmem:[%s1187_s26 + $0x38] sm:$0xff]  }
  0x14   : > { %v1107_v16 = vld [vmem:[%s1187_s26 + $0x70] sm:$0xff]   ;;  %v1109_v18 = vld [vmem:[%s1187_s26 + $0x78] sm:$0xff]  }
  0x16   : > { %1028 = vmatpush3.bf16.msra.mxu0 %v1093_v2  ;;  %1066 = vmatpush3.bf16.msra.mxu1 %v1093_v2 }
  0x19   : > { %1030 = vmatmul.mubr.msk.bf16.vlgmr.msra.gmra.mxu0 %vm464_vm0, %v1096_v5  ;;  %1046 = vmatmul.mubr.msk.bf16.vlgmr.msra.gmra.mxu1 %vm464_vm0, %v1097_v6 }
  0x1a   : > { %1033 = vmatprep.mubr.msk.bf16.mxu0 %vm464_vm0, %v1098_v7  ;;  %1049 = vmatprep.mubr.msk.bf16.mxu1 %vm464_vm0, %v1099_v8 }
  0x21   : > { %1034 = vmatmul.mubr.msk.bf16.gmra.mxu0 %vm464_vm0, %v1100_v9  ;;  %1050 = vmatmul.mubr.msk.bf16.gmra.mxu1 %vm464_vm0, %v1101_v10 }
  0x22   : > { %1037 = vmatprep.mubr.msk.bf16.mxu0 %vm464_vm0, %v1102_v11  ;;  %1053 = vmatprep.mubr.msk.bf16.mxu1 %vm464_vm0, %v1103_v12 }
  0x29   : > { %1038 = vmatmul.mubr.msk.bf16.gmra.mxu0 %vm464_vm0, %v1104_v13  ;;  %1054 = vmatmul.mubr.msk.bf16.gmra.mxu1 %vm464_vm0, %v1105_v14 }
  0x2a   : > { %1041 = vmatprep.mubr.msk.bf16.mxu0 %vm464_vm0, %v1106_v15  ;;  %1057 = vmatprep.mubr.msk.bf16.mxu1 %vm464_vm0, %v1107_v16 }
  0x31   : > { %1042 = vmatmul.mubr.msk.bf16.gmra.mxu0 %vm464_vm0, %v1108_v17  ;;  %1058 = vmatmul.mubr.msk.bf16.gmra.mxu1 %vm464_vm0, %v1109_v18 }
  0xd9   : > { %v1031_v20 = vpop.f32.mrf.mxu0  ;;  %v1047_v21 = vpop.f32.mrf.mxu1 }
  0xda   : > { %v782_v22 = vadd.f32 %v1031_v20, %v1225_v19  ;;  %v798_v23 = vadd.f32 %v1047_v21, %v1225_v19 }
  0xdb   : > { %v547_v24 = vpop.f32.mrf.mxu0  ;;  %v611_v25 = vpop.f32.mrf.mxu1 }
  0xdc   : > { %814 = vst [vmem:[%s1230_s5 + $0x10] sm:$0xff] %v782_v22  ;;  %830 = vst [vmem:[%s1230_s5 + $0x90] sm:$0xff] %v798_v23  ;;  %v780_v26 = vadd.f32 %v1225_v19, %v547_v24  ;;  %v796_v27 = vadd.f32 %v1225_v19, %v611_v25 }
  0xdd   : > { %v1032_v28 = vpop.f32.mrf.mxu0  ;;  %v1048_v29 = vpop.f32.mrf.mxu1 }
  0xde   : > { %812 = vst [vmem:[%s1230_s5] sm:$0xff] %v780_v26  ;;  %828 = vst [vmem:[%s1230_s5 + $0x80] sm:$0xff] %v796_v27  ;;  %v783_v30 = vadd.f32 %v1032_v28, %v1225_v19  ;;  %v799_v31 = vadd.f32 %v1048_v29, %v1225_v19 }
  0xdf   : > { %v550_v32 = vpop.f32.mrf.mxu0  ;;  %v614_v33 = vpop.f32.mrf.mxu1 }
  0xe0   : > { %815 = vst [vmem:[%s1230_s5 + $0x18] sm:$0xff] %v783_v30  ;;  %831 = vst [vmem:[%s1230_s5 + $0x98] sm:$0xff] %v799_v31  ;;  %v781_v34 = vadd.f32 %v1225_v19, %v550_v32  ;;  %v797_v35 = vadd.f32 %v1225_v19, %v614_v33 }
  0xe1   : > { %v1035_v36 = vpop.f32.mrf.mxu0  ;;  %v1051_v37 = vpop.f32.mrf.mxu1 }
  0xe2   : > { %813 = vst [vmem:[%s1230_s5 + $0x8] sm:$0xff] %v781_v34  ;;  %829 = vst [vmem:[%s1230_s5 + $0x88] sm:$0xff] %v797_v35  ;;  %v786_v38 = vadd.f32 %v1035_v36, %v1225_v19  ;;  %v802_v39 = vadd.f32 %v1051_v37, %v1225_v19 }
  0xe3   : > { %v563_v40 = vpop.f32.mrf.mxu0  ;;  %v627_v41 = vpop.f32.mrf.mxu1 }
  0xe4   : > { %818 = vst [vmem:[%s1230_s5 + $0x30] sm:$0xff] %v786_v38  ;;  %834 = vst [vmem:[%s1230_s5 + $0xb0] sm:$0xff] %v802_v39  ;;  %v784_v42 = vadd.f32 %v1225_v19, %v563_v40  ;;  %v800_v43 = vadd.f32 %v1225_v19, %v627_v41 }
  0xe5   : > { %v1036_v44 = vpop.f32.mrf.mxu0  ;;  %v1052_v45 = vpop.f32.mrf.mxu1 }
  0xe6   : > { %816 = vst [vmem:[%s1230_s5 + $0x20] sm:$0xff] %v784_v42  ;;  %832 = vst [vmem:[%s1230_s5 + $0xa0] sm:$0xff] %v800_v43  ;;  %v787_v46 = vadd.f32 %v1036_v44, %v1225_v19  ;;  %v803_v47 = vadd.f32 %v1052_v45, %v1225_v19 }
  0xe7   : > { %v566_v48 = vpop.f32.mrf.mxu0  ;;  %v630_v49 = vpop.f32.mrf.mxu1 }
  0xe8   : > { %819 = vst [vmem:[%s1230_s5 + $0x38] sm:$0xff] %v787_v46  ;;  %835 = vst [vmem:[%s1230_s5 + $0xb8] sm:$0xff] %v803_v47  ;;  %v785_v50 = vadd.f32 %v1225_v19, %v566_v48  ;;  %v801_v51 = vadd.f32 %v1225_v19, %v630_v49 }
  0xe9   : > { %v1039_v52 = vpop.f32.mrf.mxu0  ;;  %v1055_v53 = vpop.f32.mrf.mxu1 }
  0xea   : > { %817 = vst [vmem:[%s1230_s5 + $0x28] sm:$0xff] %v785_v50  ;;  %833 = vst [vmem:[%s1230_s5 + $0xa8] sm:$0xff] %v801_v51  ;;  %v790_v54 = vadd.f32 %v1039_v52, %v1225_v19  ;;  %v806_v55 = vadd.f32 %v1055_v53, %v1225_v19 }
  0xeb   : > { %v579_v56 = vpop.f32.mrf.mxu0  ;;  %v643_v57 = vpop.f32.mrf.mxu1 }
  0xec   : > { %822 = vst [vmem:[%s1230_s5 + $0x50] sm:$0xff] %v790_v54  ;;  %838 = vst [vmem:[%s1230_s5 + $0xd0] sm:$0xff] %v806_v55  ;;  %v788_v58 = vadd.f32 %v1225_v19, %v579_v56  ;;  %v804_v59 = vadd.f32 %v1225_v19, %v643_v57 }
  0xed   : > { %v1040_v60 = vpop.f32.mrf.mxu0  ;;  %v1056_v61 = vpop.f32.mrf.mxu1 }
  0xee   : > { %820 = vst [vmem:[%s1230_s5 + $0x40] sm:$0xff] %v788_v58  ;;  %836 = vst [vmem:[%s1230_s5 + $0xc0] sm:$0xff] %v804_v59  ;;  %v791_v62 = vadd.f32 %v1040_v60, %v1225_v19  ;;  %v807_v63 = vadd.f32 %v1056_v61, %v1225_v19 }
  0xef   : > { %v582_v0 = vpop.f32.mrf.mxu0  ;;  %v646_v1 = vpop.f32.mrf.mxu1 }
  0xf0   : > { %823 = vst [vmem:[%s1230_s5 + $0x58] sm:$0xff] %v791_v62  ;;  %839 = vst [vmem:[%s1230_s5 + $0xd8] sm:$0xff] %v807_v63  ;;  %v789_v2 = vadd.f32 %v1225_v19, %v582_v0  ;;  %v805_v3 = vadd.f32 %v1225_v19, %v646_v1 }
  0xf1   : > { %v1043_v4 = vpop.f32.mrf.mxu0  ;;  %v1059_v5 = vpop.f32.mrf.mxu1 }
  0xf2   : > { %821 = vst [vmem:[%s1230_s5 + $0x48] sm:$0xff] %v789_v2  ;;  %837 = vst [vmem:[%s1230_s5 + $0xc8] sm:$0xff] %v805_v3  ;;  %v794_v6 = vadd.f32 %v1043_v4, %v1225_v19  ;;  %v810_v7 = vadd.f32 %v1059_v5, %v1225_v19 }
  0xf3   : > { %v595_v8 = vpop.f32.mrf.mxu0  ;;  %v659_v9 = vpop.f32.mrf.mxu1 }
  0xf4   : > { %826 = vst [vmem:[%s1230_s5 + $0x70] sm:$0xff] %v794_v6  ;;  %842 = vst [vmem:[%s1230_s5 + $0xf0] sm:$0xff] %v810_v7  ;;  %v792_v10 = vadd.f32 %v1225_v19, %v595_v8  ;;  %v808_v11 = vadd.f32 %v1225_v19, %v659_v9 }
  0xf5   : > { %v1044_v12 = vpop.f32.mrf.mxu0  ;;  %v1060_v13 = vpop.f32.mrf.mxu1 }
  0xf6   : > { %824 = vst [vmem:[%s1230_s5 + $0x60] sm:$0xff] %v792_v10  ;;  %840 = vst [vmem:[%s1230_s5 + $0xe0] sm:$0xff] %v808_v11  ;;  %v795_v14 = vadd.f32 %v1044_v12, %v1225_v19  ;;  %v811_v15 = vadd.f32 %v1060_v13, %v1225_v19 }
  0xf7   : > { %v598_v16 = vpop.f32.mrf.mxu0  ;;  %v662_v17 = vpop.f32.mrf.mxu1 }
  0xf8   : > { %827 = vst [vmem:[%s1230_s5 + $0x78] sm:$0xff] %v795_v14  ;;  %843 = vst [vmem:[%s1230_s5 + $0xf8] sm:$0xff] %v811_v15  ;;  %v793_v18 = vadd.f32 %v1225_v19, %v598_v16  ;;  %v809_v20 = vadd.f32 %v1225_v19, %v662_v17 }
  0xfa   : > { %825 = vst [vmem:[%s1230_s5 + $0x68] sm:$0xff] %v793_v18  ;;  %841 = vst [vmem:[%s1230_s5 + $0xe8] sm:$0xff] %v809_v20 }
  0xfb PF: > { %s13_s14 = sadd.s32 1, %s1132_s14   ;;  %s1309_s12 = smov %s1128_s13 }
  0xfc   : > { %p10_p5 = scmp.ge.s32.totalorder %s13_s14, 4   ;;  %s1310_s13 = smov %s1312_s15 }
  0xfe   :  { %12 = sbr.rel (!%p10_p5) target bundleno = 2 (0x2), region = 76 }

// kernel: encoder_mg_forward.13
= control target key start
LH: loop header
LB: loop body
LE: loop exit
PB: predicated region body
PF: predicated region fallthrough
CT: control target
= control target key end

     0   :  { %s1192_s18 = smov 0   ;;  %s1611_s0 = inlined_call_operand.vmem [shape: f32[2,256,128], index: 0, kind: input, shape index: {}]   ;;  %s1612_s1 = inlined_call_operand.vmem [shape: f32[128,8], index: 1, kind: input, shape index: {}]   ;;  %s1613_s2 = inlined_call_operand.vmem [shape: f32[8,128], index: 2, kind: input, shape index: {}]   ;;  %s1614_s3 = inlined_call_operand.vmem [shape: f32[1,128], index: 3, kind: input, shape index: {}]   ;;  %s1615_s4 = inlined_call_operand.vmem [shape: f32[1,128], index: 4, kind: input, shape index: {}]   ;;  %s1616_s5 = inlined_call_operand.vmem [shape: f32[2,256,128], index: 5, kind: output, shape index: {}]  }
   0x1 LB: > { %s935_s19 = sadd.s32 4294967295, %s1157_s18   ;;  %p939_p0 = scmp.ge.s32.totalorder %s1157_s18, 1  ;;  %s1157_s18 = sphi %s1192_s18, %s15_s18  }
   0x2   : > { %p187_p1 = scmp.lt.s32.totalorder %s1157_s18, 3 }
   0x4   : > { %p188_p2 = pnand %p939_p0, %p187_p1 }
   0x5   : > { %p215_p3 = scmp.lt.s32.totalorder (!%p188_p2), %s935_s19, 1 }
   0x6   : > { %191 = sbr.rel (%p188_p2) target bundleno = 691 (0x2b3), region = 40 }
   0xb   : > { %v1159_v0 = vmov 1.0   ;;  %s1618_s19 = smov (!%p215_p3, %s935_s19), 1  ;;  %vm1161_vm0 = vmmov 0   ;;  %vm589_vm1 = vcmask 64512  }
   0xc   : > { %321 = vmatprep.mubr.f32.mxu0 %v1159_v0  ;;  %423 = vmatprep.mubr.f32.mxu1 %v1159_v0  ;;  %s948_s20 = sshll.u32 %s1618_s19, 8 }
   0xd   : > { %s1210_s23 = scalar_lea.vmem %s1611_s0, %s948_s20  ;;  %s1554_s17 = scalar_lea.vmem %s1616_s5, %s948_s20 }
   0xe   : > { %v1213_v1 = vld [vmem:[%s1210_s23 + $0xf8] sm:$0xff]  ;;  %v1219_v3 = vld [vmem:[%s1210_s23 + $0xf0] sm:$0xff]  ;;  %v1230_v7 = vld [vmem:[%s1210_s23 + $0xe8] sm:$0xff] }
   0xf   : > { %v1216_v2 = vld [vmem:[%s1210_s23 + $0x78] sm:$0xff]  ;;  %950 = vmatprep.subr.mxu0 %v1213_v1  ;;  %v358_v4 = vmul.f32 %v1213_v1, %v1213_v1  ;;  %v1225_v5 = vld [vmem:[%s1210_s23 + $0x70] sm:$0xff]  ;;  %v357_v8 = vmul.f32 %v1219_v3, %v1219_v3  ;;  %v1235_v9 = vld [vmem:[%s1210_s23 + $0x68] sm:$0xff]  ;;  %v356_v12 = vmul.f32 %v1230_v7, %v1230_v7 }
  0x10   : > { %v342_v6 = vmul.f32 %v1216_v2, %v1216_v2  ;;  %951 = vmatpush3.msra.mxu0 %v1216_v2  ;;  %v341_v10 = vmul.f32 %v1225_v5, %v1225_v5  ;;  %v1241_v11 = vld [vmem:[%s1210_s23 + $0xe0] sm:$0xff]  ;;  %v340_v14 = vmul.f32 %v1235_v9, %v1235_v9  ;;  %v1253_v15 = vld [vmem:[%s1210_s23 + $0xd8] sm:$0xff]  ;;  %v1265_v19 = vld [vmem:[%s1210_s23 + $0xd0] sm:$0xff] }
  0x11   : > { %952 = vmatprep.subr.mxu0 %v1219_v3  ;;  %985 = vmatprep.subr.mxu1 %v358_v4  ;;  %v1247_v13 = vld [vmem:[%s1210_s23 + $0x60] sm:$0xff]  ;;  %v355_v16 = vmul.f32 %v1241_v11, %v1241_v11  ;;  %v1259_v17 = vld [vmem:[%s1210_s23 + $0x58] sm:$0xff]  ;;  %v354_v20 = vmul.f32 %v1253_v15, %v1253_v15  ;;  %v1271_v21 = vld [vmem:[%s1210_s23 + $0x50] sm:$0xff]  ;;  %v353_v24 = vmul.f32 %v1265_v19, %v1265_v19 }
  0x12   : > { %953 = vmatpush3.msra.mxu0 %v1225_v5  ;;  %986 = vmatpush3.msra.mxu1 %v342_v6  ;;  %v339_v18 = vmul.f32 %v1247_v13, %v1247_v13  ;;  %v338_v22 = vmul.f32 %v1259_v17, %v1259_v17  ;;  %v1277_v23 = vld [vmem:[%s1210_s23 + $0xc8] sm:$0xff]  ;;  %v337_v26 = vmul.f32 %v1271_v21, %v1271_v21  ;;  %v1289_v27 = vld [vmem:[%s1210_s23 + $0xc0] sm:$0xff]  ;;  %v1301_v31 = vld [vmem:[%s1210_s23 + $0xb8] sm:$0xff] }
  0x13   : > { %954 = vmatprep.subr.mxu0 %v1230_v7  ;;  %987 = vmatprep.subr.mxu1 %v357_v8  ;;  %v1283_v25 = vld [vmem:[%s1210_s23 + $0x48] sm:$0xff]  ;;  %v352_v28 = vmul.f32 %v1277_v23, %v1277_v23  ;;  %v1295_v29 = vld [vmem:[%s1210_s23 + $0x40] sm:$0xff]  ;;  %v351_v32 = vmul.f32 %v1289_v27, %v1289_v27  ;;  %v1307_v33 = vld [vmem:[%s1210_s23 + $0x38] sm:$0xff]  ;;  %v350_v36 = vmul.f32 %v1301_v31, %v1301_v31  ;;  %v1160_v8 = vmov 0.0  }
  0x14   : > { %955 = vmatpush3.msra.mxu0 %v1235_v9  ;;  %988 = vmatpush3.msra.mxu1 %v341_v10  ;;  %v336_v30 = vmul.f32 %v1283_v25, %v1283_v25  ;;  %v335_v34 = vmul.f32 %v1295_v29, %v1295_v29  ;;  %v1313_v35 = vld [vmem:[%s1210_s23 + $0xb0] sm:$0xff]  ;;  %v334_v38 = vmul.f32 %v1307_v33, %v1307_v33  ;;  %v1325_v39 = vld [vmem:[%s1210_s23 + $0xa8] sm:$0xff]  ;;  %v1337_v43 = vld [vmem:[%s1210_s23 + $0xa0] sm:$0xff] }
  0x15   : > { %956 = vmatprep.subr.mxu0 %v1241_v11  ;;  %989 = vmatprep.subr.mxu1 %v356_v12  ;;  %v1319_v37 = vld [vmem:[%s1210_s23 + $0x30] sm:$0xff]  ;;  %v349_v40 = vmul.f32 %v1313_v35, %v1313_v35  ;;  %v1331_v41 = vld [vmem:[%s1210_s23 + $0x28] sm:$0xff]  ;;  %v348_v44 = vmul.f32 %v1325_v39, %v1325_v39  ;;  %v1343_v45 = vld [vmem:[%s1210_s23 + $0x20] sm:$0xff]  ;;  %v347_v48 = vmul.f32 %v1337_v43, %v1337_v43 }
  0x16   : > { %957 = vmatpush3.msra.mxu0 %v1247_v13  ;;  %990 = vmatpush3.msra.mxu1 %v340_v14  ;;  %v333_v42 = vmul.f32 %v1319_v37, %v1319_v37  ;;  %v332_v46 = vmul.f32 %v1331_v41, %v1331_v41  ;;  %v1349_v47 = vld [vmem:[%s1210_s23 + $0x98] sm:$0xff]  ;;  %v331_v50 = vmul.f32 %v1343_v45, %v1343_v45  ;;  %v1361_v51 = vld [vmem:[%s1210_s23 + $0x90] sm:$0xff]  ;;  %v1373_v55 = vld [vmem:[%s1210_s23 + $0x88] sm:$0xff] }
  0x17   : > { %958 = vmatprep.subr.mxu0 %v1253_v15  ;;  %991 = vmatprep.subr.mxu1 %v355_v16  ;;  %v1355_v49 = vld [vmem:[%s1210_s23 + $0x18] sm:$0xff]  ;;  %v346_v52 = vmul.f32 %v1349_v47, %v1349_v47  ;;  %v1367_v53 = vld [vmem:[%s1210_s23 + $0x10] sm:$0xff]  ;;  %v345_v56 = vmul.f32 %v1361_v51, %v1361_v51  ;;  %v1379_v57 = vld [vmem:[%s1210_s23 + $0x8] sm:$0xff]  ;;  %v344_v60 = vmul.f32 %v1373_v55, %v1373_v55 }
  0x18   : > { %959 = vmatpush3.msra.mxu0 %v1259_v17  ;;  %992 = vmatpush3.msra.mxu1 %v339_v18  ;;  %v330_v54 = vmul.f32 %v1355_v49, %v1355_v49  ;;  %v329_v58 = vmul.f32 %v1367_v53, %v1367_v53  ;;  %v1385_v59 = vld [vmem:[%s1210_s23 + $0x80] sm:$0xff]  ;;  %v328_v62 = vmul.f32 %v1379_v57, %v1379_v57  ;;  %v444_v6 = vld [vmem:[%s1612_s1 + $0x78] sm:$0xff]  ;;  %v443_v10 = vld [vmem:[%s1612_s1 + $0x70] sm:$0xff] }
  0x19   : > { %960 = vmatprep.subr.mxu0 %v1265_v19  ;;  %993 = vmatprep.subr.mxu1 %v354_v20  ;;  %v1391_v61 = vld [vmem:[%s1210_s23] sm:$0xff]  ;;  %v343_v63 = vmul.f32 %v1385_v59, %v1385_v59  ;;  %v442_v12 = vld [vmem:[%s1612_s1 + $0x68] sm:$0xff]  ;;  %v439_v16 = vld [vmem:[%s1612_s1 + $0x50] sm:$0xff] }
  0x1a   : > { %961 = vmatpush3.msra.mxu0 %v1271_v21  ;;  %994 = vmatpush3.msra.mxu1 %v338_v22  ;;  %v327_v4 = vmul.f32 %v1391_v61, %v1391_v61  ;;  %v441_v14 = vld [vmem:[%s1612_s1 + $0x60] sm:$0xff]  ;;  %v438_v18 = vld [vmem:[%s1612_s1 + $0x48] sm:$0xff]  ;;  %v436_v22 = vld [vmem:[%s1612_s1 + $0x38] sm:$0xff] }
  0x1b   : > { %962 = vmatprep.subr.mxu0 %v1277_v23  ;;  %995 = vmatprep.subr.mxu1 %v353_v24  ;;  %v437_v20 = vld [vmem:[%s1612_s1 + $0x40] sm:$0xff]  ;;  %v435_v24 = vld [vmem:[%s1612_s1 + $0x30] sm:$0xff] }
  0x1c   : > { %963 = vmatpush3.msra.mxu0 %v1283_v25  ;;  %996 = vmatpush3.msra.mxu1 %v337_v26  ;;  %v434_v26 = vld [vmem:[%s1612_s1 + $0x28] sm:$0xff] }
  0x1d   : > { %964 = vmatprep.subr.mxu0 %v1289_v27  ;;  %997 = vmatprep.subr.mxu1 %v352_v28  ;;  %v433_v28 = vld [vmem:[%s1612_s1 + $0x20] sm:$0xff] }
  0x1e   : > { %965 = vmatpush3.msra.mxu0 %v1295_v29  ;;  %998 = vmatpush3.msra.mxu1 %v336_v30  ;;  %v432_v30 = vld [vmem:[%s1612_s1 + $0x18] sm:$0xff] }
  0x1f   : > { %966 = vmatprep.subr.mxu0 %v1301_v31  ;;  %999 = vmatprep.subr.mxu1 %v351_v32  ;;  %v431_v32 = vld [vmem:[%s1612_s1 + $0x10] sm:$0xff] }
  0x20   : > { %967 = vmatpush3.msra.mxu0 %v1307_v33  ;;  %1000 = vmatpush3.msra.mxu1 %v335_v34  ;;  %v430_v34 = vld [vmem:[%s1612_s1 + $0x8] sm:$0xff] }
  0x21   : > { %968 = vmatprep.subr.mxu0 %v1313_v35  ;;  %1001 = vmatprep.subr.mxu1 %v350_v36  ;;  %v429_v36 = vld [vmem:[%s1612_s1] sm:$0xff] }
  0x22   : > { %969 = vmatpush3.msra.mxu0 %v1319_v37  ;;  %1002 = vmatpush3.msra.mxu1 %v334_v38 }
  0x23   : > { %970 = vmatprep.subr.mxu0 %v1325_v39  ;;  %1003 = vmatprep.subr.mxu1 %v349_v40 }
  0x24   : > { %971 = vmatpush3.msra.mxu0 %v1331_v41  ;;  %1004 = vmatpush3.msra.mxu1 %v333_v42 }
  0x25   : > { %972 = vmatprep.subr.mxu0 %v1337_v43  ;;  %1005 = vmatprep.subr.mxu1 %v348_v44 }
  0x26   : > { %973 = vmatpush3.msra.mxu0 %v1343_v45  ;;  %1006 = vmatpush3.msra.mxu1 %v332_v46 }
  0x27   : > { %974 = vmatprep.subr.mxu0 %v1349_v47  ;;  %1007 = vmatprep.subr.mxu1 %v347_v48 }
  0x28   : > { %975 = vmatpush3.msra.mxu0 %v1355_v49  ;;  %1008 = vmatpush3.msra.mxu1 %v331_v50  ;;  %v588_v50 = vld [vmem:[%s1613_s2] sm:$0xff] }
  0x29   : > { %976 = vmatprep.subr.mxu0 %v1361_v51  ;;  %1009 = vmatprep.subr.mxu1 %v346_v52 }
  0x2a   : > { %977 = vmatpush3.msra.mxu0 %v1367_v53  ;;  %1010 = vmatpush3.msra.mxu1 %v330_v54 }
  0x2b   : > { %978 = vmatprep.subr.mxu0 %v1373_v55  ;;  %1011 = vmatprep.subr.mxu1 %v345_v56 }
  0x2c   : > { %979 = vmatpush3.msra.mxu0 %v1379_v57  ;;  %1012 = vmatpush3.msra.mxu1 %v329_v58 }
  0x2d   : > { %980 = vmatprep.subr.mxu0 %v1385_v59  ;;  %1013 = vmatprep.subr.mxu1 %v344_v60 }
  0x2e   : > { %981 = vmatpush3.msra.mxu0 %v1391_v61  ;;  %1014 = vmatpush3.msra.mxu1 %v328_v62 }
  0x2f   : > { %322 = vmatmul.mubr.f32.vlgmr.msra.gmra.mxu0 %v1159_v0  ;;  %1015 = vmatprep.subr.mxu1 %v343_v63 }
  0x30   : > { %1016 = vmatpush3.msra.mxu1 %v327_v4  ;;  %1058 = vmatprep.subr.mxu0 %v1160_v8 }
  0x31   : > { %424 = vmatmul.mubr.f32.vlgmr.msra.gmra.mxu1 %v1159_v0  ;;  %1059 = vmatpush3.msra.mxu0 %v444_v6  ;;  %v440_v0 = vld [vmem:[%s1612_s1 + $0x58] sm:$0xff] }
  0x32   : > { %1060 = vmatprep.subr.mxu0 %v1160_v8  ;;  %1093 = vmatprep.subr.mxu1 %v1160_v8 }
  0x33   : > { %1061 = vmatpush3.msra.mxu0 %v443_v10  ;;  %1094 = vmatpush3.msra.mxu1 %v444_v6 }
  0x34   : > { %1062 = vmatprep.subr.mxu0 %v1160_v8  ;;  %1095 = vmatprep.subr.mxu1 %v1160_v8 }
  0x35   : > { %1063 = vmatpush3.msra.mxu0 %v442_v12  ;;  %1096 = vmatpush3.msra.mxu1 %v443_v10 }
  0x36   : > { %1064 = vmatprep.subr.mxu0 %v1160_v8  ;;  %1097 = vmatprep.subr.mxu1 %v1160_v8 }
  0x37   : > { %1065 = vmatpush3.msra.mxu0 %v441_v14  ;;  %1098 = vmatpush3.msra.mxu1 %v442_v12 }
  0x38   : > { %1066 = vmatprep.subr.mxu0 %v1160_v8  ;;  %1099 = vmatprep.subr.mxu1 %v1160_v8 }
  0x39   : > { %1067 = vmatpush3.msra.mxu0 %v440_v0  ;;  %1100 = vmatpush3.msra.mxu1 %v441_v14  ;;  %v742_v14 = vlaneseq }
  0x3a   : > { %1068 = vmatprep.subr.mxu0 %v1160_v8  ;;  %1101 = vmatprep.subr.mxu1 %v1160_v8 }
  0x3b   : > { %1069 = vmatpush3.msra.mxu0 %v439_v16  ;;  %1102 = vmatpush3.msra.mxu1 %v440_v0  ;;  %v743_v0 = vshrl.u32 %v742_v14, 7 }
  0x3c   : > { %1070 = vmatprep.subr.mxu0 %v1160_v8  ;;  %1103 = vmatprep.subr.mxu1 %v1160_v8 }
  0x3d   : > { %1071 = vmatpush3.msra.mxu0 %v438_v18  ;;  %1104 = vmatpush3.msra.mxu1 %v439_v16  ;;  %v737_v16 = vld [vmem:[%s1614_s3] sm:$0x1] }
  0x3e   : > { %1072 = vmatprep.subr.mxu0 %v1160_v8  ;;  %1105 = vmatprep.subr.mxu1 %v1160_v8 }
  0x3f   : > { %1073 = vmatpush3.msra.mxu0 %v437_v20  ;;  %1106 = vmatpush3.msra.mxu1 %v438_v18  ;;  %v744_v18 = vsub.s32 0, %v743_v0 }
  0x40   : > { %1074 = vmatprep.subr.mxu0 %v1160_v8  ;;  %1107 = vmatprep.subr.mxu1 %v1160_v8 }
  0x41   : > { %1075 = vmatpush3.msra.mxu0 %v436_v22  ;;  %1108 = vmatpush3.msra.mxu1 %v437_v20 }
  0x42   : > { %1076 = vmatprep.subr.mxu0 %v1160_v8  ;;  %1109 = vmatprep.subr.mxu1 %v1160_v8 }
  0x43   : > { %1077 = vmatpush3.msra.mxu0 %v435_v24  ;;  %1110 = vmatpush3.msra.mxu1 %v436_v22 }
  0x44   : > { %1078 = vmatprep.subr.mxu0 %v1160_v8  ;;  %1111 = vmatprep.subr.mxu1 %v1160_v8 }
  0x45   : > { %1079 = vmatpush3.msra.mxu0 %v434_v26  ;;  %1112 = vmatpush3.msra.mxu1 %v435_v24  ;;  %v739_v24 = vld [vmem:[%s1615_s4] sm:$0x1] }
  0x46   : > { %1080 = vmatprep.subr.mxu0 %v1160_v8  ;;  %1113 = vmatprep.subr.mxu1 %v1160_v8 }
  0x47   : > { %1081 = vmatpush3.msra.mxu0 %v433_v28  ;;  %1114 = vmatpush3.msra.mxu1 %v434_v26 }
  0x48   : > { %1082 = vmatprep.subr.mxu0 %v1160_v8  ;;  %1115 = vmatprep.subr.mxu1 %v1160_v8 }
  0x49   : > { %1083 = vmatpush3.msra.mxu0 %v432_v30  ;;  %1116 = vmatpush3.msra.mxu1 %v433_v28 }
  0x4a   : > { %1084 = vmatprep.subr.mxu0 %v1160_v8  ;;  %1117 = vmatprep.subr.mxu1 %v1160_v8 }
  0x4b   : > { %1118 = vmatpush3.msra.mxu1 %v432_v30  ;;  %1085 = vmatpush3.msra.mxu0 %v431_v32 }
  0x4c   : > { %1119 = vmatprep.subr.mxu1 %v1160_v8  ;;  %1086 = vmatprep.subr.mxu0 %v1160_v8 }
  0x4d   : > { %1120 = vmatpush3.msra.mxu1 %v431_v32  ;;  %1087 = vmatpush3.msra.mxu0 %v430_v34 }
  0x4e   : > { %1121 = vmatprep.subr.mxu1 %v1160_v8  ;;  %1088 = vmatprep.subr.mxu0 %v1160_v8 }
  0x4f   : > { %1122 = vmatpush3.msra.mxu1 %v430_v34  ;;  %1089 = vmatpush3.msra.mxu0 %v429_v36 }
  0x50   : > { %1123 = vmatprep.subr.mxu1 %v1160_v8  ;;  %1090 = vmatprep.mubr.msk.f32.mxu0 %vm1161_vm0, %v1160_v8 }
  0x51   : > { %1124 = vmatpush3.msra.mxu1 %v429_v36  ;;  %1125 = vmatprep.mubr.msk.f32.mxu1 %vm1161_vm0, %v1160_v8 }
  0x52   : > { %1128 = vmatprep.subr.mxu0 %v1160_v8  ;;  %1133 = vmatprep.subr.mxu1 %v1160_v8 }
  0xef   : > { %v982_v38 = vpop.f32.mrf.mxu0 }
  0xf1   : > { %v983_v40 = vpop.f32.mrf.mxu0  ;;  %v1017_v42 = vpop.f32.mrf.mxu1 }
  0xf2   : > { %v984_v44 = vadd.f32 %v983_v40, %v982_v38 }
  0xf3   : > { %v1018_v46 = vpop.f32.mrf.mxu1 }
  0xf4   : > { %v1019_v48 = vadd.f32 %v1018_v46, %v1017_v42  ;;  %1091 = vmatmul.mubr.f32.vlgmr.msra.gmra.mxu0 %v984_v44 }
  0xf5   : > { %1130 = vmatprep.mubr.msk.f32.mxu0 %vm1161_vm0, %v1160_v8  ;;  %1129 = vmatpush3.msra.mxu0 %v588_v50 }
  0xf6   : > { %1126 = vmatmul.mubr.f32.vlgmr.msra.gmra.mxu1 %v1019_v48 }
  0xf7   : > { %1135 = vmatprep.mubr.msk.f32.mxu1 %vm1161_vm0, %v1160_v8  ;;  %1134 = vmatpush3.msra.mxu1 %v588_v50 }
 0x1b4   : > { %v511_v52 = vpop.f32.mrf.mxu0 }
 0x1b5   : > { %v585_v54 = vmul.f32 %v511_v52, %v511_v52  ;;  %1131 = vmatmul.mubr.msk.f32.vlgmr.msra.gmra.mxu0 %vm589_vm1, %v511_v52 }
 0x1b6   : > { %v1092_v56 = vpop.f32.mrf.mxu0  ;;  %v581_v58 = vpop.f32.mrf.mxu1 }
 0x1b7   : > { %v586_v60 = vsub.f32 %v581_v58, %v585_v54 }
 0x1b8   : > { %v1127_v62 = vpop.f32.mrf.mxu1 }
 0x1b9   : > { %v587_v63 = vmax.f32 %v586_v60, 0.0 }
 0x1bb   : > { %1136 = vmatmul.mubr.msk.f32.vlgmr.msra.gmra.mxu1 %vm589_vm1, %v587_v63 }
 0x275   : > { %v659_v4 = vpop.f32.mrf.mxu0 }
 0x277   : > { %v1132_v6 = vpop.f32.mrf.mxu0 }
 0x27b   : > { %v732_v10 = vpop.f32.mrf.mxu1 }
 0x27c   : > { %v733_v8 = vadd.f32 1e-05, %v732_v10 }
 0x27d   : > { %v1137_v12 = vpop.f32.mrf.mxu1 }
 0x27e   : > { %1149 = vrsqrt.f32 %v733_v8 }
 0x28b   : > { %v1150_v20 = vpop.eup %1149 }
 0x28c   : > { %v738_v22 = vmul.f32 %v1150_v20, %v737_v16 }
 0x28e   : > { %v740_v26 = vmul.f32 %v738_v22, %v659_v4  ;;  %v745_v28 = vrot.slane %v738_v22, %v744_v18 }
 0x290   : > { %v741_v30 = vsub.f32 %v739_v24, %v740_v26  ;;  %v746_v32 = vmul.f32 %v745_v28, %v1391_v61  ;;  %v747_v34 = vmul.f32 %v745_v28, %v1379_v57  ;;  %v748_v36 = vmul.f32 %v745_v28, %v1367_v53 }
 0x291   : > { %v749_v38 = vmul.f32 %v745_v28, %v1355_v49  ;;  %v750_v40 = vmul.f32 %v745_v28, %v1343_v45  ;;  %v751_v42 = vmul.f32 %v745_v28, %v1331_v41  ;;  %v752_v44 = vmul.f32 %v745_v28, %v1319_v37 }
 0x292   : > { %v753_v46 = vmul.f32 %v745_v28, %v1307_v33  ;;  %v754_v48 = vmul.f32 %v745_v28, %v1295_v29  ;;  %v755_v50 = vmul.f32 %v745_v28, %v1283_v25  ;;  %v756_v61 = vmul.f32 %v745_v28, %v1271_v21 }
 0x293   : > { %v757_v57 = vmul.f32 %v745_v28, %v1259_v17  ;;  %v758_v53 = vmul.f32 %v745_v28, %v1247_v13  ;;  %v759_v49 = vmul.f32 %v745_v28, %v1235_v9  ;;  %v760_v45 = vmul.f32 %v745_v28, %v1225_v5 }
 0x294   : > { %v761_v41 = vmul.f32 %v745_v28, %v1216_v2  ;;  %v762_v37 = vmul.f32 %v745_v28, %v1385_v59  ;;  %v763_v33 = vmul.f32 %v745_v28, %v1373_v55  ;;  %v764_v29 = vmul.f32 %v745_v28, %v1361_v51 }
 0x295   : > { %v765_v25 = vmul.f32 %v745_v28, %v1349_v47  ;;  %v766_v21 = vmul.f32 %v745_v28, %v1337_v43  ;;  %v767_v17 = vmul.f32 %v745_v28, %v1325_v39  ;;  %v768_v13 = vmul.f32 %v745_v28, %v1313_v35 }
 0x296   : > { %v769_v9 = vmul.f32 %v745_v28, %v1301_v31  ;;  %v770_v5 = vmul.f32 %v745_v28, %v1289_v27  ;;  %v771_v2 = vmul.f32 %v745_v28, %v1277_v23  ;;  %v772_v59 = vmul.f32 %v745_v28, %v1265_v19 }
 0x297   : > { %v773_v55 = vmul.f32 %v745_v28, %v1253_v15  ;;  %v782_v52 = vrot.slane %v741_v30, %v744_v18  ;;  %v774_v51 = vmul.f32 %v745_v28, %v1241_v11  ;;  %v775_v47 = vmul.f32 %v745_v28, %v1230_v7 }
 0x298   : > { %v776_v43 = vmul.f32 %v745_v28, %v1219_v3  ;;  %v777_v39 = vmul.f32 %v745_v28, %v1213_v1 }
 0x299   : > { %v784_v35 = vadd.f32 %v782_v52, %v746_v32  ;;  %v785_v54 = vadd.f32 %v782_v52, %v747_v34  ;;  %v786_v31 = vadd.f32 %v782_v52, %v748_v36  ;;  %v787_v56 = vadd.f32 %v782_v52, %v749_v38 }
 0x29a   : > { %v788_v27 = vadd.f32 %v782_v52, %v750_v40  ;;  %v789_v58 = vadd.f32 %v782_v52, %v751_v42  ;;  %v790_v23 = vadd.f32 %v782_v52, %v752_v44  ;;  %v791_v60 = vadd.f32 %v782_v52, %v753_v46 }
 0x29b   : > { %v792_v19 = vadd.f32 %v782_v52, %v754_v48  ;;  %v793_v62 = vadd.f32 %v782_v52, %v755_v50  ;;  %v794_v15 = vadd.f32 %v782_v52, %v756_v61  ;;  %v795_v63 = vadd.f32 %v782_v52, %v757_v57 }
 0x29c   : > { %v796_v4 = vadd.f32 %v782_v52, %v758_v53  ;;  %v797_v11 = vadd.f32 %v782_v52, %v759_v49  ;;  %v798_v7 = vadd.f32 %v782_v52, %v760_v45  ;;  %v799_v6 = vadd.f32 %v782_v52, %v761_v41 }
 0x29d   : > { %v800_v3 = vadd.f32 %v782_v52, %v762_v37  ;;  %v801_v10 = vadd.f32 %v782_v52, %v763_v33  ;;  %v802_v1 = vadd.f32 %v782_v52, %v764_v29  ;;  %v803_v8 = vadd.f32 %v782_v52, %v765_v25 }
 0x29e   : > { %v1533_v12 = vadd.f32 %v782_v52, %v766_v21  ;;  %v1535_v14 = vadd.f32 %v782_v52, %v767_v17  ;;  %v1537_v0 = vadd.f32 %v782_v52, %v768_v13  ;;  %v1539_v16 = vadd.f32 %v782_v52, %v769_v9 }
 0x29f   : > { %v1541_v18 = vadd.f32 %v782_v52, %v770_v5  ;;  %v1543_v20 = vadd.f32 %v782_v52, %v771_v2  ;;  %v1545_v22 = vadd.f32 %v782_v52, %v772_v59  ;;  %v1547_v24 = vadd.f32 %v782_v52, %v773_v55 }
 0x2a0   : > { %v1556_v26 = vadd.f32 %v782_v52, %v774_v51  ;;  %v1558_v28 = vadd.f32 %v782_v52, %v775_v47  ;;  %v1560_v30 = vadd.f32 %v782_v52, %v776_v43  ;;  %v1562_v32 = vadd.f32 %v782_v52, %v777_v39 }
 0x2a1   : > { %v816_v34 = vmax.f32 %v784_v35, 0.0  ;;  %v817_v36 = vmax.f32 %v785_v54, 0.0  ;;  %v818_v38 = vmax.f32 %v786_v31, 0.0  ;;  %v819_v40 = vmax.f32 %v787_v56, 0.0 }
 0x2a2   : > { %v820_v42 = vmax.f32 %v788_v27, 0.0  ;;  %v821_v44 = vmax.f32 %v789_v58, 0.0  ;;  %v822_v46 = vmax.f32 %v790_v23, 0.0  ;;  %v823_v48 = vmax.f32 %v791_v60, 0.0 }
 0x2a3   : > { %v824_v50 = vmax.f32 %v792_v19, 0.0  ;;  %v825_v61 = vmax.f32 %v793_v62, 0.0  ;;  %v826_v57 = vmax.f32 %v794_v15, 0.0  ;;  %v827_v53 = vmax.f32 %v795_v63, 0.0  ;;  %848 = vst [vmem:[%s1554_s17] sm:$0xff] %v816_v34  ;;  %849 = vst [vmem:[%s1554_s17 + $0x8] sm:$0xff] %v817_v36 }
 0x2a4   : > { %850 = vst [vmem:[%s1554_s17 + $0x10] sm:$0xff] %v818_v38  ;;  %851 = vst [vmem:[%s1554_s17 + $0x18] sm:$0xff] %v819_v40  ;;  %v828_v49 = vmax.f32 %v796_v4, 0.0  ;;  %v829_v45 = vmax.f32 %v797_v11, 0.0  ;;  %v830_v41 = vmax.f32 %v798_v7, 0.0  ;;  %v831_v37 = vmax.f32 %v799_v6, 0.0 }
 0x2a5   : > { %852 = vst [vmem:[%s1554_s17 + $0x20] sm:$0xff] %v820_v42  ;;  %853 = vst [vmem:[%s1554_s17 + $0x28] sm:$0xff] %v821_v44  ;;  %v832_v33 = vmax.f32 %v800_v3, 0.0  ;;  %v833_v29 = vmax.f32 %v801_v10, 0.0  ;;  %v834_v25 = vmax.f32 %v802_v1, 0.0  ;;  %v835_v21 = vmax.f32 %v803_v8, 0.0 }
 0x2a6   : > { %854 = vst [vmem:[%s1554_s17 + $0x30] sm:$0xff] %v822_v46  ;;  %855 = vst [vmem:[%s1554_s17 + $0x38] sm:$0xff] %v823_v48  ;;  %v836_v17 = vmax.f32 %v1533_v12, 0.0  ;;  %v837_v13 = vmax.f32 %v1535_v14, 0.0  ;;  %v838_v9 = vmax.f32 %v1537_v0, 0.0  ;;  %v839_v5 = vmax.f32 %v1539_v16, 0.0 }
 0x2a7   : > { %856 = vst [vmem:[%s1554_s17 + $0x40] sm:$0xff] %v824_v50  ;;  %857 = vst [vmem:[%s1554_s17 + $0x48] sm:$0xff] %v825_v61  ;;  %v840_v2 = vmax.f32 %v1541_v18, 0.0  ;;  %v841_v59 = vmax.f32 %v1543_v20, 0.0  ;;  %v842_v55 = vmax.f32 %v1545_v22, 0.0  ;;  %v843_v52 = vmax.f32 %v1547_v24, 0.0 }
 0x2a8   : > { %858 = vst [vmem:[%s1554_s17 + $0x50] sm:$0xff] %v826_v57  ;;  %859 = vst [vmem:[%s1554_s17 + $0x58] sm:$0xff] %v827_v53  ;;  %v844_v51 = vmax.f32 %v1556_v26, 0.0  ;;  %v845_v47 = vmax.f32 %v1558_v28, 0.0  ;;  %v846_v43 = vmax.f32 %v1560_v30, 0.0  ;;  %v847_v39 = vmax.f32 %v1562_v32, 0.0 }
 0x2a9   : > { %860 = vst [vmem:[%s1554_s17 + $0x60] sm:$0xff] %v828_v49  ;;  %861 = vst [vmem:[%s1554_s17 + $0x68] sm:$0xff] %v829_v45 }
 0x2aa   : > { %862 = vst [vmem:[%s1554_s17 + $0x70] sm:$0xff] %v830_v41  ;;  %863 = vst [vmem:[%s1554_s17 + $0x78] sm:$0xff] %v831_v37 }
 0x2ab   : > { %864 = vst [vmem:[%s1554_s17 + $0x80] sm:$0xff] %v832_v33  ;;  %865 = vst [vmem:[%s1554_s17 + $0x88] sm:$0xff] %v833_v29 }
 0x2ac   : > { %866 = vst [vmem:[%s1554_s17 + $0x90] sm:$0xff] %v834_v25  ;;  %867 = vst [vmem:[%s1554_s17 + $0x98] sm:$0xff] %v835_v21 }
 0x2ad   : > { %868 = vst [vmem:[%s1554_s17 + $0xa0] sm:$0xff] %v836_v17  ;;  %869 = vst [vmem:[%s1554_s17 + $0xa8] sm:$0xff] %v837_v13 }
 0x2ae   : > { %870 = vst [vmem:[%s1554_s17 + $0xb0] sm:$0xff] %v838_v9  ;;  %871 = vst [vmem:[%s1554_s17 + $0xb8] sm:$0xff] %v839_v5 }
 0x2af   : > { %872 = vst [vmem:[%s1554_s17 + $0xc0] sm:$0xff] %v840_v2  ;;  %873 = vst [vmem:[%s1554_s17 + $0xc8] sm:$0xff] %v841_v59 }
 0x2b0   : > { %874 = vst [vmem:[%s1554_s17 + $0xd0] sm:$0xff] %v842_v55  ;;  %875 = vst [vmem:[%s1554_s17 + $0xd8] sm:$0xff] %v843_v52 }
 0x2b1   : > { %876 = vst [vmem:[%s1554_s17 + $0xe0] sm:$0xff] %v844_v51  ;;  %877 = vst [vmem:[%s1554_s17 + $0xe8] sm:$0xff] %v845_v47 }
 0x2b2   : > { %878 = vst [vmem:[%s1554_s17 + $0xf0] sm:$0xff] %v846_v43  ;;  %879 = vst [vmem:[%s1554_s17 + $0xf8] sm:$0xff] %v847_v39 }
 0x2b3 PF: > { %s15_s18 = sadd.s32 1, %s1157_s18  }
 0x2b4   : > { %p12_p4 = scmp.ge.s32.totalorder %s15_s18, 4  }
 0x2b6   :  { %14 = sbr.rel (!%p12_p4) target bundleno = 1 (0x1), region = 70 }

// kernel: encoder_mg_forward.14
= control target key start
LH: loop header
LB: loop body
LE: loop exit
PB: predicated region body
PF: predicated region fallthrough
CT: control target
= control target key end

     0   :  { %s1609_s12 = smov 0   ;;  %s1611_s13 = smov 0   ;;  %s1863_s0 = inlined_call_operand.vmem [shape: bf16[128,1024], index: 0, kind: input, shape index: {}]   ;;  %s1864_s1 = inlined_call_operand.vmem [shape: bf16[1024,128], index: 1, kind: input, shape index: {}]   ;;  %s1865_s2 = inlined_call_operand.vmem [shape: f32[1,128], index: 2, kind: input, shape index: {}]   ;;  %s1866_s3 = inlined_call_operand.vmem [shape: f32[128,128], index: 3, kind: output, shape index: {}]  }
   0x1   :  { %s1613_s14 = smov 0   ;;  %s1615_s15 = smov 0  }
   0x2   :  { %s1617_s16 = smov 0  }
   0x3 LB: > { %s25_s17 = sadd.s32 1, %s1582_s15  ;;  %p48_p1 = scmp.ne.s32.totalorder %s1574_s13, %s1570_s12  ;;  %s1586_s16 = sphi %s1617_s16, %s13_s16   ;;  %s1582_s15 = sphi %s1615_s15, %s1870_s15   ;;  %s1578_s14 = sphi %s1613_s14, %s1869_s14   ;;  %s1574_s13 = sphi %s1611_s13, %s1868_s13   ;;  %s1570_s12 = sphi %s1609_s12, %s1867_s12  }
   0x4   : > { %p26_p0 = scmp.ge.s32.totalorder %s25_s17, 2  ;;  %p49_p2 = scmp.eq.s32.totalorder %s1586_s16, 0 }
   0x5   : > { %s41_s19 = sadd.s32 1, %s1574_s13  ;;  %p1219_p5 = scmp.ge.s32.totalorder %s1586_s16, 2 }
   0x6   : > { %s1872_s17 = smov (%p26_p0, %s25_s17), 0  ;;  %p50_p3 = por %p49_p2, %p48_p1 }
   0x7   : > { %s37_s18 = ssub.s32 %s1582_s15, %s1872_s17  ;;  %162 = sbr.rel (%p1219_p5) target bundleno = 32 (0x20), region = 20 }
   0x8   : > { %p39_p4 = scmp.eq.s32.totalorder %s37_s18, 0 }
   0xa   : > { %s1644_s20 = scalar_select %p39_p4, %s1574_s13, %s41_s19  }
   0xc   : > { %165 = sbr.rel (!%p50_p3) target bundleno = 32 (0x20), region = 24  ;;  %s167_s21 = sand.u32 (%p50_p3), 1, %s1574_s13  }
   0xd   : > { %s1298_s22 = sshll.u32 (%p50_p3), %s1582_s15, 4  ;;  %s1220_s23 = sshll.u32 (%p50_p3), %s167_s21, 8 }
   0xe   : > { %s1652_s26 = scalar_lea.vmem (%p50_p3), %s1863_s0, %s1298_s22  ;;  %s1657_s27 = scalar_lea.vmem (%p50_p3), [#allocation3], %s1220_s23 }
   0xf   : > { %v188_v0 = vld [vmem:[%s1652_s26] sm:$0xff] (%p50_p3)  ;;  %v190_v1 = vld [vmem:[%s1652_s26 + $0x8] sm:$0xff] (%p50_p3) }
  0x10   : > { %v192_v2 = vld [vmem:[%s1652_s26 + $0x20] sm:$0xff] (%p50_p3)  ;;  %189 = vst [vmem:[%s1657_s27] sm:$0xff] (%p50_p3), %v188_v0  ;;  %191 = vst [vmem:[%s1657_s27 + $0x8] sm:$0xff] (%p50_p3), %v190_v1  ;;  %v194_v3 = vld [vmem:[%s1652_s26 + $0x28] sm:$0xff] (%p50_p3) }
  0x11   : > { %193 = vst [vmem:[%s1657_s27 + $0x10] sm:$0xff] %v192_v2  ;;  %v196_v4 = vld [vmem:[%s1652_s26 + $0x40] sm:$0xff]  ;;  %v198_v5 = vld [vmem:[%s1652_s26 + $0x48] sm:$0xff]  ;;  %195 = vst [vmem:[%s1657_s27 + $0x18] sm:$0xff] %v194_v3 }
  0x12   : > { %197 = vst [vmem:[%s1657_s27 + $0x20] sm:$0xff] %v196_v4  ;;  %199 = vst [vmem:[%s1657_s27 + $0x28] sm:$0xff] %v198_v5  ;;  %v200_v6 = vld [vmem:[%s1652_s26 + $0x60] sm:$0xff]  ;;  %v202_v7 = vld [vmem:[%s1652_s26 + $0x68] sm:$0xff] }
  0x13   : > { %v204_v8 = vld [vmem:[%s1652_s26 + $0x80] sm:$0xff]  ;;  %201 = vst [vmem:[%s1657_s27 + $0x30] sm:$0xff] %v200_v6  ;;  %203 = vst [vmem:[%s1657_s27 + $0x38] sm:$0xff] %v202_v7  ;;  %v206_v9 = vld [vmem:[%s1652_s26 + $0x88] sm:$0xff] }
  0x14   : > { %205 = vst [vmem:[%s1657_s27 + $0x40] sm:$0xff] %v204_v8  ;;  %v208_v10 = vld [vmem:[%s1652_s26 + $0xa0] sm:$0xff]  ;;  %v210_v11 = vld [vmem:[%s1652_s26 + $0xa8] sm:$0xff]  ;;  %207 = vst [vmem:[%s1657_s27 + $0x48] sm:$0xff] %v206_v9 }
  0x15   : > { %209 = vst [vmem:[%s1657_s27 + $0x50] sm:$0xff] %v208_v10  ;;  %211 = vst [vmem:[%s1657_s27 + $0x58] sm:$0xff] %v210_v11  ;;  %v212_v12 = vld [vmem:[%s1652_s26 + $0xc0] sm:$0xff]  ;;  %v214_v13 = vld [vmem:[%s1652_s26 + $0xc8] sm:$0xff] }
  0x16   : > { %v216_v14 = vld [vmem:[%s1652_s26 + $0xe0] sm:$0xff]  ;;  %213 = vst [vmem:[%s1657_s27 + $0x60] sm:$0xff] %v212_v12  ;;  %215 = vst [vmem:[%s1657_s27 + $0x68] sm:$0xff] %v214_v13  ;;  %v218_v15 = vld [vmem:[%s1652_s26 + $0xe8] sm:$0xff] }
  0x17   : > { %217 = vst [vmem:[%s1657_s27 + $0x70] sm:$0xff] %v216_v14  ;;  %v220_v16 = vld [vmem:[%s1652_s26 + $0x100] sm:$0xff]  ;;  %v222_v17 = vld [vmem:[%s1652_s26 + $0x108] sm:$0xff]  ;;  %219 = vst [vmem:[%s1657_s27 + $0x78] sm:$0xff] %v218_v15 }
  0x18   : > { %221 = vst [vmem:[%s1657_s27 + $0x80] sm:$0xff] %v220_v16  ;;  %223 = vst [vmem:[%s1657_s27 + $0x88] sm:$0xff] %v222_v17  ;;  %v224_v18 = vld [vmem:[%s1652_s26 + $0x120] sm:$0xff]  ;;  %v226_v19 = vld [vmem:[%s1652_s26 + $0x128] sm:$0xff] }
  0x19   : > { %v228_v20 = vld [vmem:[%s1652_s26 + $0x140] sm:$0xff]  ;;  %225 = vst [vmem:[%s1657_s27 + $0x90] sm:$0xff] %v224_v18  ;;  %227 = vst [vmem:[%s1657_s27 + $0x98] sm:$0xff] %v226_v19  ;;  %v230_v21 = vld [vmem:[%s1652_s26 + $0x148] sm:$0xff] }
  0x1a   : > { %229 = vst [vmem:[%s1657_s27 + $0xa0] sm:$0xff] %v228_v20  ;;  %v232_v22 = vld [vmem:[%s1652_s26 + $0x160] sm:$0xff]  ;;  %v234_v23 = vld [vmem:[%s1652_s26 + $0x168] sm:$0xff]  ;;  %231 = vst [vmem:[%s1657_s27 + $0xa8] sm:$0xff] %v230_v21 }
  0x1b   : > { %233 = vst [vmem:[%s1657_s27 + $0xb0] sm:$0xff] %v232_v22  ;;  %235 = vst [vmem:[%s1657_s27 + $0xb8] sm:$0xff] %v234_v23  ;;  %v236_v24 = vld [vmem:[%s1652_s26 + $0x180] sm:$0xff]  ;;  %v238_v25 = vld [vmem:[%s1652_s26 + $0x188] sm:$0xff] }
  0x1c   : > { %v240_v26 = vld [vmem:[%s1652_s26 + $0x1a0] sm:$0xff]  ;;  %237 = vst [vmem:[%s1657_s27 + $0xc0] sm:$0xff] %v236_v24  ;;  %239 = vst [vmem:[%s1657_s27 + $0xc8] sm:$0xff] %v238_v25  ;;  %v242_v27 = vld [vmem:[%s1652_s26 + $0x1a8] sm:$0xff] }
  0x1d   : > { %241 = vst [vmem:[%s1657_s27 + $0xd0] sm:$0xff] %v240_v26  ;;  %v244_v28 = vld [vmem:[%s1652_s26 + $0x1c0] sm:$0xff]  ;;  %v246_v29 = vld [vmem:[%s1652_s26 + $0x1c8] sm:$0xff]  ;;  %243 = vst [vmem:[%s1657_s27 + $0xd8] sm:$0xff] %v242_v27 }
  0x1e   : > { %245 = vst [vmem:[%s1657_s27 + $0xe0] sm:$0xff] %v244_v28  ;;  %247 = vst [vmem:[%s1657_s27 + $0xe8] sm:$0xff] %v246_v29  ;;  %v248_v30 = vld [vmem:[%s1652_s26 + $0x1e0] sm:$0xff]  ;;  %v250_v31 = vld [vmem:[%s1652_s26 + $0x1e8] sm:$0xff] }
  0x1f   : > { %249 = vst [vmem:[%s1657_s27 + $0xf0] sm:$0xff] %v248_v30  ;;  %251 = vst [vmem:[%s1657_s27 + $0xf8] sm:$0xff] %v250_v31 }
  0x20 PF: > { %p1223_p6 = scmp.ge.s32.totalorder %s1586_s16, 1  ;;  %p268_p7 = scmp.lt.s32.totalorder %s1586_s16, 3 }
  0x22   : > { %p269_p8 = pnand %p1223_p6, %p268_p7 }
  0x23   : > { %s275_s28 = sand.u32 (!%p269_p8), 1, %s1570_s12   ;;  %s1225_s29 = sshll.u32 (!%p269_p8), %s1578_s14, 6 }
  0x24   : > { %272 = sbr.rel (%p269_p8) target bundleno = 363 (0x16b), region = 51  ;;  %s1224_s30 = sshll.u32 (!%p269_p8), %s275_s28, 8 }
  0x25   : > { %p315_p9 = scmp.lt.s32.totalorder (!%p269_p8), %s1225_s29, 127  ;;  %s1729_s8 = scalar_lea.vmem (!%p269_p8), [#allocation3], %s1224_s30 }
  0x26   : > { %p1227_p10 = scmp.ne.s32.totalorder (!%p269_p8), %s1578_s14, 0 }
  0x29   : > { %s1874_s29 = smov (!%p315_p9, %s1225_s29), 127  ;;  %339 = sbr.rel (%p1227_p10) target bundleno = 55 (0x37), region = 59 }
  0x2a   : > { %s1226_s4 = sshll.u32 %s1874_s29, 2 }
  0x2b   : > { %s1727_s7 = scalar_lea.vmem %s1864_s1, %s1226_s4 }
  0x2e   : > { %v1588_v32 = vmov 0.0  }
  0x2f   : > { %340 = vst [vmem:[#allocation2 + $0x30] sm:$0xff] %v1588_v32  ;;  %341 = vst [vmem:[#allocation2] sm:$0xff] %v1588_v32 }
  0x30   : > { %342 = vst [vmem:[#allocation2 + $0x58] sm:$0xff] %v1588_v32  ;;  %343 = vst [vmem:[#allocation2 + $0x18] sm:$0xff] %v1588_v32 }
  0x31   : > { %344 = vst [vmem:[#allocation2 + $0x50] sm:$0xff] %v1588_v32  ;;  %345 = vst [vmem:[#allocation2 + $0x68] sm:$0xff] %v1588_v32 }
  0x32   : > { %346 = vst [vmem:[#allocation2 + $0x8] sm:$0xff] %v1588_v32  ;;  %347 = vst [vmem:[#allocation2 + $0x48] sm:$0xff] %v1588_v32 }
  0x33   : > { %348 = vst [vmem:[#allocation2 + $0x40] sm:$0xff] %v1588_v32  ;;  %349 = vst [vmem:[#allocation2 + $0x20] sm:$0xff] %v1588_v32 }
  0x34   : > { %350 = vst [vmem:[#allocation2 + $0x10] sm:$0xff] %v1588_v32  ;;  %351 = vst [vmem:[#allocation2 + $0x38] sm:$0xff] %v1588_v32 }
  0x35   : > { %352 = vst [vmem:[#allocation2 + $0x60] sm:$0xff] %v1588_v32  ;;  %353 = vst [vmem:[#allocation2 + $0x70] sm:$0xff] %v1588_v32 }
  0x36   : > { %354 = vst [vmem:[#allocation2 + $0x78] sm:$0xff] %v1588_v32  ;;  %355 = vst [vmem:[#allocation2 + $0x28] sm:$0xff] %v1588_v32 }
  0x37 PF: > { %v1468_v33 = vld [vmem:[%s1727_s7 + $0x78] sm:$0xff]   ;;  %v1472_v37 = vld [vmem:[%s1727_s7 + $0x70] sm:$0xff]   ;;  %v1476_v41 = vld [vmem:[%s1727_s7 + $0x68] sm:$0xff]   ;;  %p1292_p11 = scmp.ne.s32.totalorder %s1578_s14, 1 }
  0x38   : > { %v1469_v34 = vld [vmem:[%s1727_s7 + $0xf8] sm:$0xff]   ;;  %1299 = vmatprep.subr.bf16.mxu0 %v1468_v33  ;;  %v1473_v38 = vld [vmem:[%s1727_s7 + $0xf0] sm:$0xff]   ;;  %v1477_v42 = vld [vmem:[%s1727_s7 + $0xe8] sm:$0xff]  }
  0x39   : > { %v1470_v35 = vld [vmem:[%s1727_s7 + $0x38] sm:$0xff]   ;;  %1363 = vmatprep.subr.bf16.mxu1 %v1469_v34  ;;  %v1474_v39 = vld [vmem:[%s1727_s7 + $0x30] sm:$0xff]   ;;  %v1478_v43 = vld [vmem:[%s1727_s7 + $0x28] sm:$0xff]  }
  0x3a   : > { %v1471_v36 = vld [vmem:[%s1727_s7 + $0xb8] sm:$0xff]   ;;  %1300 = vmatpush3.bf16.msra.mxu0 %v1470_v35  ;;  %v1475_v40 = vld [vmem:[%s1727_s7 + $0xb0] sm:$0xff]   ;;  %v1479_v44 = vld [vmem:[%s1727_s7 + $0xa8] sm:$0xff]  }
  0x3b   : > { %1364 = vmatpush3.bf16.msra.mxu1 %v1471_v36  ;;  %1301 = vmatprep.subr.bf16.mxu0 %v1472_v37  ;;  %v1480_v45 = vld [vmem:[%s1727_s7 + $0x60] sm:$0xff]   ;;  %v1484_v49 = vld [vmem:[%s1727_s7 + $0x58] sm:$0xff]   ;;  %v1488_v53 = vld [vmem:[%s1727_s7 + $0x50] sm:$0xff]  }
  0x3c   : > { %1365 = vmatprep.subr.bf16.mxu1 %v1473_v38  ;;  %v1481_v46 = vld [vmem:[%s1727_s7 + $0xe0] sm:$0xff]   ;;  %v1485_v50 = vld [vmem:[%s1727_s7 + $0xd8] sm:$0xff]   ;;  %v1489_v54 = vld [vmem:[%s1727_s7 + $0xd0] sm:$0xff]  }
  0x3d   : > { %v1482_v47 = vld [vmem:[%s1727_s7 + $0x20] sm:$0xff]   ;;  %v1486_v51 = vld [vmem:[%s1727_s7 + $0x18] sm:$0xff]   ;;  %v1490_v55 = vld [vmem:[%s1727_s7 + $0x10] sm:$0xff]  }
  0x3e   : > { %1302 = vmatpush3.bf16.msra.mxu0 %v1474_v39  ;;  %v1483_v48 = vld [vmem:[%s1727_s7 + $0xa0] sm:$0xff]   ;;  %v1487_v52 = vld [vmem:[%s1727_s7 + $0x98] sm:$0xff]   ;;  %v1491_v56 = vld [vmem:[%s1727_s7 + $0x90] sm:$0xff]  }
  0x3f   : > { %1366 = vmatpush3.bf16.msra.mxu1 %v1475_v40  ;;  %1303 = vmatprep.subr.bf16.mxu0 %v1476_v41  ;;  %v1492_v57 = vld [vmem:[%s1727_s7 + $0x48] sm:$0xff]   ;;  %v1496_v61 = vld [vmem:[%s1727_s7 + $0x40] sm:$0xff]   ;;  %v356_v40 = vld [vmem:[#allocation2 + $0x30] sm:$0xff] }
  0x40   : > { %1367 = vmatprep.subr.bf16.mxu1 %v1477_v42  ;;  %v1493_v58 = vld [vmem:[%s1727_s7 + $0xc8] sm:$0xff]   ;;  %v1497_v62 = vld [vmem:[%s1727_s7 + $0xc0] sm:$0xff]  }
  0x41   : > { %v1494_v59 = vld [vmem:[%s1727_s7 + $0x8] sm:$0xff]   ;;  %v1498_v63 = vld [vmem:[%s1727_s7] sm:$0xff]  }
  0x42   : > { %1304 = vmatpush3.bf16.msra.mxu0 %v1478_v43  ;;  %v1495_v60 = vld [vmem:[%s1727_s7 + $0x88] sm:$0xff]   ;;  %v1499_v0 = vld [vmem:[%s1727_s7 + $0x80] sm:$0xff]  }
  0x43   : > { %1368 = vmatpush3.bf16.msra.mxu1 %v1479_v44  ;;  %1305 = vmatprep.subr.bf16.mxu0 %v1480_v45  ;;  %v1500_v1 = vld [vmem:[%s1729_s8] ss:$16 sps:$4 sm:$0xff]   ;;  %v1502_v2 = vld [vmem:[%s1729_s8 + $0x4] ss:$16 sps:$4 sm:$0xff]   ;;  %v1503_v3 = vld [vmem:[%s1729_s8 + $0x8] ss:$16 sps:$4 sm:$0xff]  }
  0x44   : > { %1369 = vmatprep.subr.bf16.mxu1 %v1481_v46  ;;  %v1505_v4 = vld [vmem:[%s1729_s8 + $0xc] ss:$16 sps:$4 sm:$0xff]   ;;  %852 = vmatprep.mubr.bf16.mxu0 %v1502_v2  ;;  %v1506_v5 = vld [vmem:[%s1729_s8 + $0x24] ss:$16 sps:$4 sm:$0xff]   ;;  %v1510_v7 = vld [vmem:[%s1729_s8 + $0x20] ss:$16 sps:$4 sm:$0xff]  }
  0x45   : > { %949 = vmatprep.mubr.bf16.mxu1 %v1505_v4  ;;  %v1508_v6 = vld [vmem:[%s1729_s8 + $0x2c] ss:$16 sps:$4 sm:$0xff]   ;;  %v1511_v8 = vld [vmem:[%s1729_s8 + $0x28] ss:$16 sps:$4 sm:$0xff]   ;;  %v1512_v9 = vld [vmem:[%s1729_s8 + $0x44] ss:$16 sps:$4 sm:$0xff]  }
  0x46   : > { %1306 = vmatpush3.bf16.msra.mxu0 %v1482_v47  ;;  %v1514_v10 = vld [vmem:[%s1729_s8 + $0x4c] ss:$16 sps:$4 sm:$0xff]   ;;  %v1516_v11 = vld [vmem:[%s1729_s8 + $0x40] ss:$16 sps:$4 sm:$0xff]   ;;  %v1517_v12 = vld [vmem:[%s1729_s8 + $0x48] ss:$16 sps:$4 sm:$0xff]  }
  0x47   : > { %1370 = vmatpush3.bf16.msra.mxu1 %v1483_v48  ;;  %1307 = vmatprep.subr.bf16.mxu0 %v1484_v49  ;;  %v1518_v13 = vld [vmem:[%s1729_s8 + $0x64] ss:$16 sps:$4 sm:$0xff]   ;;  %v1520_v14 = vld [vmem:[%s1729_s8 + $0x6c] ss:$16 sps:$4 sm:$0xff]   ;;  %v1522_v15 = vld [vmem:[%s1729_s8 + $0x60] ss:$16 sps:$4 sm:$0xff]  }
  0x48   : > { %1371 = vmatprep.subr.bf16.mxu1 %v1485_v50  ;;  %v1523_v16 = vld [vmem:[%s1729_s8 + $0x68] ss:$16 sps:$4 sm:$0xff]   ;;  %v1524_v17 = vld [vmem:[%s1729_s8 + $0x84] ss:$16 sps:$4 sm:$0xff]   ;;  %v1526_v18 = vld [vmem:[%s1729_s8 + $0x8c] ss:$16 sps:$4 sm:$0xff]  }
  0x49   : > { %v1528_v19 = vld [vmem:[%s1729_s8 + $0x80] ss:$16 sps:$4 sm:$0xff]   ;;  %v1529_v20 = vld [vmem:[%s1729_s8 + $0x88] ss:$16 sps:$4 sm:$0xff]   ;;  %v1530_v21 = vld [vmem:[%s1729_s8 + $0xa4] ss:$16 sps:$4 sm:$0xff]  }
  0x4a   : > { %1308 = vmatpush3.bf16.msra.mxu0 %v1486_v51  ;;  %v1532_v22 = vld [vmem:[%s1729_s8 + $0xac] ss:$16 sps:$4 sm:$0xff]   ;;  %v1534_v23 = vld [vmem:[%s1729_s8 + $0xa0] ss:$16 sps:$4 sm:$0xff]   ;;  %v1535_v24 = vld [vmem:[%s1729_s8 + $0xa8] ss:$16 sps:$4 sm:$0xff]  }
  0x4b   : > { %1372 = vmatpush3.bf16.msra.mxu1 %v1487_v52  ;;  %1309 = vmatprep.subr.bf16.mxu0 %v1488_v53  ;;  %v1536_v25 = vld [vmem:[%s1729_s8 + $0xc4] ss:$16 sps:$4 sm:$0xff]   ;;  %v1538_v26 = vld [vmem:[%s1729_s8 + $0xcc] ss:$16 sps:$4 sm:$0xff]   ;;  %v1540_v27 = vld [vmem:[%s1729_s8 + $0xc0] ss:$16 sps:$4 sm:$0xff]  }
  0x4c   : > { %1373 = vmatprep.subr.bf16.mxu1 %v1489_v54  ;;  %v1541_v28 = vld [vmem:[%s1729_s8 + $0xc8] ss:$16 sps:$4 sm:$0xff]   ;;  %v1542_v29 = vld [vmem:[%s1729_s8 + $0xe4] ss:$16 sps:$4 sm:$0xff]   ;;  %v1544_v30 = vld [vmem:[%s1729_s8 + $0xec] ss:$16 sps:$4 sm:$0xff]  }
  0x4d   : > { %v1546_v31 = vld [vmem:[%s1729_s8 + $0xe0] ss:$16 sps:$4 sm:$0xff]   ;;  %v1547_v32 = vld [vmem:[%s1729_s8 + $0xe8] ss:$16 sps:$4 sm:$0xff]  }
  0x4e   : > { %1310 = vmatpush3.bf16.msra.mxu0 %v1490_v55  ;;  %v357_v49 = vld [vmem:[#allocation2] sm:$0xff] }
  0x4f   : > { %1374 = vmatpush3.bf16.msra.mxu1 %v1491_v56  ;;  %1311 = vmatprep.subr.bf16.mxu0 %v1492_v57 }
  0x50   : > { %1375 = vmatprep.subr.bf16.mxu1 %v1493_v58  ;;  %v358_v58 = vld [vmem:[#allocation2 + $0x58] sm:$0xff] }
  0x52   : > { %1312 = vmatpush3.bf16.msra.mxu0 %v1494_v59 }
  0x53   : > { %1376 = vmatpush3.bf16.msra.mxu1 %v1495_v60  ;;  %1313 = vmatprep.subr.bf16.mxu0 %v1496_v61 }
  0x54   : > { %1377 = vmatprep.subr.bf16.mxu1 %v1497_v62 }
  0x56   : > { %1314 = vmatpush3.bf16.msra.mxu0 %v1498_v63 }
  0x57   : > { %1378 = vmatpush3.bf16.msra.mxu1 %v1499_v0 }
  0x59   : > { %853 = vmatmul.mubr.bf16.vlgmr.msra.gmra.mxu0 %v1500_v1 }
  0x5a   : > { %950 = vmatmul.mubr.bf16.vlgmr.msra.gmra.mxu1 %v1503_v3  ;;  %860 = vmatprep.mubr.bf16.mxu0 %v1506_v5  ;;  %v359_v3 = vld [vmem:[#allocation2 + $0x18] sm:$0xff] }
  0x5b   : > { %957 = vmatprep.mubr.bf16.mxu1 %v1508_v6 }
  0x61   : > { %861 = vmatmul.mubr.bf16.gmra.mxu0 %v1510_v7 }
  0x62   : > { %958 = vmatmul.mubr.bf16.gmra.mxu1 %v1511_v8  ;;  %868 = vmatprep.mubr.bf16.mxu0 %v1512_v9 }
  0x63   : > { %965 = vmatprep.mubr.bf16.mxu1 %v1514_v10 }
  0x69   : > { %869 = vmatmul.mubr.bf16.gmra.mxu0 %v1516_v11 }
  0x6a   : > { %966 = vmatmul.mubr.bf16.gmra.mxu1 %v1517_v12  ;;  %876 = vmatprep.mubr.bf16.mxu0 %v1518_v13  ;;  %v360_v12 = vld [vmem:[#allocation2 + $0x50] sm:$0xff] }
  0x6b   : > { %973 = vmatprep.mubr.bf16.mxu1 %v1520_v14 }
  0x71   : > { %877 = vmatmul.mubr.bf16.gmra.mxu0 %v1522_v15 }
  0x72   : > { %974 = vmatmul.mubr.bf16.gmra.mxu1 %v1523_v16  ;;  %884 = vmatprep.mubr.bf16.mxu0 %v1524_v17 }
  0x73   : > { %981 = vmatprep.mubr.bf16.mxu1 %v1526_v18 }
  0x79   : > { %885 = vmatmul.mubr.bf16.gmra.mxu0 %v1528_v19 }
  0x7a   : > { %982 = vmatmul.mubr.bf16.gmra.mxu1 %v1529_v20  ;;  %892 = vmatprep.mubr.bf16.mxu0 %v1530_v21  ;;  %v361_v21 = vld [vmem:[#allocation2 + $0x68] sm:$0xff] }
  0x7b   : > { %989 = vmatprep.mubr.bf16.mxu1 %v1532_v22 }
  0x81   : > { %893 = vmatmul.mubr.bf16.gmra.mxu0 %v1534_v23 }
  0x82   : > { %990 = vmatmul.mubr.bf16.gmra.mxu1 %v1535_v24  ;;  %900 = vmatprep.mubr.bf16.mxu0 %v1536_v25 }
  0x83   : > { %997 = vmatprep.mubr.bf16.mxu1 %v1538_v26 }
  0x89   : > { %901 = vmatmul.mubr.bf16.gmra.mxu0 %v1540_v27 }
  0x8a   : > { %998 = vmatmul.mubr.bf16.gmra.mxu1 %v1541_v28  ;;  %908 = vmatprep.mubr.bf16.mxu0 %v1542_v29 }
  0x8b   : > { %1005 = vmatprep.mubr.bf16.mxu1 %v1544_v30  ;;  %v362_v30 = vld [vmem:[#allocation2 + $0x8] sm:$0xff] }
  0x91   : > { %909 = vmatmul.mubr.bf16.gmra.mxu0 %v1546_v31 }
  0x92   : > { %1006 = vmatmul.mubr.bf16.gmra.mxu1 %v1547_v32 }
 0x119   : > { %v1315_v33 = vpop.f32.mrf.mxu0 }
 0x11a   : > { %v1379_v34 = vpop.f32.mrf.mxu1 }
 0x11b   : > { %v1316_v35 = vpop.f32.mrf.mxu0 }
 0x11c   : > { %v1317_v36 = vadd.f32 %v1316_v35, %v1315_v33  ;;  %v1380_v37 = vpop.f32.mrf.mxu1 }
 0x11d   : > { %v1381_v38 = vadd.f32 %v1380_v37, %v1379_v34  ;;  %v1318_v39 = vpop.f32.mrf.mxu0 }
 0x11e   : > { %v1382_v41 = vpop.f32.mrf.mxu1 }
 0x11f   : > { %v952_v42 = vadd.f32 %v1381_v38, %v1317_v36  ;;  %v1319_v43 = vpop.f32.mrf.mxu0 }
 0x120   : > { %v1320_v44 = vadd.f32 %v1319_v43, %v1318_v39  ;;  %v1383_v45 = vpop.f32.mrf.mxu1  ;;  %v363_v39 = vld [vmem:[#allocation2 + $0x48] sm:$0xff] }
 0x121   : > { %v1014_v46 = vadd.f32 %v952_v42, %v356_v40  ;;  %v1384_v47 = vadd.f32 %v1383_v45, %v1382_v41  ;;  %v1321_v48 = vpop.f32.mrf.mxu0 }
 0x122   : > { %v1385_v50 = vpop.f32.mrf.mxu1 }
 0x123   : > { %1030 = vst [vmem:[#allocation2 + $0x30] sm:$0xff] %v1014_v46  ;;  %v955_v51 = vadd.f32 %v1384_v47, %v1320_v44  ;;  %v1322_v52 = vpop.f32.mrf.mxu0 }
 0x124   : > { %v1323_v53 = vadd.f32 %v1322_v52, %v1321_v48  ;;  %v1386_v54 = vpop.f32.mrf.mxu1  ;;  %v364_v48 = vld [vmem:[#allocation2 + $0x40] sm:$0xff] }
 0x125   : > { %v1015_v55 = vadd.f32 %v955_v51, %v357_v49  ;;  %v1387_v56 = vadd.f32 %v1386_v54, %v1385_v50  ;;  %v1324_v57 = vpop.f32.mrf.mxu0 }
 0x126   : > { %v1388_v59 = vpop.f32.mrf.mxu1 }
 0x127   : > { %1031 = vst [vmem:[#allocation2] sm:$0xff] %v1015_v55  ;;  %v960_v60 = vadd.f32 %v1387_v56, %v1323_v53  ;;  %v1325_v61 = vpop.f32.mrf.mxu0 }
 0x128   : > { %v1326_v62 = vadd.f32 %v1325_v61, %v1324_v57  ;;  %v1389_v63 = vpop.f32.mrf.mxu1  ;;  %v365_v57 = vld [vmem:[#allocation2 + $0x20] sm:$0xff] }
 0x129   : > { %v1016_v0 = vadd.f32 %v960_v60, %v358_v58  ;;  %v1390_v1 = vadd.f32 %v1389_v63, %v1388_v59  ;;  %v1327_v2 = vpop.f32.mrf.mxu0 }
 0x12a   : > { %v1391_v4 = vpop.f32.mrf.mxu1 }
 0x12b   : > { %1032 = vst [vmem:[#allocation2 + $0x58] sm:$0xff] %v1016_v0  ;;  %v963_v5 = vadd.f32 %v1390_v1, %v1326_v62  ;;  %v1328_v6 = vpop.f32.mrf.mxu0 }
 0x12c   : > { %v1329_v7 = vadd.f32 %v1328_v6, %v1327_v2  ;;  %v1392_v8 = vpop.f32.mrf.mxu1  ;;  %v366_v2 = vld [vmem:[#allocation2 + $0x10] sm:$0xff] }
 0x12d   : > { %v1017_v9 = vadd.f32 %v963_v5, %v359_v3  ;;  %v1393_v10 = vadd.f32 %v1392_v8, %v1391_v4  ;;  %v1330_v11 = vpop.f32.mrf.mxu0 }
 0x12e   : > { %v1394_v13 = vpop.f32.mrf.mxu1 }
 0x12f   : > { %1033 = vst [vmem:[#allocation2 + $0x18] sm:$0xff] %v1017_v9  ;;  %v968_v14 = vadd.f32 %v1393_v10, %v1329_v7  ;;  %v1331_v15 = vpop.f32.mrf.mxu0 }
 0x130   : > { %v1332_v16 = vadd.f32 %v1331_v15, %v1330_v11  ;;  %v1395_v17 = vpop.f32.mrf.mxu1  ;;  %v367_v11 = vld [vmem:[#allocation2 + $0x38] sm:$0xff] }
 0x131   : > { %v1018_v18 = vadd.f32 %v968_v14, %v360_v12  ;;  %v1396_v19 = vadd.f32 %v1395_v17, %v1394_v13  ;;  %v1333_v20 = vpop.f32.mrf.mxu0 }
 0x132   : > { %v1397_v22 = vpop.f32.mrf.mxu1 }
 0x133   : > { %1034 = vst [vmem:[#allocation2 + $0x50] sm:$0xff] %v1018_v18  ;;  %v971_v23 = vadd.f32 %v1396_v19, %v1332_v16  ;;  %v1334_v24 = vpop.f32.mrf.mxu0 }
 0x134   : > { %v1335_v25 = vadd.f32 %v1334_v24, %v1333_v20  ;;  %v1398_v26 = vpop.f32.mrf.mxu1  ;;  %v368_v20 = vld [vmem:[#allocation2 + $0x60] sm:$0xff] }
 0x135   : > { %v1019_v27 = vadd.f32 %v971_v23, %v361_v21  ;;  %v1399_v28 = vadd.f32 %v1398_v26, %v1397_v22  ;;  %v1336_v29 = vpop.f32.mrf.mxu0 }
 0x136   : > { %v1400_v31 = vpop.f32.mrf.mxu1 }
 0x137   : > { %1035 = vst [vmem:[#allocation2 + $0x68] sm:$0xff] %v1019_v27  ;;  %v976_v32 = vadd.f32 %v1399_v28, %v1335_v25  ;;  %v1337_v33 = vpop.f32.mrf.mxu0 }
 0x138   : > { %v1338_v34 = vadd.f32 %v1337_v33, %v1336_v29  ;;  %v1401_v35 = vpop.f32.mrf.mxu1  ;;  %v369_v29 = vld [vmem:[#allocation2 + $0x70] sm:$0xff] }
 0x139   : > { %v1020_v36 = vadd.f32 %v976_v32, %v362_v30  ;;  %v1402_v37 = vadd.f32 %v1401_v35, %v1400_v31  ;;  %v1339_v38 = vpop.f32.mrf.mxu0 }
 0x13a   : > { %v1403_v40 = vpop.f32.mrf.mxu1 }
 0x13b   : > { %1036 = vst [vmem:[#allocation2 + $0x8] sm:$0xff] %v1020_v36  ;;  %v979_v41 = vadd.f32 %v1402_v37, %v1338_v34  ;;  %v1340_v42 = vpop.f32.mrf.mxu0 }
 0x13c   : > { %v1341_v43 = vadd.f32 %v1340_v42, %v1339_v38  ;;  %v1404_v44 = vpop.f32.mrf.mxu1  ;;  %v370_v38 = vld [vmem:[#allocation2 + $0x78] sm:$0xff] }
 0x13d   : > { %v1021_v45 = vadd.f32 %v979_v41, %v363_v39  ;;  %v1405_v46 = vadd.f32 %v1404_v44, %v1403_v40  ;;  %v1342_v47 = vpop.f32.mrf.mxu0 }
 0x13e   : > { %v1406_v49 = vpop.f32.mrf.mxu1 }
 0x13f   : > { %1037 = vst [vmem:[#allocation2 + $0x48] sm:$0xff] %v1021_v45  ;;  %v984_v50 = vadd.f32 %v1405_v46, %v1341_v43  ;;  %v1343_v51 = vpop.f32.mrf.mxu0  ;;  %v371_v46 = vld [vmem:[#allocation2 + $0x28] sm:$0xff] }
 0x140   : > { %v1344_v52 = vadd.f32 %v1343_v51, %v1342_v47  ;;  %v1407_v53 = vpop.f32.mrf.mxu1 }
 0x141   : > { %v1022_v54 = vadd.f32 %v984_v50, %v364_v48  ;;  %v1408_v55 = vadd.f32 %v1407_v53, %v1406_v49  ;;  %v1345_v56 = vpop.f32.mrf.mxu0 }
 0x142   : > { %v1409_v58 = vpop.f32.mrf.mxu1 }
 0x143   : > { %1038 = vst [vmem:[#allocation2 + $0x40] sm:$0xff] %v1022_v54  ;;  %v987_v59 = vadd.f32 %v1408_v55, %v1344_v52  ;;  %v1346_v60 = vpop.f32.mrf.mxu0 }
 0x144   : > { %v1347_v61 = vadd.f32 %v1346_v60, %v1345_v56  ;;  %v1410_v62 = vpop.f32.mrf.mxu1 }
 0x145   : > { %v1023_v63 = vadd.f32 %v987_v59, %v365_v57  ;;  %v1411_v0 = vadd.f32 %v1410_v62, %v1409_v58  ;;  %v1348_v1 = vpop.f32.mrf.mxu0 }
 0x146   : > { %v1412_v3 = vpop.f32.mrf.mxu1 }
 0x147   : > { %1039 = vst [vmem:[#allocation2 + $0x20] sm:$0xff] %v1023_v63  ;;  %v992_v4 = vadd.f32 %v1411_v0, %v1347_v61  ;;  %v1349_v5 = vpop.f32.mrf.mxu0 }
 0x148   : > { %v1350_v6 = vadd.f32 %v1349_v5, %v1348_v1  ;;  %v1413_v7 = vpop.f32.mrf.mxu1 }
 0x149   : > { %v1024_v8 = vadd.f32 %v992_v4, %v366_v2  ;;  %v1414_v9 = vadd.f32 %v1413_v7, %v1412_v3  ;;  %v1351_v10 = vpop.f32.mrf.mxu0 }
 0x14a   : > { %v1415_v12 = vpop.f32.mrf.mxu1 }
 0x14b   : > { %1040 = vst [vmem:[#allocation2 + $0x10] sm:$0xff] %v1024_v8  ;;  %v995_v13 = vadd.f32 %v1414_v9, %v1350_v6  ;;  %v1352_v14 = vpop.f32.mrf.mxu0 }
 0x14c   : > { %v1353_v15 = vadd.f32 %v1352_v14, %v1351_v10  ;;  %v1416_v16 = vpop.f32.mrf.mxu1 }
 0x14d   : > { %v1025_v17 = vadd.f32 %v995_v13, %v367_v11  ;;  %v1417_v18 = vadd.f32 %v1416_v16, %v1415_v12  ;;  %v1354_v19 = vpop.f32.mrf.mxu0 }
 0x14e   : > { %v1418_v21 = vpop.f32.mrf.mxu1 }
 0x14f   : > { %1041 = vst [vmem:[#allocation2 + $0x38] sm:$0xff] %v1025_v17  ;;  %v1000_v22 = vadd.f32 %v1417_v18, %v1353_v15  ;;  %v1355_v23 = vpop.f32.mrf.mxu0 }
 0x150   : > { %v1356_v24 = vadd.f32 %v1355_v23, %v1354_v19  ;;  %v1419_v25 = vpop.f32.mrf.mxu1 }
 0x151   : > { %v1026_v26 = vadd.f32 %v1000_v22, %v368_v20  ;;  %v1420_v27 = vadd.f32 %v1419_v25, %v1418_v21  ;;  %v1357_v28 = vpop.f32.mrf.mxu0 }
 0x152   : > { %v1421_v30 = vpop.f32.mrf.mxu1 }
 0x153   : > { %1042 = vst [vmem:[#allocation2 + $0x60] sm:$0xff] %v1026_v26  ;;  %v1003_v31 = vadd.f32 %v1420_v27, %v1356_v24  ;;  %v1358_v32 = vpop.f32.mrf.mxu0 }
 0x154   : > { %v1359_v33 = vadd.f32 %v1358_v32, %v1357_v28  ;;  %v1422_v34 = vpop.f32.mrf.mxu1 }
 0x155   : > { %v1027_v35 = vadd.f32 %v1003_v31, %v369_v29  ;;  %v1423_v36 = vadd.f32 %v1422_v34, %v1421_v30  ;;  %v1360_v37 = vpop.f32.mrf.mxu0 }
 0x156   : > { %v1424_v39 = vpop.f32.mrf.mxu1 }
 0x157   : > { %1043 = vst [vmem:[#allocation2 + $0x70] sm:$0xff] %v1027_v35  ;;  %v1008_v40 = vadd.f32 %v1423_v36, %v1359_v33  ;;  %v1361_v41 = vpop.f32.mrf.mxu0 }
 0x158   : > { %v1362_v42 = vadd.f32 %v1361_v41, %v1360_v37  ;;  %v1425_v43 = vpop.f32.mrf.mxu1 }
 0x159   : > { %v1028_v44 = vadd.f32 %v1008_v40, %v370_v38  ;;  %v1426_v45 = vadd.f32 %v1425_v43, %v1424_v39 }
 0x15b   : > { %1044 = vst [vmem:[#allocation2 + $0x78] sm:$0xff] %v1028_v44  ;;  %v1011_v47 = vadd.f32 %v1426_v45, %v1362_v42  ;;  %1049 = sbr.rel (%p1292_p11) target bundleno = 363 (0x16b), region = 63 }
 0x15d   : > { %v1029_v48 = vadd.f32 %v1011_v47, %v371_v46 }
 0x15f   : > { %1045 = vst [vmem:[#allocation2 + $0x28] sm:$0xff] %v1029_v48 }
 0x160   : > { %v1050_v49 = vld [vmem:[#allocation2 + $0x30] sm:$0xff]  ;;  %v1293_v50 = vld [vmem:[%s1865_s2] ss:$0 sm:$0xff]  ;;  %v1052_v54 = vld [vmem:[#allocation2 + $0x58] sm:$0xff] }
 0x161   : > { %v1051_v51 = vld [vmem:[#allocation2] sm:$0xff]  ;;  %v1073_v52 = vadd.f32 %v1293_v50, %v1050_v49  ;;  %v1053_v55 = vld [vmem:[#allocation2 + $0x18] sm:$0xff]  ;;  %v1054_v56 = vld [vmem:[#allocation2 + $0x50] sm:$0xff]  ;;  %v1075_v57 = vadd.f32 %v1293_v50, %v1052_v54 }
 0x162   : > { %v1074_v53 = vadd.f32 %v1293_v50, %v1051_v51  ;;  %v1076_v58 = vadd.f32 %v1293_v50, %v1053_v55  ;;  %v1077_v59 = vadd.f32 %v1293_v50, %v1054_v56  ;;  %v1055_v60 = vld [vmem:[#allocation2 + $0x68] sm:$0xff]  ;;  %v1058_v2 = vld [vmem:[#allocation2 + $0x40] sm:$0xff]  ;;  %v1060_v4 = vld [vmem:[#allocation2 + $0x10] sm:$0xff] }
 0x163   : > { %v1056_v61 = vld [vmem:[#allocation2 + $0x8] sm:$0xff]  ;;  %1089 = vst [vmem:[%s1866_s3] sm:$0xff] %v1073_v52  ;;  %v1078_v63 = vadd.f32 %v1293_v50, %v1055_v60  ;;  %v1059_v3 = vld [vmem:[#allocation2 + $0x20] sm:$0xff]  ;;  %1091 = vst [vmem:[%s1866_s3 + $0x10] sm:$0xff] %v1075_v57  ;;  %v1081_v5 = vadd.f32 %v1293_v50, %v1058_v2  ;;  %v1083_v7 = vadd.f32 %v1293_v50, %v1060_v4 }
 0x164   : > { %v1057_v62 = vld [vmem:[#allocation2 + $0x48] sm:$0xff]  ;;  %1090 = vst [vmem:[%s1866_s3 + $0x8] sm:$0xff] %v1074_v53  ;;  %v1079_v0 = vadd.f32 %v1293_v50, %v1056_v61  ;;  %1092 = vst [vmem:[%s1866_s3 + $0x18] sm:$0xff] %v1076_v58  ;;  %v1082_v6 = vadd.f32 %v1293_v50, %v1059_v3  ;;  %v1061_v8 = vld [vmem:[#allocation2 + $0x38] sm:$0xff] }
 0x165   : > { %v1080_v1 = vadd.f32 %v1293_v50, %v1057_v62  ;;  %1093 = vst [vmem:[%s1866_s3 + $0x20] sm:$0xff] %v1077_v59  ;;  %v1062_v9 = vld [vmem:[#allocation2 + $0x60] sm:$0xff]  ;;  %v1063_v10 = vld [vmem:[#allocation2 + $0x70] sm:$0xff]  ;;  %1094 = vst [vmem:[%s1866_s3 + $0x28] sm:$0xff] %v1078_v63  ;;  %v1084_v11 = vadd.f32 %v1293_v50, %v1061_v8 }
 0x166   : > { %1095 = vst [vmem:[%s1866_s3 + $0x30] sm:$0xff] %v1079_v0  ;;  %v1085_v12 = vadd.f32 %v1293_v50, %v1062_v9  ;;  %v1086_v13 = vadd.f32 %v1293_v50, %v1063_v10  ;;  %v1064_v14 = vld [vmem:[#allocation2 + $0x78] sm:$0xff]  ;;  %v1065_v15 = vld [vmem:[#allocation2 + $0x28] sm:$0xff]  ;;  %1097 = vst [vmem:[%s1866_s3 + $0x40] sm:$0xff] %v1081_v5 }
 0x167   : > { %1096 = vst [vmem:[%s1866_s3 + $0x38] sm:$0xff] %v1080_v1  ;;  %1098 = vst [vmem:[%s1866_s3 + $0x48] sm:$0xff] %v1082_v6  ;;  %v1087_v16 = vadd.f32 %v1293_v50, %v1064_v14  ;;  %v1088_v17 = vadd.f32 %v1293_v50, %v1065_v15 }
 0x168   : > { %1099 = vst [vmem:[%s1866_s3 + $0x50] sm:$0xff] %v1083_v7  ;;  %1100 = vst [vmem:[%s1866_s3 + $0x58] sm:$0xff] %v1084_v11 }
 0x169   : > { %1101 = vst [vmem:[%s1866_s3 + $0x60] sm:$0xff] %v1085_v12  ;;  %1102 = vst [vmem:[%s1866_s3 + $0x68] sm:$0xff] %v1086_v13 }
 0x16a   : > { %1103 = vst [vmem:[%s1866_s3 + $0x70] sm:$0xff] %v1087_v16  ;;  %1104 = vst [vmem:[%s1866_s3 + $0x78] sm:$0xff] %v1088_v17 }
 0x16b PF: > { %s13_s16 = sadd.s32 1, %s1586_s16   ;;  %s1867_s12 = smov %s1574_s13 }
 0x16c   : > { %p10_p12 = scmp.ge.s32.totalorder %s13_s16, 4   ;;  %s1868_s13 = smov %s1644_s20 }
 0x16d   : > { %s1869_s14 = smov %s1582_s15  ;;  %s1870_s15 = smov %s1872_s17 }
 0x16e   :  { %12 = sbr.rel (!%p10_p12) target bundleno = 3 (0x3), region = 104 }

// kernel: encoder_mg_forward.15
= control target key start
LH: loop header
LB: loop body
LE: loop exit
PB: predicated region body
PF: predicated region fallthrough
CT: control target
= control target key end

     0   :  { %s1040_s18 = smov 0   ;;  %s1241_s0 = inlined_call_operand.vmem [shape: f32[2,64,128], index: 0, kind: input, shape index: {}]   ;;  %s1242_s1 = inlined_call_operand.vmem [shape: f32[128,8], index: 1, kind: input, shape index: {}]   ;;  %s1243_s2 = inlined_call_operand.vmem [shape: f32[8,128], index: 2, kind: input, shape index: {}]   ;;  %s1244_s3 = inlined_call_operand.vmem [shape: f32[1,128], index: 3, kind: input, shape index: {}]   ;;  %s1245_s4 = inlined_call_operand.vmem [shape: f32[1,128], index: 4, kind: input, shape index: {}]   ;;  %s1246_s5 = inlined_call_operand.vmem [shape: f32[2,64,128], index: 5, kind: output, shape index: {}]  }
   0x1 LB: > { %s795_s19 = sadd.s32 4294967295, %s1005_s18   ;;  %p799_p0 = scmp.ge.s32.totalorder %s1005_s18, 1  ;;  %s1005_s18 = sphi %s1040_s18, %s15_s18  }
   0x2   : > { %p187_p1 = scmp.lt.s32.totalorder %s1005_s18, 3 }
   0x4   : > { %p188_p2 = pnand %p799_p0, %p187_p1 }
   0x5   : > { %p215_p3 = scmp.lt.s32.totalorder (!%p188_p2), %s795_s19, 1 }
   0x6   : > { %191 = sbr.rel (%p188_p2) target bundleno = 647 (0x287), region = 40 }
   0xb   : > { %v1007_v0 = vmov 0.0   ;;  %s1248_s19 = smov (!%p215_p3, %s795_s19), 1  ;;  %vm1008_vm0 = vmmov 0   ;;  %vm233_vm1 = vcmask 523264   ;;  %v400_v17 = vld [vmem:[%s1242_s1 + $0x78] sm:$0xff]  ;;  %v1009_v18 = vmov 1.0  }
   0xc   : > { %868 = vmatprep.subr.mxu0 %v1007_v0  ;;  %887 = vmatprep.subr.mxu1 %v1007_v0  ;;  %s810_s20 = sshll.u32 %s1248_s19, 6  ;;  %v399_v19 = vld [vmem:[%s1242_s1 + $0x70] sm:$0xff]  ;;  %v398_v20 = vld [vmem:[%s1242_s1 + $0x68] sm:$0xff]  ;;  %v397_v21 = vld [vmem:[%s1242_s1 + $0x60] sm:$0xff]  ;;  %vm545_vm2 = vcmask 64512   ;;  %v698_v51 = vlaneseq }
   0xd   : > { %884 = vmatprep.mubr.msk.f32.mxu0 %vm1008_vm0, %v1007_v0  ;;  %903 = vmatprep.mubr.msk.f32.mxu1 %vm1008_vm0, %v1007_v0  ;;  %s1062_s23 = scalar_lea.vmem %s1241_s0, %s810_s20  ;;  %v396_v22 = vld [vmem:[%s1242_s1 + $0x58] sm:$0xff]  ;;  %v395_v23 = vld [vmem:[%s1242_s1 + $0x50] sm:$0xff]  ;;  %v394_v24 = vld [vmem:[%s1242_s1 + $0x48] sm:$0xff]  ;;  %s224_s17 = scalar_lea.vmem %s1246_s5, %s810_s20 }
   0xe   : > { %v1065_v1 = vld [vmem:[%s1062_s23 + $0x38] sm:$0xff]  ;;  %v1068_v2 = vld [vmem:[%s1062_s23 + $0x30] sm:$0xff]  ;;  %v1071_v3 = vld [vmem:[%s1062_s23 + $0x28] sm:$0xff]  ;;  %v699_v52 = vshrl.u32 %v698_v51, 7 }
   0xf   : > { %869 = vmatpush3.msra.mxu0 %v1065_v1  ;;  %v314_v4 = vmul.f32 %v1065_v1, %v1065_v1  ;;  %v313_v5 = vmul.f32 %v1068_v2, %v1068_v2  ;;  %v1080_v6 = vld [vmem:[%s1062_s23 + $0x20] sm:$0xff]  ;;  %v312_v7 = vmul.f32 %v1071_v3, %v1071_v3  ;;  %v1088_v8 = vld [vmem:[%s1062_s23 + $0x18] sm:$0xff]  ;;  %v1096_v10 = vld [vmem:[%s1062_s23 + $0x10] sm:$0xff] }
  0x10   : > { %870 = vmatprep.subr.mxu0 %v1007_v0  ;;  %v311_v9 = vmul.f32 %v1080_v6, %v1080_v6  ;;  %v310_v11 = vmul.f32 %v1088_v8, %v1088_v8  ;;  %v1104_v12 = vld [vmem:[%s1062_s23 + $0x8] sm:$0xff]  ;;  %v309_v13 = vmul.f32 %v1096_v10, %v1096_v10  ;;  %v1112_v14 = vld [vmem:[%s1062_s23] sm:$0xff]  ;;  %v392_v26 = vld [vmem:[%s1242_s1 + $0x38] sm:$0xff]  ;;  %v700_v54 = vsub.s32 0, %v699_v52 }
  0x11   : > { %871 = vmatpush3.msra.mxu0 %v1068_v2  ;;  %888 = vmatpush3.msra.mxu1 %v314_v4  ;;  %v308_v15 = vmul.f32 %v1104_v12, %v1104_v12  ;;  %v307_v16 = vmul.f32 %v1112_v14, %v1112_v14  ;;  %v393_v25 = vld [vmem:[%s1242_s1 + $0x40] sm:$0xff]  ;;  %v391_v27 = vld [vmem:[%s1242_s1 + $0x30] sm:$0xff]  ;;  %v390_v28 = vld [vmem:[%s1242_s1 + $0x28] sm:$0xff] }
  0x12   : > { %872 = vmatprep.subr.mxu0 %v1007_v0  ;;  %889 = vmatprep.subr.mxu1 %v1007_v0  ;;  %v389_v29 = vld [vmem:[%s1242_s1 + $0x20] sm:$0xff]  ;;  %v388_v30 = vld [vmem:[%s1242_s1 + $0x18] sm:$0xff]  ;;  %v387_v31 = vld [vmem:[%s1242_s1 + $0x10] sm:$0xff] }
  0x13   : > { %873 = vmatpush3.msra.mxu0 %v1071_v3  ;;  %890 = vmatpush3.msra.mxu1 %v313_v5  ;;  %v386_v32 = vld [vmem:[%s1242_s1 + $0x8] sm:$0xff]  ;;  %v385_v33 = vld [vmem:[%s1242_s1] sm:$0xff] }
  0x14   : > { %874 = vmatprep.subr.mxu0 %v1007_v0  ;;  %891 = vmatprep.subr.mxu1 %v1007_v0  ;;  %v544_v38 = vld [vmem:[%s1243_s2] sm:$0xff] }
  0x15   : > { %875 = vmatpush3.msra.mxu0 %v1080_v6  ;;  %892 = vmatpush3.msra.mxu1 %v312_v7  ;;  %v693_v53 = vld [vmem:[%s1244_s3] sm:$0x1] }
  0x16   : > { %876 = vmatprep.subr.mxu0 %v1007_v0  ;;  %893 = vmatprep.subr.mxu1 %v1007_v0  ;;  %v695_v57 = vld [vmem:[%s1245_s4] sm:$0x1] }
  0x17   : > { %877 = vmatpush3.msra.mxu0 %v1088_v8  ;;  %894 = vmatpush3.msra.mxu1 %v311_v9 }
  0x18   : > { %878 = vmatprep.subr.mxu0 %v1007_v0  ;;  %895 = vmatprep.subr.mxu1 %v1007_v0 }
  0x19   : > { %879 = vmatpush3.msra.mxu0 %v1096_v10  ;;  %896 = vmatpush3.msra.mxu1 %v310_v11 }
  0x1a   : > { %880 = vmatprep.subr.mxu0 %v1007_v0  ;;  %897 = vmatprep.subr.mxu1 %v1007_v0 }
  0x1b   : > { %881 = vmatpush3.msra.mxu0 %v1104_v12  ;;  %898 = vmatpush3.msra.mxu1 %v309_v13 }
  0x1c   : > { %882 = vmatprep.subr.mxu0 %v1007_v0  ;;  %899 = vmatprep.subr.mxu1 %v1007_v0 }
  0x1d   : > { %883 = vmatpush3.msra.mxu0 %v1112_v14  ;;  %900 = vmatpush3.msra.mxu1 %v308_v15 }
  0x1e   : > { %885 = vmatmul.mubr.msk.f32.vlgmr.msra.gmra.mxu0 %vm233_vm1, %v1009_v18  ;;  %901 = vmatprep.subr.mxu1 %v1007_v0 }
  0x1f   : > { %902 = vmatpush3.msra.mxu1 %v307_v16  ;;  %906 = vmatprep.subr.mxu0 %v1007_v0 }
  0x20   : > { %904 = vmatmul.mubr.msk.f32.vlgmr.msra.gmra.mxu1 %vm233_vm1, %v1009_v18  ;;  %907 = vmatpush3.msra.mxu0 %v400_v17 }
  0x21   : > { %908 = vmatprep.subr.mxu0 %v1007_v0  ;;  %941 = vmatprep.subr.mxu1 %v1007_v0 }
  0x22   : > { %909 = vmatpush3.msra.mxu0 %v399_v19  ;;  %942 = vmatpush3.msra.mxu1 %v400_v17 }
  0x23   : > { %910 = vmatprep.subr.mxu0 %v1007_v0  ;;  %943 = vmatprep.subr.mxu1 %v1007_v0 }
  0x24   : > { %911 = vmatpush3.msra.mxu0 %v398_v20  ;;  %944 = vmatpush3.msra.mxu1 %v399_v19 }
  0x25   : > { %912 = vmatprep.subr.mxu0 %v1007_v0  ;;  %945 = vmatprep.subr.mxu1 %v1007_v0 }
  0x26   : > { %913 = vmatpush3.msra.mxu0 %v397_v21  ;;  %946 = vmatpush3.msra.mxu1 %v398_v20 }
  0x27   : > { %914 = vmatprep.subr.mxu0 %v1007_v0  ;;  %947 = vmatprep.subr.mxu1 %v1007_v0 }
  0x28   : > { %915 = vmatpush3.msra.mxu0 %v396_v22  ;;  %948 = vmatpush3.msra.mxu1 %v397_v21 }
  0x29   : > { %916 = vmatprep.subr.mxu0 %v1007_v0  ;;  %949 = vmatprep.subr.mxu1 %v1007_v0 }
  0x2a   : > { %917 = vmatpush3.msra.mxu0 %v395_v23  ;;  %950 = vmatpush3.msra.mxu1 %v396_v22 }
  0x2b   : > { %918 = vmatprep.subr.mxu0 %v1007_v0  ;;  %951 = vmatprep.subr.mxu1 %v1007_v0 }
  0x2c   : > { %919 = vmatpush3.msra.mxu0 %v394_v24  ;;  %952 = vmatpush3.msra.mxu1 %v395_v23 }
  0x2d   : > { %920 = vmatprep.subr.mxu0 %v1007_v0  ;;  %953 = vmatprep.subr.mxu1 %v1007_v0 }
  0x2e   : > { %921 = vmatpush3.msra.mxu0 %v393_v25  ;;  %954 = vmatpush3.msra.mxu1 %v394_v24 }
  0x2f   : > { %922 = vmatprep.subr.mxu0 %v1007_v0  ;;  %955 = vmatprep.subr.mxu1 %v1007_v0 }
  0x30   : > { %923 = vmatpush3.msra.mxu0 %v392_v26  ;;  %956 = vmatpush3.msra.mxu1 %v393_v25 }
  0x31   : > { %924 = vmatprep.subr.mxu0 %v1007_v0  ;;  %957 = vmatprep.subr.mxu1 %v1007_v0 }
  0x32   : > { %925 = vmatpush3.msra.mxu0 %v391_v27  ;;  %958 = vmatpush3.msra.mxu1 %v392_v26 }
  0x33   : > { %926 = vmatprep.subr.mxu0 %v1007_v0  ;;  %959 = vmatprep.subr.mxu1 %v1007_v0 }
  0x34   : > { %927 = vmatpush3.msra.mxu0 %v390_v28  ;;  %960 = vmatpush3.msra.mxu1 %v391_v27 }
  0x35   : > { %928 = vmatprep.subr.mxu0 %v1007_v0  ;;  %961 = vmatprep.subr.mxu1 %v1007_v0 }
  0x36   : > { %929 = vmatpush3.msra.mxu0 %v389_v29  ;;  %962 = vmatpush3.msra.mxu1 %v390_v28 }
  0x37   : > { %930 = vmatprep.subr.mxu0 %v1007_v0  ;;  %963 = vmatprep.subr.mxu1 %v1007_v0 }
  0x38   : > { %931 = vmatpush3.msra.mxu0 %v388_v30  ;;  %964 = vmatpush3.msra.mxu1 %v389_v29 }
  0x39   : > { %932 = vmatprep.subr.mxu0 %v1007_v0  ;;  %965 = vmatprep.subr.mxu1 %v1007_v0 }
  0x3a   : > { %933 = vmatpush3.msra.mxu0 %v387_v31  ;;  %966 = vmatpush3.msra.mxu1 %v388_v30 }
  0x3b   : > { %934 = vmatprep.subr.mxu0 %v1007_v0  ;;  %967 = vmatprep.subr.mxu1 %v1007_v0 }
  0x3c   : > { %935 = vmatpush3.msra.mxu0 %v386_v32  ;;  %968 = vmatpush3.msra.mxu1 %v387_v31 }
  0x3d   : > { %936 = vmatprep.subr.mxu0 %v1007_v0  ;;  %969 = vmatprep.subr.mxu1 %v1007_v0 }
  0x3e   : > { %938 = vmatprep.mubr.msk.f32.mxu0 %vm1008_vm0, %v1007_v0  ;;  %970 = vmatpush3.msra.mxu1 %v386_v32 }
  0x3f   : > { %971 = vmatprep.subr.mxu1 %v1007_v0  ;;  %973 = vmatprep.mubr.msk.f32.mxu1 %vm1008_vm0, %v1007_v0 }
  0x40   : > { %937 = vmatpush3.msra.mxu0 %v385_v33  ;;  %972 = vmatpush3.msra.mxu1 %v385_v33 }
  0x41   : > { %976 = vmatprep.subr.mxu0 %v1007_v0  ;;  %981 = vmatprep.subr.mxu1 %v1007_v0 }
  0xde   : > { %v303_v34 = vpop.f32.mrf.mxu0 }
  0xdf   : > { %939 = vmatmul.mubr.f32.vlgmr.msra.gmra.mxu0 %v303_v34 }
  0xe0   : > { %v886_v35 = vpop.f32.mrf.mxu0  ;;  %v381_v36 = vpop.f32.mrf.mxu1  ;;  %978 = vmatprep.mubr.msk.f32.mxu0 %vm1008_vm0, %v1007_v0  ;;  %977 = vmatpush3.msra.mxu0 %v544_v38 }
  0xe1   : > { %974 = vmatmul.mubr.f32.vlgmr.msra.gmra.mxu1 %v381_v36 }
  0xe2   : > { %v905_v37 = vpop.f32.mrf.mxu1  ;;  %983 = vmatprep.mubr.msk.f32.mxu1 %vm1008_vm0, %v1007_v0  ;;  %982 = vmatpush3.msra.mxu1 %v544_v38 }
 0x19f   : > { %v467_v39 = vpop.f32.mrf.mxu0 }
 0x1a0   : > { %v541_v40 = vmul.f32 %v467_v39, %v467_v39  ;;  %979 = vmatmul.mubr.msk.f32.vlgmr.msra.gmra.mxu0 %vm545_vm2, %v467_v39 }
 0x1a1   : > { %v940_v41 = vpop.f32.mrf.mxu0  ;;  %v537_v42 = vpop.f32.mrf.mxu1 }
 0x1a2   : > { %v542_v43 = vsub.f32 %v537_v42, %v541_v40 }
 0x1a3   : > { %v975_v44 = vpop.f32.mrf.mxu1 }
 0x1a4   : > { %v543_v45 = vmax.f32 %v542_v43, 0.0 }
 0x1a6   : > { %984 = vmatmul.mubr.msk.f32.vlgmr.msra.gmra.mxu1 %vm545_vm2, %v543_v45 }
 0x260   : > { %v615_v46 = vpop.f32.mrf.mxu0 }
 0x262   : > { %v980_v47 = vpop.f32.mrf.mxu0 }
 0x266   : > { %v688_v48 = vpop.f32.mrf.mxu1 }
 0x267   : > { %v689_v49 = vadd.f32 1e-05, %v688_v48 }
 0x268   : > { %v985_v50 = vpop.f32.mrf.mxu1 }
 0x269   : > { %997 = vrsqrt.f32 %v689_v49 }
 0x276   : > { %v998_v55 = vpop.eup %997 }
 0x277   : > { %v694_v56 = vmul.f32 %v998_v55, %v693_v53 }
 0x279   : > { %v696_v58 = vmul.f32 %v694_v56, %v615_v46  ;;  %v701_v59 = vrot.slane %v694_v56, %v700_v54 }
 0x27b   : > { %v697_v60 = vsub.f32 %v695_v57, %v696_v58  ;;  %v702_v61 = vmul.f32 %v701_v59, %v1112_v14  ;;  %v703_v62 = vmul.f32 %v701_v59, %v1104_v12  ;;  %v704_v63 = vmul.f32 %v701_v59, %v1096_v10 }
 0x27c   : > { %v705_v0 = vmul.f32 %v701_v59, %v1088_v8  ;;  %v706_v5 = vmul.f32 %v701_v59, %v1080_v6  ;;  %v707_v7 = vmul.f32 %v701_v59, %v1071_v3  ;;  %v708_v9 = vmul.f32 %v701_v59, %v1068_v2 }
 0x27d   : > { %v714_v4 = vrot.slane %v697_v60, %v700_v54  ;;  %v709_v11 = vmul.f32 %v701_v59, %v1065_v1 }
 0x27f   : > { %v716_v13 = vadd.f32 %v714_v4, %v702_v61  ;;  %v717_v15 = vadd.f32 %v714_v4, %v703_v62  ;;  %v718_v16 = vadd.f32 %v714_v4, %v704_v63  ;;  %v719_v17 = vadd.f32 %v714_v4, %v705_v0 }
 0x280   : > { %v720_v10 = vadd.f32 %v714_v4, %v706_v5  ;;  %v721_v8 = vadd.f32 %v714_v4, %v707_v7  ;;  %v722_v12 = vadd.f32 %v714_v4, %v708_v9  ;;  %v723_v14 = vadd.f32 %v714_v4, %v709_v11 }
 0x281   : > { %v724_v6 = vmax.f32 %v716_v13, 0.0  ;;  %v725_v18 = vmax.f32 %v717_v15, 0.0  ;;  %v726_v3 = vmax.f32 %v718_v16, 0.0  ;;  %v727_v19 = vmax.f32 %v719_v17, 0.0 }
 0x282   : > { %v728_v2 = vmax.f32 %v720_v10, 0.0  ;;  %v729_v20 = vmax.f32 %v721_v8, 0.0  ;;  %v730_v1 = vmax.f32 %v722_v12, 0.0  ;;  %v731_v21 = vmax.f32 %v723_v14, 0.0 }
 0x283   : > { %732 = vst [vmem:[%s224_s17] sm:$0xff] %v724_v6  ;;  %733 = vst [vmem:[%s224_s17 + $0x8] sm:$0xff] %v725_v18 }
 0x284   : > { %734 = vst [vmem:[%s224_s17 + $0x10] sm:$0xff] %v726_v3  ;;  %735 = vst [vmem:[%s224_s17 + $0x18] sm:$0xff] %v727_v19 }
 0x285   : > { %736 = vst [vmem:[%s224_s17 + $0x20] sm:$0xff] %v728_v2  ;;  %737 = vst [vmem:[%s224_s17 + $0x28] sm:$0xff] %v729_v20 }
 0x286   : > { %738 = vst [vmem:[%s224_s17 + $0x30] sm:$0xff] %v730_v1  ;;  %739 = vst [vmem:[%s224_s17 + $0x38] sm:$0xff] %v731_v21 }
 0x287 PF: > { %s15_s18 = sadd.s32 1, %s1005_s18  }
 0x288   : > { %p12_p4 = scmp.ge.s32.totalorder %s15_s18, 4  }
 0x28a   :  { %14 = sbr.rel (!%p12_p4) target bundleno = 1 (0x1), region = 70 }

// kernel: encoder_mg_forward.16
= control target key start
LH: loop header
LB: loop body
LE: loop exit
PB: predicated region body
PF: predicated region fallthrough
CT: control target
= control target key end

     0   :  { %s1344_s12 = smov 0   ;;  %s1346_s13 = smov 0   ;;  %s1514_s0 = inlined_call_operand.vmem [shape: bf16[32,2048], index: 0, kind: input, shape index: {}]   ;;  %s1515_s1 = inlined_call_operand.vmem [shape: bf16[2048,256], index: 1, kind: input, shape index: {}]   ;;  %s1516_s2 = inlined_call_operand.vmem [shape: f32[1,256], index: 2, kind: input, shape index: {}]   ;;  %s1517_s3 = inlined_call_operand.vmem [shape: f32[32,256], index: 3, kind: output, shape index: {}]  }
   0x1   :  { %s1348_s14 = smov 0   ;;  %s1350_s15 = smov 0  }
   0x2   :  { %s1352_s16 = smov 0  }
   0x3 LB: > { %s25_s17 = sadd.s32 1, %s1317_s15  ;;  %p48_p1 = scmp.ne.s32.totalorder %s1309_s13, %s1305_s12  ;;  %s1321_s16 = sphi %s1352_s16, %s13_s16   ;;  %s1317_s15 = sphi %s1350_s15, %s1521_s15   ;;  %s1313_s14 = sphi %s1348_s14, %s1520_s14   ;;  %s1309_s13 = sphi %s1346_s13, %s1519_s13   ;;  %s1305_s12 = sphi %s1344_s12, %s1518_s12  }
   0x4   : > { %p26_p0 = scmp.ge.s32.totalorder %s25_s17, 4  ;;  %p49_p2 = scmp.eq.s32.totalorder %s1321_s16, 0 }
   0x5   : > { %s41_s19 = sadd.s32 1, %s1309_s13  ;;  %p1045_p5 = scmp.ge.s32.totalorder %s1321_s16, 4 }
   0x6   : > { %s1523_s17 = smov (%p26_p0, %s25_s17), 0  ;;  %p50_p3 = por %p49_p2, %p48_p1 }
   0x7   : > { %s37_s18 = ssub.s32 %s1317_s15, %s1523_s17  ;;  %164 = sbr.rel (%p1045_p5) target bundleno = 20 (0x14), region = 20 }
   0x8   : > { %p39_p4 = scmp.eq.s32.totalorder %s37_s18, 0 }
   0xa   : > { %s1379_s20 = scalar_select %p39_p4, %s1309_s13, %s41_s19  }
   0xc   : > { %167 = sbr.rel (!%p50_p3) target bundleno = 20 (0x14), region = 24  ;;  %s169_s21 = sand.u32 (%p50_p3), 1, %s1309_s13  }
   0xd   : > { %s1132_s22 = sshll.u32 (%p50_p3), %s1317_s15, 4  ;;  %s1046_s23 = sshll.u32 (%p50_p3), %s169_s21, 6 }
   0xe   : > { %s177_s26 = scalar_lea.vmem (%p50_p3), %s1514_s0, %s1132_s22  ;;  %s171_s27 = scalar_lea.vmem (%p50_p3), [#allocation3], %s1046_s23 }
   0xf   : > { %v190_v0 = vld [vmem:[%s177_s26] sm:$0xff] (%p50_p3)  ;;  %v192_v1 = vld [vmem:[%s177_s26 + $0x8] sm:$0xff] (%p50_p3) }
  0x10   : > { %v194_v2 = vld [vmem:[%s177_s26 + $0x40] sm:$0xff] (%p50_p3)  ;;  %191 = vst [vmem:[%s171_s27] sm:$0xff] (%p50_p3), %v190_v0  ;;  %193 = vst [vmem:[%s171_s27 + $0x8] sm:$0xff] (%p50_p3), %v192_v1  ;;  %v196_v3 = vld [vmem:[%s177_s26 + $0x48] sm:$0xff] (%p50_p3) }
  0x11   : > { %195 = vst [vmem:[%s171_s27 + $0x10] sm:$0xff] %v194_v2  ;;  %v198_v4 = vld [vmem:[%s177_s26 + $0x80] sm:$0xff]  ;;  %v200_v5 = vld [vmem:[%s177_s26 + $0x88] sm:$0xff]  ;;  %197 = vst [vmem:[%s171_s27 + $0x18] sm:$0xff] %v196_v3 }
  0x12   : > { %199 = vst [vmem:[%s171_s27 + $0x20] sm:$0xff] %v198_v4  ;;  %201 = vst [vmem:[%s171_s27 + $0x28] sm:$0xff] %v200_v5  ;;  %v202_v6 = vld [vmem:[%s177_s26 + $0xc0] sm:$0xff]  ;;  %v204_v7 = vld [vmem:[%s177_s26 + $0xc8] sm:$0xff] }
  0x13   : > { %203 = vst [vmem:[%s171_s27 + $0x30] sm:$0xff] %v202_v6  ;;  %205 = vst [vmem:[%s171_s27 + $0x38] sm:$0xff] %v204_v7 }
  0x14 PF: > { %p1049_p6 = scmp.ge.s32.totalorder %s1321_s16, 1  ;;  %p225_p7 = scmp.lt.s32.totalorder %s1321_s16, 5 }
  0x16   : > { %p226_p8 = pnand %p1049_p6, %p225_p7 }
  0x17   : > { %s232_s28 = sand.u32 (!%p226_p8), 1, %s1305_s12   ;;  %s1051_s29 = sshll.u32 (!%p226_p8), %s1313_s14, 6 }
  0x18   : > { %229 = sbr.rel (%p226_p8) target bundleno = 331 (0x14b), region = 51  ;;  %s1050_s30 = sshll.u32 (!%p226_p8), %s232_s28, 6 }
  0x19   : > { %p278_p9 = scmp.lt.s32.totalorder (!%p226_p8), %s1051_s29, 255  ;;  %s1396_s8 = scalar_lea.vmem (!%p226_p8), [#allocation3], %s1050_s30 }
  0x1a   : > { %p1054_p10 = scmp.ne.s32.totalorder (!%p226_p8), %s1313_s14, 0 }
  0x1d   : > { %s1525_s29 = smov (!%p278_p9, %s1051_s29), 255  ;;  %308 = sbr.rel (%p1054_p10) target bundleno = 39 (0x27), region = 59 }
  0x1e   : > { %s1133_s4 = sshll.u32 %s1525_s29, 3 }
  0x1f   : > { %s1394_s7 = scalar_lea.vmem %s1515_s1, %s1133_s4 }
  0x22   : > { %v1323_v8 = vmov 0.0  }
  0x23   : > { %309 = vst [vmem:[#allocation2 + $0x30] sm:$0xff] %v1323_v8  ;;  %310 = vst [vmem:[#allocation2] sm:$0xff] %v1323_v8 }
  0x24   : > { %311 = vst [vmem:[#allocation2 + $0x18] sm:$0xff] %v1323_v8  ;;  %312 = vst [vmem:[#allocation2 + $0x10] sm:$0xff] %v1323_v8 }
  0x25   : > { %313 = vst [vmem:[#allocation2 + $0x8] sm:$0xff] %v1323_v8  ;;  %314 = vst [vmem:[#allocation2 + $0x20] sm:$0xff] %v1323_v8 }
  0x26   : > { %315 = vst [vmem:[#allocation2 + $0x28] sm:$0xff] %v1323_v8  ;;  %316 = vst [vmem:[#allocation2 + $0x38] sm:$0xff] %v1323_v8 }
  0x27 PF: > { %v1175_v9 = vld [vmem:[%s1394_s7 + $0x74] ss:$8 sps:$4 sm:$0xff]   ;;  %v1179_v11 = vld [vmem:[%s1394_s7 + $0x70] ss:$8 sps:$4 sm:$0xff]   ;;  %v1181_v13 = vld [vmem:[%s1394_s7 + $0x64] ss:$8 sps:$4 sm:$0xff]  }
  0x28   : > { %v1177_v10 = vld [vmem:[%s1394_s7 + $0x174] ss:$8 sps:$4 sm:$0xff]   ;;  %757 = vmatprep.subr.bf16.mxu0 %v1175_v9  ;;  %v1180_v12 = vld [vmem:[%s1394_s7 + $0x170] ss:$8 sps:$4 sm:$0xff]   ;;  %v1183_v14 = vld [vmem:[%s1394_s7 + $0x164] ss:$8 sps:$4 sm:$0xff]  }
  0x29   : > { %810 = vmatprep.subr.bf16.mxu1 %v1177_v10  ;;  %758 = vmatpush1.bf16.msra.mxu0 %v1179_v11  ;;  %v1185_v15 = vld [vmem:[%s1394_s7 + $0x60] ss:$8 sps:$4 sm:$0xff]   ;;  %v1187_v17 = vld [vmem:[%s1394_s7 + $0x54] ss:$8 sps:$4 sm:$0xff]   ;;  %v1191_v19 = vld [vmem:[%s1394_s7 + $0x50] ss:$8 sps:$4 sm:$0xff]  }
  0x2a   : > { %811 = vmatpush1.bf16.msra.mxu1 %v1180_v12  ;;  %759 = vmatprep.subr.bf16.mxu0 %v1181_v13  ;;  %v1186_v16 = vld [vmem:[%s1394_s7 + $0x160] ss:$8 sps:$4 sm:$0xff]   ;;  %v1189_v18 = vld [vmem:[%s1394_s7 + $0x154] ss:$8 sps:$4 sm:$0xff]   ;;  %v1192_v20 = vld [vmem:[%s1394_s7 + $0x150] ss:$8 sps:$4 sm:$0xff]  }
  0x2b   : > { %812 = vmatprep.subr.bf16.mxu1 %v1183_v14  ;;  %v1193_v21 = vld [vmem:[%s1394_s7 + $0x44] ss:$8 sps:$4 sm:$0xff]   ;;  %v1197_v23 = vld [vmem:[%s1394_s7 + $0x40] ss:$8 sps:$4 sm:$0xff]   ;;  %v1199_v25 = vld [vmem:[%s1394_s7 + $0x34] ss:$8 sps:$4 sm:$0xff]  }
  0x2c   : > { %v1195_v22 = vld [vmem:[%s1394_s7 + $0x144] ss:$8 sps:$4 sm:$0xff]   ;;  %v1198_v24 = vld [vmem:[%s1394_s7 + $0x140] ss:$8 sps:$4 sm:$0xff]   ;;  %v1201_v26 = vld [vmem:[%s1394_s7 + $0x134] ss:$8 sps:$4 sm:$0xff]  }
  0x2d   : > { %760 = vmatpush1.bf16.msra.mxu0 %v1185_v15  ;;  %v1203_v27 = vld [vmem:[%s1394_s7 + $0x30] ss:$8 sps:$4 sm:$0xff]   ;;  %v1205_v29 = vld [vmem:[%s1394_s7 + $0x24] ss:$8 sps:$4 sm:$0xff]   ;;  %v1209_v31 = vld [vmem:[%s1394_s7 + $0x20] ss:$8 sps:$4 sm:$0xff]  }
  0x2e   : > { %813 = vmatpush1.bf16.msra.mxu1 %v1186_v16  ;;  %761 = vmatprep.subr.bf16.mxu0 %v1187_v17  ;;  %v1204_v28 = vld [vmem:[%s1394_s7 + $0x130] ss:$8 sps:$4 sm:$0xff]   ;;  %v1207_v30 = vld [vmem:[%s1394_s7 + $0x124] ss:$8 sps:$4 sm:$0xff]   ;;  %v1210_v32 = vld [vmem:[%s1394_s7 + $0x120] ss:$8 sps:$4 sm:$0xff]  }
  0x2f   : > { %814 = vmatprep.subr.bf16.mxu1 %v1189_v18  ;;  %v1211_v33 = vld [vmem:[%s1394_s7 + $0x14] ss:$8 sps:$4 sm:$0xff]   ;;  %v1215_v35 = vld [vmem:[%s1394_s7 + $0x10] ss:$8 sps:$4 sm:$0xff]   ;;  %v1217_v37 = vld [vmem:[%s1394_s7 + $0x4] ss:$8 sps:$4 sm:$0xff]  }
  0x30   : > { %v1213_v34 = vld [vmem:[%s1394_s7 + $0x114] ss:$8 sps:$4 sm:$0xff]   ;;  %v1216_v36 = vld [vmem:[%s1394_s7 + $0x110] ss:$8 sps:$4 sm:$0xff]   ;;  %v1219_v38 = vld [vmem:[%s1394_s7 + $0x104] ss:$8 sps:$4 sm:$0xff]  }
  0x31   : > { %762 = vmatpush1.bf16.msra.mxu0 %v1191_v19  ;;  %v1221_v39 = vld [vmem:[%s1394_s7] ss:$8 sps:$4 sm:$0xff]   ;;  %v1223_v41 = vld [vmem:[%s1394_s7 + $0xf4] ss:$8 sps:$4 sm:$0xff]   ;;  %v1227_v43 = vld [vmem:[%s1394_s7 + $0xf0] ss:$8 sps:$4 sm:$0xff]  }
  0x32   : > { %815 = vmatpush1.bf16.msra.mxu1 %v1192_v20  ;;  %763 = vmatprep.subr.bf16.mxu0 %v1193_v21  ;;  %v1222_v40 = vld [vmem:[%s1394_s7 + $0x100] ss:$8 sps:$4 sm:$0xff]   ;;  %v1225_v42 = vld [vmem:[%s1394_s7 + $0x1f4] ss:$8 sps:$4 sm:$0xff]   ;;  %v1228_v44 = vld [vmem:[%s1394_s7 + $0x1f0] ss:$8 sps:$4 sm:$0xff]  }
  0x33   : > { %816 = vmatprep.subr.bf16.mxu1 %v1195_v22  ;;  %v1229_v45 = vld [vmem:[%s1394_s7 + $0xe4] ss:$8 sps:$4 sm:$0xff]   ;;  %v1233_v47 = vld [vmem:[%s1394_s7 + $0xe0] ss:$8 sps:$4 sm:$0xff]   ;;  %v1235_v49 = vld [vmem:[%s1394_s7 + $0xd4] ss:$8 sps:$4 sm:$0xff]  }
  0x34   : > { %v1231_v46 = vld [vmem:[%s1394_s7 + $0x1e4] ss:$8 sps:$4 sm:$0xff]   ;;  %v1234_v48 = vld [vmem:[%s1394_s7 + $0x1e0] ss:$8 sps:$4 sm:$0xff]   ;;  %v1237_v50 = vld [vmem:[%s1394_s7 + $0x1d4] ss:$8 sps:$4 sm:$0xff]  }
  0x35   : > { %764 = vmatpush1.bf16.msra.mxu0 %v1197_v23  ;;  %v1239_v51 = vld [vmem:[%s1394_s7 + $0xd0] ss:$8 sps:$4 sm:$0xff]   ;;  %v1241_v53 = vld [vmem:[%s1394_s7 + $0xc4] ss:$8 sps:$4 sm:$0xff]   ;;  %v1245_v55 = vld [vmem:[%s1394_s7 + $0xc0] ss:$8 sps:$4 sm:$0xff]  }
  0x36   : > { %817 = vmatpush1.bf16.msra.mxu1 %v1198_v24  ;;  %765 = vmatprep.subr.bf16.mxu0 %v1199_v25  ;;  %v1240_v52 = vld [vmem:[%s1394_s7 + $0x1d0] ss:$8 sps:$4 sm:$0xff]   ;;  %v1243_v54 = vld [vmem:[%s1394_s7 + $0x1c4] ss:$8 sps:$4 sm:$0xff]   ;;  %v1246_v56 = vld [vmem:[%s1394_s7 + $0x1c0] ss:$8 sps:$4 sm:$0xff]  }
  0x37   : > { %818 = vmatprep.subr.bf16.mxu1 %v1201_v26  ;;  %v1247_v57 = vld [vmem:[%s1394_s7 + $0xb4] ss:$8 sps:$4 sm:$0xff]   ;;  %v1251_v61 = vld [vmem:[%s1394_s7 + $0xb0] ss:$8 sps:$4 sm:$0xff]   ;;  %v1253_v63 = vld [vmem:[%s1394_s7 + $0xa4] ss:$8 sps:$4 sm:$0xff]  }
  0x38   : > { %v1273_v58 = vld [vmem:[%s1396_s8 + $0x4] ss:$16 sps:$4 sm:$0xff]   ;;  %v1276_v60 = vld [vmem:[%s1396_s8 + $0xc] ss:$16 sps:$4 sm:$0xff]   ;;  %v1252_v62 = vld [vmem:[%s1394_s7 + $0x1b0] ss:$8 sps:$4 sm:$0xff]  }
  0x39   : > { %766 = vmatpush1.bf16.msra.mxu0 %v1203_v27  ;;  %v1249_v59 = vld [vmem:[%s1394_s7 + $0x1b4] ss:$8 sps:$4 sm:$0xff]   ;;  %789 = vmatprep.mubr.bf16.mxu0 %v1273_v58  ;;  %v1255_v0 = vld [vmem:[%s1394_s7 + $0x1a4] ss:$8 sps:$4 sm:$0xff]   ;;  %v1257_v1 = vld [vmem:[%s1394_s7 + $0xa0] ss:$8 sps:$4 sm:$0xff]  }
  0x3a   : > { %819 = vmatpush1.bf16.msra.mxu1 %v1204_v28  ;;  %767 = vmatprep.subr.bf16.mxu0 %v1205_v29  ;;  %v1258_v2 = vld [vmem:[%s1394_s7 + $0x1a0] ss:$8 sps:$4 sm:$0xff]   ;;  %v1259_v3 = vld [vmem:[%s1394_s7 + $0x94] ss:$8 sps:$4 sm:$0xff]   ;;  %v1263_v5 = vld [vmem:[%s1394_s7 + $0x90] ss:$8 sps:$4 sm:$0xff]  }
  0x3b   : > { %820 = vmatprep.subr.bf16.mxu1 %v1207_v30  ;;  %842 = vmatprep.mubr.bf16.mxu1 %v1276_v60  ;;  %v1261_v4 = vld [vmem:[%s1394_s7 + $0x194] ss:$8 sps:$4 sm:$0xff]   ;;  %v1264_v6 = vld [vmem:[%s1394_s7 + $0x190] ss:$8 sps:$4 sm:$0xff]   ;;  %v1265_v7 = vld [vmem:[%s1394_s7 + $0x84] ss:$8 sps:$4 sm:$0xff]  }
  0x3c   : > { %v1267_v8 = vld [vmem:[%s1394_s7 + $0x184] ss:$8 sps:$4 sm:$0xff]   ;;  %v1269_v9 = vld [vmem:[%s1394_s7 + $0x80] ss:$8 sps:$4 sm:$0xff]   ;;  %v317_v18 = vld [vmem:[#allocation2 + $0x30] sm:$0xff]  ;;  %p1127_p11 = scmp.ne.s32.totalorder %s1313_s14, 3 }
  0x3d   : > { %768 = vmatpush1.bf16.msra.mxu0 %v1209_v31  ;;  %v1270_v10 = vld [vmem:[%s1394_s7 + $0x180] ss:$8 sps:$4 sm:$0xff]   ;;  %v1277_v13 = vld [vmem:[%s1396_s8 + $0x24] ss:$16 sps:$4 sm:$0xff]   ;;  %v1279_v14 = vld [vmem:[%s1396_s8 + $0x2c] ss:$16 sps:$4 sm:$0xff]  }
  0x3e   : > { %821 = vmatpush1.bf16.msra.mxu1 %v1210_v32  ;;  %769 = vmatprep.subr.bf16.mxu0 %v1211_v33  ;;  %v1271_v11 = vld [vmem:[%s1396_s8] ss:$16 sps:$4 sm:$0xff]   ;;  %v1274_v12 = vld [vmem:[%s1396_s8 + $0x8] ss:$16 sps:$4 sm:$0xff]  }
  0x3f   : > { %822 = vmatprep.subr.bf16.mxu1 %v1213_v34  ;;  %v1281_v15 = vld [vmem:[%s1396_s8 + $0x20] ss:$16 sps:$4 sm:$0xff]   ;;  %v1282_v16 = vld [vmem:[%s1396_s8 + $0x28] ss:$16 sps:$4 sm:$0xff]  }
  0x40   : > { %v318_v22 = vld [vmem:[#allocation2] sm:$0xff]  ;;  %v319_v27 = vld [vmem:[#allocation2 + $0x18] sm:$0xff]  ;;  %v320_v32 = vld [vmem:[#allocation2 + $0x10] sm:$0xff] }
  0x41   : > { %770 = vmatpush1.bf16.msra.mxu0 %v1215_v35 }
  0x42   : > { %823 = vmatpush1.bf16.msra.mxu1 %v1216_v36  ;;  %771 = vmatprep.subr.bf16.mxu0 %v1217_v37  ;;  %v321_v37 = vld [vmem:[#allocation2 + $0x8] sm:$0xff] }
  0x43   : > { %824 = vmatprep.subr.bf16.mxu1 %v1219_v38 }
  0x45   : > { %772 = vmatpush1.bf16.msra.mxu0 %v1221_v39 }
  0x46   : > { %825 = vmatpush1.bf16.msra.mxu1 %v1222_v40  ;;  %773 = vmatprep.subr.bf16.mxu0 %v1223_v41 }
  0x47   : > { %826 = vmatprep.subr.bf16.mxu1 %v1225_v42  ;;  %v322_v42 = vld [vmem:[#allocation2 + $0x20] sm:$0xff] }
  0x49   : > { %774 = vmatpush2.bf16.msra.mxu0 %v1227_v43 }
  0x4a   : > { %827 = vmatpush2.bf16.msra.mxu1 %v1228_v44  ;;  %775 = vmatprep.subr.bf16.mxu0 %v1229_v45 }
  0x4b   : > { %828 = vmatprep.subr.bf16.mxu1 %v1231_v46 }
  0x4d   : > { %776 = vmatpush2.bf16.msra.mxu0 %v1233_v47  ;;  %v323_v47 = vld [vmem:[#allocation2 + $0x28] sm:$0xff] }
  0x4e   : > { %829 = vmatpush2.bf16.msra.mxu1 %v1234_v48  ;;  %777 = vmatprep.subr.bf16.mxu0 %v1235_v49 }
  0x4f   : > { %830 = vmatprep.subr.bf16.mxu1 %v1237_v50 }
  0x51   : > { %778 = vmatpush2.bf16.msra.mxu0 %v1239_v51 }
  0x52   : > { %831 = vmatpush2.bf16.msra.mxu1 %v1240_v52  ;;  %779 = vmatprep.subr.bf16.mxu0 %v1241_v53  ;;  %v324_v52 = vld [vmem:[#allocation2 + $0x38] sm:$0xff] }
  0x53   : > { %832 = vmatprep.subr.bf16.mxu1 %v1243_v54 }
  0x55   : > { %780 = vmatpush2.bf16.msra.mxu0 %v1245_v55 }
  0x56   : > { %833 = vmatpush2.bf16.msra.mxu1 %v1246_v56  ;;  %781 = vmatprep.subr.bf16.mxu0 %v1247_v57 }
  0x57   : > { %834 = vmatprep.subr.bf16.mxu1 %v1249_v59 }
  0x59   : > { %782 = vmatpush2.bf16.msra.mxu0 %v1251_v61 }
  0x5a   : > { %835 = vmatpush2.bf16.msra.mxu1 %v1252_v62  ;;  %783 = vmatprep.subr.bf16.mxu0 %v1253_v63 }
  0x5b   : > { %836 = vmatprep.subr.bf16.mxu1 %v1255_v0 }
  0x5d   : > { %784 = vmatpush2.bf16.msra.mxu0 %v1257_v1 }
  0x5e   : > { %837 = vmatpush2.bf16.msra.mxu1 %v1258_v2  ;;  %785 = vmatprep.subr.bf16.mxu0 %v1259_v3 }
  0x5f   : > { %838 = vmatprep.subr.bf16.mxu1 %v1261_v4 }
  0x61   : > { %786 = vmatpush2.bf16.msra.mxu0 %v1263_v5 }
  0x62   : > { %839 = vmatpush2.bf16.msra.mxu1 %v1264_v6  ;;  %787 = vmatprep.subr.bf16.mxu0 %v1265_v7 }
  0x63   : > { %840 = vmatprep.subr.bf16.mxu1 %v1267_v8 }
  0x65   : > { %788 = vmatpush2.bf16.msra.mxu0 %v1269_v9 }
  0x66   : > { %841 = vmatpush2.bf16.msra.mxu1 %v1270_v10 }
  0x68   : > { %790 = vmatmul.mubr.bf16.vlgmr.msra.gmra.mxu0 %v1271_v11 }
  0x69   : > { %843 = vmatmul.mubr.bf16.vlgmr.msra.gmra.mxu1 %v1274_v12  ;;  %799 = vmatprep.mubr.bf16.mxu0 %v1277_v13 }
  0x6a   : > { %852 = vmatprep.mubr.bf16.mxu1 %v1279_v14 }
  0x70   : > { %800 = vmatmul.mubr.bf16.gmra.mxu0 %v1281_v15 }
  0x71   : > { %853 = vmatmul.mubr.bf16.gmra.mxu1 %v1282_v16 }
 0x128   : > { %v791_v17 = vpop.f32.mrf.mxu0 }
 0x129   : > { %v844_v19 = vpop.f32.mrf.mxu1 }
 0x12a   : > { %v845_v20 = vadd.f32 %v844_v19, %v791_v17  ;;  %v793_v21 = vpop.f32.mrf.mxu0 }
 0x12b   : > { %v846_v23 = vpop.f32.mrf.mxu1 }
 0x12c   : > { %v863_v24 = vadd.f32 %v845_v20, %v317_v18  ;;  %v847_v25 = vadd.f32 %v846_v23, %v793_v21  ;;  %v795_v26 = vpop.f32.mrf.mxu0 }
 0x12d   : > { %v848_v28 = vpop.f32.mrf.mxu1 }
 0x12e   : > { %871 = vst [vmem:[#allocation2 + $0x30] sm:$0xff] %v863_v24  ;;  %v864_v29 = vadd.f32 %v847_v25, %v318_v22  ;;  %v849_v30 = vadd.f32 %v848_v28, %v795_v26  ;;  %v797_v31 = vpop.f32.mrf.mxu0 }
 0x12f   : > { %v850_v33 = vpop.f32.mrf.mxu1 }
 0x130   : > { %872 = vst [vmem:[#allocation2] sm:$0xff] %v864_v29  ;;  %v865_v34 = vadd.f32 %v849_v30, %v319_v27  ;;  %v851_v35 = vadd.f32 %v850_v33, %v797_v31  ;;  %v801_v36 = vpop.f32.mrf.mxu0 }
 0x131   : > { %v854_v38 = vpop.f32.mrf.mxu1 }
 0x132   : > { %873 = vst [vmem:[#allocation2 + $0x18] sm:$0xff] %v865_v34  ;;  %v866_v39 = vadd.f32 %v851_v35, %v320_v32  ;;  %v855_v40 = vadd.f32 %v854_v38, %v801_v36  ;;  %v803_v41 = vpop.f32.mrf.mxu0 }
 0x133   : > { %v856_v43 = vpop.f32.mrf.mxu1 }
 0x134   : > { %874 = vst [vmem:[#allocation2 + $0x10] sm:$0xff] %v866_v39  ;;  %v867_v44 = vadd.f32 %v855_v40, %v321_v37  ;;  %v857_v45 = vadd.f32 %v856_v43, %v803_v41  ;;  %v805_v46 = vpop.f32.mrf.mxu0 }
 0x135   : > { %v858_v48 = vpop.f32.mrf.mxu1 }
 0x136   : > { %875 = vst [vmem:[#allocation2 + $0x8] sm:$0xff] %v867_v44  ;;  %v868_v49 = vadd.f32 %v857_v45, %v322_v42  ;;  %v859_v50 = vadd.f32 %v858_v48, %v805_v46  ;;  %v807_v51 = vpop.f32.mrf.mxu0 }
 0x137   : > { %v860_v53 = vpop.f32.mrf.mxu1 }
 0x138   : > { %876 = vst [vmem:[#allocation2 + $0x20] sm:$0xff] %v868_v49  ;;  %v869_v54 = vadd.f32 %v859_v50, %v323_v47  ;;  %v861_v55 = vadd.f32 %v860_v53, %v807_v51  ;;  %882 = sbr.rel (%p1127_p11) target bundleno = 331 (0x14b), region = 63 }
 0x13a   : > { %877 = vst [vmem:[#allocation2 + $0x28] sm:$0xff] %v869_v54  ;;  %v870_v56 = vadd.f32 %v861_v55, %v324_v52 }
 0x13c   : > { %878 = vst [vmem:[#allocation2 + $0x38] sm:$0xff] %v870_v56 }
 0x13d   : > { %v893_v57 = vlaneseq  ;;  %v891_v59 = vld [vmem:[%s1516_s2] sm:$0x3]  ;;  %v883_v60 = vld [vmem:[#allocation2 + $0x30] sm:$0xff]  ;;  %v885_v0 = vld [vmem:[#allocation2 + $0x18] sm:$0xff] }
 0x13e   : > { %v884_v62 = vld [vmem:[#allocation2] sm:$0xff]  ;;  %v886_v1 = vld [vmem:[#allocation2 + $0x10] sm:$0xff]  ;;  %v887_v2 = vld [vmem:[#allocation2 + $0x8] sm:$0xff] }
 0x13f   : > { %v894_v58 = vshrl.u32 %v893_v57, 7  ;;  %v888_v5 = vld [vmem:[#allocation2 + $0x20] sm:$0xff] }
 0x141   : > { %v895_v61 = vsub.s32 0, %v894_v58  ;;  %v899_v63 = vsub.s32 1, %v894_v58  ;;  %v889_v6 = vld [vmem:[#allocation2 + $0x28] sm:$0xff] }
 0x143   : > { %v896_v3 = vrot.slane %v891_v59, %v895_v61  ;;  %v900_v4 = vrot.slane %v891_v59, %v899_v63  ;;  %v890_v7 = vld [vmem:[#allocation2 + $0x38] sm:$0xff] }
 0x145   : > { %v903_v8 = vadd.f32 %v896_v3, %v883_v60  ;;  %v904_v9 = vadd.f32 %v900_v4, %v884_v62  ;;  %v905_v10 = vadd.f32 %v896_v3, %v885_v0  ;;  %v906_v11 = vadd.f32 %v900_v4, %v886_v1 }
 0x146   : > { %v907_v12 = vadd.f32 %v896_v3, %v887_v2  ;;  %v908_v13 = vadd.f32 %v900_v4, %v888_v5  ;;  %v909_v14 = vadd.f32 %v896_v3, %v889_v6  ;;  %v910_v15 = vadd.f32 %v900_v4, %v890_v7 }
 0x147   : > { %911 = vst [vmem:[%s1517_s3] sm:$0xff] %v903_v8  ;;  %912 = vst [vmem:[%s1517_s3 + $0x8] sm:$0xff] %v904_v9 }
 0x148   : > { %913 = vst [vmem:[%s1517_s3 + $0x10] sm:$0xff] %v905_v10  ;;  %914 = vst [vmem:[%s1517_s3 + $0x18] sm:$0xff] %v906_v11 }
 0x149   : > { %915 = vst [vmem:[%s1517_s3 + $0x20] sm:$0xff] %v907_v12  ;;  %916 = vst [vmem:[%s1517_s3 + $0x28] sm:$0xff] %v908_v13 }
 0x14a   : > { %917 = vst [vmem:[%s1517_s3 + $0x30] sm:$0xff] %v909_v14  ;;  %918 = vst [vmem:[%s1517_s3 + $0x38] sm:$0xff] %v910_v15 }
 0x14b PF: > { %s13_s16 = sadd.s32 1, %s1321_s16   ;;  %s1518_s12 = smov %s1309_s13 }
 0x14c   : > { %p10_p12 = scmp.ge.s32.totalorder %s13_s16, 6   ;;  %s1519_s13 = smov %s1379_s20 }
 0x14d   : > { %s1520_s14 = smov %s1317_s15  ;;  %s1521_s15 = smov %s1523_s17 }
 0x14e   :  { %12 = sbr.rel (!%p10_p12) target bundleno = 3 (0x3), region = 104 }

// kernel: encoder_mg_forward.17
= control target key start
LH: loop header
LB: loop body
LE: loop exit
PB: predicated region body
PF: predicated region fallthrough
CT: control target
= control target key end

     0   :  { %s977_s18 = smov 0   ;;  %s1147_s0 = inlined_call_operand.vmem [shape: f32[2,16,256], index: 0, kind: input, shape index: {}]   ;;  %s1148_s1 = inlined_call_operand.vmem [shape: f32[256,16], index: 1, kind: input, shape index: {}]   ;;  %s1149_s2 = inlined_call_operand.vmem [shape: f32[16,256], index: 2, kind: input, shape index: {}]   ;;  %s1150_s3 = inlined_call_operand.vmem [shape: f32[1,256], index: 3, kind: input, shape index: {}]   ;;  %s1151_s4 = inlined_call_operand.vmem [shape: f32[1,256], index: 4, kind: input, shape index: {}]   ;;  %s1152_s5 = inlined_call_operand.vmem [shape: f32[2,16,256], index: 5, kind: output, shape index: {}]  }
   0x1 LB: > { %s834_s19 = sadd.s32 4294967295, %s942_s18   ;;  %p838_p0 = scmp.ge.s32.totalorder %s942_s18, 1  ;;  %s942_s18 = sphi %s977_s18, %s15_s18  }
   0x2   : > { %p187_p1 = scmp.lt.s32.totalorder %s942_s18, 3 }
   0x4   : > { %p188_p2 = pnand %p838_p0, %p187_p1 }
   0x5   : > { %p215_p3 = scmp.lt.s32.totalorder (!%p188_p2), %s834_s19, 1 }
   0x6   : > { %191 = sbr.rel (%p188_p2) target bundleno = 649 (0x289), region = 40 }
   0xb   : > { %v944_v0 = vmov 0.0   ;;  %s1154_s19 = smov (!%p215_p3, %s834_s19), 1  ;;  %vm229_vm0 = vcmask 130048   ;;  %v410_v9 = vld [vmem:[%s1148_s1 + $0xf8] sm:$0xff]  ;;  %v945_v11 = vmov 1.0   ;;  %v409_v12 = vld [vmem:[%s1148_s1 + $0xf0] sm:$0xff]  ;;  %v710_v61 = vlaneseq }
   0xc   : > { %297 = vmatprep.mubr.f32.mxu0 %v944_v0  ;;  %372 = vmatprep.mubr.f32.mxu1 %v944_v0  ;;  %s849_s20 = sshll.u32 %s1154_s19, 5  ;;  %v394_v10 = vld [vmem:[%s1148_s1 + $0x78] sm:$0xff]  ;;  %v393_v13 = vld [vmem:[%s1148_s1 + $0x70] sm:$0xff]  ;;  %v408_v14 = vld [vmem:[%s1148_s1 + $0xe8] sm:$0xff] }
   0xd   : > { %s219_s23 = scalar_lea.vmem %s1147_s0, %s849_s20  ;;  %v392_v15 = vld [vmem:[%s1148_s1 + $0x68] sm:$0xff]  ;;  %v407_v16 = vld [vmem:[%s1148_s1 + $0xe0] sm:$0xff]  ;;  %v406_v18 = vld [vmem:[%s1148_s1 + $0xd8] sm:$0xff]  ;;  %s224_s11 = scalar_lea.vmem %s1152_s5, %s849_s20 }
   0xe   : > { %v995_v1 = vld [vmem:[%s219_s23 + $0x18] sm:$0xff]  ;;  %v997_v2 = vld [vmem:[%s219_s23 + $0x10] sm:$0xff]  ;;  %v999_v3 = vld [vmem:[%s219_s23 + $0x8] sm:$0xff] }
   0xf   : > { %261 = vmatprep.subr.mxu0 %v995_v1  ;;  %v307_v4 = vmul.f32 %v995_v1, %v995_v1  ;;  %v1004_v5 = vld [vmem:[%s219_s23] sm:$0xff]  ;;  %v306_v6 = vmul.f32 %v997_v2, %v997_v2  ;;  %v305_v7 = vmul.f32 %v999_v3, %v999_v3  ;;  %v390_v19 = vld [vmem:[%s1148_s1 + $0x58] sm:$0xff]  ;;  %v405_v20 = vld [vmem:[%s1148_s1 + $0xd0] sm:$0xff] }
  0x10   : > { %262 = vmatpush1.msra.mxu0 %v997_v2  ;;  %v304_v8 = vmul.f32 %v1004_v5, %v1004_v5  ;;  %v391_v17 = vld [vmem:[%s1148_s1 + $0x60] sm:$0xff]  ;;  %v389_v21 = vld [vmem:[%s1148_s1 + $0x50] sm:$0xff]  ;;  %v404_v22 = vld [vmem:[%s1148_s1 + $0xc8] sm:$0xff] }
  0x11   : > { %263 = vmatprep.subr.mxu0 %v999_v3  ;;  %336 = vmatprep.subr.mxu1 %v307_v4  ;;  %v388_v23 = vld [vmem:[%s1148_s1 + $0x48] sm:$0xff]  ;;  %v403_v24 = vld [vmem:[%s1148_s1 + $0xc0] sm:$0xff]  ;;  %v402_v26 = vld [vmem:[%s1148_s1 + $0xb8] sm:$0xff] }
  0x12   : > { %264 = vmatpush1.msra.mxu0 %v1004_v5  ;;  %337 = vmatpush1.msra.mxu1 %v306_v6  ;;  %v387_v25 = vld [vmem:[%s1148_s1 + $0x40] sm:$0xff]  ;;  %v386_v27 = vld [vmem:[%s1148_s1 + $0x38] sm:$0xff]  ;;  %v401_v28 = vld [vmem:[%s1148_s1 + $0xb0] sm:$0xff] }
  0x13   : > { %843 = vmatmul.mubr.msk.f32.vlgmr.msra.gmra.mxu0 %vm229_vm0, %v945_v11  ;;  %338 = vmatprep.subr.mxu1 %v305_v7  ;;  %v385_v29 = vld [vmem:[%s1148_s1 + $0x30] sm:$0xff]  ;;  %v400_v30 = vld [vmem:[%s1148_s1 + $0xa8] sm:$0xff]  ;;  %v399_v32 = vld [vmem:[%s1148_s1 + $0xa0] sm:$0xff] }
  0x14   : > { %339 = vmatpush1.msra.mxu1 %v304_v8  ;;  %851 = vmatprep.subr.mxu0 %v410_v9  ;;  %v384_v31 = vld [vmem:[%s1148_s1 + $0x28] sm:$0xff]  ;;  %v383_v33 = vld [vmem:[%s1148_s1 + $0x20] sm:$0xff]  ;;  %v398_v34 = vld [vmem:[%s1148_s1 + $0x98] sm:$0xff] }
  0x15   : > { %844 = vmatmul.mubr.msk.f32.vlgmr.msra.gmra.mxu1 %vm229_vm0, %v945_v11  ;;  %852 = vmatpush3.msra.mxu0 %v394_v10  ;;  %v382_v35 = vld [vmem:[%s1148_s1 + $0x18] sm:$0xff]  ;;  %v397_v36 = vld [vmem:[%s1148_s1 + $0x90] sm:$0xff]  ;;  %v396_v38 = vld [vmem:[%s1148_s1 + $0x88] sm:$0xff] }
  0x16   : > { %853 = vmatprep.subr.mxu0 %v409_v12  ;;  %886 = vmatprep.subr.mxu1 %v410_v9  ;;  %v381_v37 = vld [vmem:[%s1148_s1 + $0x10] sm:$0xff]  ;;  %v380_v39 = vld [vmem:[%s1148_s1 + $0x8] sm:$0xff]  ;;  %v395_v40 = vld [vmem:[%s1148_s1 + $0x80] sm:$0xff]  ;;  %v946_v9 = vmov 1966171168  }
  0x17   : > { %854 = vmatpush3.msra.mxu0 %v393_v13  ;;  %887 = vmatpush3.msra.mxu1 %v394_v10  ;;  %v379_v41 = vld [vmem:[%s1148_s1] sm:$0xff]  ;;  %v557_v46 = vld [vmem:[%s1149_s2 + $0x18] sm:$0xff]  ;;  %v556_v47 = vld [vmem:[%s1149_s2 + $0x10] sm:$0xff]  ;;  %v729_v10 = vunpack.c.l.s4 %v946_v9 }
  0x18   : > { %855 = vmatprep.subr.mxu0 %v408_v14  ;;  %888 = vmatprep.subr.mxu1 %v409_v12  ;;  %v555_v48 = vld [vmem:[%s1149_s2 + $0x8] sm:$0xff]  ;;  %v554_v49 = vld [vmem:[%s1149_s2] sm:$0xff] }
  0x19   : > { %856 = vmatpush3.msra.mxu0 %v392_v15  ;;  %889 = vmatpush3.msra.mxu1 %v393_v13  ;;  %v708_v6 = vld [vmem:[%s1150_s3] sm:$0x3] }
  0x1a   : > { %857 = vmatprep.subr.mxu0 %v407_v16  ;;  %890 = vmatprep.subr.mxu1 %v408_v14 }
  0x1b   : > { %858 = vmatpush3.msra.mxu0 %v391_v17  ;;  %891 = vmatpush3.msra.mxu1 %v392_v15  ;;  %v730_v15 = vunpack.c.0.s8 %v729_v10 }
  0x1c   : > { %859 = vmatprep.subr.mxu0 %v406_v18  ;;  %892 = vmatprep.subr.mxu1 %v407_v16 }
  0x1d   : > { %860 = vmatpush3.msra.mxu0 %v390_v19  ;;  %893 = vmatpush3.msra.mxu1 %v391_v17 }
  0x1e   : > { %861 = vmatprep.subr.mxu0 %v405_v20  ;;  %894 = vmatprep.subr.mxu1 %v406_v18 }
  0x1f   : > { %862 = vmatpush3.msra.mxu0 %v389_v21  ;;  %895 = vmatpush3.msra.mxu1 %v390_v19 }
  0x20   : > { %863 = vmatprep.subr.mxu0 %v404_v22  ;;  %896 = vmatprep.subr.mxu1 %v405_v20 }
  0x21   : > { %864 = vmatpush3.msra.mxu0 %v388_v23  ;;  %897 = vmatpush3.msra.mxu1 %v389_v21 }
  0x22   : > { %865 = vmatprep.subr.mxu0 %v403_v24  ;;  %898 = vmatprep.subr.mxu1 %v404_v22 }
  0x23   : > { %866 = vmatpush3.msra.mxu0 %v387_v25  ;;  %899 = vmatpush3.msra.mxu1 %v388_v23 }
  0x24   : > { %867 = vmatprep.subr.mxu0 %v402_v26  ;;  %900 = vmatprep.subr.mxu1 %v403_v24 }
  0x25   : > { %868 = vmatpush3.msra.mxu0 %v386_v27  ;;  %901 = vmatpush3.msra.mxu1 %v387_v25  ;;  %v722_v25 = vld [vmem:[%s1151_s4] sm:$0x3] }
  0x26   : > { %869 = vmatprep.subr.mxu0 %v401_v28  ;;  %902 = vmatprep.subr.mxu1 %v402_v26 }
  0x27   : > { %870 = vmatpush3.msra.mxu0 %v385_v29  ;;  %903 = vmatpush3.msra.mxu1 %v386_v27 }
  0x28   : > { %871 = vmatprep.subr.mxu0 %v400_v30  ;;  %904 = vmatprep.subr.mxu1 %v401_v28 }
  0x29   : > { %872 = vmatpush3.msra.mxu0 %v384_v31  ;;  %905 = vmatpush3.msra.mxu1 %v385_v29 }
  0x2a   : > { %873 = vmatprep.subr.mxu0 %v399_v32  ;;  %906 = vmatprep.subr.mxu1 %v400_v30 }
  0x2b   : > { %874 = vmatpush3.msra.mxu0 %v383_v33  ;;  %907 = vmatpush3.msra.mxu1 %v384_v31 }
  0x2c   : > { %875 = vmatprep.subr.mxu0 %v398_v34  ;;  %908 = vmatprep.subr.mxu1 %v399_v32 }
  0x2d   : > { %876 = vmatpush3.msra.mxu0 %v382_v35  ;;  %909 = vmatpush3.msra.mxu1 %v383_v33 }
  0x2e   : > { %877 = vmatprep.subr.mxu0 %v397_v36  ;;  %910 = vmatprep.subr.mxu1 %v398_v34 }
  0x2f   : > { %878 = vmatpush3.msra.mxu0 %v381_v37  ;;  %911 = vmatpush3.msra.mxu1 %v382_v35 }
  0x30   : > { %912 = vmatprep.subr.mxu1 %v397_v36  ;;  %879 = vmatprep.subr.mxu0 %v396_v38 }
  0x31   : > { %913 = vmatpush3.msra.mxu1 %v381_v37  ;;  %880 = vmatpush3.msra.mxu0 %v380_v39 }
  0x32   : > { %914 = vmatprep.subr.mxu1 %v396_v38  ;;  %881 = vmatprep.subr.mxu0 %v395_v40 }
  0x33   : > { %915 = vmatpush3.msra.mxu1 %v380_v39  ;;  %882 = vmatpush3.msra.mxu0 %v379_v41 }
  0x34   : > { %916 = vmatprep.subr.mxu1 %v395_v40  ;;  %589 = vmatprep.subr.mxu0 %v557_v46 }
  0x35   : > { %917 = vmatpush3.msra.mxu1 %v379_v41 }
  0x36   : > { %663 = vmatprep.subr.mxu1 %v557_v46 }
  0xd3   : > { %v299_v42 = vpop.f32.mrf.mxu0 }
  0xd5   : > { %v301_v43 = vpop.f32.mrf.mxu0  ;;  %v374_v44 = vpop.f32.mrf.mxu1 }
  0xd6   : > { %475 = vmatprep.mubr.f32.mxu0 %v301_v43 }
  0xd7   : > { %v376_v45 = vpop.f32.mrf.mxu1  ;;  %476 = vmatmul.mubr.f32.vlgmr.msra.gmra.mxu0 %v299_v42 }
  0xd8   : > { %545 = vmatprep.mubr.f32.mxu1 %v376_v45  ;;  %625 = vmatprep.mubr.f32.mxu0 %v944_v0 }
  0xd9   : > { %546 = vmatmul.mubr.f32.vlgmr.msra.gmra.mxu1 %v374_v44  ;;  %590 = vmatpush1.msra.mxu0 %v556_v47 }
  0xda   : > { %699 = vmatprep.mubr.f32.mxu1 %v944_v0  ;;  %664 = vmatpush1.msra.mxu1 %v556_v47  ;;  %v711_v0 = vshrl.u32 %v710_v61, 7 }
  0xdb   : > { %591 = vmatprep.subr.mxu0 %v555_v48  ;;  %665 = vmatprep.subr.mxu1 %v555_v48 }
  0xdc   : > { %592 = vmatpush1.msra.mxu0 %v554_v49  ;;  %666 = vmatpush1.msra.mxu1 %v554_v49  ;;  %v712_v4 = vsub.s32 0, %v711_v0  ;;  %v716_v7 = vsub.s32 1, %v711_v0  ;;  %v733_v21 = vsub.s32 %v730_v15, %v711_v0 }
  0xde   : > { %v713_v8 = vrot.slane %v708_v6, %v712_v4  ;;  %v717_v11 = vrot.slane %v708_v6, %v716_v7 }
 0x197   : > { %v883_v50 = vpop.f32.mrf.mxu0 }
 0x199   : > { %v884_v51 = vpop.f32.mrf.mxu0  ;;  %v918_v52 = vpop.f32.mrf.mxu1 }
 0x19a   : > { %v885_v53 = vadd.f32 %v884_v51, %v883_v50 }
 0x19b   : > { %v919_v54 = vpop.f32.mrf.mxu1 }
 0x19c   : > { %v551_v55 = vmul.f32 %v885_v53, %v885_v53  ;;  %v920_v56 = vadd.f32 %v919_v54, %v918_v52  ;;  %845 = vmatmul.mubr.msk.f32.vlgmr.msra.gmra.mxu0 %vm229_vm0, %v885_v53 }
 0x19e   : > { %v552_v57 = vsub.f32 %v920_v56, %v551_v55 }
 0x1a0   : > { %v553_v58 = vmax.f32 %v552_v57, 0.0 }
 0x1a2   : > { %846 = vmatmul.mubr.msk.f32.vlgmr.msra.gmra.mxu1 %vm229_vm0, %v553_v58 }
 0x25c   : > { %v627_v13 = vpop.f32.mrf.mxu0 }
 0x25e   : > { %v629_v18 = vpop.f32.mrf.mxu0 }
 0x262   : > { %v701_v59 = vpop.f32.mrf.mxu1 }
 0x263   : > { %v702_v60 = vadd.f32 1e-05, %v701_v59 }
 0x264   : > { %v703_v62 = vpop.f32.mrf.mxu1 }
 0x265   : > { %932 = vrsqrt.f32 %v702_v60  ;;  %v704_v63 = vadd.f32 1e-05, %v703_v62 }
 0x267   : > { %934 = vrsqrt.f32 %v704_v63 }
 0x272   : > { %v933_v12 = vpop.eup %932 }
 0x273   : > { %v720_v14 = vmul.f32 %v933_v12, %v713_v8 }
 0x274   : > { %v935_v16 = vpop.eup %934 }
 0x275   : > { %v721_v17 = vmul.f32 %v935_v16, %v717_v11  ;;  %v723_v19 = vmul.f32 %v720_v14, %v627_v13  ;;  %v747_v24 = vrot.slane %v720_v14, %v712_v4 }
 0x277   : > { %v724_v20 = vmul.f32 %v721_v17, %v629_v18  ;;  %v751_v27 = vrot.slane %v721_v17, %v712_v4  ;;  %v752_v29 = vmul.f32 %v747_v24, %v1004_v5  ;;  %v754_v30 = vmul.f32 %v747_v24, %v997_v2 }
 0x279   : > { %v727_v22 = vcombine.low %v723_v19, %v724_v20  ;;  %v753_v31 = vmul.f32 %v751_v27, %v999_v3  ;;  %v755_v32 = vmul.f32 %v751_v27, %v995_v1 }
 0x27b   : > { %v734_v23 = vrot.slane %v727_v22, %v733_v21 }
 0x27d   : > { %v741_v26 = vrot.slane %v734_v23, %v733_v21 }
 0x27f   : > { %v743_v28 = vsub.f32 %v722_v25, %v741_v26 }
 0x281   : > { %v760_v33 = vrot.slane %v743_v28, %v712_v4  ;;  %v764_v34 = vrot.slane %v743_v28, %v716_v7 }
 0x283   : > { %v767_v35 = vadd.f32 %v760_v33, %v752_v29  ;;  %v768_v36 = vadd.f32 %v764_v34, %v753_v31  ;;  %v769_v37 = vadd.f32 %v760_v33, %v754_v30  ;;  %v770_v38 = vadd.f32 %v764_v34, %v755_v32 }
 0x285   : > { %v771_v39 = vmax.f32 %v767_v35, 0.0  ;;  %v772_v40 = vmax.f32 %v768_v36, 0.0  ;;  %v773_v5 = vmax.f32 %v769_v37, 0.0  ;;  %v774_v41 = vmax.f32 %v770_v38, 0.0 }
 0x287   : > { %775 = vst [vmem:[%s224_s11] sm:$0xff] %v771_v39  ;;  %776 = vst [vmem:[%s224_s11 + $0x8] sm:$0xff] %v772_v40 }
 0x288   : > { %777 = vst [vmem:[%s224_s11 + $0x10] sm:$0xff] %v773_v5  ;;  %778 = vst [vmem:[%s224_s11 + $0x18] sm:$0xff] %v774_v41 }
 0x289 PF: > { %s15_s18 = sadd.s32 1, %s942_s18  }
 0x28a   : > { %p12_p4 = scmp.ge.s32.totalorder %s15_s18, 4  }
 0x28c   :  { %14 = sbr.rel (!%p12_p4) target bundleno = 1 (0x1), region = 70 }

// kernel: encoder_mg_forward.19
= control target key start
LH: loop header
LB: loop body
LE: loop exit
PB: predicated region body
PF: predicated region fallthrough
CT: control target
= control target key end

     0   :  { %s850_s18 = smov 0   ;;  %s1000_s0 = inlined_call_operand.vmem [shape: f32[2,4,256], index: 0, kind: input, shape index: {}]   ;;  %s1001_s1 = inlined_call_operand.vmem [shape: f32[256,16], index: 1, kind: input, shape index: {}]   ;;  %s1002_s2 = inlined_call_operand.vmem [shape: f32[16,256], index: 2, kind: input, shape index: {}]   ;;  %s1003_s3 = inlined_call_operand.vmem [shape: f32[1,256], index: 3, kind: input, shape index: {}]   ;;  %s1004_s4 = inlined_call_operand.vmem [shape: f32[1,256], index: 4, kind: input, shape index: {}]   ;;  %s1005_s5 = inlined_call_operand.vmem [shape: f32[2,4,256], index: 5, kind: output, shape index: {}]  }
   0x1 LB: > { %s710_s19 = sadd.s32 4294967295, %s816_s18   ;;  %p714_p0 = scmp.ge.s32.totalorder %s816_s18, 1  ;;  %s816_s18 = sphi %s850_s18, %s15_s18  }
   0x2   : > { %p187_p1 = scmp.lt.s32.totalorder %s816_s18, 3 }
   0x4   : > { %p188_p2 = pnand %p714_p0, %p187_p1 }
   0x5   : > { %p215_p3 = scmp.lt.s32.totalorder (!%p188_p2), %s710_s19, 1 }
   0x6   : > { %191 = sbr.rel (%p188_p2) target bundleno = 480 (0x1e0), region = 40 }
   0xb   : > { %v293_v0 = vld [vmem:[%s1001_s1 + $0xf8] sm:$0xff]  ;;  %v292_v2 = vld [vmem:[%s1001_s1 + $0xf0] sm:$0xff]  ;;  %v291_v4 = vld [vmem:[%s1001_s1 + $0xe8] sm:$0xff]  ;;  %s1007_s19 = smov (!%p215_p3, %s710_s19), 1  ;;  %vm229_vm0 = vcmask 1043456   ;;  %vm441_vm1 = vcmask 130048  }
   0xc   : > { %v277_v1 = vld [vmem:[%s1001_s1 + $0x78] sm:$0xff]  ;;  %725 = vmatprep.subr.mxu0 %v293_v0  ;;  %760 = vmatprep.subr.mxu1 %v293_v0  ;;  %v276_v3 = vld [vmem:[%s1001_s1 + $0x70] sm:$0xff]  ;;  %v275_v5 = vld [vmem:[%s1001_s1 + $0x68] sm:$0xff]  ;;  %s723_s9 = sshll.u32 %s1007_s19, 3 }
   0xd   : > { %726 = vmatpush3.msra.mxu0 %v277_v1  ;;  %761 = vmatpush3.msra.mxu1 %v277_v1  ;;  %v290_v6 = vld [vmem:[%s1001_s1 + $0xe0] sm:$0xff]  ;;  %v289_v8 = vld [vmem:[%s1001_s1 + $0xd8] sm:$0xff]  ;;  %s219_s20 = scalar_lea.vmem %s1000_s0, %s723_s9  ;;  %v288_v10 = vld [vmem:[%s1001_s1 + $0xd0] sm:$0xff]  ;;  %s224_s11 = scalar_lea.vmem %s1005_s5, %s723_s9 }
   0xe   : > { %727 = vmatprep.subr.mxu0 %v292_v2  ;;  %762 = vmatprep.subr.mxu1 %v292_v2  ;;  %v274_v7 = vld [vmem:[%s1001_s1 + $0x60] sm:$0xff]  ;;  %v273_v9 = vld [vmem:[%s1001_s1 + $0x58] sm:$0xff]  ;;  %v272_v11 = vld [vmem:[%s1001_s1 + $0x50] sm:$0xff] }
   0xf   : > { %728 = vmatpush3.msra.mxu0 %v276_v3  ;;  %763 = vmatpush3.msra.mxu1 %v276_v3  ;;  %v287_v12 = vld [vmem:[%s1001_s1 + $0xc8] sm:$0xff]  ;;  %v905_v13 = vld [vmem:[%s219_s20] sm:$0xff]  ;;  %v285_v24 = vld [vmem:[%s1001_s1 + $0xb8] sm:$0xff] }
  0x10   : > { %729 = vmatprep.subr.mxu0 %v291_v4  ;;  %764 = vmatprep.subr.mxu1 %v291_v4  ;;  %v271_v14 = vld [vmem:[%s1001_s1 + $0x48] sm:$0xff]  ;;  %v227_v15 = vcombine.high %v905_v13, %v905_v13  ;;  %v244_v16 = vmul.f32 %v905_v13, %v905_v13  ;;  %v230_v17 = vsel %vm229_vm0, %v905_v13, 0.0  ;;  %v286_v18 = vld [vmem:[%s1001_s1 + $0xc0] sm:$0xff]  ;;  %v269_v28 = vld [vmem:[%s1001_s1 + $0x38] sm:$0xff]  ;;  %v818_v4 = vmov 0.0  }
  0x11   : > { %730 = vmatpush3.msra.mxu0 %v275_v5  ;;  %765 = vmatpush3.msra.mxu1 %v275_v5  ;;  %v231_v19 = vrot.slane %v230_v17, 4  ;;  %v270_v20 = vld [vmem:[%s1001_s1 + $0x40] sm:$0xff]  ;;  %v284_v30 = vld [vmem:[%s1001_s1 + $0xb0] sm:$0xff]  ;;  %v283_v35 = vld [vmem:[%s1001_s1 + $0xa8] sm:$0xff] }
  0x12   : > { %731 = vmatprep.subr.mxu0 %v290_v6  ;;  %766 = vmatprep.subr.mxu1 %v290_v6  ;;  %v237_v21 = vsel %vm229_vm0, %v227_v15, 0.0  ;;  %v246_v22 = vcombine.high %v244_v16, %v244_v16  ;;  %v248_v23 = vsel %vm229_vm0, %v244_v16, 0.0  ;;  %v268_v34 = vld [vmem:[%s1001_s1 + $0x30] sm:$0xff]  ;;  %v267_v40 = vld [vmem:[%s1001_s1 + $0x28] sm:$0xff]  ;;  %v282_v41 = vld [vmem:[%s1001_s1 + $0xa0] sm:$0xff] }
  0x13   : > { %732 = vmatpush3.msra.mxu0 %v274_v7  ;;  %767 = vmatpush3.msra.mxu1 %v274_v7  ;;  %v238_v25 = vrot.slane %v237_v21, 4  ;;  %v232_v26 = vadd.f32 %v231_v19, %v230_v17  ;;  %v249_v27 = vrot.slane %v248_v23, 4  ;;  %v266_v44 = vld [vmem:[%s1001_s1 + $0x20] sm:$0xff]  ;;  %v281_v45 = vld [vmem:[%s1001_s1 + $0x98] sm:$0xff]  ;;  %v280_v50 = vld [vmem:[%s1001_s1 + $0x90] sm:$0xff]  ;;  %v594_v17 = vlaneseq }
  0x14   : > { %733 = vmatprep.subr.mxu0 %v289_v8  ;;  %768 = vmatprep.subr.mxu1 %v289_v8  ;;  %v255_v29 = vsel %vm229_vm0, %v246_v22, 0.0  ;;  %v265_v49 = vld [vmem:[%s1001_s1 + $0x18] sm:$0xff]  ;;  %v264_v52 = vld [vmem:[%s1001_s1 + $0x10] sm:$0xff]  ;;  %v279_v54 = vld [vmem:[%s1001_s1 + $0x88] sm:$0xff] }
  0x15   : > { %734 = vmatpush3.msra.mxu0 %v273_v9  ;;  %769 = vmatpush3.msra.mxu1 %v273_v9  ;;  %v239_v31 = vadd.f32 %v238_v25, %v237_v21  ;;  %v256_v32 = vrot.slane %v255_v29, 4  ;;  %v250_v33 = vadd.f32 %v249_v27, %v248_v23  ;;  %v233_v38 = vrot.slane %v232_v26, 2  ;;  %v263_v57 = vld [vmem:[%s1001_s1 + $0x8] sm:$0xff]  ;;  %v278_v58 = vld [vmem:[%s1001_s1 + $0x80] sm:$0xff]  ;;  %v440_v0 = vld [vmem:[%s1002_s2 + $0x18] sm:$0xff] }
  0x16   : > { %735 = vmatprep.subr.mxu0 %v288_v10  ;;  %770 = vmatprep.subr.mxu1 %v288_v10  ;;  %v262_v60 = vld [vmem:[%s1001_s1] sm:$0xff]  ;;  %v439_v1 = vld [vmem:[%s1002_s2 + $0x10] sm:$0xff]  ;;  %v438_v2 = vld [vmem:[%s1002_s2 + $0x8] sm:$0xff]  ;;  %v819_v25 = vmov 1966171168  }
  0x17   : > { %736 = vmatpush3.msra.mxu0 %v272_v11  ;;  %771 = vmatpush3.msra.mxu1 %v272_v11  ;;  %v240_v36 = vrot.slane %v239_v31, 2  ;;  %v257_v37 = vadd.f32 %v256_v32, %v255_v29  ;;  %v251_v39 = vrot.slane %v250_v33, 2  ;;  %v234_v47 = vadd.f32 %v233_v38, %v232_v26  ;;  %v437_v3 = vld [vmem:[%s1002_s2] sm:$0xff] }
  0x18   : > { %737 = vmatprep.subr.mxu0 %v287_v12  ;;  %772 = vmatprep.subr.mxu1 %v287_v12  ;;  %v592_v22 = vld [vmem:[%s1003_s3] sm:$0x3]  ;;  %v613_v26 = vunpack.c.l.s4 %v819_v25 }
  0x19   : > { %738 = vmatpush3.msra.mxu0 %v271_v14  ;;  %773 = vmatpush3.msra.mxu1 %v271_v14  ;;  %v241_v42 = vadd.f32 %v240_v36, %v239_v31  ;;  %v258_v43 = vrot.slane %v257_v37, 2  ;;  %v252_v48 = vadd.f32 %v251_v39, %v250_v33  ;;  %v235_v55 = vrot.slane %v234_v47, 1 }
  0x1a   : > { %739 = vmatprep.subr.mxu0 %v286_v18  ;;  %774 = vmatprep.subr.mxu1 %v286_v18  ;;  %v614_v31 = vunpack.c.0.s8 %v613_v26 }
  0x1b   : > { %740 = vmatpush3.msra.mxu0 %v270_v20  ;;  %775 = vmatpush3.msra.mxu1 %v270_v20  ;;  %v259_v46 = vadd.f32 %v258_v43, %v257_v37  ;;  %v242_v51 = vrot.slane %v241_v42, 1  ;;  %v253_v56 = vrot.slane %v252_v48, 1  ;;  %v236_v62 = vadd.f32 %v235_v55, %v234_v47 }
  0x1c   : > { %741 = vmatprep.subr.mxu0 %v285_v24  ;;  %776 = vmatprep.subr.mxu1 %v285_v24  ;;  %v595_v20 = vshrl.u32 %v594_v17, 7 }
  0x1d   : > { %742 = vmatpush3.msra.mxu0 %v269_v28  ;;  %777 = vmatpush3.msra.mxu1 %v269_v28  ;;  %v260_v53 = vrot.slane %v259_v46, 1  ;;  %v243_v59 = vadd.f32 %v242_v51, %v241_v42  ;;  %v254_v63 = vadd.f32 %v253_v56, %v252_v48 }
  0x1e   : > { %743 = vmatprep.subr.mxu0 %v284_v30  ;;  %778 = vmatprep.subr.mxu1 %v284_v30  ;;  %v596_v21 = vsub.s32 0, %v595_v20  ;;  %v600_v23 = vsub.s32 1, %v595_v20  ;;  %v617_v37 = vsub.s32 %v614_v31, %v595_v20 }
  0x1f   : > { %744 = vmatpush3.msra.mxu0 %v268_v34  ;;  %779 = vmatpush3.msra.mxu1 %v268_v34  ;;  %v261_v61 = vadd.f32 %v260_v53, %v259_v46 }
  0x20   : > { %745 = vmatprep.subr.mxu0 %v283_v35  ;;  %780 = vmatprep.subr.mxu1 %v283_v35  ;;  %v597_v24 = vrot.slane %v592_v22, %v596_v21  ;;  %v601_v27 = vrot.slane %v592_v22, %v600_v23 }
  0x21   : > { %746 = vmatpush3.msra.mxu0 %v267_v40  ;;  %781 = vmatpush3.msra.mxu1 %v267_v40 }
  0x22   : > { %747 = vmatprep.subr.mxu0 %v282_v41  ;;  %782 = vmatprep.subr.mxu1 %v282_v41  ;;  %v606_v41 = vld [vmem:[%s1004_s4] sm:$0x3] }
  0x23   : > { %748 = vmatpush3.msra.mxu0 %v266_v44  ;;  %783 = vmatpush3.msra.mxu1 %v266_v44 }
  0x24   : > { %749 = vmatprep.subr.mxu0 %v281_v45  ;;  %784 = vmatprep.subr.mxu1 %v281_v45 }
  0x25   : > { %750 = vmatpush3.msra.mxu0 %v265_v49  ;;  %785 = vmatpush3.msra.mxu1 %v265_v49 }
  0x26   : > { %751 = vmatprep.subr.mxu0 %v280_v50  ;;  %786 = vmatprep.subr.mxu1 %v280_v50 }
  0x27   : > { %752 = vmatpush3.msra.mxu0 %v264_v52  ;;  %787 = vmatpush3.msra.mxu1 %v264_v52 }
  0x28   : > { %753 = vmatprep.subr.mxu0 %v279_v54  ;;  %788 = vmatprep.subr.mxu1 %v279_v54 }
  0x29   : > { %754 = vmatpush3.msra.mxu0 %v263_v57  ;;  %789 = vmatpush3.msra.mxu1 %v263_v57 }
  0x2a   : > { %755 = vmatprep.subr.mxu0 %v278_v58  ;;  %790 = vmatprep.subr.mxu1 %v278_v58 }
  0x2b   : > { %756 = vmatpush3.msra.mxu0 %v262_v60  ;;  %358 = vmatprep.mubr.f32.mxu0 %v243_v59 }
  0x2c   : > { %791 = vmatpush3.msra.mxu1 %v262_v60  ;;  %428 = vmatprep.mubr.f32.mxu1 %v261_v61 }
  0x2d   : > { %359 = vmatmul.mubr.f32.vlgmr.msra.gmra.mxu0 %v236_v62  ;;  %429 = vmatmul.mubr.f32.vlgmr.msra.gmra.mxu1 %v254_v63 }
  0x2e   : > { %473 = vmatprep.subr.mxu0 %v440_v0  ;;  %547 = vmatprep.subr.mxu1 %v440_v0 }
  0x2f   : > { %474 = vmatpush1.msra.mxu0 %v439_v1  ;;  %548 = vmatpush1.msra.mxu1 %v439_v1 }
  0x30   : > { %475 = vmatprep.subr.mxu0 %v438_v2  ;;  %549 = vmatprep.subr.mxu1 %v438_v2 }
  0x31   : > { %476 = vmatpush1.msra.mxu0 %v437_v3  ;;  %509 = vmatprep.mubr.f32.mxu0 %v818_v4 }
  0x32   : > { %550 = vmatpush1.msra.mxu1 %v437_v3  ;;  %583 = vmatprep.mubr.f32.mxu1 %v818_v4 }
  0xed   : > { %v757_v5 = vpop.f32.mrf.mxu0  ;;  %v792_v6 = vpop.f32.mrf.mxu1 }
  0xef   : > { %v758_v7 = vpop.f32.mrf.mxu0  ;;  %v793_v8 = vpop.f32.mrf.mxu1 }
  0xf0   : > { %v759_v9 = vadd.f32 %v758_v7, %v757_v5  ;;  %v794_v11 = vadd.f32 %v793_v8, %v792_v6 }
  0xf2   : > { %v434_v10 = vmul.f32 %v759_v9, %v759_v9  ;;  %719 = vmatmul.mubr.msk.f32.vlgmr.msra.gmra.mxu0 %vm441_vm1, %v759_v9 }
  0xf4   : > { %v435_v12 = vsub.f32 %v794_v11, %v434_v10 }
  0xf6   : > { %v436_v14 = vmax.f32 %v435_v12, 0.0 }
  0xf8   : > { %720 = vmatmul.mubr.msk.f32.vlgmr.msra.gmra.mxu1 %vm441_vm1, %v436_v14 }
 0x1b2   : > { %v511_v29 = vpop.f32.mrf.mxu0 }
 0x1b4   : > { %v513_v34 = vpop.f32.mrf.mxu0 }
 0x1b8   : > { %v585_v15 = vpop.f32.mrf.mxu1 }
 0x1b9   : > { %v586_v16 = vadd.f32 1e-05, %v585_v15 }
 0x1ba   : > { %v587_v18 = vpop.f32.mrf.mxu1 }
 0x1bb   : > { %806 = vrsqrt.f32 %v586_v16  ;;  %v588_v19 = vadd.f32 1e-05, %v587_v18 }
 0x1bd   : > { %808 = vrsqrt.f32 %v588_v19 }
 0x1c8   : > { %v807_v28 = vpop.eup %806 }
 0x1c9   : > { %v604_v30 = vmul.f32 %v807_v28, %v597_v24 }
 0x1ca   : > { %v809_v32 = vpop.eup %808 }
 0x1cb   : > { %v605_v33 = vmul.f32 %v809_v32, %v601_v27  ;;  %v607_v35 = vmul.f32 %v604_v30, %v511_v29  ;;  %v631_v42 = vrot.slane %v604_v30, %v596_v21 }
 0x1cd   : > { %v608_v36 = vmul.f32 %v605_v33, %v513_v34  ;;  %v635_v40 = vrot.slane %v605_v33, %v596_v21 }
 0x1cf   : > { %v611_v38 = vcombine.low %v607_v35, %v608_v36  ;;  %v638_v45 = vcombine.low %v631_v42, %v635_v40 }
 0x1d1   : > { %v618_v39 = vrot.slane %v611_v38, %v617_v37  ;;  %v640_v48 = vmul.f32 %v638_v45, %v905_v13 }
 0x1d3   : > { %v625_v43 = vrot.slane %v618_v39, %v617_v37 }
 0x1d5   : > { %v627_v44 = vsub.f32 %v606_v41, %v625_v43 }
 0x1d7   : > { %v645_v46 = vrot.slane %v627_v44, %v596_v21  ;;  %v649_v47 = vrot.slane %v627_v44, %v600_v23 }
 0x1d9   : > { %v650_v49 = vcombine.low %v645_v46, %v649_v47 }
 0x1db   : > { %v652_v50 = vadd.f32 %v650_v49, %v640_v48 }
 0x1dd   : > { %v653_v51 = vmax.f32 %v652_v50, 0.0 }
 0x1df   : > { %654 = vst [vmem:[%s224_s11] sm:$0xff] %v653_v51 }
 0x1e0 PF: > { %s15_s18 = sadd.s32 1, %s816_s18  }
 0x1e1   : > { %p12_p4 = scmp.ge.s32.totalorder %s15_s18, 4  }
 0x1e3   :  { %14 = sbr.rel (!%p12_p4) target bundleno = 1 (0x1), region = 70 }

// kernel: encoder_mg_forward.18
= control target key start
LH: loop header
LB: loop body
LE: loop exit
PB: predicated region body
PF: predicated region fallthrough
CT: control target
= control target key end

     0   :  { %s1165_s12 = smov 0   ;;  %s1167_s13 = smov 0   ;;  %s1283_s0 = inlined_call_operand.vmem [shape: bf16[8,4096], index: 0, kind: input, shape index: {}]   ;;  %s1284_s1 = inlined_call_operand.vmem [shape: bf16[4096,256], index: 1, kind: input, shape index: {}]   ;;  %s1285_s2 = inlined_call_operand.vmem [shape: f32[1,256], index: 2, kind: input, shape index: {}]   ;;  %s1286_s3 = inlined_call_operand.vmem [shape: f32[8,256], index: 3, kind: output, shape index: {}]  }
   0x1   :  { %s1169_s14 = smov 0  }
   0x2 LB: > { %s25_s15 = sadd.s32 1, %s1138_s13  ;;  %p914_p0 = scmp.ge.s32.totalorder %s1142_s14, 1  ;;  %s1142_s14 = sphi %s1169_s14, %s13_s14   ;;  %s1138_s13 = sphi %s1167_s13, %s1288_s13   ;;  %s1134_s12 = sphi %s1165_s12, %s1287_s12  }
   0x3   : > { %p26_p1 = scmp.ge.s32.totalorder %s25_s15, 8  ;;  %p194_p2 = scmp.lt.s32.totalorder %s1142_s14, 9 }
   0x5   : > { %s1290_s15 = smov (%p26_p1, %s25_s15), 0  ;;  %p195_p3 = pnand %p914_p0, %p194_p2 }
   0x6   : > { %s915_s16 = sshll.u32 (!%p195_p3), %s1134_s12, 2  ;;  %s917_s17 = sshll.u32 (!%p195_p3), %s1134_s12, 6 }
   0x7   : > { %198 = sbr.rel (%p195_p3) target bundleno = 299 (0x12b), region = 32  ;;  %p243_p4 = scmp.lt.s32.totalorder (!%p195_p3), %s915_s16, 31 }
   0x8   : > { %p252_p5 = scmp.lt.s32.totalorder (!%p195_p3), %s917_s17, 511  ;;  %p920_p6 = scmp.ne.s32.totalorder (!%p195_p3), %s1134_s12, 0 }
   0xc   : > { %s1292_s16 = smov (!%p243_p4, %s915_s16), 31  ;;  %s1294_s17 = smov (!%p252_p5, %s917_s17), 511 }
   0xd   : > { %s916_s18 = sshll.u32 %s1292_s16, 2  ;;  %s994_s22 = sshll.u32 %s1294_s17, 3 }
   0xe   : > { %s1190_s21 = scalar_lea.vmem %s1283_s0, %s916_s18  ;;  %s1195_s25 = scalar_lea.vmem %s1284_s1, %s994_s22 }
   0xf   : > { %280 = sbr.rel (%p920_p6) target bundleno = 22 (0x16), region = 36 }
  0x14   : > { %v1144_v0 = vmov 0.0  }
  0x15   : > { %281 = vst [vmem:[#allocation2] sm:$0xff] %v1144_v0  ;;  %282 = vst [vmem:[#allocation2 + $0x8] sm:$0xff] %v1144_v0 }
  0x16 PF: > { %v1020_v1 = vld [vmem:[%s1195_s25 + $0x74] ss:$8 sps:$4 sm:$0xff]   ;;  %v1024_v3 = vld [vmem:[%s1195_s25 + $0x70] ss:$8 sps:$4 sm:$0xff]   ;;  %v1026_v5 = vld [vmem:[%s1195_s25 + $0x64] ss:$8 sps:$4 sm:$0xff]  }
  0x17   : > { %v1022_v2 = vld [vmem:[%s1195_s25 + $0x174] ss:$8 sps:$4 sm:$0xff]   ;;  %685 = vmatprep.subr.bf16.mxu0 %v1020_v1  ;;  %v1025_v4 = vld [vmem:[%s1195_s25 + $0x170] ss:$8 sps:$4 sm:$0xff]   ;;  %v1028_v6 = vld [vmem:[%s1195_s25 + $0x164] ss:$8 sps:$4 sm:$0xff]  }
  0x18   : > { %726 = vmatprep.subr.bf16.mxu1 %v1022_v2  ;;  %686 = vmatpush1.bf16.msra.mxu0 %v1024_v3  ;;  %v1030_v7 = vld [vmem:[%s1195_s25 + $0x60] ss:$8 sps:$4 sm:$0xff]   ;;  %v1032_v9 = vld [vmem:[%s1195_s25 + $0x54] ss:$8 sps:$4 sm:$0xff]   ;;  %v1036_v11 = vld [vmem:[%s1195_s25 + $0x50] ss:$8 sps:$4 sm:$0xff]  }
  0x19   : > { %727 = vmatpush1.bf16.msra.mxu1 %v1025_v4  ;;  %687 = vmatprep.subr.bf16.mxu0 %v1026_v5  ;;  %v1031_v8 = vld [vmem:[%s1195_s25 + $0x160] ss:$8 sps:$4 sm:$0xff]   ;;  %v1034_v10 = vld [vmem:[%s1195_s25 + $0x154] ss:$8 sps:$4 sm:$0xff]   ;;  %v1037_v12 = vld [vmem:[%s1195_s25 + $0x150] ss:$8 sps:$4 sm:$0xff]  }
  0x1a   : > { %728 = vmatprep.subr.bf16.mxu1 %v1028_v6  ;;  %v1038_v13 = vld [vmem:[%s1195_s25 + $0x44] ss:$8 sps:$4 sm:$0xff]   ;;  %v1042_v15 = vld [vmem:[%s1195_s25 + $0x40] ss:$8 sps:$4 sm:$0xff]   ;;  %v1044_v17 = vld [vmem:[%s1195_s25 + $0x34] ss:$8 sps:$4 sm:$0xff]  }
  0x1b   : > { %v1040_v14 = vld [vmem:[%s1195_s25 + $0x144] ss:$8 sps:$4 sm:$0xff]   ;;  %v1043_v16 = vld [vmem:[%s1195_s25 + $0x140] ss:$8 sps:$4 sm:$0xff]   ;;  %v1046_v18 = vld [vmem:[%s1195_s25 + $0x134] ss:$8 sps:$4 sm:$0xff]  }
  0x1c   : > { %688 = vmatpush1.bf16.msra.mxu0 %v1030_v7  ;;  %v1048_v19 = vld [vmem:[%s1195_s25 + $0x30] ss:$8 sps:$4 sm:$0xff]   ;;  %v1050_v21 = vld [vmem:[%s1195_s25 + $0x24] ss:$8 sps:$4 sm:$0xff]   ;;  %v1054_v23 = vld [vmem:[%s1195_s25 + $0x20] ss:$8 sps:$4 sm:$0xff]  }
  0x1d   : > { %729 = vmatpush1.bf16.msra.mxu1 %v1031_v8  ;;  %689 = vmatprep.subr.bf16.mxu0 %v1032_v9  ;;  %v1049_v20 = vld [vmem:[%s1195_s25 + $0x130] ss:$8 sps:$4 sm:$0xff]   ;;  %v1052_v22 = vld [vmem:[%s1195_s25 + $0x124] ss:$8 sps:$4 sm:$0xff]   ;;  %v1055_v24 = vld [vmem:[%s1195_s25 + $0x120] ss:$8 sps:$4 sm:$0xff]  }
  0x1e   : > { %730 = vmatprep.subr.bf16.mxu1 %v1034_v10  ;;  %v1056_v25 = vld [vmem:[%s1195_s25 + $0x14] ss:$8 sps:$4 sm:$0xff]   ;;  %v1060_v27 = vld [vmem:[%s1195_s25 + $0x10] ss:$8 sps:$4 sm:$0xff]   ;;  %v1062_v29 = vld [vmem:[%s1195_s25 + $0x4] ss:$8 sps:$4 sm:$0xff]  }
  0x1f   : > { %v1058_v26 = vld [vmem:[%s1195_s25 + $0x114] ss:$8 sps:$4 sm:$0xff]   ;;  %v1061_v28 = vld [vmem:[%s1195_s25 + $0x110] ss:$8 sps:$4 sm:$0xff]   ;;  %v1064_v30 = vld [vmem:[%s1195_s25 + $0x104] ss:$8 sps:$4 sm:$0xff]  }
  0x20   : > { %690 = vmatpush1.bf16.msra.mxu0 %v1036_v11  ;;  %v1066_v31 = vld [vmem:[%s1195_s25] ss:$8 sps:$4 sm:$0xff]   ;;  %v1068_v33 = vld [vmem:[%s1195_s25 + $0xf4] ss:$8 sps:$4 sm:$0xff]   ;;  %v1072_v35 = vld [vmem:[%s1195_s25 + $0xf0] ss:$8 sps:$4 sm:$0xff]  }
  0x21   : > { %731 = vmatpush1.bf16.msra.mxu1 %v1037_v12  ;;  %691 = vmatprep.subr.bf16.mxu0 %v1038_v13  ;;  %v1067_v32 = vld [vmem:[%s1195_s25 + $0x100] ss:$8 sps:$4 sm:$0xff]   ;;  %v1070_v34 = vld [vmem:[%s1195_s25 + $0x1f4] ss:$8 sps:$4 sm:$0xff]   ;;  %v1073_v36 = vld [vmem:[%s1195_s25 + $0x1f0] ss:$8 sps:$4 sm:$0xff]  }
  0x22   : > { %732 = vmatprep.subr.bf16.mxu1 %v1040_v14  ;;  %v1074_v37 = vld [vmem:[%s1195_s25 + $0xe4] ss:$8 sps:$4 sm:$0xff]   ;;  %v1078_v39 = vld [vmem:[%s1195_s25 + $0xe0] ss:$8 sps:$4 sm:$0xff]   ;;  %v1080_v41 = vld [vmem:[%s1195_s25 + $0xd4] ss:$8 sps:$4 sm:$0xff]  }
  0x23   : > { %v1076_v38 = vld [vmem:[%s1195_s25 + $0x1e4] ss:$8 sps:$4 sm:$0xff]   ;;  %v1079_v40 = vld [vmem:[%s1195_s25 + $0x1e0] ss:$8 sps:$4 sm:$0xff]   ;;  %v1082_v42 = vld [vmem:[%s1195_s25 + $0x1d4] ss:$8 sps:$4 sm:$0xff]  }
  0x24   : > { %692 = vmatpush1.bf16.msra.mxu0 %v1042_v15  ;;  %v1084_v43 = vld [vmem:[%s1195_s25 + $0xd0] ss:$8 sps:$4 sm:$0xff]   ;;  %v1086_v45 = vld [vmem:[%s1195_s25 + $0xc4] ss:$8 sps:$4 sm:$0xff]   ;;  %v1090_v50 = vld [vmem:[%s1195_s25 + $0xc0] ss:$8 sps:$4 sm:$0xff]  }
  0x25   : > { %733 = vmatpush1.bf16.msra.mxu1 %v1043_v16  ;;  %693 = vmatprep.subr.bf16.mxu0 %v1044_v17  ;;  %v1085_v44 = vld [vmem:[%s1195_s25 + $0x1d0] ss:$8 sps:$4 sm:$0xff]   ;;  %v1088_v46 = vld [vmem:[%s1195_s25 + $0x1c4] ss:$8 sps:$4 sm:$0xff]   ;;  %v1091_v51 = vld [vmem:[%s1195_s25 + $0x1c0] ss:$8 sps:$4 sm:$0xff]  }
  0x26   : > { %734 = vmatprep.subr.bf16.mxu1 %v1046_v18  ;;  %v285_v47 = vld [vmem:[%s1190_s21] sm:$0xff]  ;;  %v286_v49 = vld [vmem:[%s1190_s21 + $0x8] sm:$0xff]  ;;  %v1092_v53 = vld [vmem:[%s1195_s25 + $0xb4] ss:$8 sps:$4 sm:$0xff]   ;;  %p989_p7 = scmp.ne.s32.totalorder %s1134_s12, 7 }
  0x27   : > { %v922_v48 = vcombine.high %v285_v47, %v285_v47  ;;  %v924_v52 = vcombine.high %v286_v49, %v286_v49  ;;  %v1094_v54 = vld [vmem:[%s1195_s25 + $0x1b4] ss:$8 sps:$4 sm:$0xff]   ;;  %v1096_v55 = vld [vmem:[%s1195_s25 + $0xb0] ss:$8 sps:$4 sm:$0xff]   ;;  %v1098_v57 = vld [vmem:[%s1195_s25 + $0xa4] ss:$8 sps:$4 sm:$0xff]   ;;  %v921_v5 = vcombine.low %v285_v47, %v285_v47  ;;  %v923_v6 = vcombine.low %v286_v49, %v286_v49 }
  0x28   : > { %694 = vmatpush1.bf16.msra.mxu0 %v1048_v19  ;;  %v1097_v56 = vld [vmem:[%s1195_s25 + $0x1b0] ss:$8 sps:$4 sm:$0xff]   ;;  %v1100_v58 = vld [vmem:[%s1195_s25 + $0x1a4] ss:$8 sps:$4 sm:$0xff]   ;;  %v1102_v59 = vld [vmem:[%s1195_s25 + $0xa0] ss:$8 sps:$4 sm:$0xff]  }
  0x29   : > { %735 = vmatpush1.bf16.msra.mxu1 %v1049_v20  ;;  %695 = vmatprep.subr.bf16.mxu0 %v1050_v21  ;;  %v1103_v60 = vld [vmem:[%s1195_s25 + $0x1a0] ss:$8 sps:$4 sm:$0xff]   ;;  %v1104_v61 = vld [vmem:[%s1195_s25 + $0x94] ss:$8 sps:$4 sm:$0xff]   ;;  %v1108_v63 = vld [vmem:[%s1195_s25 + $0x90] ss:$8 sps:$4 sm:$0xff]  }
  0x2a   : > { %736 = vmatprep.subr.bf16.mxu1 %v1052_v22  ;;  %717 = vmatprep.mubr.bf16.mxu0 %v922_v48  ;;  %v1106_v62 = vld [vmem:[%s1195_s25 + $0x194] ss:$8 sps:$4 sm:$0xff]   ;;  %v1109_v0 = vld [vmem:[%s1195_s25 + $0x190] ss:$8 sps:$4 sm:$0xff]   ;;  %v1110_v1 = vld [vmem:[%s1195_s25 + $0x84] ss:$8 sps:$4 sm:$0xff]  }
  0x2b   : > { %758 = vmatprep.mubr.bf16.mxu1 %v924_v52  ;;  %v1112_v2 = vld [vmem:[%s1195_s25 + $0x184] ss:$8 sps:$4 sm:$0xff]   ;;  %v1114_v3 = vld [vmem:[%s1195_s25 + $0x80] ss:$8 sps:$4 sm:$0xff]  }
  0x2c   : > { %696 = vmatpush1.bf16.msra.mxu0 %v1054_v23  ;;  %v1115_v4 = vld [vmem:[%s1195_s25 + $0x180] ss:$8 sps:$4 sm:$0xff]  }
  0x2d   : > { %737 = vmatpush1.bf16.msra.mxu1 %v1055_v24  ;;  %697 = vmatprep.subr.bf16.mxu0 %v1056_v25  ;;  %v283_v8 = vld [vmem:[#allocation2] sm:$0xff]  ;;  %v284_v12 = vld [vmem:[#allocation2 + $0x8] sm:$0xff] }
  0x2e   : > { %738 = vmatprep.subr.bf16.mxu1 %v1058_v26 }
  0x30   : > { %698 = vmatpush1.bf16.msra.mxu0 %v1060_v27 }
  0x31   : > { %739 = vmatpush1.bf16.msra.mxu1 %v1061_v28  ;;  %699 = vmatprep.subr.bf16.mxu0 %v1062_v29 }
  0x32   : > { %740 = vmatprep.subr.bf16.mxu1 %v1064_v30 }
  0x34   : > { %700 = vmatpush1.bf16.msra.mxu0 %v1066_v31 }
  0x35   : > { %741 = vmatpush1.bf16.msra.mxu1 %v1067_v32  ;;  %701 = vmatprep.subr.bf16.mxu0 %v1068_v33 }
  0x36   : > { %742 = vmatprep.subr.bf16.mxu1 %v1070_v34 }
  0x38   : > { %702 = vmatpush2.bf16.msra.mxu0 %v1072_v35 }
  0x39   : > { %743 = vmatpush2.bf16.msra.mxu1 %v1073_v36  ;;  %703 = vmatprep.subr.bf16.mxu0 %v1074_v37 }
  0x3a   : > { %744 = vmatprep.subr.bf16.mxu1 %v1076_v38 }
  0x3c   : > { %704 = vmatpush2.bf16.msra.mxu0 %v1078_v39 }
  0x3d   : > { %745 = vmatpush2.bf16.msra.mxu1 %v1079_v40  ;;  %705 = vmatprep.subr.bf16.mxu0 %v1080_v41 }
  0x3e   : > { %746 = vmatprep.subr.bf16.mxu1 %v1082_v42 }
  0x40   : > { %706 = vmatpush2.bf16.msra.mxu0 %v1084_v43 }
  0x41   : > { %747 = vmatpush2.bf16.msra.mxu1 %v1085_v44  ;;  %707 = vmatprep.subr.bf16.mxu0 %v1086_v45 }
  0x42   : > { %748 = vmatprep.subr.bf16.mxu1 %v1088_v46 }
  0x44   : > { %708 = vmatpush2.bf16.msra.mxu0 %v1090_v50 }
  0x45   : > { %749 = vmatpush2.bf16.msra.mxu1 %v1091_v51  ;;  %709 = vmatprep.subr.bf16.mxu0 %v1092_v53 }
  0x46   : > { %750 = vmatprep.subr.bf16.mxu1 %v1094_v54 }
  0x48   : > { %710 = vmatpush2.bf16.msra.mxu0 %v1096_v55 }
  0x49   : > { %751 = vmatpush2.bf16.msra.mxu1 %v1097_v56  ;;  %711 = vmatprep.subr.bf16.mxu0 %v1098_v57 }
  0x4a   : > { %752 = vmatprep.subr.bf16.mxu1 %v1100_v58 }
  0x4c   : > { %712 = vmatpush2.bf16.msra.mxu0 %v1102_v59 }
  0x4d   : > { %753 = vmatpush2.bf16.msra.mxu1 %v1103_v60  ;;  %713 = vmatprep.subr.bf16.mxu0 %v1104_v61 }
  0x4e   : > { %754 = vmatprep.subr.bf16.mxu1 %v1106_v62 }
  0x50   : > { %714 = vmatpush2.bf16.msra.mxu0 %v1108_v63 }
  0x51   : > { %755 = vmatpush2.bf16.msra.mxu1 %v1109_v0  ;;  %715 = vmatprep.subr.bf16.mxu0 %v1110_v1 }
  0x52   : > { %756 = vmatprep.subr.bf16.mxu1 %v1112_v2 }
  0x54   : > { %716 = vmatpush2.bf16.msra.mxu0 %v1114_v3 }
  0x55   : > { %757 = vmatpush2.bf16.msra.mxu1 %v1115_v4 }
  0x57   : > { %718 = vmatmul.mubr.bf16.vlgmr.msra.gmra.mxu0 %v921_v5 }
  0x58   : > { %759 = vmatmul.mubr.bf16.vlgmr.msra.gmra.mxu1 %v923_v6 }
 0x117   : > { %v719_v7 = vpop.f32.mrf.mxu0 }
 0x118   : > { %v760_v9 = vpop.f32.mrf.mxu1 }
 0x119   : > { %v761_v10 = vadd.f32 %v760_v9, %v719_v7  ;;  %v721_v11 = vpop.f32.mrf.mxu0 }
 0x11a   : > { %v762_v13 = vpop.f32.mrf.mxu1 }
 0x11b   : > { %v767_v14 = vadd.f32 %v761_v10, %v283_v8  ;;  %v763_v15 = vadd.f32 %v762_v13, %v721_v11  ;;  %v723_v16 = vpop.f32.mrf.mxu0  ;;  %774 = sbr.rel (%p989_p7) target bundleno = 299 (0x12b), region = 40 }
 0x11c   : > { %v764_v17 = vpop.f32.mrf.mxu1 }
 0x11d   : > { %769 = vst [vmem:[#allocation2] sm:$0xff] %v767_v14  ;;  %v768_v18 = vadd.f32 %v763_v15, %v284_v12  ;;  %v724_v19 = vpop.f32.mrf.mxu0 }
 0x11e   : > { %v765_v20 = vpop.f32.mrf.mxu1 }
 0x11f   : > { %770 = vst [vmem:[#allocation2 + $0x8] sm:$0xff] %v768_v18 }
 0x120   : > { %v779_v21 = vlaneseq  ;;  %v777_v23 = vld [vmem:[%s1285_s2] sm:$0x3] }
 0x122   : > { %v780_v22 = vshrl.u32 %v779_v21, 7 }
 0x124   : > { %v781_v24 = vsub.s32 0, %v780_v22  ;;  %v785_v25 = vsub.s32 1, %v780_v22  ;;  %v775_v26 = vld [vmem:[#allocation2] sm:$0xff] }
 0x126   : > { %v776_v27 = vld [vmem:[#allocation2 + $0x8] sm:$0xff]  ;;  %v782_v28 = vrot.slane %v777_v23, %v781_v24  ;;  %v786_v29 = vrot.slane %v777_v23, %v785_v25 }
 0x128   : > { %v789_v30 = vadd.f32 %v782_v28, %v775_v26  ;;  %v790_v31 = vadd.f32 %v786_v29, %v776_v27 }
 0x12a   : > { %791 = vst [vmem:[%s1286_s3] sm:$0xff] %v789_v30  ;;  %792 = vst [vmem:[%s1286_s3 + $0x8] sm:$0xff] %v790_v31 }
 0x12b PF: > { %s13_s14 = sadd.s32 1, %s1142_s14   ;;  %s1287_s12 = smov %s1138_s13 }
 0x12c   : > { %p10_p8 = scmp.ge.s32.totalorder %s13_s14, 10   ;;  %s1288_s13 = smov %s1290_s15 }
 0x12e   :  { %12 = sbr.rel (!%p10_p8) target bundleno = 2 (0x2), region = 76 }

// kernel: encoder_mg_forward.20
= control target key start
LH: loop header
LB: loop body
LE: loop exit
PB: predicated region body
PF: predicated region fallthrough
CT: control target
= control target key end

     0   :  { %s1513_s12 = smov 0   ;;  %s1515_s13 = smov 0   ;;  %s1825_s0 = inlined_call_operand.vmem [shape: bf16[8,4096], index: 0, kind: input, shape index: {}]   ;;  %s1826_s1 = inlined_call_operand.vmem [shape: bf16[4096,512], index: 1, kind: input, shape index: {}]   ;;  %s1827_s2 = inlined_call_operand.vmem [shape: f32[1,512], index: 2, kind: input, shape index: {}]   ;;  %s1828_s3 = inlined_call_operand.vmem [shape: f32[8,512], index: 3, kind: output, shape index: {}]  }
   0x1   :  { %s1517_s14 = smov 0   ;;  %s1519_s15 = smov 0  }
   0x2   :  { %s1521_s16 = smov 0   ;;  %s1523_s17 = smov 0  }
   0x3   :  { %s1525_s18 = smov 0  }
   0x4 LB: > { %s25_s19 = sadd.s32 1, %s1482_s16  ;;  %s28_s20 = sadd.s32 1, %s1486_s17  ;;  %s1490_s18 = sphi %s1525_s18, %s13_s18   ;;  %s1486_s17 = sphi %s1523_s17, %s1834_s17   ;;  %s1482_s16 = sphi %s1521_s16, %s1833_s16   ;;  %s1478_s15 = sphi %s1519_s15, %s1832_s15   ;;  %s1474_s14 = sphi %s1517_s14, %s1831_s14   ;;  %s1470_s13 = sphi %s1515_s13, %s1830_s13   ;;  %s1466_s12 = sphi %s1513_s12, %s1829_s12  }
   0x5   : > { %p26_p0 = scmp.ge.s32.totalorder %s25_s19, 8  ;;  %p76_p1 = scmp.ne.s32.totalorder %s1470_s13, %s1466_s12 }
   0x6   : > { %p77_p2 = scmp.eq.s32.totalorder %s1490_s18, 0  ;;  %s69_s24 = sadd.s32 1, %s1470_s13 }
   0x7   : > { %s1836_s19 = smov (%p26_p0, %s25_s19), 0  ;;  %s1838_s20 = smov (!%p26_p0, %s28_s20), %s1486_s17 }
   0x8   : > { %p78_p3 = por %p77_p2, %p76_p1  ;;  %p30_p4 = scmp.ge.s32.totalorder %s1838_s20, 2 }
   0x9   : > { %s64_s21 = ssub.s32 %s1482_s16, %s1836_s19  ;;  %p1193_p6 = scmp.ge.s32.totalorder %s1490_s18, 16 }
   0xa   : > { %s1840_s20 = smov (%p30_p4, %s1838_s20), 0 }
   0xb   : > { %s65_s22 = ssub.s32 %s1486_s17, %s1840_s20  ;;  %156 = sbr.rel (%p1193_p6) target bundleno = 55 (0x37), region = 16 }
   0xc   : > { %s66_s23 = sor.u32 %s65_s22, %s64_s21 }
   0xd   : > { %p67_p5 = scmp.eq.s32.totalorder %s66_s23, 0 }
   0xf   : > { %s1564_s25 = scalar_select %p67_p5, %s1470_s13, %s69_s24  }
  0x10   : > { %172 = sbr.rel (!%p78_p3) target bundleno = 55 (0x37), region = 24  ;;  %s174_s26 = sand.u32 (%p78_p3), 1, %s1470_s13  }
  0x11   : > { %s1196_s27 = sshll.u32 (%p78_p3), %s1486_s17, 1  ;;  %s1194_s28 = sshll.u32 (%p78_p3), %s174_s26, 9 }
  0x12   : > { %s1278_s29 = sshll.u32 (%p78_p3), %s1482_s16, 8  ;;  %s1578_s8 = scalar_lea.vmem (%p78_p3), [#allocation3], %s1194_s28 }
  0x13   : > { %s180_s30 = sadd.s32 (%p78_p3), %s1278_s29, %s1196_s27 }
  0x14   : > { %s1198_s4 = sshll.u32 (%p78_p3), %s180_s30, 2 }
  0x15   : > { %s1573_s7 = scalar_lea.vmem %s1826_s1, %s1198_s4 }
  0x16   : > { %v337_v0 = vld [vmem:[%s1573_s7] sm:$0xff]  ;;  %v339_v1 = vld [vmem:[%s1573_s7 + $0x10] sm:$0xff] }
  0x17   : > { %v341_v2 = vld [vmem:[%s1573_s7 + $0x20] sm:$0xff]  ;;  %338 = vst [vmem:[%s1578_s8] sm:$0xff] %v337_v0  ;;  %340 = vst [vmem:[%s1578_s8 + $0x8] sm:$0xff] %v339_v1  ;;  %v343_v3 = vld [vmem:[%s1573_s7 + $0x30] sm:$0xff] }
  0x18   : > { %342 = vst [vmem:[%s1578_s8 + $0x10] sm:$0xff] %v341_v2  ;;  %v345_v4 = vld [vmem:[%s1573_s7 + $0x40] sm:$0xff]  ;;  %v347_v5 = vld [vmem:[%s1573_s7 + $0x50] sm:$0xff]  ;;  %344 = vst [vmem:[%s1578_s8 + $0x18] sm:$0xff] %v343_v3 }
  0x19   : > { %346 = vst [vmem:[%s1578_s8 + $0x20] sm:$0xff] %v345_v4  ;;  %348 = vst [vmem:[%s1578_s8 + $0x28] sm:$0xff] %v347_v5  ;;  %v349_v6 = vld [vmem:[%s1573_s7 + $0x60] sm:$0xff]  ;;  %v351_v7 = vld [vmem:[%s1573_s7 + $0x70] sm:$0xff] }
  0x1a   : > { %v353_v8 = vld [vmem:[%s1573_s7 + $0x80] sm:$0xff]  ;;  %350 = vst [vmem:[%s1578_s8 + $0x30] sm:$0xff] %v349_v6  ;;  %352 = vst [vmem:[%s1578_s8 + $0x38] sm:$0xff] %v351_v7  ;;  %v355_v9 = vld [vmem:[%s1573_s7 + $0x90] sm:$0xff] }
  0x1b   : > { %354 = vst [vmem:[%s1578_s8 + $0x40] sm:$0xff] %v353_v8  ;;  %v357_v10 = vld [vmem:[%s1573_s7 + $0xa0] sm:$0xff]  ;;  %v359_v11 = vld [vmem:[%s1573_s7 + $0xb0] sm:$0xff]  ;;  %356 = vst [vmem:[%s1578_s8 + $0x48] sm:$0xff] %v355_v9 }
  0x1c   : > { %358 = vst [vmem:[%s1578_s8 + $0x50] sm:$0xff] %v357_v10  ;;  %360 = vst [vmem:[%s1578_s8 + $0x58] sm:$0xff] %v359_v11  ;;  %v361_v12 = vld [vmem:[%s1573_s7 + $0xc0] sm:$0xff]  ;;  %v363_v13 = vld [vmem:[%s1573_s7 + $0xd0] sm:$0xff] }
  0x1d   : > { %v365_v14 = vld [vmem:[%s1573_s7 + $0xe0] sm:$0xff]  ;;  %362 = vst [vmem:[%s1578_s8 + $0x60] sm:$0xff] %v361_v12  ;;  %364 = vst [vmem:[%s1578_s8 + $0x68] sm:$0xff] %v363_v13  ;;  %v367_v15 = vld [vmem:[%s1573_s7 + $0xf0] sm:$0xff] }
  0x1e   : > { %366 = vst [vmem:[%s1578_s8 + $0x70] sm:$0xff] %v365_v14  ;;  %v369_v16 = vld [vmem:[%s1573_s7 + $0x100] sm:$0xff]  ;;  %v371_v17 = vld [vmem:[%s1573_s7 + $0x110] sm:$0xff]  ;;  %368 = vst [vmem:[%s1578_s8 + $0x78] sm:$0xff] %v367_v15 }
  0x1f   : > { %370 = vst [vmem:[%s1578_s8 + $0x80] sm:$0xff] %v369_v16  ;;  %372 = vst [vmem:[%s1578_s8 + $0x88] sm:$0xff] %v371_v17  ;;  %v373_v18 = vld [vmem:[%s1573_s7 + $0x120] sm:$0xff]  ;;  %v375_v19 = vld [vmem:[%s1573_s7 + $0x130] sm:$0xff] }
  0x20   : > { %v377_v20 = vld [vmem:[%s1573_s7 + $0x140] sm:$0xff]  ;;  %374 = vst [vmem:[%s1578_s8 + $0x90] sm:$0xff] %v373_v18  ;;  %376 = vst [vmem:[%s1578_s8 + $0x98] sm:$0xff] %v375_v19  ;;  %v379_v21 = vld [vmem:[%s1573_s7 + $0x150] sm:$0xff] }
  0x21   : > { %378 = vst [vmem:[%s1578_s8 + $0xa0] sm:$0xff] %v377_v20  ;;  %v381_v22 = vld [vmem:[%s1573_s7 + $0x160] sm:$0xff]  ;;  %v383_v23 = vld [vmem:[%s1573_s7 + $0x170] sm:$0xff]  ;;  %380 = vst [vmem:[%s1578_s8 + $0xa8] sm:$0xff] %v379_v21 }
  0x22   : > { %382 = vst [vmem:[%s1578_s8 + $0xb0] sm:$0xff] %v381_v22  ;;  %384 = vst [vmem:[%s1578_s8 + $0xb8] sm:$0xff] %v383_v23  ;;  %v385_v24 = vld [vmem:[%s1573_s7 + $0x180] sm:$0xff]  ;;  %v387_v25 = vld [vmem:[%s1573_s7 + $0x190] sm:$0xff] }
  0x23   : > { %v389_v26 = vld [vmem:[%s1573_s7 + $0x1a0] sm:$0xff]  ;;  %386 = vst [vmem:[%s1578_s8 + $0xc0] sm:$0xff] %v385_v24  ;;  %388 = vst [vmem:[%s1578_s8 + $0xc8] sm:$0xff] %v387_v25  ;;  %v391_v27 = vld [vmem:[%s1573_s7 + $0x1b0] sm:$0xff] }
  0x24   : > { %390 = vst [vmem:[%s1578_s8 + $0xd0] sm:$0xff] %v389_v26  ;;  %v393_v28 = vld [vmem:[%s1573_s7 + $0x1c0] sm:$0xff]  ;;  %v395_v29 = vld [vmem:[%s1573_s7 + $0x1d0] sm:$0xff]  ;;  %392 = vst [vmem:[%s1578_s8 + $0xd8] sm:$0xff] %v391_v27 }
  0x25   : > { %394 = vst [vmem:[%s1578_s8 + $0xe0] sm:$0xff] %v393_v28  ;;  %396 = vst [vmem:[%s1578_s8 + $0xe8] sm:$0xff] %v395_v29  ;;  %v397_v30 = vld [vmem:[%s1573_s7 + $0x1e0] sm:$0xff]  ;;  %v399_v31 = vld [vmem:[%s1573_s7 + $0x1f0] sm:$0xff] }
  0x26   : > { %v401_v32 = vld [vmem:[%s1573_s7 + $0x200] sm:$0xff]  ;;  %398 = vst [vmem:[%s1578_s8 + $0xf0] sm:$0xff] %v397_v30  ;;  %400 = vst [vmem:[%s1578_s8 + $0xf8] sm:$0xff] %v399_v31  ;;  %v403_v33 = vld [vmem:[%s1573_s7 + $0x210] sm:$0xff] }
  0x27   : > { %402 = vst [vmem:[%s1578_s8 + $0x100] sm:$0xff] %v401_v32  ;;  %v405_v34 = vld [vmem:[%s1573_s7 + $0x220] sm:$0xff]  ;;  %v407_v35 = vld [vmem:[%s1573_s7 + $0x230] sm:$0xff]  ;;  %404 = vst [vmem:[%s1578_s8 + $0x108] sm:$0xff] %v403_v33 }
  0x28   : > { %406 = vst [vmem:[%s1578_s8 + $0x110] sm:$0xff] %v405_v34  ;;  %408 = vst [vmem:[%s1578_s8 + $0x118] sm:$0xff] %v407_v35  ;;  %v409_v36 = vld [vmem:[%s1573_s7 + $0x240] sm:$0xff]  ;;  %v411_v37 = vld [vmem:[%s1573_s7 + $0x250] sm:$0xff] }
  0x29   : > { %v413_v38 = vld [vmem:[%s1573_s7 + $0x260] sm:$0xff]  ;;  %410 = vst [vmem:[%s1578_s8 + $0x120] sm:$0xff] %v409_v36  ;;  %412 = vst [vmem:[%s1578_s8 + $0x128] sm:$0xff] %v411_v37  ;;  %v415_v39 = vld [vmem:[%s1573_s7 + $0x270] sm:$0xff] }
  0x2a   : > { %414 = vst [vmem:[%s1578_s8 + $0x130] sm:$0xff] %v413_v38  ;;  %v417_v40 = vld [vmem:[%s1573_s7 + $0x280] sm:$0xff]  ;;  %v419_v41 = vld [vmem:[%s1573_s7 + $0x290] sm:$0xff]  ;;  %416 = vst [vmem:[%s1578_s8 + $0x138] sm:$0xff] %v415_v39 }
  0x2b   : > { %418 = vst [vmem:[%s1578_s8 + $0x140] sm:$0xff] %v417_v40  ;;  %420 = vst [vmem:[%s1578_s8 + $0x148] sm:$0xff] %v419_v41  ;;  %v421_v42 = vld [vmem:[%s1573_s7 + $0x2a0] sm:$0xff]  ;;  %v423_v43 = vld [vmem:[%s1573_s7 + $0x2b0] sm:$0xff] }
  0x2c   : > { %v425_v44 = vld [vmem:[%s1573_s7 + $0x2c0] sm:$0xff]  ;;  %422 = vst [vmem:[%s1578_s8 + $0x150] sm:$0xff] %v421_v42  ;;  %424 = vst [vmem:[%s1578_s8 + $0x158] sm:$0xff] %v423_v43  ;;  %v427_v45 = vld [vmem:[%s1573_s7 + $0x2d0] sm:$0xff] }
  0x2d   : > { %426 = vst [vmem:[%s1578_s8 + $0x160] sm:$0xff] %v425_v44  ;;  %v429_v46 = vld [vmem:[%s1573_s7 + $0x2e0] sm:$0xff]  ;;  %v431_v47 = vld [vmem:[%s1573_s7 + $0x2f0] sm:$0xff]  ;;  %428 = vst [vmem:[%s1578_s8 + $0x168] sm:$0xff] %v427_v45 }
  0x2e   : > { %430 = vst [vmem:[%s1578_s8 + $0x170] sm:$0xff] %v429_v46  ;;  %432 = vst [vmem:[%s1578_s8 + $0x178] sm:$0xff] %v431_v47  ;;  %v433_v48 = vld [vmem:[%s1573_s7 + $0x300] sm:$0xff]  ;;  %v435_v49 = vld [vmem:[%s1573_s7 + $0x310] sm:$0xff] }
  0x2f   : > { %v437_v50 = vld [vmem:[%s1573_s7 + $0x320] sm:$0xff]  ;;  %434 = vst [vmem:[%s1578_s8 + $0x180] sm:$0xff] %v433_v48  ;;  %436 = vst [vmem:[%s1578_s8 + $0x188] sm:$0xff] %v435_v49  ;;  %v439_v51 = vld [vmem:[%s1573_s7 + $0x330] sm:$0xff] }
  0x30   : > { %438 = vst [vmem:[%s1578_s8 + $0x190] sm:$0xff] %v437_v50  ;;  %v441_v52 = vld [vmem:[%s1573_s7 + $0x340] sm:$0xff]  ;;  %v443_v53 = vld [vmem:[%s1573_s7 + $0x350] sm:$0xff]  ;;  %440 = vst [vmem:[%s1578_s8 + $0x198] sm:$0xff] %v439_v51 }
  0x31   : > { %442 = vst [vmem:[%s1578_s8 + $0x1a0] sm:$0xff] %v441_v52  ;;  %444 = vst [vmem:[%s1578_s8 + $0x1a8] sm:$0xff] %v443_v53  ;;  %v445_v54 = vld [vmem:[%s1573_s7 + $0x360] sm:$0xff]  ;;  %v447_v55 = vld [vmem:[%s1573_s7 + $0x370] sm:$0xff] }
  0x32   : > { %v449_v56 = vld [vmem:[%s1573_s7 + $0x380] sm:$0xff]  ;;  %446 = vst [vmem:[%s1578_s8 + $0x1b0] sm:$0xff] %v445_v54  ;;  %448 = vst [vmem:[%s1578_s8 + $0x1b8] sm:$0xff] %v447_v55  ;;  %v451_v57 = vld [vmem:[%s1573_s7 + $0x390] sm:$0xff] }
  0x33   : > { %450 = vst [vmem:[%s1578_s8 + $0x1c0] sm:$0xff] %v449_v56  ;;  %v453_v58 = vld [vmem:[%s1573_s7 + $0x3a0] sm:$0xff]  ;;  %v455_v59 = vld [vmem:[%s1573_s7 + $0x3b0] sm:$0xff]  ;;  %452 = vst [vmem:[%s1578_s8 + $0x1c8] sm:$0xff] %v451_v57 }
  0x34   : > { %454 = vst [vmem:[%s1578_s8 + $0x1d0] sm:$0xff] %v453_v58  ;;  %456 = vst [vmem:[%s1578_s8 + $0x1d8] sm:$0xff] %v455_v59  ;;  %v457_v60 = vld [vmem:[%s1573_s7 + $0x3c0] sm:$0xff]  ;;  %v459_v61 = vld [vmem:[%s1573_s7 + $0x3d0] sm:$0xff] }
  0x35   : > { %v461_v62 = vld [vmem:[%s1573_s7 + $0x3e0] sm:$0xff]  ;;  %458 = vst [vmem:[%s1578_s8 + $0x1e0] sm:$0xff] %v457_v60  ;;  %460 = vst [vmem:[%s1578_s8 + $0x1e8] sm:$0xff] %v459_v61  ;;  %v463_v63 = vld [vmem:[%s1573_s7 + $0x3f0] sm:$0xff] }
  0x36   : > { %462 = vst [vmem:[%s1578_s8 + $0x1f0] sm:$0xff] %v461_v62  ;;  %464 = vst [vmem:[%s1578_s8 + $0x1f8] sm:$0xff] %v463_v63 }
  0x37 PF: > { %p1199_p7 = scmp.ge.s32.totalorder %s1490_s18, 1  ;;  %p477_p8 = scmp.lt.s32.totalorder %s1490_s18, 17 }
  0x39   : > { %p478_p9 = pnand %p1199_p7, %p477_p8 }
  0x3a   : > { %s484_s9 = sand.u32 (!%p478_p9), 1, %s1466_s12   ;;  %s1201_s10 = sshll.u32 (!%p478_p9), %s1474_s14, 2 }
  0x3b   : > { %481 = sbr.rel (%p478_p9) target bundleno = 351 (0x15f), region = 66  ;;  %s1200_s11 = sshll.u32 (!%p478_p9), %s484_s9, 9 }
  0x3c   : > { %p527_p10 = scmp.lt.s32.totalorder (!%p478_p9), %s1201_s10, 31  ;;  %s1203_s21 = sshll.u32 (!%p478_p9), %s1478_s15, 1 }
  0x3d   : > { %p537_p11 = scmp.lt.s32.totalorder (!%p478_p9), %s1203_s21, 3  ;;  %s1727_s5 = scalar_lea.vmem (!%p478_p9), [#allocation3], %s1200_s11 }
  0x3e   : > { %p1206_p12 = scmp.ne.s32.totalorder (!%p478_p9), %s1474_s14, 0 }
  0x40   : > { %s1842_s10 = smov (!%p527_p10, %s1201_s10), 31  ;;  %s1844_s21 = smov (!%p537_p11, %s1203_s21), 3 }
  0x41   : > { %s1202_s22 = sshll.u32 %s1842_s10, 2  ;;  %s539_s12 = scalar_lea.vmem %s1827_s2, %s1844_s21 }
  0x42   : > { %s1713_s26 = scalar_lea.vmem %s1825_s0, %s1202_s22  ;;  %s1205_s29 = sshll.u32 %s1844_s21, 3 }
  0x43   : > { %s1725_s15 = scalar_lea.vmem %s1828_s3, %s1205_s29  ;;  %554 = sbr.rel (%p1206_p12) target bundleno = 74 (0x4a), region = 74 }
  0x48   : > { %v1492_v0 = vmov 0.0  }
  0x49   : > { %555 = vst [vmem:[#allocation2] sm:$0xff] %v1492_v0  ;;  %556 = vst [vmem:[#allocation2 + $0x8] sm:$0xff] %v1492_v0 }
  0x4a PF: > { %v1336_v1 = vld [vmem:[%s1727_s5 + $0x74] ss:$8 sps:$4 sm:$0xff]   ;;  %v1340_v3 = vld [vmem:[%s1727_s5 + $0x70] ss:$8 sps:$4 sm:$0xff]   ;;  %v1342_v5 = vld [vmem:[%s1727_s5 + $0x64] ss:$8 sps:$4 sm:$0xff]  }
  0x4b   : > { %v1338_v2 = vld [vmem:[%s1727_s5 + $0x174] ss:$8 sps:$4 sm:$0xff]   ;;  %959 = vmatprep.subr.bf16.mxu0 %v1336_v1  ;;  %v1341_v4 = vld [vmem:[%s1727_s5 + $0x170] ss:$8 sps:$4 sm:$0xff]   ;;  %v1344_v6 = vld [vmem:[%s1727_s5 + $0x164] ss:$8 sps:$4 sm:$0xff]  }
  0x4c   : > { %1000 = vmatprep.subr.bf16.mxu1 %v1338_v2  ;;  %960 = vmatpush1.bf16.msra.mxu0 %v1340_v3  ;;  %v1346_v7 = vld [vmem:[%s1727_s5 + $0x60] ss:$8 sps:$4 sm:$0xff]   ;;  %v1348_v9 = vld [vmem:[%s1727_s5 + $0x54] ss:$8 sps:$4 sm:$0xff]   ;;  %v1352_v11 = vld [vmem:[%s1727_s5 + $0x50] ss:$8 sps:$4 sm:$0xff]  }
  0x4d   : > { %1001 = vmatpush1.bf16.msra.mxu1 %v1341_v4  ;;  %961 = vmatprep.subr.bf16.mxu0 %v1342_v5  ;;  %v1347_v8 = vld [vmem:[%s1727_s5 + $0x160] ss:$8 sps:$4 sm:$0xff]   ;;  %v1350_v10 = vld [vmem:[%s1727_s5 + $0x154] ss:$8 sps:$4 sm:$0xff]   ;;  %v1353_v12 = vld [vmem:[%s1727_s5 + $0x150] ss:$8 sps:$4 sm:$0xff]  }
  0x4e   : > { %1002 = vmatprep.subr.bf16.mxu1 %v1344_v6  ;;  %v1354_v13 = vld [vmem:[%s1727_s5 + $0x44] ss:$8 sps:$4 sm:$0xff]   ;;  %v1358_v15 = vld [vmem:[%s1727_s5 + $0x40] ss:$8 sps:$4 sm:$0xff]   ;;  %v1360_v17 = vld [vmem:[%s1727_s5 + $0x34] ss:$8 sps:$4 sm:$0xff]  }
  0x4f   : > { %v1356_v14 = vld [vmem:[%s1727_s5 + $0x144] ss:$8 sps:$4 sm:$0xff]   ;;  %v1359_v16 = vld [vmem:[%s1727_s5 + $0x140] ss:$8 sps:$4 sm:$0xff]   ;;  %v1362_v18 = vld [vmem:[%s1727_s5 + $0x134] ss:$8 sps:$4 sm:$0xff]  }
  0x50   : > { %962 = vmatpush1.bf16.msra.mxu0 %v1346_v7  ;;  %v1364_v19 = vld [vmem:[%s1727_s5 + $0x30] ss:$8 sps:$4 sm:$0xff]   ;;  %v1366_v21 = vld [vmem:[%s1727_s5 + $0x24] ss:$8 sps:$4 sm:$0xff]   ;;  %v1370_v23 = vld [vmem:[%s1727_s5 + $0x20] ss:$8 sps:$4 sm:$0xff]  }
  0x51   : > { %1003 = vmatpush1.bf16.msra.mxu1 %v1347_v8  ;;  %963 = vmatprep.subr.bf16.mxu0 %v1348_v9  ;;  %v1365_v20 = vld [vmem:[%s1727_s5 + $0x130] ss:$8 sps:$4 sm:$0xff]   ;;  %v1368_v22 = vld [vmem:[%s1727_s5 + $0x124] ss:$8 sps:$4 sm:$0xff]   ;;  %v1371_v24 = vld [vmem:[%s1727_s5 + $0x120] ss:$8 sps:$4 sm:$0xff]  }
  0x52   : > { %1004 = vmatprep.subr.bf16.mxu1 %v1350_v10  ;;  %v1372_v25 = vld [vmem:[%s1727_s5 + $0x14] ss:$8 sps:$4 sm:$0xff]   ;;  %v1376_v27 = vld [vmem:[%s1727_s5 + $0x10] ss:$8 sps:$4 sm:$0xff]   ;;  %v1378_v29 = vld [vmem:[%s1727_s5 + $0x4] ss:$8 sps:$4 sm:$0xff]  }
  0x53   : > { %v1374_v26 = vld [vmem:[%s1727_s5 + $0x114] ss:$8 sps:$4 sm:$0xff]   ;;  %v1377_v28 = vld [vmem:[%s1727_s5 + $0x110] ss:$8 sps:$4 sm:$0xff]   ;;  %v1380_v30 = vld [vmem:[%s1727_s5 + $0x104] ss:$8 sps:$4 sm:$0xff]  }
  0x54   : > { %964 = vmatpush1.bf16.msra.mxu0 %v1352_v11  ;;  %v1382_v31 = vld [vmem:[%s1727_s5] ss:$8 sps:$4 sm:$0xff]   ;;  %v1384_v33 = vld [vmem:[%s1727_s5 + $0xf4] ss:$8 sps:$4 sm:$0xff]   ;;  %v1388_v35 = vld [vmem:[%s1727_s5 + $0xf0] ss:$8 sps:$4 sm:$0xff]  }
  0x55   : > { %1005 = vmatpush1.bf16.msra.mxu1 %v1353_v12  ;;  %965 = vmatprep.subr.bf16.mxu0 %v1354_v13  ;;  %v1383_v32 = vld [vmem:[%s1727_s5 + $0x100] ss:$8 sps:$4 sm:$0xff]   ;;  %v1386_v34 = vld [vmem:[%s1727_s5 + $0x1f4] ss:$8 sps:$4 sm:$0xff]   ;;  %v1389_v36 = vld [vmem:[%s1727_s5 + $0x1f0] ss:$8 sps:$4 sm:$0xff]  }
  0x56   : > { %1006 = vmatprep.subr.bf16.mxu1 %v1356_v14  ;;  %v1390_v37 = vld [vmem:[%s1727_s5 + $0xe4] ss:$8 sps:$4 sm:$0xff]   ;;  %v1394_v39 = vld [vmem:[%s1727_s5 + $0xe0] ss:$8 sps:$4 sm:$0xff]   ;;  %v1396_v41 = vld [vmem:[%s1727_s5 + $0xd4] ss:$8 sps:$4 sm:$0xff]  }
  0x57   : > { %v1392_v38 = vld [vmem:[%s1727_s5 + $0x1e4] ss:$8 sps:$4 sm:$0xff]   ;;  %v1395_v40 = vld [vmem:[%s1727_s5 + $0x1e0] ss:$8 sps:$4 sm:$0xff]   ;;  %v1398_v42 = vld [vmem:[%s1727_s5 + $0x1d4] ss:$8 sps:$4 sm:$0xff]  }
  0x58   : > { %966 = vmatpush1.bf16.msra.mxu0 %v1358_v15  ;;  %v1400_v43 = vld [vmem:[%s1727_s5 + $0xd0] ss:$8 sps:$4 sm:$0xff]   ;;  %v1402_v45 = vld [vmem:[%s1727_s5 + $0xc4] ss:$8 sps:$4 sm:$0xff]   ;;  %v1406_v50 = vld [vmem:[%s1727_s5 + $0xc0] ss:$8 sps:$4 sm:$0xff]  }
  0x59   : > { %1007 = vmatpush1.bf16.msra.mxu1 %v1359_v16  ;;  %967 = vmatprep.subr.bf16.mxu0 %v1360_v17  ;;  %v1401_v44 = vld [vmem:[%s1727_s5 + $0x1d0] ss:$8 sps:$4 sm:$0xff]   ;;  %v1404_v46 = vld [vmem:[%s1727_s5 + $0x1c4] ss:$8 sps:$4 sm:$0xff]   ;;  %v1407_v51 = vld [vmem:[%s1727_s5 + $0x1c0] ss:$8 sps:$4 sm:$0xff]  }
  0x5a   : > { %1008 = vmatprep.subr.bf16.mxu1 %v1362_v18  ;;  %v559_v47 = vld [vmem:[%s1713_s26] sm:$0xff]  ;;  %v560_v49 = vld [vmem:[%s1713_s26 + $0x8] sm:$0xff]  ;;  %v1414_v57 = vld [vmem:[%s1727_s5 + $0xa4] ss:$8 sps:$4 sm:$0xff]   ;;  %p1275_p13 = scmp.ne.s32.totalorder %s1474_s14, 7 }
  0x5b   : > { %v1208_v48 = vcombine.high %v559_v47, %v559_v47  ;;  %v1210_v52 = vcombine.high %v560_v49, %v560_v49  ;;  %v1408_v53 = vld [vmem:[%s1727_s5 + $0xb4] ss:$8 sps:$4 sm:$0xff]   ;;  %v1412_v55 = vld [vmem:[%s1727_s5 + $0xb0] ss:$8 sps:$4 sm:$0xff]   ;;  %v1416_v58 = vld [vmem:[%s1727_s5 + $0x1a4] ss:$8 sps:$4 sm:$0xff]   ;;  %v1207_v5 = vcombine.low %v559_v47, %v559_v47  ;;  %v1209_v6 = vcombine.low %v560_v49, %v560_v49 }
  0x5c   : > { %968 = vmatpush1.bf16.msra.mxu0 %v1364_v19  ;;  %v1410_v54 = vld [vmem:[%s1727_s5 + $0x1b4] ss:$8 sps:$4 sm:$0xff]   ;;  %v1413_v56 = vld [vmem:[%s1727_s5 + $0x1b0] ss:$8 sps:$4 sm:$0xff]   ;;  %v1418_v59 = vld [vmem:[%s1727_s5 + $0xa0] ss:$8 sps:$4 sm:$0xff]  }
  0x5d   : > { %1009 = vmatpush1.bf16.msra.mxu1 %v1365_v20  ;;  %969 = vmatprep.subr.bf16.mxu0 %v1366_v21  ;;  %v1419_v60 = vld [vmem:[%s1727_s5 + $0x1a0] ss:$8 sps:$4 sm:$0xff]   ;;  %v1420_v61 = vld [vmem:[%s1727_s5 + $0x94] ss:$8 sps:$4 sm:$0xff]   ;;  %v1424_v63 = vld [vmem:[%s1727_s5 + $0x90] ss:$8 sps:$4 sm:$0xff]  }
  0x5e   : > { %1010 = vmatprep.subr.bf16.mxu1 %v1368_v22  ;;  %991 = vmatprep.mubr.bf16.mxu0 %v1208_v48  ;;  %v1422_v62 = vld [vmem:[%s1727_s5 + $0x194] ss:$8 sps:$4 sm:$0xff]   ;;  %v1425_v0 = vld [vmem:[%s1727_s5 + $0x190] ss:$8 sps:$4 sm:$0xff]   ;;  %v1426_v1 = vld [vmem:[%s1727_s5 + $0x84] ss:$8 sps:$4 sm:$0xff]  }
  0x5f   : > { %1032 = vmatprep.mubr.bf16.mxu1 %v1210_v52  ;;  %v1428_v2 = vld [vmem:[%s1727_s5 + $0x184] ss:$8 sps:$4 sm:$0xff]   ;;  %v1430_v3 = vld [vmem:[%s1727_s5 + $0x80] ss:$8 sps:$4 sm:$0xff]   ;;  %v557_v8 = vld [vmem:[#allocation2] sm:$0xff] }
  0x60   : > { %970 = vmatpush1.bf16.msra.mxu0 %v1370_v23  ;;  %v1431_v4 = vld [vmem:[%s1727_s5 + $0x180] ss:$8 sps:$4 sm:$0xff]   ;;  %v558_v12 = vld [vmem:[#allocation2 + $0x8] sm:$0xff] }
  0x61   : > { %1011 = vmatpush1.bf16.msra.mxu1 %v1371_v24  ;;  %971 = vmatprep.subr.bf16.mxu0 %v1372_v25 }
  0x62   : > { %1012 = vmatprep.subr.bf16.mxu1 %v1374_v26 }
  0x64   : > { %972 = vmatpush1.bf16.msra.mxu0 %v1376_v27 }
  0x65   : > { %1013 = vmatpush1.bf16.msra.mxu1 %v1377_v28  ;;  %973 = vmatprep.subr.bf16.mxu0 %v1378_v29 }
  0x66   : > { %1014 = vmatprep.subr.bf16.mxu1 %v1380_v30 }
  0x68   : > { %974 = vmatpush1.bf16.msra.mxu0 %v1382_v31 }
  0x69   : > { %1015 = vmatpush1.bf16.msra.mxu1 %v1383_v32  ;;  %975 = vmatprep.subr.bf16.mxu0 %v1384_v33 }
  0x6a   : > { %1016 = vmatprep.subr.bf16.mxu1 %v1386_v34 }
  0x6c   : > { %976 = vmatpush2.bf16.msra.mxu0 %v1388_v35 }
  0x6d   : > { %1017 = vmatpush2.bf16.msra.mxu1 %v1389_v36  ;;  %977 = vmatprep.subr.bf16.mxu0 %v1390_v37 }
  0x6e   : > { %1018 = vmatprep.subr.bf16.mxu1 %v1392_v38 }
  0x70   : > { %978 = vmatpush2.bf16.msra.mxu0 %v1394_v39 }
  0x71   : > { %1019 = vmatpush2.bf16.msra.mxu1 %v1395_v40  ;;  %979 = vmatprep.subr.bf16.mxu0 %v1396_v41 }
  0x72   : > { %1020 = vmatprep.subr.bf16.mxu1 %v1398_v42 }
  0x74   : > { %980 = vmatpush2.bf16.msra.mxu0 %v1400_v43 }
  0x75   : > { %1021 = vmatpush2.bf16.msra.mxu1 %v1401_v44  ;;  %981 = vmatprep.subr.bf16.mxu0 %v1402_v45 }
  0x76   : > { %1022 = vmatprep.subr.bf16.mxu1 %v1404_v46 }
  0x78   : > { %982 = vmatpush2.bf16.msra.mxu0 %v1406_v50 }
  0x79   : > { %1023 = vmatpush2.bf16.msra.mxu1 %v1407_v51  ;;  %983 = vmatprep.subr.bf16.mxu0 %v1408_v53 }
  0x7a   : > { %1024 = vmatprep.subr.bf16.mxu1 %v1410_v54 }
  0x7c   : > { %984 = vmatpush2.bf16.msra.mxu0 %v1412_v55 }
  0x7d   : > { %1025 = vmatpush2.bf16.msra.mxu1 %v1413_v56  ;;  %985 = vmatprep.subr.bf16.mxu0 %v1414_v57 }
  0x7e   : > { %1026 = vmatprep.subr.bf16.mxu1 %v1416_v58 }
  0x80   : > { %986 = vmatpush2.bf16.msra.mxu0 %v1418_v59 }
  0x81   : > { %1027 = vmatpush2.bf16.msra.mxu1 %v1419_v60  ;;  %987 = vmatprep.subr.bf16.mxu0 %v1420_v61 }
  0x82   : > { %1028 = vmatprep.subr.bf16.mxu1 %v1422_v62 }
  0x84   : > { %988 = vmatpush2.bf16.msra.mxu0 %v1424_v63 }
  0x85   : > { %1029 = vmatpush2.bf16.msra.mxu1 %v1425_v0  ;;  %989 = vmatprep.subr.bf16.mxu0 %v1426_v1 }
  0x86   : > { %1030 = vmatprep.subr.bf16.mxu1 %v1428_v2 }
  0x88   : > { %990 = vmatpush2.bf16.msra.mxu0 %v1430_v3 }
  0x89   : > { %1031 = vmatpush2.bf16.msra.mxu1 %v1431_v4 }
  0x8b   : > { %992 = vmatmul.mubr.bf16.vlgmr.msra.gmra.mxu0 %v1207_v5 }
  0x8c   : > { %1033 = vmatmul.mubr.bf16.vlgmr.msra.gmra.mxu1 %v1209_v6 }
 0x14b   : > { %v993_v7 = vpop.f32.mrf.mxu0 }
 0x14c   : > { %v1034_v9 = vpop.f32.mrf.mxu1 }
 0x14d   : > { %v1035_v10 = vadd.f32 %v1034_v9, %v993_v7  ;;  %v995_v11 = vpop.f32.mrf.mxu0 }
 0x14e   : > { %v1036_v13 = vpop.f32.mrf.mxu1 }
 0x14f   : > { %v1041_v14 = vadd.f32 %v1035_v10, %v557_v8  ;;  %v1037_v15 = vadd.f32 %v1036_v13, %v995_v11  ;;  %v997_v16 = vpop.f32.mrf.mxu0  ;;  %1048 = sbr.rel (%p1275_p13) target bundleno = 351 (0x15f), region = 78 }
 0x150   : > { %v1038_v17 = vpop.f32.mrf.mxu1 }
 0x151   : > { %1043 = vst [vmem:[#allocation2] sm:$0xff] %v1041_v14  ;;  %v1042_v18 = vadd.f32 %v1037_v15, %v558_v12  ;;  %v998_v19 = vpop.f32.mrf.mxu0 }
 0x152   : > { %v1039_v20 = vpop.f32.mrf.mxu1 }
 0x153   : > { %1044 = vst [vmem:[#allocation2 + $0x8] sm:$0xff] %v1042_v18 }
 0x154   : > { %v1053_v21 = vlaneseq  ;;  %v1051_v23 = vld [vmem:[%s539_s12] sm:$0x3] }
 0x156   : > { %v1054_v22 = vshrl.u32 %v1053_v21, 7 }
 0x158   : > { %v1055_v24 = vsub.s32 0, %v1054_v22  ;;  %v1059_v25 = vsub.s32 1, %v1054_v22  ;;  %v1049_v26 = vld [vmem:[#allocation2] sm:$0xff] }
 0x15a   : > { %v1050_v27 = vld [vmem:[#allocation2 + $0x8] sm:$0xff]  ;;  %v1056_v28 = vrot.slane %v1051_v23, %v1055_v24  ;;  %v1060_v29 = vrot.slane %v1051_v23, %v1059_v25 }
 0x15c   : > { %v1063_v30 = vadd.f32 %v1056_v28, %v1049_v26  ;;  %v1064_v31 = vadd.f32 %v1060_v29, %v1050_v27 }
 0x15e   : > { %1065 = vst [vmem:[%s1725_s15] sm:$0xff] %v1063_v30  ;;  %1066 = vst [vmem:[%s1725_s15 + $0x8] sm:$0xff] %v1064_v31 }
 0x15f PF: > { %s13_s18 = sadd.s32 1, %s1490_s18   ;;  %s1829_s12 = smov %s1470_s13 }
 0x160   : > { %p10_p0 = scmp.ge.s32.totalorder %s13_s18, 18   ;;  %s1830_s13 = smov %s1564_s25 }
 0x161   : > { %s1831_s14 = smov %s1482_s16  ;;  %s1832_s15 = smov %s1486_s17 }
 0x162   : > { %s1833_s16 = smov %s1836_s19  ;;  %s1834_s17 = smov %s1840_s20 }
 0x163   :  { %12 = sbr.rel (!%p10_p0) target bundleno = 4 (0x4), region = 119 }

// kernel: encoder_mg_forward.21
= control target key start
LH: loop header
LB: loop body
LE: loop exit
PB: predicated region body
PF: predicated region fallthrough
CT: control target
= control target key end

     0   :  { %s1286_s18 = smov 0   ;;  %s1864_s0 = inlined_call_operand.vmem [shape: f32[2,1,512], index: 0, kind: input, shape index: {}]   ;;  %s1865_s1 = inlined_call_operand.vmem [shape: f32[512,32], index: 1, kind: input, shape index: {}]   ;;  %s1866_s2 = inlined_call_operand.vmem [shape: f32[32,512], index: 2, kind: input, shape index: {}]   ;;  %s1867_s3 = inlined_call_operand.vmem [shape: f32[1,512], index: 3, kind: input, shape index: {}]   ;;  %s1868_s4 = inlined_call_operand.vmem [shape: f32[1,512], index: 4, kind: input, shape index: {}]   ;;  %s1869_s5 = inlined_call_operand.vmem [shape: f32[2,1,512], index: 5, kind: output, shape index: {}]  }
   0x1 LB: > { %s1075_s19 = sadd.s32 4294967295, %s1252_s18   ;;  %p1079_p0 = scmp.ge.s32.totalorder %s1252_s18, 1  ;;  %s1252_s18 = sphi %s1286_s18, %s15_s18  }
   0x2   : > { %p186_p1 = scmp.lt.s32.totalorder %s1252_s18, 3 }
   0x4   : > { %p187_p2 = pnand %p1079_p0, %p186_p1 }
   0x6   : > { %190 = sbr.rel (%p187_p2) target bundleno = 515 (0x203), region = 40 }
   0xb   : > { %v1297_v0 = vld [vmem:[%s1865_s1 + $0xf8] sm:$0xff]  ;;  %v1319_v4 = vld [vmem:[%s1865_s1 + $0xf0] sm:$0xff]  ;;  %v1341_v8 = vld [vmem:[%s1865_s1 + $0xe8] sm:$0xff]  ;;  %p1458_p3 = scmp.lt.s32.totalorder %s1075_s19, 1  ;;  %v1870_v38 = vlaneseq  ;;  %vm629_vm0 = vcmask 261120  }
   0xc   : > { %v1302_v1 = vld [vmem:[%s1865_s1 + $0x1f8] sm:$0xff]  ;;  %1088 = vmatprep.subr.mxu0 %v1297_v0  ;;  %v1324_v5 = vld [vmem:[%s1865_s1 + $0x1f0] sm:$0xff]  ;;  %v1348_v9 = vld [vmem:[%s1865_s1 + $0x1e8] sm:$0xff] }
   0xd   : > { %v1307_v2 = vld [vmem:[%s1865_s1 + $0x78] sm:$0xff]  ;;  %1123 = vmatprep.subr.mxu1 %v1302_v1  ;;  %v1331_v6 = vld [vmem:[%s1865_s1 + $0x70] sm:$0xff]  ;;  %v1353_v10 = vld [vmem:[%s1865_s1 + $0x68] sm:$0xff]  ;;  %s1905_s19 = smov (!%p1458_p3, %s1075_s19), 1  ;;  %v1578_v47 = vshrl.u32 %v1870_v38, 7 }
   0xe   : > { %v1314_v3 = vld [vmem:[%s1865_s1 + $0x178] sm:$0xff]  ;;  %1089 = vmatpush3.msra.mxu0 %v1307_v2  ;;  %v1336_v7 = vld [vmem:[%s1865_s1 + $0x170] sm:$0xff]  ;;  %v1358_v11 = vld [vmem:[%s1865_s1 + $0x168] sm:$0xff]  ;;  %s1080_s15 = sshll.u32 %s1905_s19, 2 }
   0xf   : > { %1124 = vmatpush3.msra.mxu1 %v1314_v3  ;;  %1090 = vmatprep.subr.mxu0 %v1319_v4  ;;  %v1365_v12 = vld [vmem:[%s1865_s1 + $0xe0] sm:$0xff]  ;;  %v1389_v16 = vld [vmem:[%s1865_s1 + $0xd8] sm:$0xff]  ;;  %v1413_v20 = vld [vmem:[%s1865_s1 + $0xd0] sm:$0xff]  ;;  %1883 = vst [vmem:[#allocation2_spill] sm:$0xff] %v1578_v47  ;;  %s215_s7 = scalar_lea.vmem %s1864_s0, %s1080_s15  ;;  %v1634_v56 = vsub.s32 1, %v1578_v47  ;;  %v1651_v60 = vsub.s32 3, %v1578_v47  ;;  %s219_s8 = scalar_lea.vmem %s1869_s5, %s1080_s15 }
  0x10   : > { %1125 = vmatprep.subr.mxu1 %v1324_v5  ;;  %1091 = vmatpush3.msra.mxu0 %v1331_v6  ;;  %v1370_v13 = vld [vmem:[%s1865_s1 + $0x1e0] sm:$0xff]  ;;  %v1394_v17 = vld [vmem:[%s1865_s1 + $0x1d8] sm:$0xff]  ;;  %v1418_v21 = vld [vmem:[%s1865_s1 + $0x1d0] sm:$0xff]  ;;  %v1666_v63 = vsub.s32 0, %v1578_v47  ;;  %v1669_v38 = vsub.s32 2, %v1578_v47 }
  0x11   : > { %1126 = vmatpush3.msra.mxu1 %v1336_v7  ;;  %1092 = vmatprep.subr.mxu0 %v1341_v8  ;;  %v1377_v14 = vld [vmem:[%s1865_s1 + $0x60] sm:$0xff]  ;;  %v1401_v18 = vld [vmem:[%s1865_s1 + $0x58] sm:$0xff]  ;;  %v1425_v22 = vld [vmem:[%s1865_s1 + $0x50] sm:$0xff]  ;;  %1888 = vst [vmem:[#allocation7_spill] sm:$0xff] %v1634_v56 }
  0x12   : > { %1127 = vmatprep.subr.mxu1 %v1348_v9  ;;  %v1382_v15 = vld [vmem:[%s1865_s1 + $0x160] sm:$0xff]  ;;  %1093 = vmatpush3.msra.mxu0 %v1353_v10  ;;  %v1406_v19 = vld [vmem:[%s1865_s1 + $0x158] sm:$0xff]  ;;  %v1430_v23 = vld [vmem:[%s1865_s1 + $0x150] sm:$0xff] }
  0x13   : > { %1128 = vmatpush3.msra.mxu1 %v1358_v11  ;;  %1094 = vmatprep.subr.mxu0 %v1365_v12  ;;  %v1437_v24 = vld [vmem:[%s1865_s1 + $0xc8] sm:$0xff]  ;;  %v1467_v28 = vld [vmem:[%s1865_s1 + $0xc0] sm:$0xff]  ;;  %v1491_v32 = vld [vmem:[%s1865_s1 + $0xb8] sm:$0xff] }
  0x14   : > { %1129 = vmatprep.subr.mxu1 %v1370_v13  ;;  %1095 = vmatpush3.msra.mxu0 %v1377_v14  ;;  %v1442_v25 = vld [vmem:[%s1865_s1 + $0x1c8] sm:$0xff]  ;;  %v1472_v29 = vld [vmem:[%s1865_s1 + $0x1c0] sm:$0xff]  ;;  %v1496_v33 = vld [vmem:[%s1865_s1 + $0x1b8] sm:$0xff] }
  0x15   : > { %1130 = vmatpush3.msra.mxu1 %v1382_v15  ;;  %1096 = vmatprep.subr.mxu0 %v1389_v16  ;;  %v1449_v26 = vld [vmem:[%s1865_s1 + $0x48] sm:$0xff]  ;;  %v1479_v30 = vld [vmem:[%s1865_s1 + $0x40] sm:$0xff]  ;;  %v1503_v34 = vld [vmem:[%s1865_s1 + $0x38] sm:$0xff] }
  0x16   : > { %1131 = vmatprep.subr.mxu1 %v1394_v17  ;;  %1097 = vmatpush3.msra.mxu0 %v1401_v18  ;;  %v1454_v27 = vld [vmem:[%s1865_s1 + $0x148] sm:$0xff]  ;;  %v1484_v31 = vld [vmem:[%s1865_s1 + $0x140] sm:$0xff]  ;;  %v1508_v35 = vld [vmem:[%s1865_s1 + $0x138] sm:$0xff] }
  0x17   : > { %1132 = vmatpush3.msra.mxu1 %v1406_v19  ;;  %1098 = vmatprep.subr.mxu0 %v1413_v20  ;;  %v1521_v36 = vld [vmem:[%s1865_s1 + $0xb0] sm:$0xff]  ;;  %v1545_v41 = vld [vmem:[%s1865_s1 + $0xa8] sm:$0xff]  ;;  %v1570_v45 = vld [vmem:[%s1865_s1 + $0xa0] sm:$0xff] }
  0x18   : > { %1133 = vmatprep.subr.mxu1 %v1418_v21  ;;  %1099 = vmatpush3.msra.mxu0 %v1425_v22  ;;  %v1526_v37 = vld [vmem:[%s1865_s1 + $0x1b0] sm:$0xff]  ;;  %v1550_v42 = vld [vmem:[%s1865_s1 + $0x1a8] sm:$0xff]  ;;  %v1575_v46 = vld [vmem:[%s1865_s1 + $0x1a0] sm:$0xff] }
  0x19   : > { %1134 = vmatpush3.msra.mxu1 %v1430_v23  ;;  %1100 = vmatprep.subr.mxu0 %v1437_v24  ;;  %v1533_v39 = vld [vmem:[%s1865_s1 + $0x30] sm:$0xff]  ;;  %v1557_v43 = vld [vmem:[%s1865_s1 + $0x28] sm:$0xff]  ;;  %v1585_v48 = vld [vmem:[%s1865_s1 + $0x20] sm:$0xff] }
  0x1a   : > { %1135 = vmatprep.subr.mxu1 %v1442_v25  ;;  %1101 = vmatpush3.msra.mxu0 %v1449_v26  ;;  %v1538_v40 = vld [vmem:[%s1865_s1 + $0x130] sm:$0xff]  ;;  %v1562_v44 = vld [vmem:[%s1865_s1 + $0x128] sm:$0xff]  ;;  %v1590_v49 = vld [vmem:[%s1865_s1 + $0x120] sm:$0xff] }
  0x1b   : > { %1136 = vmatpush3.msra.mxu1 %v1454_v27  ;;  %1102 = vmatprep.subr.mxu0 %v1467_v28  ;;  %v1597_v50 = vld [vmem:[%s1865_s1 + $0x98] sm:$0xff]  ;;  %v1626_v54 = vld [vmem:[%s1865_s1 + $0x90] sm:$0xff]  ;;  %v1648_v59 = vld [vmem:[%s215_s7] sm:$0xf] }
  0x1c   : > { %1137 = vmatprep.subr.mxu1 %v1472_v29  ;;  %1103 = vmatpush3.msra.mxu0 %v1479_v30  ;;  %v1602_v51 = vld [vmem:[%s1865_s1 + $0x198] sm:$0xff]  ;;  %1886 = vst [vmem:[#allocation5_spill] sm:$0xff] %v1626_v54  ;;  %v1631_v55 = vld [vmem:[%s1865_s1 + $0x190] sm:$0xff]  ;;  %v1658_v61 = vld [vmem:[%s1865_s1 + $0x88] sm:$0xff] }
  0x1d   : > { %1138 = vmatpush3.msra.mxu1 %v1484_v31  ;;  %1104 = vmatprep.subr.mxu0 %v1491_v32  ;;  %v1614_v52 = vld [vmem:[%s1865_s1 + $0x18] sm:$0xff]  ;;  %1887 = vst [vmem:[#allocation6_spill] sm:$0xff] %v1631_v55  ;;  %v1641_v57 = vld [vmem:[%s1865_s1 + $0x10] sm:$0xff]  ;;  %1891 = vst [vmem:[#allocation10_spill] sm:$0xff] %v1658_v61 }
  0x1e   : > { %1139 = vmatprep.subr.mxu1 %v1496_v33  ;;  %1105 = vmatpush3.msra.mxu0 %v1503_v34  ;;  %1884 = vst [vmem:[#allocation3_spill] sm:$0xff] %v1614_v52  ;;  %v1619_v53 = vld [vmem:[%s1865_s1 + $0x118] sm:$0xff]  ;;  %1889 = vst [vmem:[#allocation8_spill] sm:$0xff] %v1641_v57  ;;  %v1646_v58 = vld [vmem:[%s1865_s1 + $0x110] sm:$0xff] }
  0x1f   : > { %1140 = vmatpush3.msra.mxu1 %v1508_v35  ;;  %1106 = vmatprep.subr.mxu0 %v1521_v36  ;;  %1885 = vst [vmem:[#allocation4_spill] sm:$0xff] %v1619_v53  ;;  %1890 = vst [vmem:[#allocation9_spill] sm:$0xff] %v1646_v58  ;;  %v1663_v62 = vld [vmem:[%s1865_s1 + $0x188] sm:$0xff]  ;;  %v1688_v47 = vld [vmem:[%s1865_s1 + $0x80] sm:$0xff] }
  0x20   : > { %1141 = vmatprep.subr.mxu1 %v1526_v37  ;;  %1107 = vmatpush3.msra.mxu0 %v1533_v39  ;;  %1892 = vst [vmem:[#allocation11_spill] sm:$0xff] %v1663_v62 }
  0x21   : > { %1142 = vmatpush3.msra.mxu1 %v1538_v40  ;;  %1108 = vmatprep.subr.mxu0 %v1545_v41 }
  0x22   : > { %1143 = vmatprep.subr.mxu1 %v1550_v42  ;;  %1109 = vmatpush3.msra.mxu0 %v1557_v43 }
  0x23   : > { %1144 = vmatpush3.msra.mxu1 %v1562_v44  ;;  %1110 = vmatprep.subr.mxu0 %v1570_v45 }
  0x24   : > { %1145 = vmatprep.subr.mxu1 %v1575_v46  ;;  %1111 = vmatpush3.msra.mxu0 %v1585_v48 }
  0x25   : > { %1146 = vmatpush3.msra.mxu1 %v1590_v49  ;;  %1112 = vmatprep.subr.mxu0 %v1597_v50 }
  0x26   : > { %1147 = vmatprep.subr.mxu1 %v1602_v51  ;;  %1113 = vmatpush3.msra.mxu0 %v1614_v52  ;;  %v1681_v52 = vld [vmem:[%s1865_s1 + $0x108] sm:$0xff] }
  0x27   : > { %1148 = vmatpush3.msra.mxu1 %v1619_v53  ;;  %1114 = vmatprep.subr.mxu0 %v1626_v54  ;;  %v1676_v53 = vld [vmem:[%s1865_s1 + $0x8] sm:$0xff]  ;;  %v296_v54 = vrot.slane %v1648_v59, %v1634_v56  ;;  %v1711_v56 = vld [vmem:[%s1865_s1 + $0x100] sm:$0xff] }
  0x28   : > { %1149 = vmatprep.subr.mxu1 %v1631_v55  ;;  %1115 = vmatpush3.msra.mxu0 %v1641_v57  ;;  %v1693_v55 = vld [vmem:[%s1865_s1 + $0x180] sm:$0xff]  ;;  %v304_v57 = vrot.slane %v1648_v59, %v1651_v60 }
  0x29   : > { %1150 = vmatpush3.msra.mxu1 %v1646_v58  ;;  %1116 = vmatprep.subr.mxu0 %v1658_v61  ;;  %v1702_v58 = vld [vmem:[%s1865_s1] sm:$0xff]  ;;  %v300_v61 = vrot.slane %v1648_v59, %v1669_v38 }
  0x2a   : > { %1151 = vmatprep.subr.mxu1 %v1663_v62  ;;  %1117 = vmatpush3.msra.mxu0 %v1676_v53  ;;  %v292_v62 = vrot.slane %v1648_v59, %v1666_v63 }
  0x2b   : > { %1152 = vmatpush3.msra.mxu1 %v1681_v52  ;;  %1118 = vmatprep.subr.mxu0 %v1688_v47 }
  0x2c   : > { %1153 = vmatprep.subr.mxu1 %v1693_v55  ;;  %1119 = vmatpush3.msra.mxu0 %v1702_v58 }
  0x2d   : > { %373 = vmatprep.mubr.f32.mxu0 %v296_v54  ;;  %1154 = vmatpush3.msra.mxu1 %v1711_v56 }
  0x2e   : > { %443 = vmatprep.mubr.f32.mxu1 %v304_v57  ;;  %374 = vmatmul.mubr.f32.vlgmr.msra.gmra.mxu0 %v292_v62 }
  0x2f   : > { %444 = vmatmul.mubr.f32.vlgmr.msra.gmra.mxu1 %v300_v61  ;;  %1158 = vmatprep.subr.mxu0 %v1297_v0  ;;  %v222_v0 = vmul.f32 %v1648_v59, %v1648_v59 }
  0x30   : > { %1193 = vmatprep.subr.mxu1 %v1302_v1  ;;  %1159 = vmatpush3.msra.mxu0 %v1307_v2  ;;  %v1893_v1 = vld [vmem:[#allocation3_spill] sm:$0xff]  ;;  %v1894_v2 = vld [vmem:[#allocation4_spill] sm:$0xff] }
  0x31   : > { %1194 = vmatpush3.msra.mxu1 %v1314_v3  ;;  %1160 = vmatprep.subr.mxu0 %v1319_v4  ;;  %v1895_v3 = vld [vmem:[#allocation5_spill] sm:$0xff]  ;;  %v1896_v4 = vld [vmem:[#allocation6_spill] sm:$0xff] }
  0x32   : > { %1195 = vmatprep.subr.mxu1 %v1324_v5  ;;  %1161 = vmatpush3.msra.mxu0 %v1331_v6  ;;  %v1897_v5 = vld [vmem:[#allocation8_spill] sm:$0xff]  ;;  %v1898_v6 = vld [vmem:[#allocation9_spill] sm:$0xff] }
  0x33   : > { %1196 = vmatpush3.msra.mxu1 %v1336_v7  ;;  %1162 = vmatprep.subr.mxu0 %v1341_v8  ;;  %v1899_v7 = vld [vmem:[#allocation7_spill] sm:$0xff] }
  0x34   : > { %1197 = vmatprep.subr.mxu1 %v1348_v9  ;;  %1163 = vmatpush3.msra.mxu0 %v1353_v10  ;;  %v457_v8 = vrot.slane %v222_v0, %v1899_v7  ;;  %v1900_v9 = vld [vmem:[#allocation10_spill] sm:$0xff]  ;;  %v1901_v10 = vld [vmem:[#allocation11_spill] sm:$0xff] }
  0x35   : > { %1198 = vmatpush3.msra.mxu1 %v1358_v11  ;;  %1164 = vmatprep.subr.mxu0 %v1365_v12  ;;  %v465_v11 = vrot.slane %v222_v0, %v1651_v60  ;;  %v453_v12 = vrot.slane %v222_v0, %v1666_v63 }
  0x36   : > { %1199 = vmatprep.subr.mxu1 %v1370_v13  ;;  %1165 = vmatpush3.msra.mxu0 %v1377_v14  ;;  %v461_v13 = vrot.slane %v222_v0, %v1669_v38  ;;  %v626_v14 = vld [vmem:[%s1866_s2 + $0x68] sm:$0xff]  ;;  %v924_v0 = vld [vmem:[%s1867_s3] sm:$0xf] }
  0x37   : > { %1200 = vmatpush3.msra.mxu1 %v1382_v15  ;;  %1166 = vmatprep.subr.mxu0 %v1389_v16  ;;  %v628_v15 = vld [vmem:[%s1866_s2 + $0x78] sm:$0xff]  ;;  %v625_v16 = vld [vmem:[%s1866_s2 + $0x60] sm:$0xff] }
  0x38   : > { %1201 = vmatprep.subr.mxu1 %v1394_v17  ;;  %1167 = vmatpush3.msra.mxu0 %v1401_v18  ;;  %v627_v17 = vld [vmem:[%s1866_s2 + $0x70] sm:$0xff]  ;;  %v622_v18 = vld [vmem:[%s1866_s2 + $0x48] sm:$0xff] }
  0x39   : > { %1202 = vmatpush3.msra.mxu1 %v1406_v19  ;;  %1168 = vmatprep.subr.mxu0 %v1413_v20  ;;  %v624_v19 = vld [vmem:[%s1866_s2 + $0x58] sm:$0xff]  ;;  %v621_v20 = vld [vmem:[%s1866_s2 + $0x40] sm:$0xff] }
  0x3a   : > { %1203 = vmatprep.subr.mxu1 %v1418_v21  ;;  %1169 = vmatpush3.msra.mxu0 %v1425_v22  ;;  %v623_v21 = vld [vmem:[%s1866_s2 + $0x50] sm:$0xff]  ;;  %v618_v22 = vld [vmem:[%s1866_s2 + $0x28] sm:$0xff] }
  0x3b   : > { %1204 = vmatpush3.msra.mxu1 %v1430_v23  ;;  %1170 = vmatprep.subr.mxu0 %v1437_v24  ;;  %v620_v23 = vld [vmem:[%s1866_s2 + $0x38] sm:$0xff]  ;;  %v617_v24 = vld [vmem:[%s1866_s2 + $0x20] sm:$0xff] }
  0x3c   : > { %1205 = vmatprep.subr.mxu1 %v1442_v25  ;;  %1171 = vmatpush3.msra.mxu0 %v1449_v26  ;;  %v619_v25 = vld [vmem:[%s1866_s2 + $0x30] sm:$0xff]  ;;  %v614_v26 = vld [vmem:[%s1866_s2 + $0x8] sm:$0xff] }
  0x3d   : > { %1206 = vmatpush3.msra.mxu1 %v1454_v27  ;;  %1172 = vmatprep.subr.mxu0 %v1467_v28  ;;  %v616_v27 = vld [vmem:[%s1866_s2 + $0x18] sm:$0xff]  ;;  %v613_v28 = vld [vmem:[%s1866_s2] sm:$0xff] }
  0x3e   : > { %1207 = vmatprep.subr.mxu1 %v1472_v29  ;;  %1173 = vmatpush3.msra.mxu0 %v1479_v30  ;;  %v615_v29 = vld [vmem:[%s1866_s2 + $0x10] sm:$0xff]  ;;  %v1254_v30 = vmov 0.0  }
  0x3f   : > { %1208 = vmatpush3.msra.mxu1 %v1484_v31  ;;  %1174 = vmatprep.subr.mxu0 %v1491_v32 }
  0x40   : > { %1209 = vmatprep.subr.mxu1 %v1496_v33  ;;  %1175 = vmatpush3.msra.mxu0 %v1503_v34 }
  0x41   : > { %1210 = vmatpush3.msra.mxu1 %v1508_v35  ;;  %1176 = vmatprep.subr.mxu0 %v1521_v36 }
  0x42   : > { %1211 = vmatprep.subr.mxu1 %v1526_v37  ;;  %1177 = vmatpush3.msra.mxu0 %v1533_v39 }
  0x43   : > { %1212 = vmatpush3.msra.mxu1 %v1538_v40  ;;  %1178 = vmatprep.subr.mxu0 %v1545_v41 }
  0x44   : > { %1213 = vmatprep.subr.mxu1 %v1550_v42  ;;  %1179 = vmatpush3.msra.mxu0 %v1557_v43 }
  0x45   : > { %1214 = vmatpush3.msra.mxu1 %v1562_v44  ;;  %1180 = vmatprep.subr.mxu0 %v1570_v45 }
  0x46   : > { %1215 = vmatprep.subr.mxu1 %v1575_v46  ;;  %1181 = vmatpush3.msra.mxu0 %v1585_v48 }
  0x47   : > { %1216 = vmatpush3.msra.mxu1 %v1590_v49  ;;  %1182 = vmatprep.subr.mxu0 %v1597_v50 }
  0x48   : > { %1217 = vmatprep.subr.mxu1 %v1602_v51  ;;  %1183 = vmatpush3.msra.mxu0 %v1893_v1  ;;  %v1255_v1 = vmov 1966171168  }
  0x49   : > { %1218 = vmatpush3.msra.mxu1 %v1894_v2  ;;  %1184 = vmatprep.subr.mxu0 %v1895_v3  ;;  %v962_v2 = vunpack.c.l.s4 %v1255_v1  ;;  %v929_v3 = vrot.slane %v924_v0, %v1666_v63 }
  0x4a   : > { %1219 = vmatprep.subr.mxu1 %v1896_v4  ;;  %1185 = vmatpush3.msra.mxu0 %v1897_v5  ;;  %v937_v4 = vrot.slane %v924_v0, %v1669_v38  ;;  %v933_v5 = vrot.slane %v924_v0, %v1899_v7 }
  0x4b   : > { %1220 = vmatpush3.msra.mxu1 %v1898_v6  ;;  %1186 = vmatprep.subr.mxu0 %v1900_v9  ;;  %v963_v6 = vunpack.c.0.s8 %v962_v2  ;;  %v941_v9 = vrot.slane %v924_v0, %v1651_v60 }
  0x4c   : > { %1221 = vmatprep.subr.mxu1 %v1901_v10  ;;  %1187 = vmatpush3.msra.mxu0 %v1676_v53 }
  0x4d   : > { %1222 = vmatpush3.msra.mxu1 %v1681_v52  ;;  %1188 = vmatprep.subr.mxu0 %v1688_v47 }
  0x4e   : > { %1223 = vmatprep.subr.mxu1 %v1693_v55  ;;  %1189 = vmatpush3.msra.mxu0 %v1702_v58 }
  0x4f   : > { %534 = vmatprep.mubr.f32.mxu0 %v457_v8  ;;  %1224 = vmatpush3.msra.mxu1 %v1711_v56 }
  0x50   : > { %604 = vmatprep.mubr.f32.mxu1 %v465_v11  ;;  %535 = vmatmul.mubr.f32.vlgmr.msra.gmra.mxu0 %v453_v12 }
  0x51   : > { %605 = vmatmul.mubr.f32.vlgmr.msra.gmra.mxu1 %v461_v13  ;;  %657 = vmatprep.subr.mxu0 %v626_v14 }
  0x52   : > { %728 = vmatprep.subr.mxu1 %v628_v15  ;;  %658 = vmatpush1.msra.mxu0 %v625_v16 }
  0x53   : > { %729 = vmatpush1.msra.mxu1 %v627_v17  ;;  %659 = vmatprep.subr.mxu0 %v622_v18 }
  0x54   : > { %730 = vmatprep.subr.mxu1 %v624_v19  ;;  %660 = vmatpush1.msra.mxu0 %v621_v20 }
  0x55   : > { %731 = vmatpush1.msra.mxu1 %v623_v21  ;;  %661 = vmatprep.subr.mxu0 %v618_v22 }
  0x56   : > { %732 = vmatprep.subr.mxu1 %v620_v23  ;;  %662 = vmatpush1.msra.mxu0 %v617_v24 }
  0x57   : > { %733 = vmatpush1.msra.mxu1 %v619_v25  ;;  %663 = vmatprep.subr.mxu0 %v614_v26 }
  0x58   : > { %734 = vmatprep.subr.mxu1 %v616_v27  ;;  %664 = vmatpush1.msra.mxu0 %v613_v28 }
  0x59   : > { %697 = vmatprep.mubr.f32.mxu0 %v1254_v30  ;;  %735 = vmatpush1.msra.mxu1 %v615_v29 }
  0x5a   : > { %768 = vmatprep.mubr.f32.mxu1 %v1254_v30  ;;  %802 = vmatprep.subr.mxu0 %v626_v14 }
  0x5b   : > { %873 = vmatprep.subr.mxu1 %v628_v15  ;;  %v1902_v15 = vld [vmem:[#allocation2_spill] sm:$0xff] }
  0xee   : > { %v1120_v31 = vpop.f32.mrf.mxu0 }
  0xef   : > { %v1155_v32 = vpop.f32.mrf.mxu1 }
  0xf0   : > { %v1121_v33 = vpop.f32.mrf.mxu0 }
  0xf1   : > { %v1156_v34 = vpop.f32.mrf.mxu1  ;;  %v1122_v35 = vadd.f32 %v1121_v33, %v1120_v31 }
  0xf2   : > { %v1157_v36 = vadd.f32 %v1156_v34, %v1155_v32 }
  0xf4   : > { %v446_v37 = vadd.f32 %v1157_v36, %v1122_v35  ;;  %v1903_v35 = vlaneseq }
  0xf6   : > { %1082 = vmatmul.mubr.msk.f32.vlgmr.msra.gmra.mxu0 %vm629_vm0, %v446_v37  ;;  %1083 = vmatmul.mubr.msk.f32.vlgmr.msra.gmra.mxu1 %vm629_vm0, %v446_v37  ;;  %v610_v46 = vmul.f32 %v446_v37, %v446_v37  ;;  %vm1019_vm1 = vcmp.lt.s32.totalorder %v1903_v35, 512 }
  0xf7   : > { %803 = vmatpush1.msra.mxu0 %v625_v16  ;;  %874 = vmatpush1.msra.mxu1 %v627_v17  ;;  %v966_v16 = vsub.s32 %v963_v6, %v1902_v15 }
  0xf8   : > { %804 = vmatprep.subr.mxu0 %v622_v18  ;;  %875 = vmatprep.subr.mxu1 %v624_v19 }
  0xf9   : > { %805 = vmatpush1.msra.mxu0 %v621_v20  ;;  %876 = vmatpush1.msra.mxu1 %v623_v21 }
  0xfa   : > { %806 = vmatprep.subr.mxu0 %v618_v22  ;;  %877 = vmatprep.subr.mxu1 %v620_v23 }
  0xfb   : > { %807 = vmatpush1.msra.mxu0 %v617_v24  ;;  %878 = vmatpush1.msra.mxu1 %v619_v25 }
  0xfc   : > { %808 = vmatprep.subr.mxu0 %v614_v26  ;;  %879 = vmatprep.subr.mxu1 %v616_v27 }
  0xfd   : > { %809 = vmatpush1.msra.mxu0 %v613_v28  ;;  %842 = vmatprep.mubr.f32.mxu0 %v1254_v30 }
  0xfe   : > { %880 = vmatpush1.msra.mxu1 %v615_v29  ;;  %913 = vmatprep.mubr.f32.mxu1 %v1254_v30  ;;  %v950_v30 = vld [vmem:[%s1868_s4] sm:$0xf] }
 0x110   : > { %v1190_v39 = vpop.f32.mrf.mxu0 }
 0x111   : > { %v1225_v40 = vpop.f32.mrf.mxu1 }
 0x112   : > { %v1191_v41 = vpop.f32.mrf.mxu0 }
 0x113   : > { %v1226_v42 = vpop.f32.mrf.mxu1  ;;  %v1192_v43 = vadd.f32 %v1191_v41, %v1190_v39 }
 0x114   : > { %v1227_v44 = vadd.f32 %v1226_v42, %v1225_v40 }
 0x116   : > { %v607_v45 = vadd.f32 %v1227_v44, %v1192_v43 }
 0x118   : > { %v611_v47 = vsub.f32 %v607_v45, %v610_v46 }
 0x11a   : > { %v612_v48 = vmax.f32 %v611_v47, 0.0 }
 0x11c   : > { %1084 = vmatmul.mubr.msk.f32.vlgmr.msra.gmra.mxu0 %vm629_vm0, %v612_v48  ;;  %1085 = vmatmul.mubr.msk.f32.vlgmr.msra.gmra.mxu1 %vm629_vm0, %v612_v48 }
 0x1b6   : > { %v699_v49 = vpop.f32.mrf.mxu0  ;;  %v770_v50 = vpop.f32.mrf.mxu1 }
 0x1b8   : > { %v701_v51 = vpop.f32.mrf.mxu0  ;;  %v772_v52 = vpop.f32.mrf.mxu1 }
 0x1dc   : > { %v844_v53 = vpop.f32.mrf.mxu0  ;;  %v915_v54 = vpop.f32.mrf.mxu1 }
 0x1dd   : > { %v845_v55 = vadd.f32 1e-05, %v844_v53  ;;  %v916_v56 = vadd.f32 1e-05, %v915_v54 }
 0x1de   : > { %v846_v57 = vpop.f32.mrf.mxu0  ;;  %v917_v58 = vpop.f32.mrf.mxu1 }
 0x1df   : > { %1238 = vrsqrt.f32 %v845_v55  ;;  %v847_v61 = vadd.f32 1e-05, %v846_v57  ;;  %v918_v62 = vadd.f32 1e-05, %v917_v58 }
 0x1e0   : > { %1240 = vrsqrt.f32 %v916_v56 }
 0x1e1   : > { %1242 = vrsqrt.f32 %v847_v61 }
 0x1e2   : > { %1244 = vrsqrt.f32 %v918_v62 }
 0x1ec   : > { %v1239_v8 = vpop.eup %1238 }
 0x1ed   : > { %v1241_v10 = vpop.eup %1240  ;;  %v946_v11 = vmul.f32 %v1239_v8, %v929_v3 }
 0x1ee   : > { %v1243_v12 = vpop.eup %1242  ;;  %v948_v13 = vmul.f32 %v1241_v10, %v937_v4 }
 0x1ef   : > { %v1245_v14 = vpop.eup %1244  ;;  %v947_v17 = vmul.f32 %v1243_v12, %v933_v5  ;;  %v951_v19 = vmul.f32 %v946_v11, %v699_v49 }
 0x1f0   : > { %v949_v18 = vmul.f32 %v1245_v14, %v941_v9  ;;  %v953_v21 = vmul.f32 %v948_v13, %v770_v50 }
 0x1f1   : > { %v952_v20 = vmul.f32 %v947_v17, %v701_v51  ;;  %v989_v63 = vcombine.low %v946_v11, %v947_v17 }
 0x1f2   : > { %v954_v38 = vmul.f32 %v949_v18, %v772_v52  ;;  %v990_v7 = vcombine.low %v948_v13, %v949_v18 }
 0x1f3   : > { %v959_v22 = vcombine.low %v951_v19, %v952_v20  ;;  %v997_v23 = vrot.slane %v989_v63, %v966_v16 }
 0x1f4   : > { %v960_v24 = vcombine.low %v953_v21, %v954_v38  ;;  %v1004_v60 = vrot.slane %v990_v7, %v966_v16 }
 0x1f5   : > { %v967_v25 = vrot.slane %v959_v22, %v966_v16 }
 0x1f6   : > { %v974_v26 = vrot.slane %v960_v24, %v966_v16  ;;  %v1005_v27 = vcombine.low %v997_v23, %v1004_v60 }
 0x1f8   : > { %v975_v28 = vcombine.low %v967_v25, %v974_v26  ;;  %v1012_v29 = vrot.slane %v1005_v27, %v966_v16 }
 0x1fa   : > { %v982_v31 = vrot.slane %v975_v28, %v966_v16  ;;  %v1014_v33 = vmul.f32 %v1012_v29, %v1648_v59 }
 0x1fc   : > { %v984_v32 = vsub.f32 %v950_v30, %v982_v31 }
 0x1fe   : > { %v1015_v34 = vadd.f32 %v1014_v33, %v984_v32 }
 0x200   : > { %v1016_v36 = vmax.f32 %v1015_v34, 0.0 }
 0x202   : > { %1021 = vst.msk [vmem:[%s219_s8] sm:$0xf] %vm1019_vm1, %v1016_v36 }
 0x203 PF: > { %s15_s18 = sadd.s32 1, %s1252_s18  }
 0x204   : > { %p12_p4 = scmp.ge.s32.totalorder %s15_s18, 4  }
 0x206   :  { %14 = sbr.rel (!%p12_p4) target bundleno = 1 (0x1), region = 70 }

// kernel: encoder_mg_forward.22
= control target key start
LH: loop header
LB: loop body
LE: loop exit
PB: predicated region body
PF: predicated region fallthrough
CT: control target
= control target key end

     0   :  { %s1513_s12 = smov 0   ;;  %s1515_s13 = smov 0   ;;  %s1825_s0 = inlined_call_operand.vmem [shape: bf16[8,4608], index: 0, kind: input, shape index: {}]   ;;  %s1826_s1 = inlined_call_operand.vmem [shape: bf16[4608,1024], index: 1, kind: input, shape index: {}]   ;;  %s1827_s2 = inlined_call_operand.vmem [shape: f32[1,1024], index: 2, kind: input, shape index: {}]   ;;  %s1828_s3 = inlined_call_operand.vmem [shape: f32[8,1024], index: 3, kind: output, shape index: {}]  }
   0x1   :  { %s1517_s14 = smov 0   ;;  %s1519_s15 = smov 0  }
   0x2   :  { %s1521_s16 = smov 0   ;;  %s1523_s17 = smov 0  }
   0x3   :  { %s1525_s18 = smov 0  }
   0x4 LB: > { %s25_s19 = sadd.s32 1, %s1482_s16  ;;  %s28_s20 = sadd.s32 1, %s1486_s17  ;;  %s1490_s18 = sphi %s1525_s18, %s13_s18   ;;  %s1486_s17 = sphi %s1523_s17, %s1834_s17   ;;  %s1482_s16 = sphi %s1521_s16, %s1833_s16   ;;  %s1478_s15 = sphi %s1519_s15, %s1832_s15   ;;  %s1474_s14 = sphi %s1517_s14, %s1831_s14   ;;  %s1470_s13 = sphi %s1515_s13, %s1830_s13   ;;  %s1466_s12 = sphi %s1513_s12, %s1829_s12  }
   0x5   : > { %p26_p0 = scmp.ge.s32.totalorder %s25_s19, 9  ;;  %p76_p1 = scmp.ne.s32.totalorder %s1470_s13, %s1466_s12 }
   0x6   : > { %p77_p2 = scmp.eq.s32.totalorder %s1490_s18, 0  ;;  %s69_s24 = sadd.s32 1, %s1470_s13 }
   0x7   : > { %s1836_s19 = smov (%p26_p0, %s25_s19), 0  ;;  %s1838_s20 = smov (!%p26_p0, %s28_s20), %s1486_s17 }
   0x8   : > { %p78_p3 = por %p77_p2, %p76_p1  ;;  %p30_p4 = scmp.ge.s32.totalorder %s1838_s20, 4 }
   0x9   : > { %s64_s21 = ssub.s32 %s1482_s16, %s1836_s19  ;;  %p1193_p6 = scmp.ge.s32.totalorder %s1490_s18, 36 }
   0xa   : > { %s1840_s20 = smov (%p30_p4, %s1838_s20), 0 }
   0xb   : > { %s65_s22 = ssub.s32 %s1486_s17, %s1840_s20  ;;  %156 = sbr.rel (%p1193_p6) target bundleno = 87 (0x57), region = 16 }
   0xc   : > { %s66_s23 = sor.u32 %s65_s22, %s64_s21 }
   0xd   : > { %p67_p5 = scmp.eq.s32.totalorder %s66_s23, 0 }
   0xf   : > { %s1564_s25 = scalar_select %p67_p5, %s1470_s13, %s69_s24  }
  0x10   : > { %172 = sbr.rel (!%p78_p3) target bundleno = 87 (0x57), region = 24  ;;  %s174_s26 = sand.u32 (%p78_p3), 1, %s1470_s13  }
  0x11   : > { %s1196_s27 = sshll.u32 (%p78_p3), %s1486_s17, 1  ;;  %s1194_s28 = sshll.u32 (%p78_p3), %s174_s26, 9 }
  0x12   : > { %s1278_s29 = sshll.u32 (%p78_p3), %s1482_s16, 9  ;;  %s1578_s8 = scalar_lea.vmem (%p78_p3), [#allocation3], %s1194_s28 }
  0x13   : > { %s180_s30 = sadd.s32 (%p78_p3), %s1278_s29, %s1196_s27 }
  0x14   : > { %s1198_s4 = sshll.u32 (%p78_p3), %s180_s30, 2 }
  0x15   : > { %s1573_s7 = scalar_lea.vmem %s1826_s1, %s1198_s4 }
  0x16   : > { %v337_v0 = vld [vmem:[%s1573_s7] sm:$0xff] }
  0x17   : > { %v339_v1 = vld [vmem:[%s1573_s7 + $0x20] sm:$0xff]  ;;  %338 = vst [vmem:[%s1578_s8] sm:$0xff] %v337_v0 }
  0x18   : > { %v341_v2 = vld [vmem:[%s1573_s7 + $0x40] sm:$0xff]  ;;  %340 = vst [vmem:[%s1578_s8 + $0x8] sm:$0xff] %v339_v1 }
  0x19   : > { %342 = vst [vmem:[%s1578_s8 + $0x10] sm:$0xff] %v341_v2  ;;  %v343_v3 = vld [vmem:[%s1573_s7 + $0x60] sm:$0xff] }
  0x1a   : > { %v345_v4 = vld [vmem:[%s1573_s7 + $0x80] sm:$0xff]  ;;  %344 = vst [vmem:[%s1578_s8 + $0x18] sm:$0xff] %v343_v3 }
  0x1b   : > { %v347_v5 = vld [vmem:[%s1573_s7 + $0xa0] sm:$0xff]  ;;  %346 = vst [vmem:[%s1578_s8 + $0x20] sm:$0xff] %v345_v4 }
  0x1c   : > { %348 = vst [vmem:[%s1578_s8 + $0x28] sm:$0xff] %v347_v5  ;;  %v349_v6 = vld [vmem:[%s1573_s7 + $0xc0] sm:$0xff] }
  0x1d   : > { %v351_v7 = vld [vmem:[%s1573_s7 + $0xe0] sm:$0xff]  ;;  %350 = vst [vmem:[%s1578_s8 + $0x30] sm:$0xff] %v349_v6 }
  0x1e   : > { %v353_v8 = vld [vmem:[%s1573_s7 + $0x100] sm:$0xff]  ;;  %352 = vst [vmem:[%s1578_s8 + $0x38] sm:$0xff] %v351_v7 }
  0x1f   : > { %354 = vst [vmem:[%s1578_s8 + $0x40] sm:$0xff] %v353_v8  ;;  %v355_v9 = vld [vmem:[%s1573_s7 + $0x120] sm:$0xff] }
  0x20   : > { %v357_v10 = vld [vmem:[%s1573_s7 + $0x140] sm:$0xff]  ;;  %356 = vst [vmem:[%s1578_s8 + $0x48] sm:$0xff] %v355_v9 }
  0x21   : > { %v359_v11 = vld [vmem:[%s1573_s7 + $0x160] sm:$0xff]  ;;  %358 = vst [vmem:[%s1578_s8 + $0x50] sm:$0xff] %v357_v10 }
  0x22   : > { %360 = vst [vmem:[%s1578_s8 + $0x58] sm:$0xff] %v359_v11  ;;  %v361_v12 = vld [vmem:[%s1573_s7 + $0x180] sm:$0xff] }
  0x23   : > { %v363_v13 = vld [vmem:[%s1573_s7 + $0x1a0] sm:$0xff]  ;;  %362 = vst [vmem:[%s1578_s8 + $0x60] sm:$0xff] %v361_v12 }
  0x24   : > { %v365_v14 = vld [vmem:[%s1573_s7 + $0x1c0] sm:$0xff]  ;;  %364 = vst [vmem:[%s1578_s8 + $0x68] sm:$0xff] %v363_v13 }
  0x25   : > { %366 = vst [vmem:[%s1578_s8 + $0x70] sm:$0xff] %v365_v14  ;;  %v367_v15 = vld [vmem:[%s1573_s7 + $0x1e0] sm:$0xff] }
  0x26   : > { %v369_v16 = vld [vmem:[%s1573_s7 + $0x200] sm:$0xff]  ;;  %368 = vst [vmem:[%s1578_s8 + $0x78] sm:$0xff] %v367_v15 }
  0x27   : > { %v371_v17 = vld [vmem:[%s1573_s7 + $0x220] sm:$0xff]  ;;  %370 = vst [vmem:[%s1578_s8 + $0x80] sm:$0xff] %v369_v16 }
  0x28   : > { %372 = vst [vmem:[%s1578_s8 + $0x88] sm:$0xff] %v371_v17  ;;  %v373_v18 = vld [vmem:[%s1573_s7 + $0x240] sm:$0xff] }
  0x29   : > { %v375_v19 = vld [vmem:[%s1573_s7 + $0x260] sm:$0xff]  ;;  %374 = vst [vmem:[%s1578_s8 + $0x90] sm:$0xff] %v373_v18 }
  0x2a   : > { %v377_v20 = vld [vmem:[%s1573_s7 + $0x280] sm:$0xff]  ;;  %376 = vst [vmem:[%s1578_s8 + $0x98] sm:$0xff] %v375_v19 }
  0x2b   : > { %378 = vst [vmem:[%s1578_s8 + $0xa0] sm:$0xff] %v377_v20  ;;  %v379_v21 = vld [vmem:[%s1573_s7 + $0x2a0] sm:$0xff] }
  0x2c   : > { %v381_v22 = vld [vmem:[%s1573_s7 + $0x2c0] sm:$0xff]  ;;  %380 = vst [vmem:[%s1578_s8 + $0xa8] sm:$0xff] %v379_v21 }
  0x2d   : > { %v383_v23 = vld [vmem:[%s1573_s7 + $0x2e0] sm:$0xff]  ;;  %382 = vst [vmem:[%s1578_s8 + $0xb0] sm:$0xff] %v381_v22 }
  0x2e   : > { %384 = vst [vmem:[%s1578_s8 + $0xb8] sm:$0xff] %v383_v23  ;;  %v385_v24 = vld [vmem:[%s1573_s7 + $0x300] sm:$0xff] }
  0x2f   : > { %v387_v25 = vld [vmem:[%s1573_s7 + $0x320] sm:$0xff]  ;;  %386 = vst [vmem:[%s1578_s8 + $0xc0] sm:$0xff] %v385_v24 }
  0x30   : > { %v389_v26 = vld [vmem:[%s1573_s7 + $0x340] sm:$0xff]  ;;  %388 = vst [vmem:[%s1578_s8 + $0xc8] sm:$0xff] %v387_v25 }
  0x31   : > { %390 = vst [vmem:[%s1578_s8 + $0xd0] sm:$0xff] %v389_v26  ;;  %v391_v27 = vld [vmem:[%s1573_s7 + $0x360] sm:$0xff] }
  0x32   : > { %v393_v28 = vld [vmem:[%s1573_s7 + $0x380] sm:$0xff]  ;;  %392 = vst [vmem:[%s1578_s8 + $0xd8] sm:$0xff] %v391_v27 }
  0x33   : > { %v395_v29 = vld [vmem:[%s1573_s7 + $0x3a0] sm:$0xff]  ;;  %394 = vst [vmem:[%s1578_s8 + $0xe0] sm:$0xff] %v393_v28 }
  0x34   : > { %396 = vst [vmem:[%s1578_s8 + $0xe8] sm:$0xff] %v395_v29  ;;  %v397_v30 = vld [vmem:[%s1573_s7 + $0x3c0] sm:$0xff] }
  0x35   : > { %v399_v31 = vld [vmem:[%s1573_s7 + $0x3e0] sm:$0xff]  ;;  %398 = vst [vmem:[%s1578_s8 + $0xf0] sm:$0xff] %v397_v30 }
  0x36   : > { %v401_v32 = vld [vmem:[%s1573_s7 + $0x400] sm:$0xff]  ;;  %400 = vst [vmem:[%s1578_s8 + $0xf8] sm:$0xff] %v399_v31 }
  0x37   : > { %402 = vst [vmem:[%s1578_s8 + $0x100] sm:$0xff] %v401_v32  ;;  %v403_v33 = vld [vmem:[%s1573_s7 + $0x420] sm:$0xff] }
  0x38   : > { %v405_v34 = vld [vmem:[%s1573_s7 + $0x440] sm:$0xff]  ;;  %404 = vst [vmem:[%s1578_s8 + $0x108] sm:$0xff] %v403_v33 }
  0x39   : > { %v407_v35 = vld [vmem:[%s1573_s7 + $0x460] sm:$0xff]  ;;  %406 = vst [vmem:[%s1578_s8 + $0x110] sm:$0xff] %v405_v34 }
  0x3a   : > { %408 = vst [vmem:[%s1578_s8 + $0x118] sm:$0xff] %v407_v35  ;;  %v409_v36 = vld [vmem:[%s1573_s7 + $0x480] sm:$0xff] }
  0x3b   : > { %v411_v37 = vld [vmem:[%s1573_s7 + $0x4a0] sm:$0xff]  ;;  %410 = vst [vmem:[%s1578_s8 + $0x120] sm:$0xff] %v409_v36 }
  0x3c   : > { %v413_v38 = vld [vmem:[%s1573_s7 + $0x4c0] sm:$0xff]  ;;  %412 = vst [vmem:[%s1578_s8 + $0x128] sm:$0xff] %v411_v37 }
  0x3d   : > { %414 = vst [vmem:[%s1578_s8 + $0x130] sm:$0xff] %v413_v38  ;;  %v415_v39 = vld [vmem:[%s1573_s7 + $0x4e0] sm:$0xff] }
  0x3e   : > { %v417_v40 = vld [vmem:[%s1573_s7 + $0x500] sm:$0xff]  ;;  %416 = vst [vmem:[%s1578_s8 + $0x138] sm:$0xff] %v415_v39 }
  0x3f   : > { %v419_v41 = vld [vmem:[%s1573_s7 + $0x520] sm:$0xff]  ;;  %418 = vst [vmem:[%s1578_s8 + $0x140] sm:$0xff] %v417_v40 }
  0x40   : > { %420 = vst [vmem:[%s1578_s8 + $0x148] sm:$0xff] %v419_v41  ;;  %v421_v42 = vld [vmem:[%s1573_s7 + $0x540] sm:$0xff] }
  0x41   : > { %v423_v43 = vld [vmem:[%s1573_s7 + $0x560] sm:$0xff]  ;;  %422 = vst [vmem:[%s1578_s8 + $0x150] sm:$0xff] %v421_v42 }
  0x42   : > { %v425_v44 = vld [vmem:[%s1573_s7 + $0x580] sm:$0xff]  ;;  %424 = vst [vmem:[%s1578_s8 + $0x158] sm:$0xff] %v423_v43 }
  0x43   : > { %426 = vst [vmem:[%s1578_s8 + $0x160] sm:$0xff] %v425_v44  ;;  %v427_v45 = vld [vmem:[%s1573_s7 + $0x5a0] sm:$0xff] }
  0x44   : > { %v429_v46 = vld [vmem:[%s1573_s7 + $0x5c0] sm:$0xff]  ;;  %428 = vst [vmem:[%s1578_s8 + $0x168] sm:$0xff] %v427_v45 }
  0x45   : > { %v431_v47 = vld [vmem:[%s1573_s7 + $0x5e0] sm:$0xff]  ;;  %430 = vst [vmem:[%s1578_s8 + $0x170] sm:$0xff] %v429_v46 }
  0x46   : > { %432 = vst [vmem:[%s1578_s8 + $0x178] sm:$0xff] %v431_v47  ;;  %v433_v48 = vld [vmem:[%s1573_s7 + $0x600] sm:$0xff] }
  0x47   : > { %v435_v49 = vld [vmem:[%s1573_s7 + $0x620] sm:$0xff]  ;;  %434 = vst [vmem:[%s1578_s8 + $0x180] sm:$0xff] %v433_v48 }
  0x48   : > { %v437_v50 = vld [vmem:[%s1573_s7 + $0x640] sm:$0xff]  ;;  %436 = vst [vmem:[%s1578_s8 + $0x188] sm:$0xff] %v435_v49 }
  0x49   : > { %438 = vst [vmem:[%s1578_s8 + $0x190] sm:$0xff] %v437_v50  ;;  %v439_v51 = vld [vmem:[%s1573_s7 + $0x660] sm:$0xff] }
  0x4a   : > { %v441_v52 = vld [vmem:[%s1573_s7 + $0x680] sm:$0xff]  ;;  %440 = vst [vmem:[%s1578_s8 + $0x198] sm:$0xff] %v439_v51 }
  0x4b   : > { %v443_v53 = vld [vmem:[%s1573_s7 + $0x6a0] sm:$0xff]  ;;  %442 = vst [vmem:[%s1578_s8 + $0x1a0] sm:$0xff] %v441_v52 }
  0x4c   : > { %444 = vst [vmem:[%s1578_s8 + $0x1a8] sm:$0xff] %v443_v53  ;;  %v445_v54 = vld [vmem:[%s1573_s7 + $0x6c0] sm:$0xff] }
  0x4d   : > { %v447_v55 = vld [vmem:[%s1573_s7 + $0x6e0] sm:$0xff]  ;;  %446 = vst [vmem:[%s1578_s8 + $0x1b0] sm:$0xff] %v445_v54 }
  0x4e   : > { %v449_v56 = vld [vmem:[%s1573_s7 + $0x700] sm:$0xff]  ;;  %448 = vst [vmem:[%s1578_s8 + $0x1b8] sm:$0xff] %v447_v55 }
  0x4f   : > { %450 = vst [vmem:[%s1578_s8 + $0x1c0] sm:$0xff] %v449_v56  ;;  %v451_v57 = vld [vmem:[%s1573_s7 + $0x720] sm:$0xff] }
  0x50   : > { %v453_v58 = vld [vmem:[%s1573_s7 + $0x740] sm:$0xff]  ;;  %452 = vst [vmem:[%s1578_s8 + $0x1c8] sm:$0xff] %v451_v57 }
  0x51   : > { %v455_v59 = vld [vmem:[%s1573_s7 + $0x760] sm:$0xff]  ;;  %454 = vst [vmem:[%s1578_s8 + $0x1d0] sm:$0xff] %v453_v58 }
  0x52   : > { %456 = vst [vmem:[%s1578_s8 + $0x1d8] sm:$0xff] %v455_v59  ;;  %v457_v60 = vld [vmem:[%s1573_s7 + $0x780] sm:$0xff] }
  0x53   : > { %v459_v61 = vld [vmem:[%s1573_s7 + $0x7a0] sm:$0xff]  ;;  %458 = vst [vmem:[%s1578_s8 + $0x1e0] sm:$0xff] %v457_v60 }
  0x54   : > { %v461_v62 = vld [vmem:[%s1573_s7 + $0x7c0] sm:$0xff]  ;;  %460 = vst [vmem:[%s1578_s8 + $0x1e8] sm:$0xff] %v459_v61 }
  0x55   : > { %462 = vst [vmem:[%s1578_s8 + $0x1f0] sm:$0xff] %v461_v62  ;;  %v463_v63 = vld [vmem:[%s1573_s7 + $0x7e0] sm:$0xff] }
  0x56   : > { %464 = vst [vmem:[%s1578_s8 + $0x1f8] sm:$0xff] %v463_v63 }
  0x57 PF: > { %p1199_p7 = scmp.ge.s32.totalorder %s1490_s18, 1  ;;  %p477_p8 = scmp.lt.s32.totalorder %s1490_s18, 37 }
  0x59   : > { %p478_p9 = pnand %p1199_p7, %p477_p8 }
  0x5a   : > { %s484_s9 = sand.u32 (!%p478_p9), 1, %s1466_s12   ;;  %s1201_s10 = sshll.u32 (!%p478_p9), %s1474_s14, 2 }
  0x5b   : > { %481 = sbr.rel (%p478_p9) target bundleno = 383 (0x17f), region = 66  ;;  %s1200_s11 = sshll.u32 (!%p478_p9), %s484_s9, 9 }
  0x5c   : > { %p527_p10 = scmp.lt.s32.totalorder (!%p478_p9), %s1201_s10, 35  ;;  %s1203_s21 = sshll.u32 (!%p478_p9), %s1478_s15, 1 }
  0x5d   : > { %p537_p11 = scmp.lt.s32.totalorder (!%p478_p9), %s1203_s21, 7  ;;  %s1727_s5 = scalar_lea.vmem (!%p478_p9), [#allocation3], %s1200_s11 }
  0x5e   : > { %p1206_p12 = scmp.ne.s32.totalorder (!%p478_p9), %s1474_s14, 0 }
  0x60   : > { %s1842_s10 = smov (!%p527_p10, %s1201_s10), 35  ;;  %s1844_s21 = smov (!%p537_p11, %s1203_s21), 7 }
  0x61   : > { %s1202_s22 = sshll.u32 %s1842_s10, 2  ;;  %s539_s12 = scalar_lea.vmem %s1827_s2, %s1844_s21 }
  0x62   : > { %s1713_s26 = scalar_lea.vmem %s1825_s0, %s1202_s22  ;;  %s1205_s29 = sshll.u32 %s1844_s21, 3 }
  0x63   : > { %s1725_s15 = scalar_lea.vmem %s1828_s3, %s1205_s29  ;;  %554 = sbr.rel (%p1206_p12) target bundleno = 106 (0x6a), region = 74 }
  0x68   : > { %v1492_v0 = vmov 0.0  }
  0x69   : > { %555 = vst [vmem:[#allocation2] sm:$0xff] %v1492_v0  ;;  %556 = vst [vmem:[#allocation2 + $0x8] sm:$0xff] %v1492_v0 }
  0x6a PF: > { %v1336_v1 = vld [vmem:[%s1727_s5 + $0x74] ss:$8 sps:$4 sm:$0xff]   ;;  %v1340_v3 = vld [vmem:[%s1727_s5 + $0x70] ss:$8 sps:$4 sm:$0xff]   ;;  %v1342_v5 = vld [vmem:[%s1727_s5 + $0x64] ss:$8 sps:$4 sm:$0xff]  }
  0x6b   : > { %v1338_v2 = vld [vmem:[%s1727_s5 + $0x174] ss:$8 sps:$4 sm:$0xff]   ;;  %959 = vmatprep.subr.bf16.mxu0 %v1336_v1  ;;  %v1341_v4 = vld [vmem:[%s1727_s5 + $0x170] ss:$8 sps:$4 sm:$0xff]   ;;  %v1344_v6 = vld [vmem:[%s1727_s5 + $0x164] ss:$8 sps:$4 sm:$0xff]  }
  0x6c   : > { %1000 = vmatprep.subr.bf16.mxu1 %v1338_v2  ;;  %960 = vmatpush1.bf16.msra.mxu0 %v1340_v3  ;;  %v1346_v7 = vld [vmem:[%s1727_s5 + $0x60] ss:$8 sps:$4 sm:$0xff]   ;;  %v1348_v9 = vld [vmem:[%s1727_s5 + $0x54] ss:$8 sps:$4 sm:$0xff]   ;;  %v1352_v11 = vld [vmem:[%s1727_s5 + $0x50] ss:$8 sps:$4 sm:$0xff]  }
  0x6d   : > { %1001 = vmatpush1.bf16.msra.mxu1 %v1341_v4  ;;  %961 = vmatprep.subr.bf16.mxu0 %v1342_v5  ;;  %v1347_v8 = vld [vmem:[%s1727_s5 + $0x160] ss:$8 sps:$4 sm:$0xff]   ;;  %v1350_v10 = vld [vmem:[%s1727_s5 + $0x154] ss:$8 sps:$4 sm:$0xff]   ;;  %v1353_v12 = vld [vmem:[%s1727_s5 + $0x150] ss:$8 sps:$4 sm:$0xff]  }
  0x6e   : > { %1002 = vmatprep.subr.bf16.mxu1 %v1344_v6  ;;  %v1354_v13 = vld [vmem:[%s1727_s5 + $0x44] ss:$8 sps:$4 sm:$0xff]   ;;  %v1358_v15 = vld [vmem:[%s1727_s5 + $0x40] ss:$8 sps:$4 sm:$0xff]   ;;  %v1360_v17 = vld [vmem:[%s1727_s5 + $0x34] ss:$8 sps:$4 sm:$0xff]  }
  0x6f   : > { %v1356_v14 = vld [vmem:[%s1727_s5 + $0x144] ss:$8 sps:$4 sm:$0xff]   ;;  %v1359_v16 = vld [vmem:[%s1727_s5 + $0x140] ss:$8 sps:$4 sm:$0xff]   ;;  %v1362_v18 = vld [vmem:[%s1727_s5 + $0x134] ss:$8 sps:$4 sm:$0xff]  }
  0x70   : > { %962 = vmatpush1.bf16.msra.mxu0 %v1346_v7  ;;  %v1364_v19 = vld [vmem:[%s1727_s5 + $0x30] ss:$8 sps:$4 sm:$0xff]   ;;  %v1366_v21 = vld [vmem:[%s1727_s5 + $0x24] ss:$8 sps:$4 sm:$0xff]   ;;  %v1370_v23 = vld [vmem:[%s1727_s5 + $0x20] ss:$8 sps:$4 sm:$0xff]  }
  0x71   : > { %1003 = vmatpush1.bf16.msra.mxu1 %v1347_v8  ;;  %963 = vmatprep.subr.bf16.mxu0 %v1348_v9  ;;  %v1365_v20 = vld [vmem:[%s1727_s5 + $0x130] ss:$8 sps:$4 sm:$0xff]   ;;  %v1368_v22 = vld [vmem:[%s1727_s5 + $0x124] ss:$8 sps:$4 sm:$0xff]   ;;  %v1371_v24 = vld [vmem:[%s1727_s5 + $0x120] ss:$8 sps:$4 sm:$0xff]  }
  0x72   : > { %1004 = vmatprep.subr.bf16.mxu1 %v1350_v10  ;;  %v1372_v25 = vld [vmem:[%s1727_s5 + $0x14] ss:$8 sps:$4 sm:$0xff]   ;;  %v1376_v27 = vld [vmem:[%s1727_s5 + $0x10] ss:$8 sps:$4 sm:$0xff]   ;;  %v1378_v29 = vld [vmem:[%s1727_s5 + $0x4] ss:$8 sps:$4 sm:$0xff]  }
  0x73   : > { %v1374_v26 = vld [vmem:[%s1727_s5 + $0x114] ss:$8 sps:$4 sm:$0xff]   ;;  %v1377_v28 = vld [vmem:[%s1727_s5 + $0x110] ss:$8 sps:$4 sm:$0xff]   ;;  %v1380_v30 = vld [vmem:[%s1727_s5 + $0x104] ss:$8 sps:$4 sm:$0xff]  }
  0x74   : > { %964 = vmatpush1.bf16.msra.mxu0 %v1352_v11  ;;  %v1382_v31 = vld [vmem:[%s1727_s5] ss:$8 sps:$4 sm:$0xff]   ;;  %v1384_v33 = vld [vmem:[%s1727_s5 + $0xf4] ss:$8 sps:$4 sm:$0xff]   ;;  %v1388_v35 = vld [vmem:[%s1727_s5 + $0xf0] ss:$8 sps:$4 sm:$0xff]  }
  0x75   : > { %1005 = vmatpush1.bf16.msra.mxu1 %v1353_v12  ;;  %965 = vmatprep.subr.bf16.mxu0 %v1354_v13  ;;  %v1383_v32 = vld [vmem:[%s1727_s5 + $0x100] ss:$8 sps:$4 sm:$0xff]   ;;  %v1386_v34 = vld [vmem:[%s1727_s5 + $0x1f4] ss:$8 sps:$4 sm:$0xff]   ;;  %v1389_v36 = vld [vmem:[%s1727_s5 + $0x1f0] ss:$8 sps:$4 sm:$0xff]  }
  0x76   : > { %1006 = vmatprep.subr.bf16.mxu1 %v1356_v14  ;;  %v1390_v37 = vld [vmem:[%s1727_s5 + $0xe4] ss:$8 sps:$4 sm:$0xff]   ;;  %v1394_v39 = vld [vmem:[%s1727_s5 + $0xe0] ss:$8 sps:$4 sm:$0xff]   ;;  %v1396_v41 = vld [vmem:[%s1727_s5 + $0xd4] ss:$8 sps:$4 sm:$0xff]  }
  0x77   : > { %v1392_v38 = vld [vmem:[%s1727_s5 + $0x1e4] ss:$8 sps:$4 sm:$0xff]   ;;  %v1395_v40 = vld [vmem:[%s1727_s5 + $0x1e0] ss:$8 sps:$4 sm:$0xff]   ;;  %v1398_v42 = vld [vmem:[%s1727_s5 + $0x1d4] ss:$8 sps:$4 sm:$0xff]  }
  0x78   : > { %966 = vmatpush1.bf16.msra.mxu0 %v1358_v15  ;;  %v1400_v43 = vld [vmem:[%s1727_s5 + $0xd0] ss:$8 sps:$4 sm:$0xff]   ;;  %v1402_v45 = vld [vmem:[%s1727_s5 + $0xc4] ss:$8 sps:$4 sm:$0xff]   ;;  %v1406_v50 = vld [vmem:[%s1727_s5 + $0xc0] ss:$8 sps:$4 sm:$0xff]  }
  0x79   : > { %1007 = vmatpush1.bf16.msra.mxu1 %v1359_v16  ;;  %967 = vmatprep.subr.bf16.mxu0 %v1360_v17  ;;  %v1401_v44 = vld [vmem:[%s1727_s5 + $0x1d0] ss:$8 sps:$4 sm:$0xff]   ;;  %v1404_v46 = vld [vmem:[%s1727_s5 + $0x1c4] ss:$8 sps:$4 sm:$0xff]   ;;  %v1407_v51 = vld [vmem:[%s1727_s5 + $0x1c0] ss:$8 sps:$4 sm:$0xff]  }
  0x7a   : > { %1008 = vmatprep.subr.bf16.mxu1 %v1362_v18  ;;  %v559_v47 = vld [vmem:[%s1713_s26] sm:$0xff]  ;;  %v560_v49 = vld [vmem:[%s1713_s26 + $0x8] sm:$0xff]  ;;  %v1414_v57 = vld [vmem:[%s1727_s5 + $0xa4] ss:$8 sps:$4 sm:$0xff]   ;;  %p1275_p13 = scmp.ne.s32.totalorder %s1474_s14, 8 }
  0x7b   : > { %v1208_v48 = vcombine.high %v559_v47, %v559_v47  ;;  %v1210_v52 = vcombine.high %v560_v49, %v560_v49  ;;  %v1408_v53 = vld [vmem:[%s1727_s5 + $0xb4] ss:$8 sps:$4 sm:$0xff]   ;;  %v1412_v55 = vld [vmem:[%s1727_s5 + $0xb0] ss:$8 sps:$4 sm:$0xff]   ;;  %v1416_v58 = vld [vmem:[%s1727_s5 + $0x1a4] ss:$8 sps:$4 sm:$0xff]   ;;  %v1207_v5 = vcombine.low %v559_v47, %v559_v47  ;;  %v1209_v6 = vcombine.low %v560_v49, %v560_v49 }
  0x7c   : > { %968 = vmatpush1.bf16.msra.mxu0 %v1364_v19  ;;  %v1410_v54 = vld [vmem:[%s1727_s5 + $0x1b4] ss:$8 sps:$4 sm:$0xff]   ;;  %v1413_v56 = vld [vmem:[%s1727_s5 + $0x1b0] ss:$8 sps:$4 sm:$0xff]   ;;  %v1418_v59 = vld [vmem:[%s1727_s5 + $0xa0] ss:$8 sps:$4 sm:$0xff]  }
  0x7d   : > { %1009 = vmatpush1.bf16.msra.mxu1 %v1365_v20  ;;  %969 = vmatprep.subr.bf16.mxu0 %v1366_v21  ;;  %v1419_v60 = vld [vmem:[%s1727_s5 + $0x1a0] ss:$8 sps:$4 sm:$0xff]   ;;  %v1420_v61 = vld [vmem:[%s1727_s5 + $0x94] ss:$8 sps:$4 sm:$0xff]   ;;  %v1424_v63 = vld [vmem:[%s1727_s5 + $0x90] ss:$8 sps:$4 sm:$0xff]  }
  0x7e   : > { %1010 = vmatprep.subr.bf16.mxu1 %v1368_v22  ;;  %991 = vmatprep.mubr.bf16.mxu0 %v1208_v48  ;;  %v1422_v62 = vld [vmem:[%s1727_s5 + $0x194] ss:$8 sps:$4 sm:$0xff]   ;;  %v1425_v0 = vld [vmem:[%s1727_s5 + $0x190] ss:$8 sps:$4 sm:$0xff]   ;;  %v1426_v1 = vld [vmem:[%s1727_s5 + $0x84] ss:$8 sps:$4 sm:$0xff]  }
  0x7f   : > { %1032 = vmatprep.mubr.bf16.mxu1 %v1210_v52  ;;  %v1428_v2 = vld [vmem:[%s1727_s5 + $0x184] ss:$8 sps:$4 sm:$0xff]   ;;  %v1430_v3 = vld [vmem:[%s1727_s5 + $0x80] ss:$8 sps:$4 sm:$0xff]   ;;  %v557_v8 = vld [vmem:[#allocation2] sm:$0xff] }
  0x80   : > { %970 = vmatpush1.bf16.msra.mxu0 %v1370_v23  ;;  %v1431_v4 = vld [vmem:[%s1727_s5 + $0x180] ss:$8 sps:$4 sm:$0xff]   ;;  %v558_v12 = vld [vmem:[#allocation2 + $0x8] sm:$0xff] }
  0x81   : > { %1011 = vmatpush1.bf16.msra.mxu1 %v1371_v24  ;;  %971 = vmatprep.subr.bf16.mxu0 %v1372_v25 }
  0x82   : > { %1012 = vmatprep.subr.bf16.mxu1 %v1374_v26 }
  0x84   : > { %972 = vmatpush1.bf16.msra.mxu0 %v1376_v27 }
  0x85   : > { %1013 = vmatpush1.bf16.msra.mxu1 %v1377_v28  ;;  %973 = vmatprep.subr.bf16.mxu0 %v1378_v29 }
  0x86   : > { %1014 = vmatprep.subr.bf16.mxu1 %v1380_v30 }
  0x88   : > { %974 = vmatpush1.bf16.msra.mxu0 %v1382_v31 }
  0x89   : > { %1015 = vmatpush1.bf16.msra.mxu1 %v1383_v32  ;;  %975 = vmatprep.subr.bf16.mxu0 %v1384_v33 }
  0x8a   : > { %1016 = vmatprep.subr.bf16.mxu1 %v1386_v34 }
  0x8c   : > { %976 = vmatpush2.bf16.msra.mxu0 %v1388_v35 }
  0x8d   : > { %1017 = vmatpush2.bf16.msra.mxu1 %v1389_v36  ;;  %977 = vmatprep.subr.bf16.mxu0 %v1390_v37 }
  0x8e   : > { %1018 = vmatprep.subr.bf16.mxu1 %v1392_v38 }
  0x90   : > { %978 = vmatpush2.bf16.msra.mxu0 %v1394_v39 }
  0x91   : > { %1019 = vmatpush2.bf16.msra.mxu1 %v1395_v40  ;;  %979 = vmatprep.subr.bf16.mxu0 %v1396_v41 }
  0x92   : > { %1020 = vmatprep.subr.bf16.mxu1 %v1398_v42 }
  0x94   : > { %980 = vmatpush2.bf16.msra.mxu0 %v1400_v43 }
  0x95   : > { %1021 = vmatpush2.bf16.msra.mxu1 %v1401_v44  ;;  %981 = vmatprep.subr.bf16.mxu0 %v1402_v45 }
  0x96   : > { %1022 = vmatprep.subr.bf16.mxu1 %v1404_v46 }
  0x98   : > { %982 = vmatpush2.bf16.msra.mxu0 %v1406_v50 }
  0x99   : > { %1023 = vmatpush2.bf16.msra.mxu1 %v1407_v51  ;;  %983 = vmatprep.subr.bf16.mxu0 %v1408_v53 }
  0x9a   : > { %1024 = vmatprep.subr.bf16.mxu1 %v1410_v54 }
  0x9c   : > { %984 = vmatpush2.bf16.msra.mxu0 %v1412_v55 }
  0x9d   : > { %1025 = vmatpush2.bf16.msra.mxu1 %v1413_v56  ;;  %985 = vmatprep.subr.bf16.mxu0 %v1414_v57 }
  0x9e   : > { %1026 = vmatprep.subr.bf16.mxu1 %v1416_v58 }
  0xa0   : > { %986 = vmatpush2.bf16.msra.mxu0 %v1418_v59 }
  0xa1   : > { %1027 = vmatpush2.bf16.msra.mxu1 %v1419_v60  ;;  %987 = vmatprep.subr.bf16.mxu0 %v1420_v61 }
  0xa2   : > { %1028 = vmatprep.subr.bf16.mxu1 %v1422_v62 }
  0xa4   : > { %988 = vmatpush2.bf16.msra.mxu0 %v1424_v63 }
  0xa5   : > { %1029 = vmatpush2.bf16.msra.mxu1 %v1425_v0  ;;  %989 = vmatprep.subr.bf16.mxu0 %v1426_v1 }
  0xa6   : > { %1030 = vmatprep.subr.bf16.mxu1 %v1428_v2 }
  0xa8   : > { %990 = vmatpush2.bf16.msra.mxu0 %v1430_v3 }
  0xa9   : > { %1031 = vmatpush2.bf16.msra.mxu1 %v1431_v4 }
  0xab   : > { %992 = vmatmul.mubr.bf16.vlgmr.msra.gmra.mxu0 %v1207_v5 }
  0xac   : > { %1033 = vmatmul.mubr.bf16.vlgmr.msra.gmra.mxu1 %v1209_v6 }
 0x16b   : > { %v993_v7 = vpop.f32.mrf.mxu0 }
 0x16c   : > { %v1034_v9 = vpop.f32.mrf.mxu1 }
 0x16d   : > { %v1035_v10 = vadd.f32 %v1034_v9, %v993_v7  ;;  %v995_v11 = vpop.f32.mrf.mxu0 }
 0x16e   : > { %v1036_v13 = vpop.f32.mrf.mxu1 }
 0x16f   : > { %v1041_v14 = vadd.f32 %v1035_v10, %v557_v8  ;;  %v1037_v15 = vadd.f32 %v1036_v13, %v995_v11  ;;  %v997_v16 = vpop.f32.mrf.mxu0  ;;  %1048 = sbr.rel (%p1275_p13) target bundleno = 383 (0x17f), region = 78 }
 0x170   : > { %v1038_v17 = vpop.f32.mrf.mxu1 }
 0x171   : > { %1043 = vst [vmem:[#allocation2] sm:$0xff] %v1041_v14  ;;  %v1042_v18 = vadd.f32 %v1037_v15, %v558_v12  ;;  %v998_v19 = vpop.f32.mrf.mxu0 }
 0x172   : > { %v1039_v20 = vpop.f32.mrf.mxu1 }
 0x173   : > { %1044 = vst [vmem:[#allocation2 + $0x8] sm:$0xff] %v1042_v18 }
 0x174   : > { %v1053_v21 = vlaneseq  ;;  %v1051_v23 = vld [vmem:[%s539_s12] sm:$0x3] }
 0x176   : > { %v1054_v22 = vshrl.u32 %v1053_v21, 7 }
 0x178   : > { %v1055_v24 = vsub.s32 0, %v1054_v22  ;;  %v1059_v25 = vsub.s32 1, %v1054_v22  ;;  %v1049_v26 = vld [vmem:[#allocation2] sm:$0xff] }
 0x17a   : > { %v1050_v27 = vld [vmem:[#allocation2 + $0x8] sm:$0xff]  ;;  %v1056_v28 = vrot.slane %v1051_v23, %v1055_v24  ;;  %v1060_v29 = vrot.slane %v1051_v23, %v1059_v25 }
 0x17c   : > { %v1063_v30 = vadd.f32 %v1056_v28, %v1049_v26  ;;  %v1064_v31 = vadd.f32 %v1060_v29, %v1050_v27 }
 0x17e   : > { %1065 = vst [vmem:[%s1725_s15] sm:$0xff] %v1063_v30  ;;  %1066 = vst [vmem:[%s1725_s15 + $0x8] sm:$0xff] %v1064_v31 }
 0x17f PF: > { %s13_s18 = sadd.s32 1, %s1490_s18   ;;  %s1829_s12 = smov %s1470_s13 }
 0x180   : > { %p10_p0 = scmp.ge.s32.totalorder %s13_s18, 38   ;;  %s1830_s13 = smov %s1564_s25 }
 0x181   : > { %s1831_s14 = smov %s1482_s16  ;;  %s1832_s15 = smov %s1486_s17 }
 0x182   : > { %s1833_s16 = smov %s1836_s19  ;;  %s1834_s17 = smov %s1840_s20 }
 0x183   :  { %12 = sbr.rel (!%p10_p0) target bundleno = 4 (0x4), region = 119 }

// kernel: encoder_mg_forward.23
= control target key start
LH: loop header
LB: loop body
LE: loop exit
PB: predicated region body
PF: predicated region fallthrough
CT: control target
= control target key end

     0   :  { %10 = vsyncpa [#allocation3], 0  ;;  %s3906_s0 = inlined_call_operand.vmem [shape: f32[2,1,1024], index: 0, kind: input, shape index: {}]   ;;  %s3907_s1 = inlined_call_operand.vmem [shape: f32[1024,64], index: 1, kind: input, shape index: {}]   ;;  %s3908_s2 = inlined_call_operand.vmem [shape: f32[64,1024], index: 2, kind: input, shape index: {}]   ;;  %s3909_s3 = inlined_call_operand.vmem [shape: f32[1,1024], index: 3, kind: input, shape index: {}]   ;;  %s3910_s4 = inlined_call_operand.vmem [shape: f32[1,1024], index: 4, kind: input, shape index: {}]   ;;  %s3911_s5 = inlined_call_operand.hbm [shape: f32[2,1,1024], index: 5, kind: output, shape index: {}]  }
   0x1   :  { %12 = vsyncpa [#allocation3 + $0x1], 0  ;;  %s2351_s18 = smov 0   ;;  %s2353_s19 = smov 0  }
   0x2   :  { %s2355_s20 = smov 0   ;;  %s2357_s21 = smov 0  }
   0x3 LB: > { %s2372_s22 = sadd.s32 4294967295, %s2316_s21   ;;  %s1898_s23 = sadd.s32 4294967294, %s2316_s21   ;;  %s2316_s21 = sphi %s2357_s21, %s4179_s21   ;;  %s2312_s20 = sphi %s2355_s20, %s4178_s20   ;;  %s2308_s19 = sphi %s2353_s19, %s4177_s19   ;;  %s2304_s18 = sphi %s2351_s18, %s4176_s18  }
   0x4   : > { %s2376_s24 = sadd.s32 1, %s2316_s21   ;;  %s135_s25 = sadd.s32 1, %s2312_s20 }
   0x5   : > { %s132_s26 = ssub.s32 %s2316_s21, %s2376_s24  ;;  %p145_p0 = scmp.ne.s32.totalorder %s2312_s20, %s2308_s19 }
   0x6   : > { %p133_p1 = scmp.eq.s32.totalorder %s132_s26, 0  ;;  %p146_p2 = scmp.eq.s32.totalorder %s2372_s22, 1 }
   0x7   : > { %p151_p3 = scmp.ne.s32.totalorder %s2308_s19, %s2304_s18  ;;  %p152_p4 = scmp.eq.s32.totalorder %s1898_s23, 1 }
   0x8   : > { %s2387_s27 = scalar_select %p133_p1, %s2312_s20, %s135_s25  }
   0x9   : > { %p2389_p5 = por %p146_p2, %p145_p0  ;;  %p2393_p6 = por %p152_p4, %p151_p3 }
   0xa   : > { %p1901_p7 = scmp.ge.s32.totalorder %s2316_s21, 1  ;;  %p189_p8 = scmp.lt.s32.totalorder %s2316_s21, 3 }
   0xc   : > { %p190_p9 = pnand %p1901_p7, %p189_p8 }
   0xe   : > { %193 = sbr.rel (%p190_p9) target bundleno = 623 (0x26f), region = 40 }
  0x13   : > { %v2402_v0 = vld [vmem:[%s3907_s1 + $0xf8] sm:$0xff]  ;;  %v2424_v4 = vld [vmem:[%s3907_s1 + $0xf0] sm:$0xff]  ;;  %v2446_v8 = vld [vmem:[%s3907_s1 + $0xe8] sm:$0xff]  ;;  %p216_p10 = scmp.lt.s32.totalorder %s2372_s22, 1  ;;  %v353_v38 = vlaneseq  ;;  %vm1061_vm0 = vcmask 523264   ;;  %s213_s17 = sand.u32 1, %s2308_s19  }
  0x14   : > { %v2407_v1 = vld [vmem:[%s3907_s1 + $0x1f8] sm:$0xff]  ;;  %1918 = vmatprep.subr.mxu0 %v2402_v0  ;;  %v2429_v5 = vld [vmem:[%s3907_s1 + $0x1f0] sm:$0xff]  ;;  %v2453_v9 = vld [vmem:[%s3907_s1 + $0x1e8] sm:$0xff]  ;;  %s1902_s23 = sshll.u32 %s213_s17, 3  ;;  %s1825_s9 = scalar_lea.sflag [#allocation3], %s213_s17 }
  0x15   : > { %v2412_v2 = vld [vmem:[%s3907_s1 + $0x78] sm:$0xff]  ;;  %1953 = vmatprep.subr.mxu1 %v2407_v1  ;;  %v2436_v6 = vld [vmem:[%s3907_s1 + $0x70] sm:$0xff]  ;;  %v2458_v10 = vld [vmem:[%s3907_s1 + $0x68] sm:$0xff]  ;;  %s2613_s13 = scalar_select %p216_p10, %s2372_s22, 1  ;;  %v2676_v47 = vshrl.u32 %v353_v38, 7 }
  0x16   : > { %v2419_v3 = vld [vmem:[%s3907_s1 + $0x178] sm:$0xff]  ;;  %1919 = vmatpush3.msra.mxu0 %v2412_v2  ;;  %v2441_v7 = vld [vmem:[%s3907_s1 + $0x170] sm:$0xff]  ;;  %v2463_v11 = vld [vmem:[%s3907_s1 + $0x168] sm:$0xff]  ;;  %s215_s26 = scalar_lea.vmem [#allocation2], %s1902_s23  ;;  %s2320_s11 = smov [#allocation2]  }
  0x17   : > { %1954 = vmatpush3.msra.mxu1 %v2419_v3  ;;  %1920 = vmatprep.subr.mxu0 %v2424_v4  ;;  %v2470_v12 = vld [vmem:[%s3907_s1 + $0xe0] sm:$0xff]  ;;  %v2494_v16 = vld [vmem:[%s3907_s1 + $0xd8] sm:$0xff]  ;;  %v2518_v20 = vld [vmem:[%s3907_s1 + $0xd0] sm:$0xff]  ;;  %s1903_s15 = sshll.u32 %s2613_s13, 3  ;;  %4004 = vst [vmem:[#allocation5_spill] sm:$0xff] %v2676_v47  ;;  %v2732_v56 = vsub.s32 1, %v2676_v47 }
  0x18   : > { %1955 = vmatprep.subr.mxu1 %v2429_v5  ;;  %1921 = vmatpush3.msra.mxu0 %v2436_v6  ;;  %v2475_v13 = vld [vmem:[%s3907_s1 + $0x1e0] sm:$0xff]  ;;  %v2499_v17 = vld [vmem:[%s3907_s1 + $0x1d8] sm:$0xff]  ;;  %v2523_v21 = vld [vmem:[%s3907_s1 + $0x1d0] sm:$0xff]  ;;  %s2705_s14 = scalar_lea.vmem %s3906_s0, %s1903_s15  ;;  %v2750_v60 = vsub.s32 3, %v2676_v47  ;;  %v2765_v63 = vsub.s32 0, %v2676_v47  ;;  %v2768_v38 = vsub.s32 2, %v2676_v47 }
  0x19   : > { %1956 = vmatpush3.msra.mxu1 %v2441_v7  ;;  %1922 = vmatprep.subr.mxu0 %v2446_v8  ;;  %v2482_v14 = vld [vmem:[%s3907_s1 + $0x60] sm:$0xff]  ;;  %v2506_v18 = vld [vmem:[%s3907_s1 + $0x58] sm:$0xff]  ;;  %v2530_v22 = vld [vmem:[%s3907_s1 + $0x50] sm:$0xff]  ;;  %4010 = vst [vmem:[#allocation11_spill] sm:$0xff] %v2732_v56  ;;  %s1917_s13 = sshll.u32 %s2372_s22, 7  ;;  %s1839_s30 = sshll.u32 %s215_s26, 4  ;;  %s1840_s30 = int_to_ptr.vmem [resolvable:$true] %s1839_s30 }
  0x1a   : > { %1957 = vmatprep.subr.mxu1 %v2453_v9  ;;  %v2487_v15 = vld [vmem:[%s3907_s1 + $0x160] sm:$0xff]  ;;  %1923 = vmatpush3.msra.mxu0 %v2458_v10  ;;  %v2511_v19 = vld [vmem:[%s3907_s1 + $0x158] sm:$0xff]  ;;  %v2535_v23 = vld [vmem:[%s3907_s1 + $0x150] sm:$0xff]  ;;  %4013 = vst [vmem:[#allocation14_spill] sm:$0xff] %v2750_v60  ;;  %s1837_s8 = scalar_lea.hbm %s3911_s5, %s1917_s13  ;;  %s2256_s10 = scalar_lea.vmem %s1840_s30, 128 }
  0x1b   : > { %1958 = vmatpush3.msra.mxu1 %v2463_v11  ;;  %1924 = vmatprep.subr.mxu0 %v2470_v12  ;;  %v2542_v24 = vld [vmem:[%s3907_s1 + $0xc8] sm:$0xff]  ;;  %v2567_v28 = vld [vmem:[%s3907_s1 + $0xc0] sm:$0xff]  ;;  %v2591_v32 = vld [vmem:[%s3907_s1 + $0xb8] sm:$0xff]  ;;  %4016 = vst [vmem:[#allocation17_spill] sm:$0xff] %v2765_v63  ;;  %p2257_p11 = scmp.ne.s32.totalorder %s1840_s30, %s2256_s10 }
  0x1c   : > { %1959 = vmatprep.subr.mxu1 %v2475_v13  ;;  %1925 = vmatpush3.msra.mxu0 %v2482_v14  ;;  %v2547_v25 = vld [vmem:[%s3907_s1 + $0x1c8] sm:$0xff]  ;;  %v2572_v29 = vld [vmem:[%s3907_s1 + $0x1c0] sm:$0xff]  ;;  %v2596_v33 = vld [vmem:[%s3907_s1 + $0x1b8] sm:$0xff]  ;;  %4017 = vst [vmem:[#allocation18_spill] sm:$0xff] %v2768_v38 }
  0x1d   : > { %1960 = vmatpush3.msra.mxu1 %v2487_v15  ;;  %1926 = vmatprep.subr.mxu0 %v2494_v16  ;;  %v2554_v26 = vld [vmem:[%s3907_s1 + $0x48] sm:$0xff]  ;;  %v2579_v30 = vld [vmem:[%s3907_s1 + $0x40] sm:$0xff]  ;;  %v2603_v34 = vld [vmem:[%s3907_s1 + $0x38] sm:$0xff]  ;;  %p2258_p12 = pnand %p2257_p11, %p2389_p5 }
  0x1e   : > { %1961 = vmatprep.subr.mxu1 %v2499_v17  ;;  %1927 = vmatpush3.msra.mxu0 %v2506_v18  ;;  %v2559_v27 = vld [vmem:[%s3907_s1 + $0x148] sm:$0xff]  ;;  %v2584_v31 = vld [vmem:[%s3907_s1 + $0x140] sm:$0xff]  ;;  %v2608_v35 = vld [vmem:[%s3907_s1 + $0x138] sm:$0xff] }
  0x1f   : > { %1962 = vmatpush3.msra.mxu1 %v2511_v19  ;;  %1928 = vmatprep.subr.mxu0 %v2518_v20  ;;  %v2620_v36 = vld [vmem:[%s3907_s1 + $0xb0] sm:$0xff]  ;;  %v2644_v41 = vld [vmem:[%s3907_s1 + $0xa8] sm:$0xff]  ;;  %v2669_v45 = vld [vmem:[%s3907_s1 + $0xa0] sm:$0xff]  ;;  %p2259_p13 = pneg %p2258_p12 }
  0x20   : > { %1963 = vmatprep.subr.mxu1 %v2523_v21  ;;  %1929 = vmatpush3.msra.mxu0 %v2530_v22  ;;  %v2625_v37 = vld [vmem:[%s3907_s1 + $0x1b0] sm:$0xff]  ;;  %v2649_v42 = vld [vmem:[%s3907_s1 + $0x1a8] sm:$0xff]  ;;  %v2674_v46 = vld [vmem:[%s3907_s1 + $0x1a0] sm:$0xff] }
  0x21   : > { %1964 = vmatpush3.msra.mxu1 %v2535_v23  ;;  %1930 = vmatprep.subr.mxu0 %v2542_v24  ;;  %v2632_v39 = vld [vmem:[%s3907_s1 + $0x30] sm:$0xff]  ;;  %v2656_v43 = vld [vmem:[%s3907_s1 + $0x28] sm:$0xff]  ;;  %v2683_v48 = vld [vmem:[%s3907_s1 + $0x20] sm:$0xff] }
  0x22   : > { %1965 = vmatprep.subr.mxu1 %v2547_v25  ;;  %1931 = vmatpush3.msra.mxu0 %v2554_v26  ;;  %v2637_v40 = vld [vmem:[%s3907_s1 + $0x130] sm:$0xff]  ;;  %v2661_v44 = vld [vmem:[%s3907_s1 + $0x128] sm:$0xff]  ;;  %v2688_v49 = vld [vmem:[%s3907_s1 + $0x120] sm:$0xff] }
  0x23   : > { %1966 = vmatpush3.msra.mxu1 %v2559_v27  ;;  %1932 = vmatprep.subr.mxu0 %v2567_v28  ;;  %v2695_v50 = vld [vmem:[%s3907_s1 + $0x98] sm:$0xff]  ;;  %v2724_v54 = vld [vmem:[%s3907_s1 + $0x90] sm:$0xff]  ;;  %v2747_v59 = vld [vmem:[%s2705_s14] sm:$0xff] }
  0x24   : > { %1967 = vmatprep.subr.mxu1 %v2572_v29  ;;  %1933 = vmatpush3.msra.mxu0 %v2579_v30  ;;  %v2700_v51 = vld [vmem:[%s3907_s1 + $0x198] sm:$0xff]  ;;  %4008 = vst [vmem:[#allocation9_spill] sm:$0xff] %v2724_v54  ;;  %v2729_v55 = vld [vmem:[%s3907_s1 + $0x190] sm:$0xff]  ;;  %v2757_v61 = vld [vmem:[%s3907_s1 + $0x88] sm:$0xff] }
  0x25   : > { %1968 = vmatpush3.msra.mxu1 %v2584_v31  ;;  %1934 = vmatprep.subr.mxu0 %v2591_v32  ;;  %4005 = vst [vmem:[#allocation6_spill] sm:$0xff] %v2700_v51  ;;  %v2712_v52 = vld [vmem:[%s3907_s1 + $0x18] sm:$0xff]  ;;  %4009 = vst [vmem:[#allocation10_spill] sm:$0xff] %v2729_v55  ;;  %v2739_v57 = vld [vmem:[%s3907_s1 + $0x10] sm:$0xff] }
  0x26   : > { %1969 = vmatprep.subr.mxu1 %v2596_v33  ;;  %1935 = vmatpush3.msra.mxu0 %v2603_v34  ;;  %4006 = vst [vmem:[#allocation7_spill] sm:$0xff] %v2712_v52  ;;  %v2717_v53 = vld [vmem:[%s3907_s1 + $0x118] sm:$0xff]  ;;  %4011 = vst [vmem:[#allocation12_spill] sm:$0xff] %v2739_v57  ;;  %v2744_v58 = vld [vmem:[%s3907_s1 + $0x110] sm:$0xff] }
  0x27   : > { %1970 = vmatpush3.msra.mxu1 %v2608_v35  ;;  %1936 = vmatprep.subr.mxu0 %v2620_v36  ;;  %4007 = vst [vmem:[#allocation8_spill] sm:$0xff] %v2717_v53  ;;  %4012 = vst [vmem:[#allocation13_spill] sm:$0xff] %v2744_v58  ;;  %v2762_v62 = vld [vmem:[%s3907_s1 + $0x188] sm:$0xff] }
  0x28   : > { %1971 = vmatprep.subr.mxu1 %v2625_v37  ;;  %1937 = vmatpush3.msra.mxu0 %v2632_v39  ;;  %4014 = vst [vmem:[#allocation15_spill] sm:$0xff] %v2757_v61  ;;  %4015 = vst [vmem:[#allocation16_spill] sm:$0xff] %v2762_v62 }
  0x29   : > { %1972 = vmatpush3.msra.mxu1 %v2637_v40  ;;  %1938 = vmatprep.subr.mxu0 %v2644_v41 }
  0x2a   : > { %1973 = vmatprep.subr.mxu1 %v2649_v42  ;;  %1939 = vmatpush3.msra.mxu0 %v2656_v43 }
  0x2b   : > { %1974 = vmatpush3.msra.mxu1 %v2661_v44  ;;  %1940 = vmatprep.subr.mxu0 %v2669_v45 }
  0x2c   : > { %1975 = vmatprep.subr.mxu1 %v2674_v46  ;;  %1941 = vmatpush3.msra.mxu0 %v2683_v48 }
  0x2d   : > { %1976 = vmatpush3.msra.mxu1 %v2688_v49  ;;  %1942 = vmatprep.subr.mxu0 %v2695_v50 }
  0x2e   : > { %1977 = vmatprep.subr.mxu1 %v2700_v51  ;;  %1943 = vmatpush3.msra.mxu0 %v2712_v52  ;;  %v2780_v52 = vld [vmem:[%s3907_s1 + $0x108] sm:$0xff]  ;;  %v360_v51 = vrot.slane %v2747_v59, %v2732_v56  ;;  %v2810_v56 = vld [vmem:[%s3907_s1 + $0x100] sm:$0xff] }
  0x2f   : > { %1978 = vmatpush3.msra.mxu1 %v2717_v53  ;;  %1944 = vmatprep.subr.mxu0 %v2724_v54  ;;  %v2775_v53 = vld [vmem:[%s3907_s1 + $0x8] sm:$0xff]  ;;  %4019 = vst [vmem:[#allocation20_spill] sm:$0xff] %v2780_v52  ;;  %v2787_v54 = vld [vmem:[%s3907_s1 + $0x80] sm:$0xff]  ;;  %4023 = vst [vmem:[#allocation24_spill] sm:$0xff] %v2810_v56 }
  0x30   : > { %1979 = vmatprep.subr.mxu1 %v2729_v55  ;;  %4018 = vst [vmem:[#allocation19_spill] sm:$0xff] %v2775_v53  ;;  %1945 = vmatpush3.msra.mxu0 %v2739_v57  ;;  %4020 = vst [vmem:[#allocation21_spill] sm:$0xff] %v2787_v54  ;;  %v2792_v55 = vld [vmem:[%s3907_s1 + $0x180] sm:$0xff]  ;;  %v368_v57 = vrot.slane %v2747_v59, %v2750_v60 }
  0x31   : > { %1980 = vmatpush3.msra.mxu1 %v2744_v58  ;;  %4021 = vst [vmem:[#allocation22_spill] sm:$0xff] %v2792_v55  ;;  %1946 = vmatprep.subr.mxu0 %v2757_v61  ;;  %v2801_v58 = vld [vmem:[%s3907_s1] sm:$0xff]  ;;  %v364_v61 = vrot.slane %v2747_v59, %v2768_v38  ;;  %v3169_v38 = vsub.s32 7, %v2676_v47 }
  0x32   : > { %1981 = vmatprep.subr.mxu1 %v2762_v62  ;;  %4022 = vst [vmem:[#allocation23_spill] sm:$0xff] %v2801_v58  ;;  %1947 = vmatpush3.msra.mxu0 %v2775_v53  ;;  %v356_v62 = vrot.slane %v2747_v59, %v2765_v63  ;;  %v2827_v53 = vld [vmem:[%s3907_s1 + $0x3f8] sm:$0xff]  ;;  %v3184_v63 = vsub.s32 6, %v2676_v47 }
  0x33   : > { %1982 = vmatpush3.msra.mxu1 %v2780_v52  ;;  %1948 = vmatprep.subr.mxu0 %v2787_v54  ;;  %v2822_v52 = vld [vmem:[%s3907_s1 + $0x2f8] sm:$0xff]  ;;  %4025 = vst [vmem:[#allocation26_spill] sm:$0xff] %v2827_v53  ;;  %v3154_v54 = vsub.s32 4, %v2676_v47  ;;  %4083 = vst [vmem:[#allocation84_spill] sm:$0xff] %v3169_v38 }
  0x34   : > { %1983 = vmatprep.subr.mxu1 %v2792_v55  ;;  %1949 = vmatpush3.msra.mxu0 %v2801_v58  ;;  %4024 = vst [vmem:[#allocation25_spill] sm:$0xff] %v2822_v52  ;;  %v2833_v55 = vld [vmem:[%s3907_s1 + $0x278] sm:$0xff]  ;;  %v2843_v58 = vld [vmem:[%s3907_s1 + $0x2f0] sm:$0xff]  ;;  %4084 = vst [vmem:[#allocation85_spill] sm:$0xff] %v3184_v63 }
  0x35   : > { %457 = vmatprep.mubr.f32.mxu0 %v360_v51  ;;  %1984 = vmatpush3.msra.mxu1 %v2810_v56  ;;  %4026 = vst [vmem:[#allocation27_spill] sm:$0xff] %v2833_v55  ;;  %v2838_v51 = vld [vmem:[%s3907_s1 + $0x378] sm:$0xff]  ;;  %4028 = vst [vmem:[#allocation29_spill] sm:$0xff] %v2843_v58  ;;  %v2855_v56 = vld [vmem:[%s3907_s1 + $0x270] sm:$0xff] }
  0x36   : > { %527 = vmatprep.mubr.f32.mxu1 %v368_v57  ;;  %4027 = vst [vmem:[#allocation28_spill] sm:$0xff] %v2838_v51  ;;  %458 = vmatmul.mubr.f32.vlgmr.msra.gmra.mxu0 %v356_v62  ;;  %v2848_v57 = vld [vmem:[%s3907_s1 + $0x3f0] sm:$0xff]  ;;  %4030 = vst [vmem:[#allocation31_spill] sm:$0xff] %v2855_v56  ;;  %v2867_v62 = vld [vmem:[%s3907_s1 + $0x2e8] sm:$0xff] }
  0x37   : > { %528 = vmatmul.mubr.f32.vlgmr.msra.gmra.mxu1 %v364_v61  ;;  %4029 = vst [vmem:[#allocation30_spill] sm:$0xff] %v2848_v57  ;;  %1988 = vmatprep.subr.mxu0 %v2822_v52  ;;  %v2860_v61 = vld [vmem:[%s3907_s1 + $0x370] sm:$0xff]  ;;  %4032 = vst [vmem:[#allocation33_spill] sm:$0xff] %v2867_v62  ;;  %v3139_v52 = vsub.s32 5, %v2676_v47  ;;  %v3205_v47 = vld [vmem:[%s3907_s1 + $0x200] sm:$0xff] }
  0x38   : > { %2023 = vmatprep.subr.mxu1 %v2827_v53  ;;  %4031 = vst [vmem:[#allocation32_spill] sm:$0xff] %v2860_v61  ;;  %1989 = vmatpush3.msra.mxu0 %v2833_v55  ;;  %v2872_v53 = vld [vmem:[%s3907_s1 + $0x3e8] sm:$0xff]  ;;  %4080 = vst [vmem:[#allocation81_spill] sm:$0xff] %v3154_v54 }
  0x39   : > { %2024 = vmatpush3.msra.mxu1 %v2838_v51  ;;  %4033 = vst [vmem:[#allocation34_spill] sm:$0xff] %v2872_v53  ;;  %1990 = vmatprep.subr.mxu0 %v2843_v58  ;;  %v2879_v55 = vld [vmem:[%s3907_s1 + $0x268] sm:$0xff]  ;;  %v2891_v58 = vld [vmem:[%s3907_s1 + $0x2e0] sm:$0xff]  ;;  %4078 = vst [vmem:[#allocation79_spill] sm:$0xff] %v3139_v52  ;;  %v376_v60 = vrot.slane %v2747_v59, %v3139_v52 }
  0x3a   : > { %2025 = vmatprep.subr.mxu1 %v2848_v57  ;;  %4034 = vst [vmem:[#allocation35_spill] sm:$0xff] %v2879_v55  ;;  %v2884_v51 = vld [vmem:[%s3907_s1 + $0x368] sm:$0xff]  ;;  %1991 = vmatpush3.msra.mxu0 %v2855_v56  ;;  %4036 = vst [vmem:[#allocation37_spill] sm:$0xff] %v2891_v58  ;;  %v2896_v57 = vld [vmem:[%s3907_s1 + $0x3e0] sm:$0xff] }
  0x3b   : > { %4035 = vst [vmem:[#allocation36_spill] sm:$0xff] %v2884_v51  ;;  %2026 = vmatpush3.msra.mxu1 %v2860_v61  ;;  %4037 = vst [vmem:[#allocation38_spill] sm:$0xff] %v2896_v57  ;;  %1992 = vmatprep.subr.mxu0 %v2867_v62  ;;  %v2903_v56 = vld [vmem:[%s3907_s1 + $0x260] sm:$0xff]  ;;  %v2915_v62 = vld [vmem:[%s3907_s1 + $0x2d8] sm:$0xff] }
  0x3c   : > { %2027 = vmatprep.subr.mxu1 %v2872_v53  ;;  %4038 = vst [vmem:[#allocation39_spill] sm:$0xff] %v2903_v56  ;;  %v2908_v61 = vld [vmem:[%s3907_s1 + $0x360] sm:$0xff]  ;;  %1993 = vmatpush3.msra.mxu0 %v2879_v55  ;;  %4040 = vst [vmem:[#allocation41_spill] sm:$0xff] %v2915_v62  ;;  %v2920_v53 = vld [vmem:[%s3907_s1 + $0x3d8] sm:$0xff] }
  0x3d   : > { %4039 = vst [vmem:[#allocation40_spill] sm:$0xff] %v2908_v61  ;;  %2028 = vmatpush3.msra.mxu1 %v2884_v51  ;;  %4041 = vst [vmem:[#allocation42_spill] sm:$0xff] %v2920_v53  ;;  %1994 = vmatprep.subr.mxu0 %v2891_v58  ;;  %v2927_v55 = vld [vmem:[%s3907_s1 + $0x258] sm:$0xff]  ;;  %v2939_v58 = vld [vmem:[%s3907_s1 + $0x2d0] sm:$0xff] }
  0x3e   : > { %2029 = vmatprep.subr.mxu1 %v2896_v57  ;;  %4042 = vst [vmem:[#allocation43_spill] sm:$0xff] %v2927_v55  ;;  %v2932_v51 = vld [vmem:[%s3907_s1 + $0x358] sm:$0xff]  ;;  %1995 = vmatpush3.msra.mxu0 %v2903_v56  ;;  %4044 = vst [vmem:[#allocation45_spill] sm:$0xff] %v2939_v58  ;;  %v2944_v57 = vld [vmem:[%s3907_s1 + $0x3d0] sm:$0xff] }
  0x3f   : > { %4043 = vst [vmem:[#allocation44_spill] sm:$0xff] %v2932_v51  ;;  %2030 = vmatpush3.msra.mxu1 %v2908_v61  ;;  %4045 = vst [vmem:[#allocation46_spill] sm:$0xff] %v2944_v57  ;;  %1996 = vmatprep.subr.mxu0 %v2915_v62  ;;  %v2951_v56 = vld [vmem:[%s3907_s1 + $0x250] sm:$0xff]  ;;  %v2963_v62 = vld [vmem:[%s3907_s1 + $0x2c8] sm:$0xff] }
  0x40   : > { %2031 = vmatprep.subr.mxu1 %v2920_v53  ;;  %4046 = vst [vmem:[#allocation47_spill] sm:$0xff] %v2951_v56  ;;  %v2956_v61 = vld [vmem:[%s3907_s1 + $0x350] sm:$0xff]  ;;  %1997 = vmatpush3.msra.mxu0 %v2927_v55  ;;  %4048 = vst [vmem:[#allocation49_spill] sm:$0xff] %v2963_v62  ;;  %v2968_v53 = vld [vmem:[%s3907_s1 + $0x3c8] sm:$0xff] }
  0x41   : > { %4047 = vst [vmem:[#allocation48_spill] sm:$0xff] %v2956_v61  ;;  %2032 = vmatpush3.msra.mxu1 %v2932_v51  ;;  %4049 = vst [vmem:[#allocation50_spill] sm:$0xff] %v2968_v53  ;;  %1998 = vmatprep.subr.mxu0 %v2939_v58  ;;  %v2975_v55 = vld [vmem:[%s3907_s1 + $0x248] sm:$0xff]  ;;  %v2987_v58 = vld [vmem:[%s3907_s1 + $0x2c0] sm:$0xff] }
  0x42   : > { %2033 = vmatprep.subr.mxu1 %v2944_v57  ;;  %4050 = vst [vmem:[#allocation51_spill] sm:$0xff] %v2975_v55  ;;  %v2980_v51 = vld [vmem:[%s3907_s1 + $0x348] sm:$0xff]  ;;  %1999 = vmatpush3.msra.mxu0 %v2951_v56  ;;  %4052 = vst [vmem:[#allocation53_spill] sm:$0xff] %v2987_v58  ;;  %v2992_v57 = vld [vmem:[%s3907_s1 + $0x3c0] sm:$0xff] }
  0x43   : > { %4051 = vst [vmem:[#allocation52_spill] sm:$0xff] %v2980_v51  ;;  %2034 = vmatpush3.msra.mxu1 %v2956_v61  ;;  %4053 = vst [vmem:[#allocation54_spill] sm:$0xff] %v2992_v57  ;;  %2000 = vmatprep.subr.mxu0 %v2963_v62  ;;  %v2999_v56 = vld [vmem:[%s3907_s1 + $0x240] sm:$0xff]  ;;  %v3011_v62 = vld [vmem:[%s3907_s1 + $0x2b8] sm:$0xff] }
  0x44   : > { %2035 = vmatprep.subr.mxu1 %v2968_v53  ;;  %4054 = vst [vmem:[#allocation55_spill] sm:$0xff] %v2999_v56  ;;  %v3004_v61 = vld [vmem:[%s3907_s1 + $0x340] sm:$0xff]  ;;  %2001 = vmatpush3.msra.mxu0 %v2975_v55  ;;  %4056 = vst [vmem:[#allocation57_spill] sm:$0xff] %v3011_v62  ;;  %v3016_v53 = vld [vmem:[%s3907_s1 + $0x3b8] sm:$0xff] }
  0x45   : > { %4055 = vst [vmem:[#allocation56_spill] sm:$0xff] %v3004_v61  ;;  %2036 = vmatpush3.msra.mxu1 %v2980_v51  ;;  %4057 = vst [vmem:[#allocation58_spill] sm:$0xff] %v3016_v53  ;;  %2002 = vmatprep.subr.mxu0 %v2987_v58  ;;  %v3023_v55 = vld [vmem:[%s3907_s1 + $0x238] sm:$0xff]  ;;  %v3035_v58 = vld [vmem:[%s3907_s1 + $0x2b0] sm:$0xff] }
  0x46   : > { %2037 = vmatprep.subr.mxu1 %v2992_v57  ;;  %4058 = vst [vmem:[#allocation59_spill] sm:$0xff] %v3023_v55  ;;  %v3028_v51 = vld [vmem:[%s3907_s1 + $0x338] sm:$0xff]  ;;  %2003 = vmatpush3.msra.mxu0 %v2999_v56  ;;  %4060 = vst [vmem:[#allocation61_spill] sm:$0xff] %v3035_v58  ;;  %v3040_v57 = vld [vmem:[%s3907_s1 + $0x3b0] sm:$0xff] }
  0x47   : > { %4059 = vst [vmem:[#allocation60_spill] sm:$0xff] %v3028_v51  ;;  %2038 = vmatpush3.msra.mxu1 %v3004_v61  ;;  %4061 = vst [vmem:[#allocation62_spill] sm:$0xff] %v3040_v57  ;;  %2004 = vmatprep.subr.mxu0 %v3011_v62  ;;  %v3047_v56 = vld [vmem:[%s3907_s1 + $0x230] sm:$0xff]  ;;  %v3059_v62 = vld [vmem:[%s3907_s1 + $0x2a8] sm:$0xff] }
  0x48   : > { %2039 = vmatprep.subr.mxu1 %v3016_v53  ;;  %4062 = vst [vmem:[#allocation63_spill] sm:$0xff] %v3047_v56  ;;  %v3052_v61 = vld [vmem:[%s3907_s1 + $0x330] sm:$0xff]  ;;  %2005 = vmatpush3.msra.mxu0 %v3023_v55  ;;  %4064 = vst [vmem:[#allocation65_spill] sm:$0xff] %v3059_v62  ;;  %v3064_v53 = vld [vmem:[%s3907_s1 + $0x3a8] sm:$0xff] }
  0x49   : > { %4063 = vst [vmem:[#allocation64_spill] sm:$0xff] %v3052_v61  ;;  %2040 = vmatpush3.msra.mxu1 %v3028_v51  ;;  %4065 = vst [vmem:[#allocation66_spill] sm:$0xff] %v3064_v53  ;;  %2006 = vmatprep.subr.mxu0 %v3035_v58  ;;  %v3071_v55 = vld [vmem:[%s3907_s1 + $0x228] sm:$0xff]  ;;  %v3083_v58 = vld [vmem:[%s3907_s1 + $0x2a0] sm:$0xff] }
  0x4a   : > { %2041 = vmatprep.subr.mxu1 %v3040_v57  ;;  %4066 = vst [vmem:[#allocation67_spill] sm:$0xff] %v3071_v55  ;;  %v3076_v51 = vld [vmem:[%s3907_s1 + $0x328] sm:$0xff]  ;;  %2007 = vmatpush3.msra.mxu0 %v3047_v56  ;;  %4068 = vst [vmem:[#allocation69_spill] sm:$0xff] %v3083_v58  ;;  %v3088_v57 = vld [vmem:[%s3907_s1 + $0x3a0] sm:$0xff] }
  0x4b   : > { %4067 = vst [vmem:[#allocation68_spill] sm:$0xff] %v3076_v51  ;;  %2042 = vmatpush3.msra.mxu1 %v3052_v61  ;;  %4069 = vst [vmem:[#allocation70_spill] sm:$0xff] %v3088_v57  ;;  %2008 = vmatprep.subr.mxu0 %v3059_v62  ;;  %v3095_v56 = vld [vmem:[%s3907_s1 + $0x220] sm:$0xff]  ;;  %v3107_v62 = vld [vmem:[%s3907_s1 + $0x298] sm:$0xff] }
  0x4c   : > { %2043 = vmatprep.subr.mxu1 %v3064_v53  ;;  %4070 = vst [vmem:[#allocation71_spill] sm:$0xff] %v3095_v56  ;;  %v3100_v61 = vld [vmem:[%s3907_s1 + $0x320] sm:$0xff]  ;;  %2009 = vmatpush3.msra.mxu0 %v3071_v55  ;;  %4072 = vst [vmem:[#allocation73_spill] sm:$0xff] %v3107_v62  ;;  %v3112_v53 = vld [vmem:[%s3907_s1 + $0x398] sm:$0xff] }
  0x4d   : > { %4071 = vst [vmem:[#allocation72_spill] sm:$0xff] %v3100_v61  ;;  %2044 = vmatpush3.msra.mxu1 %v3076_v51  ;;  %4073 = vst [vmem:[#allocation74_spill] sm:$0xff] %v3112_v53  ;;  %2010 = vmatprep.subr.mxu0 %v3083_v58  ;;  %v3119_v55 = vld [vmem:[%s3907_s1 + $0x218] sm:$0xff]  ;;  %v3131_v58 = vld [vmem:[%s3907_s1 + $0x290] sm:$0xff] }
  0x4e   : > { %2045 = vmatprep.subr.mxu1 %v3088_v57  ;;  %4074 = vst [vmem:[#allocation75_spill] sm:$0xff] %v3119_v55  ;;  %v3124_v51 = vld [vmem:[%s3907_s1 + $0x318] sm:$0xff]  ;;  %2011 = vmatpush3.msra.mxu0 %v3095_v56  ;;  %4076 = vst [vmem:[#allocation77_spill] sm:$0xff] %v3131_v58  ;;  %v3136_v57 = vld [vmem:[%s3907_s1 + $0x390] sm:$0xff] }
  0x4f   : > { %4075 = vst [vmem:[#allocation76_spill] sm:$0xff] %v3124_v51  ;;  %2046 = vmatpush3.msra.mxu1 %v3100_v61  ;;  %4077 = vst [vmem:[#allocation78_spill] sm:$0xff] %v3136_v57  ;;  %2012 = vmatprep.subr.mxu0 %v3107_v62  ;;  %v3146_v61 = vld [vmem:[%s3907_s1 + $0x210] sm:$0xff]  ;;  %v3166_v62 = vld [vmem:[%s3907_s1 + $0x388] sm:$0xff] }
  0x50   : > { %2047 = vmatprep.subr.mxu1 %v3112_v53  ;;  %v3151_v56 = vld [vmem:[%s3907_s1 + $0x310] sm:$0xff]  ;;  %2013 = vmatpush3.msra.mxu0 %v3119_v55  ;;  %v3161_v53 = vld [vmem:[%s3907_s1 + $0x288] sm:$0xff]  ;;  %4082 = vst [vmem:[#allocation83_spill] sm:$0xff] %v3166_v62  ;;  %v3214_v52 = vld [vmem:[%s3907_s1 + $0x300] sm:$0xff] }
  0x51   : > { %4079 = vst [vmem:[#allocation80_spill] sm:$0xff] %v3151_v56  ;;  %2048 = vmatpush3.msra.mxu1 %v3124_v51  ;;  %4081 = vst [vmem:[#allocation82_spill] sm:$0xff] %v3161_v53  ;;  %2014 = vmatprep.subr.mxu0 %v3131_v58  ;;  %v3176_v51 = vld [vmem:[%s3907_s1 + $0x208] sm:$0xff]  ;;  %v3196_v58 = vld [vmem:[%s3907_s1 + $0x380] sm:$0xff] }
  0x52   : > { %2049 = vmatprep.subr.mxu1 %v3136_v57  ;;  %v3181_v55 = vld [vmem:[%s3907_s1 + $0x308] sm:$0xff]  ;;  %2015 = vmatpush3.msra.mxu0 %v3146_v61  ;;  %v3191_v57 = vld [vmem:[%s3907_s1 + $0x280] sm:$0xff] }
  0x53   : > { %2050 = vmatpush3.msra.mxu1 %v3151_v56  ;;  %2016 = vmatprep.subr.mxu0 %v3161_v53  ;;  %v372_v56 = vrot.slane %v2747_v59, %v3154_v54  ;;  %v380_v53 = vrot.slane %v2747_v59, %v3184_v63 }
  0x54   : > { %2051 = vmatprep.subr.mxu1 %v3166_v62  ;;  %2017 = vmatpush3.msra.mxu0 %v3176_v51  ;;  %v384_v62 = vrot.slane %v2747_v59, %v3169_v38 }
  0x55   : > { %2052 = vmatpush3.msra.mxu1 %v3181_v55  ;;  %2018 = vmatprep.subr.mxu0 %v3191_v57 }
  0x56   : > { %2053 = vmatprep.subr.mxu1 %v3196_v58  ;;  %2019 = vmatpush3.msra.mxu0 %v3205_v47 }
  0x57   : > { %597 = vmatprep.mubr.f32.mxu0 %v376_v60  ;;  %2054 = vmatpush3.msra.mxu1 %v3214_v52  ;;  %v4132_v60 = vld [vmem:[#allocation53_spill] sm:$0xff] }
  0x58   : > { %598 = vmatmul.mubr.f32.vlgmr.msra.gmra.mxu0 %v372_v56  ;;  %667 = vmatprep.mubr.f32.mxu1 %v384_v62  ;;  %v4130_v56 = vld [vmem:[#allocation51_spill] sm:$0xff]  ;;  %v4133_v62 = vld [vmem:[#allocation54_spill] sm:$0xff] }
  0x59   : > { %2058 = vmatprep.subr.mxu0 %v2402_v0  ;;  %2093 = vmatprep.subr.mxu1 %v2407_v1  ;;  %v3274_v0 = vmul.f32 %v2747_v59, %v2747_v59  ;;  %v4085_v1 = vld [vmem:[#allocation6_spill] sm:$0xff]  ;;  %v4131_v59 = vld [vmem:[#allocation52_spill] sm:$0xff] }
  0x5a   : > { %668 = vmatmul.mubr.f32.vlgmr.msra.gmra.mxu1 %v380_v53  ;;  %2059 = vmatpush3.msra.mxu0 %v2412_v2  ;;  %v4086_v2 = vld [vmem:[#allocation7_spill] sm:$0xff]  ;;  %v4129_v53 = vld [vmem:[#allocation50_spill] sm:$0xff] }
  0x5b   : > { %2094 = vmatpush3.msra.mxu1 %v2419_v3  ;;  %2060 = vmatprep.subr.mxu0 %v2424_v4  ;;  %v4087_v3 = vld [vmem:[#allocation8_spill] sm:$0xff]  ;;  %v4088_v4 = vld [vmem:[#allocation9_spill] sm:$0xff] }
  0x5c   : > { %2095 = vmatprep.subr.mxu1 %v2429_v5  ;;  %2061 = vmatpush3.msra.mxu0 %v2436_v6  ;;  %v4089_v5 = vld [vmem:[#allocation10_spill] sm:$0xff]  ;;  %v4090_v6 = vld [vmem:[#allocation12_spill] sm:$0xff] }
  0x5d   : > { %2096 = vmatpush3.msra.mxu1 %v2441_v7  ;;  %2062 = vmatprep.subr.mxu0 %v2446_v8  ;;  %v4091_v7 = vld [vmem:[#allocation13_spill] sm:$0xff]  ;;  %v4092_v8 = vld [vmem:[#allocation11_spill] sm:$0xff] }
  0x5e   : > { %2097 = vmatprep.subr.mxu1 %v2453_v9  ;;  %2063 = vmatpush3.msra.mxu0 %v2458_v10  ;;  %v681_v9 = vrot.slane %v3274_v0, %v4092_v8  ;;  %v4093_v10 = vld [vmem:[#allocation15_spill] sm:$0xff]  ;;  %v3739_v8 = vld [vmem:[%s3908_s2 + $0x28] sm:$0xff] }
  0x5f   : > { %2098 = vmatpush3.msra.mxu1 %v2463_v11  ;;  %2064 = vmatprep.subr.mxu0 %v2470_v12  ;;  %v4094_v11 = vld [vmem:[#allocation16_spill] sm:$0xff]  ;;  %v4095_v12 = vld [vmem:[#allocation14_spill] sm:$0xff] }
  0x60   : > { %2099 = vmatprep.subr.mxu1 %v2475_v13  ;;  %2065 = vmatpush3.msra.mxu0 %v2482_v14  ;;  %v689_v13 = vrot.slane %v3274_v0, %v4095_v12  ;;  %v4096_v14 = vld [vmem:[#allocation19_spill] sm:$0xff]  ;;  %v3732_v12 = vld [vmem:[%s3908_s2 + $0x70] sm:$0xff] }
  0x61   : > { %2100 = vmatpush3.msra.mxu1 %v2487_v15  ;;  %2066 = vmatprep.subr.mxu0 %v2494_v16  ;;  %v4097_v15 = vld [vmem:[#allocation20_spill] sm:$0xff]  ;;  %v4098_v16 = vld [vmem:[#allocation17_spill] sm:$0xff] }
  0x62   : > { %2101 = vmatprep.subr.mxu1 %v2499_v17  ;;  %2067 = vmatpush3.msra.mxu0 %v2506_v18  ;;  %v677_v17 = vrot.slane %v3274_v0, %v4098_v16  ;;  %v4099_v18 = vld [vmem:[#allocation18_spill] sm:$0xff]  ;;  %v3751_v16 = vld [vmem:[%s3908_s2 + $0x20] sm:$0xff] }
  0x63   : > { %2102 = vmatpush3.msra.mxu1 %v2511_v19  ;;  %2068 = vmatprep.subr.mxu0 %v2518_v20  ;;  %v685_v19 = vrot.slane %v3274_v0, %v4099_v18  ;;  %v4100_v20 = vld [vmem:[#allocation21_spill] sm:$0xff]  ;;  %v3744_v18 = vld [vmem:[%s3908_s2 + $0x38] sm:$0xff] }
  0x64   : > { %2103 = vmatprep.subr.mxu1 %v2523_v21  ;;  %2069 = vmatpush3.msra.mxu0 %v2530_v22  ;;  %v4101_v21 = vld [vmem:[#allocation22_spill] sm:$0xff]  ;;  %v4102_v22 = vld [vmem:[#allocation23_spill] sm:$0xff] }
  0x65   : > { %2104 = vmatpush3.msra.mxu1 %v2535_v23  ;;  %2070 = vmatprep.subr.mxu0 %v2542_v24  ;;  %v4103_v23 = vld [vmem:[#allocation24_spill] sm:$0xff]  ;;  %v4104_v24 = vld [vmem:[#allocation25_spill] sm:$0xff] }
  0x66   : > { %2105 = vmatprep.subr.mxu1 %v2547_v25  ;;  %2071 = vmatpush3.msra.mxu0 %v2554_v26  ;;  %v4105_v25 = vld [vmem:[#allocation26_spill] sm:$0xff]  ;;  %v4106_v26 = vld [vmem:[#allocation27_spill] sm:$0xff] }
  0x67   : > { %2106 = vmatpush3.msra.mxu1 %v2559_v27  ;;  %2072 = vmatprep.subr.mxu0 %v2567_v28  ;;  %v4107_v27 = vld [vmem:[#allocation28_spill] sm:$0xff]  ;;  %v4108_v28 = vld [vmem:[#allocation29_spill] sm:$0xff] }
  0x68   : > { %2107 = vmatprep.subr.mxu1 %v2572_v29  ;;  %2073 = vmatpush3.msra.mxu0 %v2579_v30  ;;  %v4109_v29 = vld [vmem:[#allocation30_spill] sm:$0xff]  ;;  %v4110_v30 = vld [vmem:[#allocation31_spill] sm:$0xff] }
  0x69   : > { %2108 = vmatpush3.msra.mxu1 %v2584_v31  ;;  %2074 = vmatprep.subr.mxu0 %v2591_v32  ;;  %v4111_v31 = vld [vmem:[#allocation32_spill] sm:$0xff]  ;;  %v4112_v32 = vld [vmem:[#allocation33_spill] sm:$0xff] }
  0x6a   : > { %2109 = vmatprep.subr.mxu1 %v2596_v33  ;;  %2075 = vmatpush3.msra.mxu0 %v2603_v34  ;;  %v4113_v33 = vld [vmem:[#allocation34_spill] sm:$0xff]  ;;  %v4114_v34 = vld [vmem:[#allocation35_spill] sm:$0xff] }
  0x6b   : > { %2110 = vmatpush3.msra.mxu1 %v2608_v35  ;;  %2076 = vmatprep.subr.mxu0 %v2620_v36  ;;  %v4115_v35 = vld [vmem:[#allocation36_spill] sm:$0xff]  ;;  %v4116_v36 = vld [vmem:[#allocation37_spill] sm:$0xff] }
  0x6c   : > { %2111 = vmatprep.subr.mxu1 %v2625_v37  ;;  %2077 = vmatpush3.msra.mxu0 %v2632_v39  ;;  %v4117_v37 = vld [vmem:[#allocation38_spill] sm:$0xff]  ;;  %v4118_v39 = vld [vmem:[#allocation39_spill] sm:$0xff] }
  0x6d   : > { %2112 = vmatpush3.msra.mxu1 %v2637_v40  ;;  %2078 = vmatprep.subr.mxu0 %v2644_v41  ;;  %v4119_v40 = vld [vmem:[#allocation40_spill] sm:$0xff]  ;;  %v4120_v41 = vld [vmem:[#allocation41_spill] sm:$0xff] }
  0x6e   : > { %2113 = vmatprep.subr.mxu1 %v2649_v42  ;;  %2079 = vmatpush3.msra.mxu0 %v2656_v43  ;;  %v4121_v42 = vld [vmem:[#allocation42_spill] sm:$0xff]  ;;  %v4122_v43 = vld [vmem:[#allocation43_spill] sm:$0xff] }
  0x6f   : > { %2114 = vmatpush3.msra.mxu1 %v2661_v44  ;;  %2080 = vmatprep.subr.mxu0 %v2669_v45  ;;  %v4123_v44 = vld [vmem:[#allocation44_spill] sm:$0xff]  ;;  %v4124_v45 = vld [vmem:[#allocation45_spill] sm:$0xff] }
  0x70   : > { %2115 = vmatprep.subr.mxu1 %v2674_v46  ;;  %2081 = vmatpush3.msra.mxu0 %v2683_v48  ;;  %v4125_v46 = vld [vmem:[#allocation46_spill] sm:$0xff]  ;;  %v4126_v48 = vld [vmem:[#allocation47_spill] sm:$0xff] }
  0x71   : > { %2116 = vmatpush3.msra.mxu1 %v2688_v49  ;;  %2082 = vmatprep.subr.mxu0 %v2695_v50  ;;  %v4127_v49 = vld [vmem:[#allocation48_spill] sm:$0xff]  ;;  %v4128_v50 = vld [vmem:[#allocation49_spill] sm:$0xff] }
  0x72   : > { %2117 = vmatprep.subr.mxu1 %v4085_v1  ;;  %2083 = vmatpush3.msra.mxu0 %v4086_v2  ;;  %v4134_v1 = vld [vmem:[#allocation55_spill] sm:$0xff]  ;;  %v4135_v2 = vld [vmem:[#allocation56_spill] sm:$0xff] }
  0x73   : > { %2118 = vmatpush3.msra.mxu1 %v4087_v3  ;;  %2084 = vmatprep.subr.mxu0 %v4088_v4  ;;  %v4136_v3 = vld [vmem:[#allocation57_spill] sm:$0xff]  ;;  %v4137_v4 = vld [vmem:[#allocation58_spill] sm:$0xff] }
  0x74   : > { %2119 = vmatprep.subr.mxu1 %v4089_v5  ;;  %2085 = vmatpush3.msra.mxu0 %v4090_v6  ;;  %v4138_v5 = vld [vmem:[#allocation59_spill] sm:$0xff]  ;;  %v4139_v6 = vld [vmem:[#allocation60_spill] sm:$0xff] }
  0x75   : > { %2120 = vmatpush3.msra.mxu1 %v4091_v7  ;;  %2086 = vmatprep.subr.mxu0 %v4093_v10  ;;  %v4140_v7 = vld [vmem:[#allocation61_spill] sm:$0xff]  ;;  %v4142_v10 = vld [vmem:[#allocation63_spill] sm:$0xff] }
  0x76   : > { %2121 = vmatprep.subr.mxu1 %v4094_v11  ;;  %2087 = vmatpush3.msra.mxu0 %v4096_v14  ;;  %v4143_v11 = vld [vmem:[#allocation64_spill] sm:$0xff]  ;;  %v4145_v14 = vld [vmem:[#allocation66_spill] sm:$0xff] }
  0x77   : > { %2122 = vmatpush3.msra.mxu1 %v4097_v15  ;;  %2088 = vmatprep.subr.mxu0 %v4100_v20  ;;  %v4146_v15 = vld [vmem:[#allocation67_spill] sm:$0xff]  ;;  %v4149_v20 = vld [vmem:[#allocation70_spill] sm:$0xff] }
  0x78   : > { %2123 = vmatprep.subr.mxu1 %v4101_v21  ;;  %2089 = vmatpush3.msra.mxu0 %v4102_v22  ;;  %v4150_v21 = vld [vmem:[#allocation71_spill] sm:$0xff]  ;;  %v4151_v22 = vld [vmem:[#allocation72_spill] sm:$0xff] }
  0x79   : > { %778 = vmatprep.mubr.f32.mxu0 %v681_v9  ;;  %2124 = vmatpush3.msra.mxu1 %v4103_v23  ;;  %v4141_v9 = vld [vmem:[#allocation62_spill] sm:$0xff]  ;;  %v4152_v23 = vld [vmem:[#allocation73_spill] sm:$0xff] }
  0x7a   : > { %848 = vmatprep.mubr.f32.mxu1 %v689_v13  ;;  %779 = vmatmul.mubr.f32.vlgmr.msra.gmra.mxu0 %v677_v17  ;;  %v4144_v13 = vld [vmem:[#allocation65_spill] sm:$0xff]  ;;  %v4147_v17 = vld [vmem:[#allocation68_spill] sm:$0xff] }
  0x7b   : > { %849 = vmatmul.mubr.f32.vlgmr.msra.gmra.mxu1 %v685_v19  ;;  %2128 = vmatprep.subr.mxu0 %v4104_v24  ;;  %v4148_v19 = vld [vmem:[#allocation69_spill] sm:$0xff]  ;;  %v4153_v24 = vld [vmem:[#allocation74_spill] sm:$0xff] }
  0x7c   : > { %2163 = vmatprep.subr.mxu1 %v4105_v25  ;;  %2129 = vmatpush3.msra.mxu0 %v4106_v26  ;;  %v4154_v25 = vld [vmem:[#allocation75_spill] sm:$0xff]  ;;  %v4155_v26 = vld [vmem:[#allocation76_spill] sm:$0xff] }
  0x7d   : > { %2164 = vmatpush3.msra.mxu1 %v4107_v27  ;;  %2130 = vmatprep.subr.mxu0 %v4108_v28  ;;  %v4156_v27 = vld [vmem:[#allocation77_spill] sm:$0xff]  ;;  %v4157_v28 = vld [vmem:[#allocation78_spill] sm:$0xff] }
  0x7e   : > { %2165 = vmatprep.subr.mxu1 %v4109_v29  ;;  %2131 = vmatpush3.msra.mxu0 %v4110_v30  ;;  %v4158_v29 = vld [vmem:[#allocation80_spill] sm:$0xff]  ;;  %v4159_v30 = vld [vmem:[#allocation79_spill] sm:$0xff] }
  0x7f   : > { %2166 = vmatpush3.msra.mxu1 %v4111_v31  ;;  %2132 = vmatprep.subr.mxu0 %v4112_v32  ;;  %v697_v31 = vrot.slane %v3274_v0, %v4159_v30  ;;  %v4160_v32 = vld [vmem:[#allocation82_spill] sm:$0xff]  ;;  %v3715_v30 = vld [vmem:[%s3908_s2 + $0x68] sm:$0xff] }
  0x80   : > { %2167 = vmatprep.subr.mxu1 %v4113_v33  ;;  %2133 = vmatpush3.msra.mxu0 %v4114_v34  ;;  %v4161_v33 = vld [vmem:[#allocation83_spill] sm:$0xff]  ;;  %v705_v34 = vrot.slane %v3274_v0, %v3169_v38  ;;  %v3708_v38 = vld [vmem:[%s3908_s2 + $0xb0] sm:$0xff] }
  0x81   : > { %2168 = vmatpush3.msra.mxu1 %v4115_v35  ;;  %2134 = vmatprep.subr.mxu0 %v4116_v36  ;;  %v693_v35 = vrot.slane %v3274_v0, %v3154_v54  ;;  %v3374_v36 = vld [vmem:[%s3908_s2 + $0x1c8] sm:$0xff]  ;;  %4162 = vst [vmem:[#allocation6_spill] sm:$0xff] %v3708_v38  ;;  %v3727_v54 = vld [vmem:[%s3908_s2 + $0x60] sm:$0xff] }
  0x82   : > { %2169 = vmatprep.subr.mxu1 %v4117_v37  ;;  %2135 = vmatpush3.msra.mxu0 %v4118_v39  ;;  %v3419_v37 = vld [vmem:[%s3908_s2 + $0x148] sm:$0xff]  ;;  %v3424_v39 = vld [vmem:[%s3908_s2 + $0x158] sm:$0xff] }
  0x83   : > { %2170 = vmatpush3.msra.mxu1 %v4119_v40  ;;  %2136 = vmatprep.subr.mxu0 %v4120_v41  ;;  %v3431_v40 = vld [vmem:[%s3908_s2 + $0x140] sm:$0xff]  ;;  %v3436_v41 = vld [vmem:[%s3908_s2 + $0x150] sm:$0xff] }
  0x84   : > { %2171 = vmatprep.subr.mxu1 %v4121_v42  ;;  %2137 = vmatpush3.msra.mxu0 %v4122_v43  ;;  %v3443_v42 = vld [vmem:[%s3908_s2 + $0x108] sm:$0xff]  ;;  %v3448_v43 = vld [vmem:[%s3908_s2 + $0x118] sm:$0xff] }
  0x85   : > { %2172 = vmatpush3.msra.mxu1 %v4123_v44  ;;  %2138 = vmatprep.subr.mxu0 %v4124_v45  ;;  %v3455_v44 = vld [vmem:[%s3908_s2 + $0x100] sm:$0xff]  ;;  %v3460_v45 = vld [vmem:[%s3908_s2 + $0x110] sm:$0xff] }
  0x86   : > { %2173 = vmatprep.subr.mxu1 %v4125_v46  ;;  %2139 = vmatpush3.msra.mxu0 %v4126_v48  ;;  %v3467_v46 = vld [vmem:[%s3908_s2 + $0xc8] sm:$0xff]  ;;  %v3472_v48 = vld [vmem:[%s3908_s2 + $0xd8] sm:$0xff] }
  0x87   : > { %2174 = vmatpush3.msra.mxu1 %v4127_v49  ;;  %2140 = vmatprep.subr.mxu0 %v4128_v50  ;;  %v3479_v49 = vld [vmem:[%s3908_s2 + $0xc0] sm:$0xff]  ;;  %v3484_v50 = vld [vmem:[%s3908_s2 + $0xd0] sm:$0xff] }
  0x88   : > { %2175 = vmatprep.subr.mxu1 %v4129_v53  ;;  %2141 = vmatpush3.msra.mxu0 %v4130_v56  ;;  %v3491_v53 = vld [vmem:[%s3908_s2 + $0x88] sm:$0xff]  ;;  %v3496_v56 = vld [vmem:[%s3908_s2 + $0x98] sm:$0xff] }
  0x89   : > { %2176 = vmatpush3.msra.mxu1 %v4131_v59  ;;  %2142 = vmatprep.subr.mxu0 %v4132_v60  ;;  %v3503_v59 = vld [vmem:[%s3908_s2 + $0x80] sm:$0xff]  ;;  %v3508_v60 = vld [vmem:[%s3908_s2 + $0x90] sm:$0xff] }
  0x8a   : > { %2177 = vmatprep.subr.mxu1 %v4133_v62  ;;  %2143 = vmatpush3.msra.mxu0 %v4134_v1  ;;  %v3515_v62 = vld [vmem:[%s3908_s2 + $0x48] sm:$0xff]  ;;  %v3520_v1 = vld [vmem:[%s3908_s2 + $0x58] sm:$0xff] }
  0x8b   : > { %2178 = vmatpush3.msra.mxu1 %v4135_v2  ;;  %2144 = vmatprep.subr.mxu0 %v4136_v3  ;;  %v3527_v2 = vld [vmem:[%s3908_s2 + $0x40] sm:$0xff]  ;;  %v3532_v3 = vld [vmem:[%s3908_s2 + $0x50] sm:$0xff] }
  0x8c   : > { %2179 = vmatprep.subr.mxu1 %v4137_v4  ;;  %2145 = vmatpush3.msra.mxu0 %v4138_v5  ;;  %v3539_v4 = vld [vmem:[%s3908_s2 + $0x8] sm:$0xff]  ;;  %v3544_v5 = vld [vmem:[%s3908_s2 + $0x18] sm:$0xff] }
  0x8d   : > { %2180 = vmatpush3.msra.mxu1 %v4139_v6  ;;  %2146 = vmatprep.subr.mxu0 %v4140_v7  ;;  %v3551_v6 = vld [vmem:[%s3908_s2] sm:$0xff]  ;;  %v3556_v7 = vld [vmem:[%s3908_s2 + $0x10] sm:$0xff] }
  0x8e   : > { %2181 = vmatprep.subr.mxu1 %v4141_v9  ;;  %2147 = vmatpush3.msra.mxu0 %v4142_v10  ;;  %v3565_v9 = vld [vmem:[%s3908_s2 + $0x1e8] sm:$0xff]  ;;  %v3570_v10 = vld [vmem:[%s3908_s2 + $0x1f8] sm:$0xff] }
  0x8f   : > { %2182 = vmatpush3.msra.mxu1 %v4143_v11  ;;  %2148 = vmatprep.subr.mxu0 %v4144_v13  ;;  %v3995_v11 = vmov 0.0  }
  0x90   : > { %2183 = vmatprep.subr.mxu1 %v4145_v14  ;;  %2149 = vmatpush3.msra.mxu0 %v4146_v15 }
  0x91   : > { %2184 = vmatpush3.msra.mxu1 %v4147_v17  ;;  %2150 = vmatprep.subr.mxu0 %v4148_v19 }
  0x92   : > { %2185 = vmatprep.subr.mxu1 %v4149_v20  ;;  %2151 = vmatpush3.msra.mxu0 %v4150_v21 }
  0x93   : > { %2186 = vmatpush3.msra.mxu1 %v4151_v22  ;;  %2152 = vmatprep.subr.mxu0 %v4152_v23 }
  0x94   : > { %2187 = vmatprep.subr.mxu1 %v4153_v24  ;;  %2153 = vmatpush3.msra.mxu0 %v4154_v25 }
  0x95   : > { %2188 = vmatpush3.msra.mxu1 %v4155_v26  ;;  %2154 = vmatprep.subr.mxu0 %v4156_v27 }
  0x96   : > { %2189 = vmatprep.subr.mxu1 %v4157_v28  ;;  %2155 = vmatpush3.msra.mxu0 %v3146_v61  ;;  %v701_v61 = vrot.slane %v3274_v0, %v3184_v63  ;;  %v3412_v0 = vld [vmem:[%s3908_s2 + $0x190] sm:$0xff]  ;;  %v3720_v63 = vld [vmem:[%s3908_s2 + $0x78] sm:$0xff] }
  0x97   : > { %2190 = vmatpush3.msra.mxu1 %v4158_v29  ;;  %2156 = vmatprep.subr.mxu0 %v4160_v32  ;;  %v3588_v32 = vld [vmem:[%s3908_s2 + $0x1f0] sm:$0xff]  ;;  %4163 = vst [vmem:[#allocation7_spill] sm:$0xff] %v3720_v63 }
  0x98   : > { %2191 = vmatprep.subr.mxu1 %v4161_v33  ;;  %2157 = vmatpush3.msra.mxu0 %v3176_v51  ;;  %v3395_v51 = vld [vmem:[%s3908_s2 + $0x188] sm:$0xff] }
  0x99   : > { %2192 = vmatpush3.msra.mxu1 %v3181_v55  ;;  %2158 = vmatprep.subr.mxu0 %v3191_v57  ;;  %v3379_v55 = vld [vmem:[%s3908_s2 + $0x1d8] sm:$0xff]  ;;  %v3407_v57 = vld [vmem:[%s3908_s2 + $0x180] sm:$0xff]  ;;  %v3593_v33 = vld [vmem:[%s3908_s2 + $0x1a8] sm:$0xff] }
  0x9a   : > { %2193 = vmatprep.subr.mxu1 %v3196_v58  ;;  %2159 = vmatpush3.msra.mxu0 %v3205_v47  ;;  %v3385_v58 = vld [vmem:[%s3908_s2 + $0x1c0] sm:$0xff]  ;;  %v3390_v47 = vld [vmem:[%s3908_s2 + $0x1d0] sm:$0xff] }
  0x9b   : > { %918 = vmatprep.mubr.f32.mxu0 %v697_v31  ;;  %2194 = vmatpush3.msra.mxu1 %v3214_v52  ;;  %v3400_v52 = vld [vmem:[%s3908_s2 + $0x198] sm:$0xff]  ;;  %v3583_v31 = vld [vmem:[%s3908_s2 + $0x1e0] sm:$0xff] }
  0x9c   : > { %988 = vmatprep.mubr.f32.mxu1 %v705_v34  ;;  %919 = vmatmul.mubr.f32.vlgmr.msra.gmra.mxu0 %v693_v35  ;;  %v3598_v34 = vld [vmem:[%s3908_s2 + $0x1b8] sm:$0xff]  ;;  %v3607_v35 = vld [vmem:[%s3908_s2 + $0x1a0] sm:$0xff] }
  0x9d   : > { %989 = vmatmul.mubr.f32.vlgmr.msra.gmra.mxu1 %v701_v61  ;;  %1081 = vmatprep.subr.mxu0 %v3374_v36  ;;  %v3612_v61 = vld [vmem:[%s3908_s2 + $0x1b0] sm:$0xff] }
  0x9e   : > { %1152 = vmatprep.subr.mxu1 %v3379_v55  ;;  %1082 = vmatpush1.msra.mxu0 %v3385_v58 }
  0x9f   : > { %1153 = vmatpush1.msra.mxu1 %v3390_v47  ;;  %1083 = vmatprep.subr.mxu0 %v3395_v51 }
  0xa0   : > { %1154 = vmatprep.subr.mxu1 %v3400_v52  ;;  %1084 = vmatpush1.msra.mxu0 %v3407_v57 }
  0xa1   : > { %1155 = vmatpush1.msra.mxu1 %v3412_v0  ;;  %1085 = vmatprep.subr.mxu0 %v3419_v37 }
  0xa2   : > { %1156 = vmatprep.subr.mxu1 %v3424_v39  ;;  %1086 = vmatpush1.msra.mxu0 %v3431_v40 }
  0xa3   : > { %1157 = vmatpush1.msra.mxu1 %v3436_v41  ;;  %1087 = vmatprep.subr.mxu0 %v3443_v42 }
  0xa4   : > { %1158 = vmatprep.subr.mxu1 %v3448_v43  ;;  %1088 = vmatpush1.msra.mxu0 %v3455_v44 }
  0xa5   : > { %1159 = vmatpush1.msra.mxu1 %v3460_v45  ;;  %1089 = vmatprep.subr.mxu0 %v3467_v46 }
  0xa6   : > { %1160 = vmatprep.subr.mxu1 %v3472_v48  ;;  %1090 = vmatpush1.msra.mxu0 %v3479_v49 }
  0xa7   : > { %1161 = vmatpush1.msra.mxu1 %v3484_v50  ;;  %1091 = vmatprep.subr.mxu0 %v3491_v53 }
  0xa8   : > { %1162 = vmatprep.subr.mxu1 %v3496_v56  ;;  %1092 = vmatpush1.msra.mxu0 %v3503_v59 }
  0xa9   : > { %1163 = vmatpush1.msra.mxu1 %v3508_v60  ;;  %1093 = vmatprep.subr.mxu0 %v3515_v62 }
  0xaa   : > { %1164 = vmatprep.subr.mxu1 %v3520_v1  ;;  %1094 = vmatpush1.msra.mxu0 %v3527_v2 }
  0xab   : > { %1165 = vmatpush1.msra.mxu1 %v3532_v3  ;;  %1095 = vmatprep.subr.mxu0 %v3539_v4 }
  0xac   : > { %1166 = vmatprep.subr.mxu1 %v3544_v5  ;;  %1096 = vmatpush1.msra.mxu0 %v3551_v6 }
  0xad   : > { %1167 = vmatpush1.msra.mxu1 %v3556_v7  ;;  %1129 = vmatprep.mubr.f32.mxu0 %v3995_v11 }
  0xae   : > { %1200 = vmatprep.mubr.f32.mxu1 %v3995_v11  ;;  %1223 = vmatprep.subr.mxu0 %v3565_v9  ;;  %v3703_v11 = vld [vmem:[%s3908_s2 + $0xa0] sm:$0xff] }
  0xaf   : > { %1294 = vmatprep.subr.mxu1 %v3570_v10 }
  0xf6   : > { %v1950_v13 = vpop.f32.mrf.mxu0 }
  0xf7   : > { %v1985_v14 = vpop.f32.mrf.mxu1 }
  0xf8   : > { %v1951_v15 = vpop.f32.mrf.mxu0 }
  0xf9   : > { %v1986_v17 = vpop.f32.mrf.mxu1  ;;  %v1952_v19 = vadd.f32 %v1951_v15, %v1950_v13  ;;  %v3619_v13 = vld [vmem:[%s3908_s2 + $0x168] sm:$0xff]  ;;  %v3631_v15 = vld [vmem:[%s3908_s2 + $0x160] sm:$0xff] }
  0xfa   : > { %v1987_v20 = vadd.f32 %v1986_v17, %v1985_v14  ;;  %v3624_v14 = vld [vmem:[%s3908_s2 + $0x178] sm:$0xff]  ;;  %v3636_v17 = vld [vmem:[%s3908_s2 + $0x170] sm:$0xff] }
  0xfc   : > { %v530_v24 = vadd.f32 %v1987_v20, %v1952_v19  ;;  %v3643_v19 = vld [vmem:[%s3908_s2 + $0x128] sm:$0xff]  ;;  %v3648_v20 = vld [vmem:[%s3908_s2 + $0x138] sm:$0xff] }
 0x118   : > { %v2020_v21 = vpop.f32.mrf.mxu0 }
 0x11a   : > { %v2055_v22 = vpop.f32.mrf.mxu1  ;;  %v2021_v23 = vpop.f32.mrf.mxu0 }
 0x11b   : > { %v2022_v25 = vadd.f32 %v2021_v23, %v2020_v21  ;;  %v3655_v21 = vld [vmem:[%s3908_s2 + $0x120] sm:$0xff]  ;;  %v3667_v23 = vld [vmem:[%s3908_s2 + $0xe8] sm:$0xff] }
 0x11c   : > { %v2056_v26 = vpop.f32.mrf.mxu1 }
 0x11d   : > { %v600_v27 = vadd.f32 %v2022_v25, %v530_v24  ;;  %v2057_v28 = vadd.f32 %v2056_v26, %v2055_v22  ;;  %v3660_v22 = vld [vmem:[%s3908_s2 + $0x130] sm:$0xff]  ;;  %v3672_v24 = vld [vmem:[%s3908_s2 + $0xf8] sm:$0xff]  ;;  %v3679_v25 = vld [vmem:[%s3908_s2 + $0xe0] sm:$0xff] }
 0x11e   : > { %v3684_v26 = vld [vmem:[%s3908_s2 + $0xf0] sm:$0xff] }
 0x11f   : > { %v3578_v29 = vadd.f32 %v2057_v28, %v600_v27  ;;  %v3691_v27 = vld [vmem:[%s3908_s2 + $0xa8] sm:$0xff]  ;;  %v3696_v28 = vld [vmem:[%s3908_s2 + $0xb8] sm:$0xff] }
 0x121   : > { %1904 = vmatmul.mubr.msk.f32.vlgmr.msra.gmra.mxu0 %vm1061_vm0, %v3578_v29  ;;  %1905 = vmatmul.mubr.msk.f32.vlgmr.msra.gmra.mxu1 %vm1061_vm0, %v3578_v29 }
 0x122   : > { %1224 = vmatpush1.msra.mxu0 %v3583_v31  ;;  %1295 = vmatpush1.msra.mxu1 %v3588_v32 }
 0x123   : > { %1225 = vmatprep.subr.mxu0 %v3593_v33  ;;  %1296 = vmatprep.subr.mxu1 %v3598_v34 }
 0x124   : > { %1226 = vmatpush1.msra.mxu0 %v3607_v35  ;;  %1297 = vmatpush1.msra.mxu1 %v3612_v61 }
 0x125   : > { %1227 = vmatprep.subr.mxu0 %v3619_v13  ;;  %1298 = vmatprep.subr.mxu1 %v3624_v14 }
 0x126   : > { %1228 = vmatpush1.msra.mxu0 %v3631_v15  ;;  %1299 = vmatpush1.msra.mxu1 %v3636_v17 }
 0x127   : > { %1229 = vmatprep.subr.mxu0 %v3643_v19  ;;  %1300 = vmatprep.subr.mxu1 %v3648_v20 }
 0x128   : > { %1230 = vmatpush1.msra.mxu0 %v3655_v21  ;;  %1301 = vmatpush1.msra.mxu1 %v3660_v22 }
 0x129   : > { %1231 = vmatprep.subr.mxu0 %v3667_v23  ;;  %1302 = vmatprep.subr.mxu1 %v3672_v24 }
 0x12a   : > { %1232 = vmatpush1.msra.mxu0 %v3679_v25  ;;  %1303 = vmatpush1.msra.mxu1 %v3684_v26 }
 0x12b   : > { %1233 = vmatprep.subr.mxu0 %v3691_v27  ;;  %1304 = vmatprep.subr.mxu1 %v3696_v28 }
 0x12c   : > { %1234 = vmatpush1.msra.mxu0 %v3703_v11  ;;  %1305 = vmatpush1.msra.mxu1 %v3708_v38  ;;  %v3758_v38 = vld [vmem:[%s3908_s2 + $0x30] sm:$0xff] }
 0x12d   : > { %1235 = vmatprep.subr.mxu0 %v3715_v30  ;;  %1306 = vmatprep.subr.mxu1 %v3720_v63  ;;  %v4164_v63 = vmov 0.0  }
 0x12e   : > { %1236 = vmatpush1.msra.mxu0 %v3727_v54  ;;  %1307 = vmatpush1.msra.mxu1 %v3732_v12 }
 0x12f   : > { %1237 = vmatprep.subr.mxu0 %v3739_v8  ;;  %1308 = vmatprep.subr.mxu1 %v3744_v18 }
 0x130   : > { %1238 = vmatpush1.msra.mxu0 %v3751_v16  ;;  %1271 = vmatprep.mubr.f32.mxu0 %v4164_v63 }
 0x131   : > { %1309 = vmatpush1.msra.mxu1 %v3758_v38  ;;  %1342 = vmatprep.mubr.f32.mxu1 %v4164_v63 }
 0x132   : > { %1906 = vmatmul.mubr.msk.f32.vlgmr.msra.gmra.mxu0 %vm1061_vm0, %v3578_v29  ;;  %1907 = vmatmul.mubr.msk.f32.vlgmr.msra.gmra.mxu1 %vm1061_vm0, %v3578_v29 }
 0x133   : > { %1368 = vmatprep.subr.mxu0 %v3374_v36  ;;  %1439 = vmatprep.subr.mxu1 %v3379_v55 }
 0x134   : > { %1369 = vmatpush1.msra.mxu0 %v3385_v58  ;;  %1440 = vmatpush1.msra.mxu1 %v3390_v47 }
 0x135   : > { %1370 = vmatprep.subr.mxu0 %v3395_v51  ;;  %1441 = vmatprep.subr.mxu1 %v3400_v52 }
 0x136   : > { %1371 = vmatpush1.msra.mxu0 %v3407_v57  ;;  %1442 = vmatpush1.msra.mxu1 %v3412_v0 }
 0x137   : > { %1372 = vmatprep.subr.mxu0 %v3419_v37  ;;  %1443 = vmatprep.subr.mxu1 %v3424_v39 }
 0x138   : > { %1373 = vmatpush1.msra.mxu0 %v3431_v40  ;;  %1444 = vmatpush1.msra.mxu1 %v3436_v41 }
 0x139   : > { %1374 = vmatprep.subr.mxu0 %v3443_v42  ;;  %1445 = vmatprep.subr.mxu1 %v3448_v43 }
 0x13a   : > { %1375 = vmatpush1.msra.mxu0 %v3455_v44  ;;  %1446 = vmatpush1.msra.mxu1 %v3460_v45  ;;  %v2090_v36 = vpop.f32.mrf.mxu0  ;;  %v994_v45 = vmul.f32 %v3578_v29, %v3578_v29  ;;  %v4169_v29 = vld [vmem:[#allocation11_spill] sm:$0xff] }
 0x13b   : > { %1376 = vmatprep.subr.mxu0 %v3467_v46  ;;  %1447 = vmatprep.subr.mxu1 %v3472_v48  ;;  %v2125_v55 = vpop.f32.mrf.mxu1 }
 0x13c   : > { %1377 = vmatpush1.msra.mxu0 %v3479_v49  ;;  %1448 = vmatpush1.msra.mxu1 %v3484_v50  ;;  %v2091_v58 = vpop.f32.mrf.mxu0  ;;  %v4165_v49 = vld [vmem:[#allocation6_spill] sm:$0xff]  ;;  %v4166_v50 = vld [vmem:[#allocation7_spill] sm:$0xff] }
 0x13d   : > { %1378 = vmatprep.subr.mxu0 %v3491_v53  ;;  %1449 = vmatprep.subr.mxu1 %v3496_v56  ;;  %v2126_v47 = vpop.f32.mrf.mxu1  ;;  %v2092_v51 = vadd.f32 %v2091_v58, %v2090_v36 }
 0x13e   : > { %1379 = vmatpush1.msra.mxu0 %v3503_v59  ;;  %1450 = vmatpush1.msra.mxu1 %v3508_v60  ;;  %v2127_v52 = vadd.f32 %v2126_v47, %v2125_v55 }
 0x13f   : > { %1380 = vmatprep.subr.mxu0 %v3515_v62  ;;  %1451 = vmatprep.subr.mxu1 %v3520_v1 }
 0x140   : > { %1381 = vmatpush1.msra.mxu0 %v3527_v2  ;;  %1452 = vmatpush1.msra.mxu1 %v3532_v3  ;;  %v851_v40 = vadd.f32 %v2127_v52, %v2092_v51 }
 0x141   : > { %1382 = vmatprep.subr.mxu0 %v3539_v4  ;;  %1453 = vmatprep.subr.mxu1 %v3544_v5  ;;  %v1644_v4 = vld [vmem:[%s3909_s3] sm:$0xff]  ;;  %v2319_v5 = vmov 1966171168  }
 0x142   : > { %1383 = vmatpush1.msra.mxu0 %v3551_v6  ;;  %1454 = vmatpush1.msra.mxu1 %v3556_v7  ;;  %v1716_v6 = vunpack.c.l.s4 %v2319_v5  ;;  %v4167_v7 = vld [vmem:[#allocation17_spill] sm:$0xff] }
 0x143   : > { %1416 = vmatprep.mubr.f32.mxu0 %v4164_v63  ;;  %1487 = vmatprep.mubr.f32.mxu1 %v4164_v63 }
 0x144   : > { %1510 = vmatprep.subr.mxu0 %v3565_v9  ;;  %1581 = vmatprep.subr.mxu1 %v3570_v10  ;;  %v1649_v9 = vrot.slane %v1644_v4, %v4167_v7  ;;  %v4168_v10 = vld [vmem:[#allocation18_spill] sm:$0xff] }
 0x15c   : > { %v2160_v57 = vpop.f32.mrf.mxu0 }
 0x15d   : > { %v2195_v0 = vpop.f32.mrf.mxu1 }
 0x15e   : > { %v2161_v37 = vpop.f32.mrf.mxu0 }
 0x15f   : > { %v2196_v39 = vpop.f32.mrf.mxu1  ;;  %v2162_v41 = vadd.f32 %v2161_v37, %v2160_v57 }
 0x160   : > { %v2197_v43 = vadd.f32 %v2196_v39, %v2195_v0 }
 0x161   : > { %v921_v42 = vadd.f32 %v2162_v41, %v851_v40 }
 0x163   : > { %v991_v44 = vadd.f32 %v2197_v43, %v921_v42 }
 0x165   : > { %v995_v46 = vsub.f32 %v991_v44, %v994_v45 }
 0x167   : > { %v996_v48 = vmax.f32 %v995_v46, 0.0  ;;  %v4172_v46 = vld [vmem:[#allocation81_spill] sm:$0xff] }
 0x169   : > { %1908 = vmatmul.mubr.msk.f32.vlgmr.msra.gmra.mxu0 %vm1061_vm0, %v996_v48  ;;  %1909 = vmatmul.mubr.msk.f32.vlgmr.msra.gmra.mxu1 %vm1061_vm0, %v996_v48 }
 0x16a   : > { %1511 = vmatpush1.msra.mxu0 %v3583_v31  ;;  %1582 = vmatpush1.msra.mxu1 %v3588_v32  ;;  %v1653_v31 = vrot.slane %v1644_v4, %v4169_v29  ;;  %v1717_v32 = vunpack.c.0.s8 %v1716_v6 }
 0x16b   : > { %1512 = vmatprep.subr.mxu0 %v3593_v33  ;;  %1583 = vmatprep.subr.mxu1 %v3598_v34  ;;  %v4170_v34 = vld [vmem:[#allocation14_spill] sm:$0xff] }
 0x16c   : > { %1513 = vmatpush1.msra.mxu0 %v3607_v35  ;;  %1584 = vmatpush1.msra.mxu1 %v3612_v61  ;;  %v1661_v35 = vrot.slane %v1644_v4, %v4170_v34 }
 0x16d   : > { %1514 = vmatprep.subr.mxu0 %v3619_v13  ;;  %1585 = vmatprep.subr.mxu1 %v3624_v14 }
 0x16e   : > { %1515 = vmatpush1.msra.mxu0 %v3631_v15  ;;  %1586 = vmatpush1.msra.mxu1 %v3636_v17 }
 0x16f   : > { %1516 = vmatprep.subr.mxu0 %v3643_v19  ;;  %1587 = vmatprep.subr.mxu1 %v3648_v20 }
 0x170   : > { %1517 = vmatpush1.msra.mxu0 %v3655_v21  ;;  %1588 = vmatpush1.msra.mxu1 %v3660_v22 }
 0x171   : > { %1518 = vmatprep.subr.mxu0 %v3667_v23  ;;  %1589 = vmatprep.subr.mxu1 %v3672_v24 }
 0x172   : > { %1519 = vmatpush1.msra.mxu0 %v3679_v25  ;;  %1590 = vmatpush1.msra.mxu1 %v3684_v26  ;;  %v4171_v26 = vld [vmem:[#allocation5_spill] sm:$0xff] }
 0x173   : > { %1520 = vmatprep.subr.mxu0 %v3691_v27  ;;  %1591 = vmatprep.subr.mxu1 %v3696_v28  ;;  %v1720_v27 = vsub.s32 %v1717_v32, %v4171_v26 }
 0x174   : > { %1521 = vmatpush1.msra.mxu0 %v3703_v11  ;;  %1592 = vmatpush1.msra.mxu1 %v4165_v49  ;;  %v1657_v11 = vrot.slane %v1644_v4, %v4168_v10  ;;  %v4173_v49 = vld [vmem:[#allocation85_spill] sm:$0xff] }
 0x175   : > { %1522 = vmatprep.subr.mxu0 %v3715_v30  ;;  %1593 = vmatprep.subr.mxu1 %v4166_v50  ;;  %v1673_v50 = vrot.slane %v1644_v4, %v4173_v49 }
 0x176   : > { %1523 = vmatpush1.msra.mxu0 %v3727_v54  ;;  %1594 = vmatpush1.msra.mxu1 %v3732_v12 }
 0x177   : > { %1524 = vmatprep.subr.mxu0 %v3739_v8  ;;  %1595 = vmatprep.subr.mxu1 %v3744_v18 }
 0x178   : > { %1525 = vmatpush1.msra.mxu0 %v3751_v16  ;;  %1558 = vmatprep.mubr.f32.mxu0 %v4164_v63 }
 0x179   : > { %1596 = vmatpush1.msra.mxu1 %v3758_v38  ;;  %1629 = vmatprep.mubr.f32.mxu1 %v4164_v63 }
 0x17a   : > { %1910 = vmatmul.mubr.msk.f32.vlgmr.msra.gmra.mxu0 %vm1061_vm0, %v996_v48  ;;  %1911 = vmatmul.mubr.msk.f32.vlgmr.msra.gmra.mxu1 %vm1061_vm0, %v996_v48  ;;  %v1665_v48 = vrot.slane %v1644_v4, %v4172_v46 }
 0x1e1   : > { %v1131_v30 = vpop.f32.mrf.mxu0  ;;  %v1202_v54 = vpop.f32.mrf.mxu1 }
 0x1e3   : > { %v1133_v53 = vpop.f32.mrf.mxu0  ;;  %v1204_v12 = vpop.f32.mrf.mxu1 }
 0x1f2   : > { %v3844_v56 = vpop.f32.mrf.mxu0  ;;  %v3846_v8 = vpop.f32.mrf.mxu1 }
 0x1f4   : > { %v3848_v18 = vpop.f32.mrf.mxu0  ;;  %v3850_v16 = vpop.f32.mrf.mxu1 }
 0x229   : > { %v1418_v59 = vpop.f32.mrf.mxu0  ;;  %v1489_v38 = vpop.f32.mrf.mxu1 }
 0x22a   : > { %v1419_v60 = vadd.f32 1e-05, %v1418_v59  ;;  %v1490_v63 = vadd.f32 1e-05, %v1489_v38 }
 0x22b   : > { %v1420_v62 = vpop.f32.mrf.mxu0  ;;  %v1491_v1 = vpop.f32.mrf.mxu1 }
 0x22c   : > { %2239 = vrsqrt.f32 %v1419_v60  ;;  %v1421_v2 = vadd.f32 1e-05, %v1420_v62  ;;  %v1492_v3 = vadd.f32 1e-05, %v1491_v1 }
 0x22d   : > { %2241 = vrsqrt.f32 %v1490_v63 }
 0x22e   : > { %2243 = vrsqrt.f32 %v1421_v2 }
 0x22f   : > { %2245 = vrsqrt.f32 %v1492_v3 }
 0x239   : > { %v2240_v33 = vpop.eup %2239 }
 0x23a   : > { %v2242_v61 = vpop.eup %2241  ;;  %v1686_v13 = vmul.f32 %v2240_v33, %v1649_v9  ;;  %v1560_v14 = vpop.f32.mrf.mxu0 }
 0x23b   : > { %v1631_v15 = vpop.f32.mrf.mxu1  ;;  %v2244_v17 = vpop.eup %2243  ;;  %v1688_v19 = vmul.f32 %v2242_v61, %v1657_v11  ;;  %v1561_v20 = vadd.f32 1e-05, %v1560_v14 }
 0x23c   : > { %v1632_v21 = vadd.f32 1e-05, %v1631_v15  ;;  %v2246_v22 = vpop.eup %2245  ;;  %v1687_v23 = vmul.f32 %v2244_v17, %v1653_v31  ;;  %v1562_v24 = vpop.f32.mrf.mxu0  ;;  %v1695_v28 = vmul.f32 %v1686_v13, %v1131_v30  ;;  %v4174_v30 = vld [vmem:[#allocation79_spill] sm:$0xff] }
 0x23d   : > { %v1633_v25 = vpop.f32.mrf.mxu1  ;;  %v1689_v36 = vmul.f32 %v2246_v22, %v1661_v35  ;;  %2247 = vrsqrt.f32 %v1561_v20  ;;  %v1563_v55 = vadd.f32 1e-05, %v1562_v24  ;;  %v1697_v52 = vmul.f32 %v1688_v19, %v1202_v54  ;;  %v4175_v54 = vld [vmem:[#allocation84_spill] sm:$0xff] }
 0x23e   : > { %v1696_v58 = vmul.f32 %v1687_v23, %v1133_v53  ;;  %v1770_v47 = vcombine.low %v1686_v13, %v1687_v23  ;;  %2249 = vrsqrt.f32 %v1632_v21  ;;  %v1634_v51 = vadd.f32 1e-05, %v1633_v25 }
 0x23f   : > { %v1698_v57 = vmul.f32 %v1689_v36, %v1204_v12  ;;  %v1771_v0 = vcombine.low %v1688_v19, %v1689_v36  ;;  %2251 = vrsqrt.f32 %v1563_v55  ;;  %v1669_v53 = vrot.slane %v1644_v4, %v4174_v30  ;;  %v2255_v19 = vld [vmem:[%s2705_s14] sm:$0xff]  ;;  %s2260_s14 = sshll.u32 %s2320_s11, 4  ;;  %s2261_s14 = int_to_ptr.vmem [resolvable:$false] %s2260_s14 }
 0x240   : > { %2253 = vrsqrt.f32 %v1634_v51  ;;  %v1711_v37 = vcombine.low %v1695_v28, %v1696_v58  ;;  %v1780_v39 = vrot.slane %v1770_v47, %v1720_v27  ;;  %v1677_v12 = vrot.slane %v1644_v4, %v4175_v54  ;;  %s2262_s22 = scalar_lea.vmem %s2261_s14, 256  ;;  %p2263_p0 = scmp.lt.s32.totalorder %s1840_s30, %s2261_s14 }
 0x241   : > { %v1712_v40 = vcombine.low %v1697_v52, %v1698_v57  ;;  %v1787_v41 = vrot.slane %v1771_v0, %v1720_v27  ;;  %p2264_p1 = scmp.lt.s32.totalorder %s2262_s22, %s2256_s10 }
 0x242   : > { %v1721_v42 = vrot.slane %v1711_v37, %v1720_v27 }
 0x243   : > { %v1728_v43 = vrot.slane %v1712_v40, %v1720_v27  ;;  %v1802_v44 = vcombine.low %v1780_v39, %v1787_v41  ;;  %p2265_p2 = por %p2264_p1, %p2263_p0 }
 0x245   : > { %v1743_v45 = vcombine.low %v1721_v42, %v1728_v43  ;;  %p2266_p3 = pnand %p2265_p2, %p2259_p13 }
 0x24a   : > { %v2248_v59 = vpop.eup %2247 }
 0x24b   : > { %v2250_v38 = vpop.eup %2249  ;;  %v1690_v60 = vmul.f32 %v2248_v59, %v1665_v48 }
 0x24c   : > { %v2252_v63 = vpop.eup %2251  ;;  %v1692_v62 = vmul.f32 %v2250_v38, %v1673_v50 }
 0x24d   : > { %v2254_v1 = vpop.eup %2253  ;;  %v1691_v2 = vmul.f32 %v2252_v63, %v1669_v53  ;;  %v1699_v5 = vmul.f32 %v1690_v60, %v3844_v56  ;;  %v1810_v56 = vrot.slane %v1802_v44, %v1720_v27 }
 0x24e   : > { %v1693_v3 = vmul.f32 %v2254_v1, %v1677_v12  ;;  %v1701_v9 = vmul.f32 %v1692_v62, %v3846_v8 }
 0x24f   : > { %v1700_v6 = vmul.f32 %v1691_v2, %v3848_v18  ;;  %v1772_v7 = vcombine.low %v1690_v60, %v1691_v2  ;;  %v1751_v18 = vrot.slane %v1743_v45, %v1720_v27 }
 0x250   : > { %v1702_v10 = vmul.f32 %v1693_v3, %v3850_v16  ;;  %v1773_v11 = vcombine.low %v1692_v62, %v1693_v3  ;;  %v1694_v16 = vld [vmem:[%s3910_s4] sm:$0xff] }
 0x251   : > { %v1713_v29 = vcombine.low %v1699_v5, %v1700_v6  ;;  %v1794_v4 = vrot.slane %v1772_v7, %v1720_v27 }
 0x252   : > { %v1714_v31 = vcombine.low %v1701_v9, %v1702_v10  ;;  %v1801_v32 = vrot.slane %v1773_v11, %v1720_v27 }
 0x253   : > { %v1735_v33 = vrot.slane %v1713_v29, %v1720_v27 }
 0x254   : > { %v1742_v34 = vrot.slane %v1714_v31, %v1720_v27  ;;  %v1803_v35 = vcombine.low %v1794_v4, %v1801_v32 }
 0x256   : > { %v1744_v61 = vcombine.low %v1735_v33, %v1742_v34  ;;  %v1817_v13 = vrot.slane %v1803_v35, %v1720_v27 }
 0x258   : > { %v1758_v14 = vrot.slane %v1744_v61, %v1720_v27  ;;  %v1818_v8 = vcombine.low %v1810_v56, %v1817_v13 }
 0x25a   : > { %v1759_v15 = vcombine.low %v1751_v18, %v1758_v14  ;;  %v1820_v20 = vmul.f32 %v2255_v19, %v1818_v8 }
 0x25c   : > { %v1761_v17 = vsub.f32 %v1694_v16, %v1759_v15 }
 0x25e   : > { %v1821_v21 = vadd.f32 %v1820_v20, %v1761_v17 }
 0x260   : > { %v1822_v22 = vmax.f32 %v1821_v21, 0.0 }
 0x262   : > { %1823 = vst [vmem:[%s215_s26] sm:$0xff] %v1822_v22 }
 0x263   : > { %2269 = shalt.err (!%p2266_p3)
}
 0x264   : > { %s2270_s12 = scalar_lea.hbm %s1837_s8, 128  ;;  %s2274_s23 = scalar_lea.hbm %s3911_s5, 256 }
 0x265   : > { %p2271_p4 = scmp.ne.s32.totalorder %s1837_s8, %s2270_s12  ;;  %p2275_p9 = scmp.lt.s32.totalorder %s1837_s8, %s3911_s5 }
 0x266   : > { %p2276_p10 = scmp.lt.s32.totalorder %s2274_s23, %s2270_s12 }
 0x267   : > { %p2272_p7 = pnand %p2271_p4, %p2389_p5 }
 0x268   : > { %p2277_p11 = por %p2276_p10, %p2275_p9 }
 0x269   : > { %p2273_p8 = pneg %p2272_p7 }
 0x26b   : > { %p2278_p12 = pnand %p2277_p11, %p2273_p8 }
 0x26d   : > { %2281 = shalt.err (!%p2278_p12)
}
 0x26e   : > { %2198 = dma.vmem_to_hbm [thread:$0]  (%p2389_p5), %s1840_s30, 128, %s1837_s8, %s1825_s9  }
 0x26f PF: > { %p2204_p13 = scmp.ge.s32.totalorder %s2316_s21, 2  ;;  %s1851_s13 = sand.u32 1, %s2304_s18  }
 0x270   : > { %s1852_s26 = scalar_lea.sflag [#allocation3], %s1851_s13 }
 0x271   : > { %p2201_p0 = pnand %p2204_p13, %p2393_p6 }
 0x273   : > { %p2202_p1 = pneg %p2201_p0 }
 0x275   : > { %2299 = dma.done.wait (%p2202_p1), %s1852_s26, 128  }
 0x276   : > { %2301 = vsyncadd (%p2202_p1), %s1852_s26, 4294967168  ;;  %p15_p2 = scmp.ge.s32.totalorder %s2376_s24, 4   ;;  %s4176_s18 = smov %s2308_s19 }
 0x277   : > { %s4177_s19 = smov %s2312_s20  ;;  %s4178_s20 = smov %s2387_s27 }
 0x278   : > { %s4179_s21 = smov %s2376_s24  ;;  %17 = sbr.rel (!%p15_p2) target bundleno = 3 (0x3), region = 75 }
 0x27d   :  { %1857 = vsyncpa [#allocation3], 1 }
 0x27e   :  { %1859 = vsyncpa [#allocation3 + $0x1], 1 }

</bundles_post_ra>
